<compile_context>
chip_gen: v6e
topology: v6e:2x2x1
jax: 0.10.0
libtpu: 0.0.40
codegen_flags: <defaults>
</compile_context>

<pallas_src>
import jax
import jax.numpy as jnp
from jax.experimental import pallas as pl
from jax.experimental.pallas import tpu as pltpu

_LP = 8  # left zero-pad width inside the padded VMEM scratch; a multiple of 8
         # keeps the interior store sublane-tile aligned while providing >=1
         # zero column on each side of the data for the 3x3 "same" conv.


# ----------------------------------------------------------------------------
# Fused forward kernel (one image per grid step)
# ----------------------------------------------------------------------------
def _fused_cnn_kernel(x_ref, w1, b1, w2, b2, w3, b3, w4, b4, wfc, bfc,
                      o_ref, pad1, pad2, pad3, pad4, hp2, hp3):

    def conv3x3_relu(x, pad_ref, w_ref, b_ref):
        # x: (H, W, Cin) f32 value -> returns (H*W, Cout) f32 (post bias+ReLU).
        H, W, Cin = x.shape
        Cout = w_ref.shape[-1]
        # In-kernel zero padding (VMEM scratch, aligned interior store).
        pad_ref[...] = jnp.zeros(pad_ref.shape, pad_ref.dtype)
        pad_ref[1:H + 1, _LP:_LP + W, :] = x
        acc = jnp.zeros((H * W, Cout), jnp.float32)
        # TODO(synk): merge the 9 taps into one deep-K im2col matmul once
        # unaligned lane-dim concatenation lowers reliably; for now 9 bf16 MXU
        # matmuls accumulated in f32.
        for kh in range(3):                                   # static unroll
            for kw in range(3):
                c0 = _LP - 1 + kw
                patch = pad_ref[kh:kh + H, c0:c0 + W, :]
                patch = patch.reshape(H * W, Cin).astype(jnp.bfloat16)
                acc += jnp.dot(patch, w_ref[kh, kw],
                               preferred_element_type=jnp.float32)
        return jnp.maximum(acc + b_ref[...], 0.0)             # bias + ReLU (f32)

    def maxpool2x2(y, hp_ref):
        # y: (H, W, C) f32 value -> (H//2, W//2, C).
        H, W, C = y.shape
        Ho, Wo = H // 2, W // 2
        yr = y.reshape(Ho, 2, W, C)                           # split leading dim
        hp_ref[...] = jnp.maximum(yr[:, 0], yr[:, 1])         # H-pool in regs
        a = hp_ref[:, pl.ds(0, Wo, stride=2), :]              # even W columns
        b = hp_ref[:, pl.ds(1, Wo, stride=2), :]              # odd  W columns
        return jnp.maximum(a, b)

    H, W = x_ref.shape[1], x_ref.shape[2]
    H2, W2 = H // 2, W // 2

    x = x_ref[0]                                              # (H, W, 3) f32
    y = conv3x3_relu(x, pad1, w1, b1).reshape(H, W, 32)
    y = conv3x3_relu(y, pad2, w2, b2).reshape(H, W, 64)
    y = maxpool2x2(y, hp2)                                    # (H/2, W/2, 64)
    y = conv3x3_relu(y, pad3, w3, b3).reshape(H2, W2, 128)
    y = maxpool2x2(y, hp3)                                    # (H/4, W/4, 128)
    y = conv3x3_relu(y, pad4, w4, b4)                         # (H/4*W/4, 128)

    pooled = jnp.mean(y, axis=0, keepdims=True)               # global avg (1,128)
    logits = jnp.dot(pooled, wfc[...], preferred_element_type=jnp.float32)
    o_ref[0] = (logits + bfc[...]).astype(o_ref.dtype)


# ----------------------------------------------------------------------------
# Wrapper: one pallas_call for the whole network
# ----------------------------------------------------------------------------
def simple_cnn_forward(x_nchw, params):
    x = jnp.transpose(x_nchw, (0, 2, 3, 1)).astype(jnp.float32)   # NCHW -> NHWC
    N, H, W, Cin = x.shape
    assert Cin == 3 and H % 4 == 0 and W % 4 == 0
    ncls = params["wfc"].shape[-1]
    H2, W2, H4, W4 = H // 2, W // 2, H // 4, W // 4
    f32, bf16 = jnp.float32, jnp.bfloat16

    # bf16 conv weights: native MXU input dtype, half the VMEM/HBM traffic.
    w1 = params["w1"].astype(bf16)
    w2 = params["w2"].astype(bf16)
    w3 = params["w3"].astype(bf16)
    w4 = params["w4"].astype(bf16)
    b1 = params["b1"].reshape(1, -1).astype(f32)
    b2 = params["b2"].reshape(1, -1).astype(f32)
    b3 = params["b3"].reshape(1, -1).astype(f32)
    b4 = params["b4"].reshape(1, -1).astype(f32)
    wfc = params["wfc"].astype(f32)
    bfc = params["bfc"].reshape(1, -1).astype(f32)

    def _const(shape):
        return pl.BlockSpec(shape, lambda n, _r=len(shape): (0,) * _r)

    in_specs = [
        pl.BlockSpec((1, H, W, 3), lambda n: (n, 0, 0, 0)),       # x (one image)
        _const(w1.shape), _const(b1.shape),
        _const(w2.shape), _const(b2.shape),
        _const(w3.shape), _const(b3.shape),
        _const(w4.shape), _const(b4.shape),
        _const(wfc.shape), _const(bfc.shape),
    ]
    out_specs = pl.BlockSpec((1, 1, ncls), lambda n: (n, 0, 0))

    scratch_shapes = [
        pltpu.VMEM((H + 2, W + 2 * _LP, 3), f32),                 # pad1
        pltpu.VMEM((H + 2, W + 2 * _LP, 32), f32),                # pad2
        pltpu.VMEM((H2 + 2, W2 + 2 * _LP, 64), f32),              # pad3
        pltpu.VMEM((H4 + 2, W4 + 2 * _LP, 128), f32),             # pad4
        pltpu.VMEM((H2, W, 64), f32),                             # hp2 (H-pooled)
        pltpu.VMEM((H4, W2, 128), f32),                           # hp3 (H-pooled)
    ]

    out = pl.pallas_call(
        _fused_cnn_kernel,
        out_shape=jax.ShapeDtypeStruct((N, 1, ncls), f32),
        grid=(N,),
        in_specs=in_specs,
        out_specs=out_specs,
        scratch_shapes=scratch_shapes,
        compiler_params=pltpu.CompilerParams(
            dimension_semantics=("parallel",),        # use both TCs on v7x
            vmem_limit_bytes=32 * 1024 * 1024),
    )(x, w1, b1, w2, b2, w3, b3, w4, b4, wfc, bfc)
    return out.reshape(N, ncls)


# ----------------------------------------------------------------------------
# Parameters (deterministic synthetic init) and pure-JAX reference
# ----------------------------------------------------------------------------
def init_params(key, n_classes=10):
    ks = jax.random.split(key, 6)

    def conv_w(k, cin, cout):
        scale = 1.0 / jnp.sqrt(9.0 * cin)
        return jax.random.normal(k, (3, 3, cin, cout), jnp.float32) * scale

    return {
        "w1": conv_w(ks[0], 3, 32),    "b1": jnp.zeros((32,), jnp.float32),
        "w2": conv_w(ks[1], 32, 64),   "b2": jnp.zeros((64,), jnp.float32),
        "w3": conv_w(ks[2], 64, 128),  "b3": jnp.zeros((128,), jnp.float32),
        "w4": conv_w(ks[3], 128, 128), "b4": jnp.zeros((128,), jnp.float32),
        "wfc": jax.random.normal(ks[4], (128, n_classes), jnp.float32) / jnp.sqrt(128.0),
        "bfc": jax.random.normal(ks[5], (n_classes,), jnp.float32) * 0.01,
    }


def reference_forward(x_nchw, params):
    # Pure-JAX reference (XLA conv) with the same bf16-operand / f32-accumulate
    # numerics as the kernel.
    x = jnp.transpose(x_nchw, (0, 2, 3, 1)).astype(jnp.float32)

    def conv(x, w, b):
        y = jax.lax.conv_general_dilated(
            x.astype(jnp.bfloat16), w.astype(jnp.bfloat16),
            window_strides=(1, 1), padding="SAME",
            dimension_numbers=("NHWC", "HWIO", "NHWC"),
            preferred_element_type=jnp.float32)
        return jax.nn.relu(y + b)

    def pool(x):
        return jax.lax.reduce_window(x, -jnp.inf, jax.lax.max,
                                     (1, 2, 2, 1), (1, 2, 2, 1), "VALID")

    x = conv(x, params["w1"], params["b1"])
    x = conv(x, params["w2"], params["b2"])
    x = pool(x)
    x = conv(x, params["w3"], params["b3"])
    x = pool(x)
    x = conv(x, params["w4"], params["b4"])
    pooled = jnp.mean(x, axis=(1, 2))
    return pooled @ params["wfc"] + params["bfc"]


if __name__ == "__main__":
    key = jax.random.PRNGKey(0)
    k_x, k_p = jax.random.split(key)
    # Small NCHW input consistent with the module (3 input channels, spatial
    # divisible by 4 because of the two MaxPool2d(2) stages).
    x = jax.random.normal(k_x, (2, 3, 16, 16), jnp.float32)
    params = init_params(k_p, n_classes=10)

    out = jax.block_until_ready(jax.jit(simple_cnn_forward)(x, params))
    assert out.shape == (2, 10) and out.dtype == jnp.float32

    ref = jax.block_until_ready(reference_forward(x, params))
    assert jnp.allclose(out, ref, atol=1e-2, rtol=1e-2), (
        f"max abs diff {jnp.max(jnp.abs(out - ref))}")

    print("KERNEL_OK")
</pallas_src>

<mosaic_0001>
module attributes {stable_mosaic.version = 11 : i64} {
  func.func @_fused_cnn_kernel(%arg0: i32, %arg1: memref<1x16x16x3xf32, #tpu.memory_space<vmem>>, %arg2: memref<3x3x3x32xbf16, #tpu.memory_space<vmem>>, %arg3: memref<1x32xf32, #tpu.memory_space<vmem>>, %arg4: memref<3x3x32x64xbf16, #tpu.memory_space<vmem>>, %arg5: memref<1x64xf32, #tpu.memory_space<vmem>>, %arg6: memref<3x3x64x128xbf16, #tpu.memory_space<vmem>>, %arg7: memref<1x128xf32, #tpu.memory_space<vmem>>, %arg8: memref<3x3x128x128xbf16, #tpu.memory_space<vmem>>, %arg9: memref<1x128xf32, #tpu.memory_space<vmem>>, %arg10: memref<128x10xf32, #tpu.memory_space<vmem>>, %arg11: memref<1x10xf32, #tpu.memory_space<vmem>>, %arg12: memref<1x1x10xf32, #tpu.memory_space<vmem>>, %arg13: memref<18x32x3xf32, #tpu.memory_space<vmem>>, %arg14: memref<18x32x32xf32, #tpu.memory_space<vmem>>, %arg15: memref<10x24x64xf32, #tpu.memory_space<vmem>>, %arg16: memref<6x20x128xf32, #tpu.memory_space<vmem>>, %arg17: memref<8x16x64xf32, #tpu.memory_space<vmem>>, %arg18: memref<4x8x128xf32, #tpu.memory_space<vmem>>) attributes {dimension_semantics = [#tpu.dimension_semantics<parallel>], iteration_bounds = array<i64: 2>, scalar_prefetch = 0 : i64, scratch_operands = 6 : i64, tpu.core_type = #tpu.core_type<tc>, window_params = [{transform_indices = @transform_0, window_bounds = array<i64: 1, 16, 16, 3>}, {pipeline_mode = #tpu.pipeline_mode<synchronous>, transform_indices = @transform_1, window_bounds = array<i64: 3, 3, 3, 32>}, {pipeline_mode = #tpu.pipeline_mode<synchronous>, transform_indices = @transform_2, window_bounds = array<i64: 1, 32>}, {pipeline_mode = #tpu.pipeline_mode<synchronous>, transform_indices = @transform_3, window_bounds = array<i64: 3, 3, 32, 64>}, {pipeline_mode = #tpu.pipeline_mode<synchronous>, transform_indices = @transform_4, window_bounds = array<i64: 1, 64>}, {pipeline_mode = #tpu.pipeline_mode<synchronous>, transform_indices = @transform_5, window_bounds = array<i64: 3, 3, 64, 128>}, {pipeline_mode = #tpu.pipeline_mode<synchronous>, transform_indices = @transform_6, window_bounds = array<i64: 1, 128>}, {pipeline_mode = #tpu.pipeline_mode<synchronous>, transform_indices = @transform_7, window_bounds = array<i64: 3, 3, 128, 128>}, {pipeline_mode = #tpu.pipeline_mode<synchronous>, transform_indices = @transform_8, window_bounds = array<i64: 1, 128>}, {pipeline_mode = #tpu.pipeline_mode<synchronous>, transform_indices = @transform_9, window_bounds = array<i64: 128, 10>}, {pipeline_mode = #tpu.pipeline_mode<synchronous>, transform_indices = @transform_10, window_bounds = array<i64: 1, 10>}, {transform_indices = @transform_11, window_bounds = array<i64: 1, 1, 10>}]} {
    %c0 = arith.constant 0 : index
    %c0_0 = arith.constant 0 : index
    %c0_1 = arith.constant 0 : index
    %c0_2 = arith.constant 0 : index
    %0 = vector.load %arg1[%c0, %c0_0, %c0_1, %c0_2] : memref<1x16x16x3xf32, #tpu.memory_space<vmem>>, vector<1x16x16x3xf32>
    %1 = vector.shape_cast %0 : vector<1x16x16x3xf32> to vector<16x16x3xf32>
    %cst = arith.constant 0.000000e+00 : f32
    %2 = vector.broadcast %cst : f32 to vector<18x32x3xf32>
    %c0_3 = arith.constant 0 : index
    %c0_4 = arith.constant 0 : index
    %c0_5 = arith.constant 0 : index
    %3 = vector.load %arg13[%c0_3, %c0_4, %c0_5] : memref<18x32x3xf32, #tpu.memory_space<vmem>>, vector<18x32x3xf32>
    tpu.vector_store %arg13[%c0_3, %c0_4, %c0_5], %2 {strides = array<i32>} : memref<18x32x3xf32, #tpu.memory_space<vmem>>, vector<18x32x3xf32>,
    %c1 = arith.constant 1 : index
    %c8 = arith.constant 8 : index
    %c0_6 = arith.constant 0 : index
    %4 = vector.load %arg13[%c1, %c8, %c0_6] : memref<18x32x3xf32, #tpu.memory_space<vmem>>, vector<16x16x3xf32>
    tpu.vector_store %arg13[%c1, %c8, %c0_6], %1 {strides = array<i32>} : memref<18x32x3xf32, #tpu.memory_space<vmem>>, vector<16x16x3xf32>,
    %cst_7 = arith.constant 0.000000e+00 : f32
    %5 = vector.broadcast %cst_7 : f32 to vector<256x32xf32>
    %c0_8 = arith.constant 0 : index
    %c7 = arith.constant 7 : index
    %c0_9 = arith.constant 0 : index
    %6 = vector.load %arg13[%c0_8, %c7, %c0_9] : memref<18x32x3xf32, #tpu.memory_space<vmem>>, vector<16x16x3xf32>
    %7 = vector.shape_cast %6 : vector<16x16x3xf32> to vector<256x3xf32>
    %8 = arith.truncf %7 : vector<256x3xf32> to vector<256x3xbf16>
    %c0_10 = arith.constant 0 : index
    %c0_11 = arith.constant 0 : index
    %c0_12 = arith.constant 0 : index
    %c0_13 = arith.constant 0 : index
    %9 = vector.load %arg2[%c0_10, %c0_11, %c0_12, %c0_13] : memref<3x3x3x32xbf16, #tpu.memory_space<vmem>>, vector<1x1x3x32xbf16>
    %10 = vector.shape_cast %9 : vector<1x1x3x32xbf16> to vector<3x32xbf16>
    %cst_14 = arith.constant dense<0.000000e+00> : vector<256x32xf32>
    %11 = tpu.matmul %8, %10, %cst_14 {dimension_numbers = #tpu.dot_dimension_numbers<[1], [0], [0], [1], [0, 0, 1, 1], [], []>} : vector<256x3xbf16>, vector<3x32xbf16>, vector<256x32xf32> -> vector<256x32xf32>
    %12 = arith.addf %5, %11 : vector<256x32xf32>
    %c0_15 = arith.constant 0 : index
    %c8_16 = arith.constant 8 : index
    %c0_17 = arith.constant 0 : index
    %13 = vector.load %arg13[%c0_15, %c8_16, %c0_17] : memref<18x32x3xf32, #tpu.memory_space<vmem>>, vector<16x16x3xf32>
    %14 = vector.shape_cast %13 : vector<16x16x3xf32> to vector<256x3xf32>
    %15 = arith.truncf %14 : vector<256x3xf32> to vector<256x3xbf16>
    %c0_18 = arith.constant 0 : index
    %c1_19 = arith.constant 1 : index
    %c0_20 = arith.constant 0 : index
    %c0_21 = arith.constant 0 : index
    %16 = vector.load %arg2[%c0_18, %c1_19, %c0_20, %c0_21] : memref<3x3x3x32xbf16, #tpu.memory_space<vmem>>, vector<1x1x3x32xbf16>
    %17 = vector.shape_cast %16 : vector<1x1x3x32xbf16> to vector<3x32xbf16>
    %cst_22 = arith.constant dense<0.000000e+00> : vector<256x32xf32>
    %18 = tpu.matmul %15, %17, %cst_22 {dimension_numbers = #tpu.dot_dimension_numbers<[1], [0], [0], [1], [0, 0, 1, 1], [], []>} : vector<256x3xbf16>, vector<3x32xbf16>, vector<256x32xf32> -> vector<256x32xf32>
    %19 = arith.addf %12, %18 : vector<256x32xf32>
    %c0_23 = arith.constant 0 : index
    %c9 = arith.constant 9 : index
    %c0_24 = arith.constant 0 : index
    %20 = vector.load %arg13[%c0_23, %c9, %c0_24] : memref<18x32x3xf32, #tpu.memory_space<vmem>>, vector<16x16x3xf32>
    %21 = vector.shape_cast %20 : vector<16x16x3xf32> to vector<256x3xf32>
    %22 = arith.truncf %21 : vector<256x3xf32> to vector<256x3xbf16>
    %c0_25 = arith.constant 0 : index
    %c2 = arith.constant 2 : index
    %c0_26 = arith.constant 0 : index
    %c0_27 = arith.constant 0 : index
    %23 = vector.load %arg2[%c0_25, %c2, %c0_26, %c0_27] : memref<3x3x3x32xbf16, #tpu.memory_space<vmem>>, vector<1x1x3x32xbf16>
    %24 = vector.shape_cast %23 : vector<1x1x3x32xbf16> to vector<3x32xbf16>
    %cst_28 = arith.constant dense<0.000000e+00> : vector<256x32xf32>
    %25 = tpu.matmul %22, %24, %cst_28 {dimension_numbers = #tpu.dot_dimension_numbers<[1], [0], [0], [1], [0, 0, 1, 1], [], []>} : vector<256x3xbf16>, vector<3x32xbf16>, vector<256x32xf32> -> vector<256x32xf32>
    %26 = arith.addf %19, %25 : vector<256x32xf32>
    %c1_29 = arith.constant 1 : index
    %c7_30 = arith.constant 7 : index
    %c0_31 = arith.constant 0 : index
    %27 = vector.load %arg13[%c1_29, %c7_30, %c0_31] : memref<18x32x3xf32, #tpu.memory_space<vmem>>, vector<16x16x3xf32>
    %28 = vector.shape_cast %27 : vector<16x16x3xf32> to vector<256x3xf32>
    %29 = arith.truncf %28 : vector<256x3xf32> to vector<256x3xbf16>
    %c1_32 = arith.constant 1 : index
    %c0_33 = arith.constant 0 : index
    %c0_34 = arith.constant 0 : index
    %c0_35 = arith.constant 0 : index
    %30 = vector.load %arg2[%c1_32, %c0_33, %c0_34, %c0_35] : memref<3x3x3x32xbf16, #tpu.memory_space<vmem>>, vector<1x1x3x32xbf16>
    %31 = vector.shape_cast %30 : vector<1x1x3x32xbf16> to vector<3x32xbf16>
    %cst_36 = arith.constant dense<0.000000e+00> : vector<256x32xf32>
    %32 = tpu.matmul %29, %31, %cst_36 {dimension_numbers = #tpu.dot_dimension_numbers<[1], [0], [0], [1], [0, 0, 1, 1], [], []>} : vector<256x3xbf16>, vector<3x32xbf16>, vector<256x32xf32> -> vector<256x32xf32>
    %33 = arith.addf %26, %32 : vector<256x32xf32>
    %c1_37 = arith.constant 1 : index
    %c8_38 = arith.constant 8 : index
    %c0_39 = arith.constant 0 : index
    %34 = vector.load %arg13[%c1_37, %c8_38, %c0_39] : memref<18x32x3xf32, #tpu.memory_space<vmem>>, vector<16x16x3xf32>
    %35 = vector.shape_cast %34 : vector<16x16x3xf32> to vector<256x3xf32>
    %36 = arith.truncf %35 : vector<256x3xf32> to vector<256x3xbf16>
    %c1_40 = arith.constant 1 : index
    %c1_41 = arith.constant 1 : index
    %c0_42 = arith.constant 0 : index
    %c0_43 = arith.constant 0 : index
    %37 = vector.load %arg2[%c1_40, %c1_41, %c0_42, %c0_43] : memref<3x3x3x32xbf16, #tpu.memory_space<vmem>>, vector<1x1x3x32xbf16>
    %38 = vector.shape_cast %37 : vector<1x1x3x32xbf16> to vector<3x32xbf16>
    %cst_44 = arith.constant dense<0.000000e+00> : vector<256x32xf32>
    %39 = tpu.matmul %36, %38, %cst_44 {dimension_numbers = #tpu.dot_dimension_numbers<[1], [0], [0], [1], [0, 0, 1, 1], [], []>} : vector<256x3xbf16>, vector<3x32xbf16>, vector<256x32xf32> -> vector<256x32xf32>
    %40 = arith.addf %33, %39 : vector<256x32xf32>
    %c1_45 = arith.constant 1 : index
    %c9_46 = arith.constant 9 : index
    %c0_47 = arith.constant 0 : index
    %41 = vector.load %arg13[%c1_45, %c9_46, %c0_47] : memref<18x32x3xf32, #tpu.memory_space<vmem>>, vector<16x16x3xf32>
    %42 = vector.shape_cast %41 : vector<16x16x3xf32> to vector<256x3xf32>
    %43 = arith.truncf %42 : vector<256x3xf32> to vector<256x3xbf16>
    %c1_48 = arith.constant 1 : index
    %c2_49 = arith.constant 2 : index
    %c0_50 = arith.constant 0 : index
    %c0_51 = arith.constant 0 : index
    %44 = vector.load %arg2[%c1_48, %c2_49, %c0_50, %c0_51] : memref<3x3x3x32xbf16, #tpu.memory_space<vmem>>, vector<1x1x3x32xbf16>
    %45 = vector.shape_cast %44 : vector<1x1x3x32xbf16> to vector<3x32xbf16>
    %cst_52 = arith.constant dense<0.000000e+00> : vector<256x32xf32>
    %46 = tpu.matmul %43, %45, %cst_52 {dimension_numbers = #tpu.dot_dimension_numbers<[1], [0], [0], [1], [0, 0, 1, 1], [], []>} : vector<256x3xbf16>, vector<3x32xbf16>, vector<256x32xf32> -> vector<256x32xf32>
    %47 = arith.addf %40, %46 : vector<256x32xf32>
    %c2_53 = arith.constant 2 : index
    %c7_54 = arith.constant 7 : index
    %c0_55 = arith.constant 0 : index
    %48 = vector.load %arg13[%c2_53, %c7_54, %c0_55] : memref<18x32x3xf32, #tpu.memory_space<vmem>>, vector<16x16x3xf32>
    %49 = vector.shape_cast %48 : vector<16x16x3xf32> to vector<256x3xf32>
    %50 = arith.truncf %49 : vector<256x3xf32> to vector<256x3xbf16>
    %c2_56 = arith.constant 2 : index
    %c0_57 = arith.constant 0 : index
    %c0_58 = arith.constant 0 : index
    %c0_59 = arith.constant 0 : index
    %51 = vector.load %arg2[%c2_56, %c0_57, %c0_58, %c0_59] : memref<3x3x3x32xbf16, #tpu.memory_space<vmem>>, vector<1x1x3x32xbf16>
    %52 = vector.shape_cast %51 : vector<1x1x3x32xbf16> to vector<3x32xbf16>
    %cst_60 = arith.constant dense<0.000000e+00> : vector<256x32xf32>
    %53 = tpu.matmul %50, %52, %cst_60 {dimension_numbers = #tpu.dot_dimension_numbers<[1], [0], [0], [1], [0, 0, 1, 1], [], []>} : vector<256x3xbf16>, vector<3x32xbf16>, vector<256x32xf32> -> vector<256x32xf32>
    %54 = arith.addf %47, %53 : vector<256x32xf32>
    %c2_61 = arith.constant 2 : index
    %c8_62 = arith.constant 8 : index
    %c0_63 = arith.constant 0 : index
    %55 = vector.load %arg13[%c2_61, %c8_62, %c0_63] : memref<18x32x3xf32, #tpu.memory_space<vmem>>, vector<16x16x3xf32>
    %56 = vector.shape_cast %55 : vector<16x16x3xf32> to vector<256x3xf32>
    %57 = arith.truncf %56 : vector<256x3xf32> to vector<256x3xbf16>
    %c2_64 = arith.constant 2 : index
    %c1_65 = arith.constant 1 : index
    %c0_66 = arith.constant 0 : index
    %c0_67 = arith.constant 0 : index
    %58 = vector.load %arg2[%c2_64, %c1_65, %c0_66, %c0_67] : memref<3x3x3x32xbf16, #tpu.memory_space<vmem>>, vector<1x1x3x32xbf16>
    %59 = vector.shape_cast %58 : vector<1x1x3x32xbf16> to vector<3x32xbf16>
    %cst_68 = arith.constant dense<0.000000e+00> : vector<256x32xf32>
    %60 = tpu.matmul %57, %59, %cst_68 {dimension_numbers = #tpu.dot_dimension_numbers<[1], [0], [0], [1], [0, 0, 1, 1], [], []>} : vector<256x3xbf16>, vector<3x32xbf16>, vector<256x32xf32> -> vector<256x32xf32>
    %61 = arith.addf %54, %60 : vector<256x32xf32>
    %c2_69 = arith.constant 2 : index
    %c9_70 = arith.constant 9 : index
    %c0_71 = arith.constant 0 : index
    %62 = vector.load %arg13[%c2_69, %c9_70, %c0_71] : memref<18x32x3xf32, #tpu.memory_space<vmem>>, vector<16x16x3xf32>
    %63 = vector.shape_cast %62 : vector<16x16x3xf32> to vector<256x3xf32>
    %64 = arith.truncf %63 : vector<256x3xf32> to vector<256x3xbf16>
    %c2_72 = arith.constant 2 : index
    %c2_73 = arith.constant 2 : index
    %c0_74 = arith.constant 0 : index
    %c0_75 = arith.constant 0 : index
    %65 = vector.load %arg2[%c2_72, %c2_73, %c0_74, %c0_75] : memref<3x3x3x32xbf16, #tpu.memory_space<vmem>>, vector<1x1x3x32xbf16>
    %66 = vector.shape_cast %65 : vector<1x1x3x32xbf16> to vector<3x32xbf16>
    %cst_76 = arith.constant dense<0.000000e+00> : vector<256x32xf32>
    %67 = tpu.matmul %64, %66, %cst_76 {dimension_numbers = #tpu.dot_dimension_numbers<[1], [0], [0], [1], [0, 0, 1, 1], [], []>} : vector<256x3xbf16>, vector<3x32xbf16>, vector<256x32xf32> -> vector<256x32xf32>
    %68 = arith.addf %61, %67 : vector<256x32xf32>
    %c0_77 = arith.constant 0 : index
    %c0_78 = arith.constant 0 : index
    %69 = vector.load %arg3[%c0_77, %c0_78] : memref<1x32xf32, #tpu.memory_space<vmem>>, vector<1x32xf32>
    %70 = vector.broadcast %69 : vector<1x32xf32> to vector<256x32xf32>
    %71 = arith.addf %68, %70 : vector<256x32xf32>
    %cst_79 = arith.constant 0.000000e+00 : f32
    %72 = vector.broadcast %cst_79 : f32 to vector<256x32xf32>
    %73 = arith.maximumf %71, %72 : vector<256x32xf32>
    %74 = vector.shape_cast %73 : vector<256x32xf32> to vector<16x16x32xf32>
    %cst_80 = arith.constant 0.000000e+00 : f32
    %75 = vector.broadcast %cst_80 : f32 to vector<18x32x32xf32>
    %c0_81 = arith.constant 0 : index
    %c0_82 = arith.constant 0 : index
    %c0_83 = arith.constant 0 : index
    %76 = vector.load %arg14[%c0_81, %c0_82, %c0_83] : memref<18x32x32xf32, #tpu.memory_space<vmem>>, vector<18x32x32xf32>
    tpu.vector_store %arg14[%c0_81, %c0_82, %c0_83], %75 {strides = array<i32>} : memref<18x32x32xf32, #tpu.memory_space<vmem>>, vector<18x32x32xf32>,
    %c1_84 = arith.constant 1 : index
    %c8_85 = arith.constant 8 : index
    %c0_86 = arith.constant 0 : index
    %77 = vector.load %arg14[%c1_84, %c8_85, %c0_86] : memref<18x32x32xf32, #tpu.memory_space<vmem>>, vector<16x16x32xf32>
    tpu.vector_store %arg14[%c1_84, %c8_85, %c0_86], %74 {strides = array<i32>} : memref<18x32x32xf32, #tpu.memory_space<vmem>>, vector<16x16x32xf32>,
    %cst_87 = arith.constant 0.000000e+00 : f32
    %78 = vector.broadcast %cst_87 : f32 to vector<256x64xf32>
    %c0_88 = arith.constant 0 : index
    %c7_89 = arith.constant 7 : index
    %c0_90 = arith.constant 0 : index
    %79 = vector.load %arg14[%c0_88, %c7_89, %c0_90] : memref<18x32x32xf32, #tpu.memory_space<vmem>>, vector<16x16x32xf32>
    %80 = vector.shape_cast %79 : vector<16x16x32xf32> to vector<256x32xf32>
    %81 = arith.truncf %80 : vector<256x32xf32> to vector<256x32xbf16>
    %c0_91 = arith.constant 0 : index
    %c0_92 = arith.constant 0 : index
    %c0_93 = arith.constant 0 : index
    %c0_94 = arith.constant 0 : index
    %82 = vector.load %arg4[%c0_91, %c0_92, %c0_93, %c0_94] : memref<3x3x32x64xbf16, #tpu.memory_space<vmem>>, vector<1x1x32x64xbf16>
    %83 = vector.shape_cast %82 : vector<1x1x32x64xbf16> to vector<32x64xbf16>
    %cst_95 = arith.constant dense<0.000000e+00> : vector<256x64xf32>
    %84 = tpu.matmul %81, %83, %cst_95 {dimension_numbers = #tpu.dot_dimension_numbers<[1], [0], [0], [1], [0, 0, 1, 1], [], []>} : vector<256x32xbf16>, vector<32x64xbf16>, vector<256x64xf32> -> vector<256x64xf32>
    %85 = arith.addf %78, %84 : vector<256x64xf32>
    %c0_96 = arith.constant 0 : index
    %c8_97 = arith.constant 8 : index
    %c0_98 = arith.constant 0 : index
    %86 = vector.load %arg14[%c0_96, %c8_97, %c0_98] : memref<18x32x32xf32, #tpu.memory_space<vmem>>, vector<16x16x32xf32>
    %87 = vector.shape_cast %86 : vector<16x16x32xf32> to vector<256x32xf32>
    %88 = arith.truncf %87 : vector<256x32xf32> to vector<256x32xbf16>
    %c0_99 = arith.constant 0 : index
    %c1_100 = arith.constant 1 : index
    %c0_101 = arith.constant 0 : index
    %c0_102 = arith.constant 0 : index
    %89 = vector.load %arg4[%c0_99, %c1_100, %c0_101, %c0_102] : memref<3x3x32x64xbf16, #tpu.memory_space<vmem>>, vector<1x1x32x64xbf16>
    %90 = vector.shape_cast %89 : vector<1x1x32x64xbf16> to vector<32x64xbf16>
    %cst_103 = arith.constant dense<0.000000e+00> : vector<256x64xf32>
    %91 = tpu.matmul %88, %90, %cst_103 {dimension_numbers = #tpu.dot_dimension_numbers<[1], [0], [0], [1], [0, 0, 1, 1], [], []>} : vector<256x32xbf16>, vector<32x64xbf16>, vector<256x64xf32> -> vector<256x64xf32>
    %92 = arith.addf %85, %91 : vector<256x64xf32>
    %c0_104 = arith.constant 0 : index
    %c9_105 = arith.constant 9 : index
    %c0_106 = arith.constant 0 : index
    %93 = vector.load %arg14[%c0_104, %c9_105, %c0_106] : memref<18x32x32xf32, #tpu.memory_space<vmem>>, vector<16x16x32xf32>
    %94 = vector.shape_cast %93 : vector<16x16x32xf32> to vector<256x32xf32>
    %95 = arith.truncf %94 : vector<256x32xf32> to vector<256x32xbf16>
    %c0_107 = arith.constant 0 : index
    %c2_108 = arith.constant 2 : index
    %c0_109 = arith.constant 0 : index
    %c0_110 = arith.constant 0 : index
    %96 = vector.load %arg4[%c0_107, %c2_108, %c0_109, %c0_110] : memref<3x3x32x64xbf16, #tpu.memory_space<vmem>>, vector<1x1x32x64xbf16>
    %97 = vector.shape_cast %96 : vector<1x1x32x64xbf16> to vector<32x64xbf16>
    %cst_111 = arith.constant dense<0.000000e+00> : vector<256x64xf32>
    %98 = tpu.matmul %95, %97, %cst_111 {dimension_numbers = #tpu.dot_dimension_numbers<[1], [0], [0], [1], [0, 0, 1, 1], [], []>} : vector<256x32xbf16>, vector<32x64xbf16>, vector<256x64xf32> -> vector<256x64xf32>
    %99 = arith.addf %92, %98 : vector<256x64xf32>
    %c1_112 = arith.constant 1 : index
    %c7_113 = arith.constant 7 : index
    %c0_114 = arith.constant 0 : index
    %100 = vector.load %arg14[%c1_112, %c7_113, %c0_114] : memref<18x32x32xf32, #tpu.memory_space<vmem>>, vector<16x16x32xf32>
    %101 = vector.shape_cast %100 : vector<16x16x32xf32> to vector<256x32xf32>
    %102 = arith.truncf %101 : vector<256x32xf32> to vector<256x32xbf16>
    %c1_115 = arith.constant 1 : index
    %c0_116 = arith.constant 0 : index
    %c0_117 = arith.constant 0 : index
    %c0_118 = arith.constant 0 : index
    %103 = vector.load %arg4[%c1_115, %c0_116, %c0_117, %c0_118] : memref<3x3x32x64xbf16, #tpu.memory_space<vmem>>, vector<1x1x32x64xbf16>
    %104 = vector.shape_cast %103 : vector<1x1x32x64xbf16> to vector<32x64xbf16>
    %cst_119 = arith.constant dense<0.000000e+00> : vector<256x64xf32>
    %105 = tpu.matmul %102, %104, %cst_119 {dimension_numbers = #tpu.dot_dimension_numbers<[1], [0], [0], [1], [0, 0, 1, 1], [], []>} : vector<256x32xbf16>, vector<32x64xbf16>, vector<256x64xf32> -> vector<256x64xf32>
    %106 = arith.addf %99, %105 : vector<256x64xf32>
    %c1_120 = arith.constant 1 : index
    %c8_121 = arith.constant 8 : index
    %c0_122 = arith.constant 0 : index
    %107 = vector.load %arg14[%c1_120, %c8_121, %c0_122] : memref<18x32x32xf32, #tpu.memory_space<vmem>>, vector<16x16x32xf32>
    %108 = vector.shape_cast %107 : vector<16x16x32xf32> to vector<256x32xf32>
    %109 = arith.truncf %108 : vector<256x32xf32> to vector<256x32xbf16>
    %c1_123 = arith.constant 1 : index
    %c1_124 = arith.constant 1 : index
    %c0_125 = arith.constant 0 : index
    %c0_126 = arith.constant 0 : index
    %110 = vector.load %arg4[%c1_123, %c1_124, %c0_125, %c0_126] : memref<3x3x32x64xbf16, #tpu.memory_space<vmem>>, vector<1x1x32x64xbf16>
    %111 = vector.shape_cast %110 : vector<1x1x32x64xbf16> to vector<32x64xbf16>
    %cst_127 = arith.constant dense<0.000000e+00> : vector<256x64xf32>
    %112 = tpu.matmul %109, %111, %cst_127 {dimension_numbers = #tpu.dot_dimension_numbers<[1], [0], [0], [1], [0, 0, 1, 1], [], []>} : vector<256x32xbf16>, vector<32x64xbf16>, vector<256x64xf32> -> vector<256x64xf32>
    %113 = arith.addf %106, %112 : vector<256x64xf32>
    %c1_128 = arith.constant 1 : index
    %c9_129 = arith.constant 9 : index
    %c0_130 = arith.constant 0 : index
    %114 = vector.load %arg14[%c1_128, %c9_129, %c0_130] : memref<18x32x32xf32, #tpu.memory_space<vmem>>, vector<16x16x32xf32>
    %115 = vector.shape_cast %114 : vector<16x16x32xf32> to vector<256x32xf32>
    %116 = arith.truncf %115 : vector<256x32xf32> to vector<256x32xbf16>
    %c1_131 = arith.constant 1 : index
    %c2_132 = arith.constant 2 : index
    %c0_133 = arith.constant 0 : index
    %c0_134 = arith.constant 0 : index
    %117 = vector.load %arg4[%c1_131, %c2_132, %c0_133, %c0_134] : memref<3x3x32x64xbf16, #tpu.memory_space<vmem>>, vector<1x1x32x64xbf16>
    %118 = vector.shape_cast %117 : vector<1x1x32x64xbf16> to vector<32x64xbf16>
    %cst_135 = arith.constant dense<0.000000e+00> : vector<256x64xf32>
    %119 = tpu.matmul %116, %118, %cst_135 {dimension_numbers = #tpu.dot_dimension_numbers<[1], [0], [0], [1], [0, 0, 1, 1], [], []>} : vector<256x32xbf16>, vector<32x64xbf16>, vector<256x64xf32> -> vector<256x64xf32>
    %120 = arith.addf %113, %119 : vector<256x64xf32>
    %c2_136 = arith.constant 2 : index
    %c7_137 = arith.constant 7 : index
    %c0_138 = arith.constant 0 : index
    %121 = vector.load %arg14[%c2_136, %c7_137, %c0_138] : memref<18x32x32xf32, #tpu.memory_space<vmem>>, vector<16x16x32xf32>
    %122 = vector.shape_cast %121 : vector<16x16x32xf32> to vector<256x32xf32>
    %123 = arith.truncf %122 : vector<256x32xf32> to vector<256x32xbf16>
    %c2_139 = arith.constant 2 : index
    %c0_140 = arith.constant 0 : index
    %c0_141 = arith.constant 0 : index
    %c0_142 = arith.constant 0 : index
    %124 = vector.load %arg4[%c2_139, %c0_140, %c0_141, %c0_142] : memref<3x3x32x64xbf16, #tpu.memory_space<vmem>>, vector<1x1x32x64xbf16>
    %125 = vector.shape_cast %124 : vector<1x1x32x64xbf16> to vector<32x64xbf16>
    %cst_143 = arith.constant dense<0.000000e+00> : vector<256x64xf32>
    %126 = tpu.matmul %123, %125, %cst_143 {dimension_numbers = #tpu.dot_dimension_numbers<[1], [0], [0], [1], [0, 0, 1, 1], [], []>} : vector<256x32xbf16>, vector<32x64xbf16>, vector<256x64xf32> -> vector<256x64xf32>
    %127 = arith.addf %120, %126 : vector<256x64xf32>
    %c2_144 = arith.constant 2 : index
    %c8_145 = arith.constant 8 : index
    %c0_146 = arith.constant 0 : index
    %128 = vector.load %arg14[%c2_144, %c8_145, %c0_146] : memref<18x32x32xf32, #tpu.memory_space<vmem>>, vector<16x16x32xf32>
    %129 = vector.shape_cast %128 : vector<16x16x32xf32> to vector<256x32xf32>
    %130 = arith.truncf %129 : vector<256x32xf32> to vector<256x32xbf16>
    %c2_147 = arith.constant 2 : index
    %c1_148 = arith.constant 1 : index
    %c0_149 = arith.constant 0 : index
    %c0_150 = arith.constant 0 : index
    %131 = vector.load %arg4[%c2_147, %c1_148, %c0_149, %c0_150] : memref<3x3x32x64xbf16, #tpu.memory_space<vmem>>, vector<1x1x32x64xbf16>
    %132 = vector.shape_cast %131 : vector<1x1x32x64xbf16> to vector<32x64xbf16>
    %cst_151 = arith.constant dense<0.000000e+00> : vector<256x64xf32>
    %133 = tpu.matmul %130, %132, %cst_151 {dimension_numbers = #tpu.dot_dimension_numbers<[1], [0], [0], [1], [0, 0, 1, 1], [], []>} : vector<256x32xbf16>, vector<32x64xbf16>, vector<256x64xf32> -> vector<256x64xf32>
    %134 = arith.addf %127, %133 : vector<256x64xf32>
    %c2_152 = arith.constant 2 : index
    %c9_153 = arith.constant 9 : index
    %c0_154 = arith.constant 0 : index
    %135 = vector.load %arg14[%c2_152, %c9_153, %c0_154] : memref<18x32x32xf32, #tpu.memory_space<vmem>>, vector<16x16x32xf32>
    %136 = vector.shape_cast %135 : vector<16x16x32xf32> to vector<256x32xf32>
    %137 = arith.truncf %136 : vector<256x32xf32> to vector<256x32xbf16>
    %c2_155 = arith.constant 2 : index
    %c2_156 = arith.constant 2 : index
    %c0_157 = arith.constant 0 : index
    %c0_158 = arith.constant 0 : index
    %138 = vector.load %arg4[%c2_155, %c2_156, %c0_157, %c0_158] : memref<3x3x32x64xbf16, #tpu.memory_space<vmem>>, vector<1x1x32x64xbf16>
    %139 = vector.shape_cast %138 : vector<1x1x32x64xbf16> to vector<32x64xbf16>
    %cst_159 = arith.constant dense<0.000000e+00> : vector<256x64xf32>
    %140 = tpu.matmul %137, %139, %cst_159 {dimension_numbers = #tpu.dot_dimension_numbers<[1], [0], [0], [1], [0, 0, 1, 1], [], []>} : vector<256x32xbf16>, vector<32x64xbf16>, vector<256x64xf32> -> vector<256x64xf32>
    %141 = arith.addf %134, %140 : vector<256x64xf32>
    %c0_160 = arith.constant 0 : index
    %c0_161 = arith.constant 0 : index
    %142 = vector.load %arg5[%c0_160, %c0_161] : memref<1x64xf32, #tpu.memory_space<vmem>>, vector<1x64xf32>
    %143 = vector.broadcast %142 : vector<1x64xf32> to vector<256x64xf32>
    %144 = arith.addf %141, %143 : vector<256x64xf32>
    %cst_162 = arith.constant 0.000000e+00 : f32
    %145 = vector.broadcast %cst_162 : f32 to vector<256x64xf32>
    %146 = arith.maximumf %144, %145 : vector<256x64xf32>
    %147 = vector.shape_cast %146 : vector<256x64xf32> to vector<16x16x64xf32>
    %148 = vector.shape_cast %147 : vector<16x16x64xf32> to vector<8x2x16x64xf32>
    %149 = vector.extract_strided_slice %148 {offsets = [0, 0, 0, 0], sizes = [8, 1, 16, 64], strides = [1, 1, 1, 1]} : vector<8x2x16x64xf32> to vector<8x1x16x64xf32>
    %150 = vector.shape_cast %149 : vector<8x1x16x64xf32> to vector<8x16x64xf32>
    %151 = vector.extract_strided_slice %148 {offsets = [0, 1, 0, 0], sizes = [8, 1, 16, 64], strides = [1, 1, 1, 1]} : vector<8x2x16x64xf32> to vector<8x1x16x64xf32>
    %152 = vector.shape_cast %151 : vector<8x1x16x64xf32> to vector<8x16x64xf32>
    %153 = arith.maximumf %150, %152 : vector<8x16x64xf32>
    %c0_163 = arith.constant 0 : index
    %c0_164 = arith.constant 0 : index
    %c0_165 = arith.constant 0 : index
    %154 = vector.load %arg17[%c0_163, %c0_164, %c0_165] : memref<8x16x64xf32, #tpu.memory_space<vmem>>, vector<8x16x64xf32>
    tpu.vector_store %arg17[%c0_163, %c0_164, %c0_165], %153 {strides = array<i32>} : memref<8x16x64xf32, #tpu.memory_space<vmem>>, vector<8x16x64xf32>,
    %c0_166 = arith.constant 0 : index
    %c0_167 = arith.constant 0 : index
    %c0_168 = arith.constant 0 : index
    %155 = tpu.strided_load %arg17[%c0_166, %c0_167, %c0_168] {strides = array<i32: 1, 2, 1>} : memref<8x16x64xf32, #tpu.memory_space<vmem>>, vector<8x8x64xf32>
    %c0_169 = arith.constant 0 : index
    %c1_170 = arith.constant 1 : index
    %c0_171 = arith.constant 0 : index
    %156 = tpu.strided_load %arg17[%c0_169, %c1_170, %c0_171] {strides = array<i32: 1, 2, 1>} : memref<8x16x64xf32, #tpu.memory_space<vmem>>, vector<8x8x64xf32>
    %157 = arith.maximumf %155, %156 : vector<8x8x64xf32>
    %cst_172 = arith.constant 0.000000e+00 : f32
    %158 = vector.broadcast %cst_172 : f32 to vector<10x24x64xf32>
    %c0_173 = arith.constant 0 : index
    %c0_174 = arith.constant 0 : index
    %c0_175 = arith.constant 0 : index
    %159 = vector.load %arg15[%c0_173, %c0_174, %c0_175] : memref<10x24x64xf32, #tpu.memory_space<vmem>>, vector<10x24x64xf32>
    tpu.vector_store %arg15[%c0_173, %c0_174, %c0_175], %158 {strides = array<i32>} : memref<10x24x64xf32, #tpu.memory_space<vmem>>, vector<10x24x64xf32>,
    %c1_176 = arith.constant 1 : index
    %c8_177 = arith.constant 8 : index
    %c0_178 = arith.constant 0 : index
    %160 = vector.load %arg15[%c1_176, %c8_177, %c0_178] : memref<10x24x64xf32, #tpu.memory_space<vmem>>, vector<8x8x64xf32>
    tpu.vector_store %arg15[%c1_176, %c8_177, %c0_178], %157 {strides = array<i32>} : memref<10x24x64xf32, #tpu.memory_space<vmem>>, vector<8x8x64xf32>,
    %cst_179 = arith.constant 0.000000e+00 : f32
    %161 = vector.broadcast %cst_179 : f32 to vector<64x128xf32>
    %c0_180 = arith.constant 0 : index
    %c7_181 = arith.constant 7 : index
    %c0_182 = arith.constant 0 : index
    %162 = vector.load %arg15[%c0_180, %c7_181, %c0_182] : memref<10x24x64xf32, #tpu.memory_space<vmem>>, vector<8x8x64xf32>
    %163 = vector.shape_cast %162 : vector<8x8x64xf32> to vector<64x64xf32>
    %164 = arith.truncf %163 : vector<64x64xf32> to vector<64x64xbf16>
    %c0_183 = arith.constant 0 : index
    %c0_184 = arith.constant 0 : index
    %c0_185 = arith.constant 0 : index
    %c0_186 = arith.constant 0 : index
    %165 = vector.load %arg6[%c0_183, %c0_184, %c0_185, %c0_186] : memref<3x3x64x128xbf16, #tpu.memory_space<vmem>>, vector<1x1x64x128xbf16>
    %166 = vector.shape_cast %165 : vector<1x1x64x128xbf16> to vector<64x128xbf16>
    %cst_187 = arith.constant dense<0.000000e+00> : vector<64x128xf32>
    %167 = tpu.matmul %164, %166, %cst_187 {dimension_numbers = #tpu.dot_dimension_numbers<[1], [0], [0], [1], [0, 0, 1, 1], [], []>} : vector<64x64xbf16>, vector<64x128xbf16>, vector<64x128xf32> -> vector<64x128xf32>
    %168 = arith.addf %161, %167 : vector<64x128xf32>
    %c0_188 = arith.constant 0 : index
    %c8_189 = arith.constant 8 : index
    %c0_190 = arith.constant 0 : index
    %169 = vector.load %arg15[%c0_188, %c8_189, %c0_190] : memref<10x24x64xf32, #tpu.memory_space<vmem>>, vector<8x8x64xf32>
    %170 = vector.shape_cast %169 : vector<8x8x64xf32> to vector<64x64xf32>
    %171 = arith.truncf %170 : vector<64x64xf32> to vector<64x64xbf16>
    %c0_191 = arith.constant 0 : index
    %c1_192 = arith.constant 1 : index
    %c0_193 = arith.constant 0 : index
    %c0_194 = arith.constant 0 : index
    %172 = vector.load %arg6[%c0_191, %c1_192, %c0_193, %c0_194] : memref<3x3x64x128xbf16, #tpu.memory_space<vmem>>, vector<1x1x64x128xbf16>
    %173 = vector.shape_cast %172 : vector<1x1x64x128xbf16> to vector<64x128xbf16>
    %cst_195 = arith.constant dense<0.000000e+00> : vector<64x128xf32>
    %174 = tpu.matmul %171, %173, %cst_195 {dimension_numbers = #tpu.dot_dimension_numbers<[1], [0], [0], [1], [0, 0, 1, 1], [], []>} : vector<64x64xbf16>, vector<64x128xbf16>, vector<64x128xf32> -> vector<64x128xf32>
    %175 = arith.addf %168, %174 : vector<64x128xf32>
    %c0_196 = arith.constant 0 : index
    %c9_197 = arith.constant 9 : index
    %c0_198 = arith.constant 0 : index
    %176 = vector.load %arg15[%c0_196, %c9_197, %c0_198] : memref<10x24x64xf32, #tpu.memory_space<vmem>>, vector<8x8x64xf32>
    %177 = vector.shape_cast %176 : vector<8x8x64xf32> to vector<64x64xf32>
    %178 = arith.truncf %177 : vector<64x64xf32> to vector<64x64xbf16>
    %c0_199 = arith.constant 0 : index
    %c2_200 = arith.constant 2 : index
    %c0_201 = arith.constant 0 : index
    %c0_202 = arith.constant 0 : index
    %179 = vector.load %arg6[%c0_199, %c2_200, %c0_201, %c0_202] : memref<3x3x64x128xbf16, #tpu.memory_space<vmem>>, vector<1x1x64x128xbf16>
    %180 = vector.shape_cast %179 : vector<1x1x64x128xbf16> to vector<64x128xbf16>
    %cst_203 = arith.constant dense<0.000000e+00> : vector<64x128xf32>
    %181 = tpu.matmul %178, %180, %cst_203 {dimension_numbers = #tpu.dot_dimension_numbers<[1], [0], [0], [1], [0, 0, 1, 1], [], []>} : vector<64x64xbf16>, vector<64x128xbf16>, vector<64x128xf32> -> vector<64x128xf32>
    %182 = arith.addf %175, %181 : vector<64x128xf32>
    %c1_204 = arith.constant 1 : index
    %c7_205 = arith.constant 7 : index
    %c0_206 = arith.constant 0 : index
    %183 = vector.load %arg15[%c1_204, %c7_205, %c0_206] : memref<10x24x64xf32, #tpu.memory_space<vmem>>, vector<8x8x64xf32>
    %184 = vector.shape_cast %183 : vector<8x8x64xf32> to vector<64x64xf32>
    %185 = arith.truncf %184 : vector<64x64xf32> to vector<64x64xbf16>
    %c1_207 = arith.constant 1 : index
    %c0_208 = arith.constant 0 : index
    %c0_209 = arith.constant 0 : index
    %c0_210 = arith.constant 0 : index
    %186 = vector.load %arg6[%c1_207, %c0_208, %c0_209, %c0_210] : memref<3x3x64x128xbf16, #tpu.memory_space<vmem>>, vector<1x1x64x128xbf16>
    %187 = vector.shape_cast %186 : vector<1x1x64x128xbf16> to vector<64x128xbf16>
    %cst_211 = arith.constant dense<0.000000e+00> : vector<64x128xf32>
    %188 = tpu.matmul %185, %187, %cst_211 {dimension_numbers = #tpu.dot_dimension_numbers<[1], [0], [0], [1], [0, 0, 1, 1], [], []>} : vector<64x64xbf16>, vector<64x128xbf16>, vector<64x128xf32> -> vector<64x128xf32>
    %189 = arith.addf %182, %188 : vector<64x128xf32>
    %c1_212 = arith.constant 1 : index
    %c8_213 = arith.constant 8 : index
    %c0_214 = arith.constant 0 : index
    %190 = vector.load %arg15[%c1_212, %c8_213, %c0_214] : memref<10x24x64xf32, #tpu.memory_space<vmem>>, vector<8x8x64xf32>
    %191 = vector.shape_cast %190 : vector<8x8x64xf32> to vector<64x64xf32>
    %192 = arith.truncf %191 : vector<64x64xf32> to vector<64x64xbf16>
    %c1_215 = arith.constant 1 : index
    %c1_216 = arith.constant 1 : index
    %c0_217 = arith.constant 0 : index
    %c0_218 = arith.constant 0 : index
    %193 = vector.load %arg6[%c1_215, %c1_216, %c0_217, %c0_218] : memref<3x3x64x128xbf16, #tpu.memory_space<vmem>>, vector<1x1x64x128xbf16>
    %194 = vector.shape_cast %193 : vector<1x1x64x128xbf16> to vector<64x128xbf16>
    %cst_219 = arith.constant dense<0.000000e+00> : vector<64x128xf32>
    %195 = tpu.matmul %192, %194, %cst_219 {dimension_numbers = #tpu.dot_dimension_numbers<[1], [0], [0], [1], [0, 0, 1, 1], [], []>} : vector<64x64xbf16>, vector<64x128xbf16>, vector<64x128xf32> -> vector<64x128xf32>
    %196 = arith.addf %189, %195 : vector<64x128xf32>
    %c1_220 = arith.constant 1 : index
    %c9_221 = arith.constant 9 : index
    %c0_222 = arith.constant 0 : index
    %197 = vector.load %arg15[%c1_220, %c9_221, %c0_222] : memref<10x24x64xf32, #tpu.memory_space<vmem>>, vector<8x8x64xf32>
    %198 = vector.shape_cast %197 : vector<8x8x64xf32> to vector<64x64xf32>
    %199 = arith.truncf %198 : vector<64x64xf32> to vector<64x64xbf16>
    %c1_223 = arith.constant 1 : index
    %c2_224 = arith.constant 2 : index
    %c0_225 = arith.constant 0 : index
    %c0_226 = arith.constant 0 : index
    %200 = vector.load %arg6[%c1_223, %c2_224, %c0_225, %c0_226] : memref<3x3x64x128xbf16, #tpu.memory_space<vmem>>, vector<1x1x64x128xbf16>
    %201 = vector.shape_cast %200 : vector<1x1x64x128xbf16> to vector<64x128xbf16>
    %cst_227 = arith.constant dense<0.000000e+00> : vector<64x128xf32>
    %202 = tpu.matmul %199, %201, %cst_227 {dimension_numbers = #tpu.dot_dimension_numbers<[1], [0], [0], [1], [0, 0, 1, 1], [], []>} : vector<64x64xbf16>, vector<64x128xbf16>, vector<64x128xf32> -> vector<64x128xf32>
    %203 = arith.addf %196, %202 : vector<64x128xf32>
    %c2_228 = arith.constant 2 : index
    %c7_229 = arith.constant 7 : index
    %c0_230 = arith.constant 0 : index
    %204 = vector.load %arg15[%c2_228, %c7_229, %c0_230] : memref<10x24x64xf32, #tpu.memory_space<vmem>>, vector<8x8x64xf32>
    %205 = vector.shape_cast %204 : vector<8x8x64xf32> to vector<64x64xf32>
    %206 = arith.truncf %205 : vector<64x64xf32> to vector<64x64xbf16>
    %c2_231 = arith.constant 2 : index
    %c0_232 = arith.constant 0 : index
    %c0_233 = arith.constant 0 : index
    %c0_234 = arith.constant 0 : index
    %207 = vector.load %arg6[%c2_231, %c0_232, %c0_233, %c0_234] : memref<3x3x64x128xbf16, #tpu.memory_space<vmem>>, vector<1x1x64x128xbf16>
    %208 = vector.shape_cast %207 : vector<1x1x64x128xbf16> to vector<64x128xbf16>
    %cst_235 = arith.constant dense<0.000000e+00> : vector<64x128xf32>
    %209 = tpu.matmul %206, %208, %cst_235 {dimension_numbers = #tpu.dot_dimension_numbers<[1], [0], [0], [1], [0, 0, 1, 1], [], []>} : vector<64x64xbf16>, vector<64x128xbf16>, vector<64x128xf32> -> vector<64x128xf32>
    %210 = arith.addf %203, %209 : vector<64x128xf32>
    %c2_236 = arith.constant 2 : index
    %c8_237 = arith.constant 8 : index
    %c0_238 = arith.constant 0 : index
    %211 = vector.load %arg15[%c2_236, %c8_237, %c0_238] : memref<10x24x64xf32, #tpu.memory_space<vmem>>, vector<8x8x64xf32>
    %212 = vector.shape_cast %211 : vector<8x8x64xf32> to vector<64x64xf32>
    %213 = arith.truncf %212 : vector<64x64xf32> to vector<64x64xbf16>
    %c2_239 = arith.constant 2 : index
    %c1_240 = arith.constant 1 : index
    %c0_241 = arith.constant 0 : index
    %c0_242 = arith.constant 0 : index
    %214 = vector.load %arg6[%c2_239, %c1_240, %c0_241, %c0_242] : memref<3x3x64x128xbf16, #tpu.memory_space<vmem>>, vector<1x1x64x128xbf16>
    %215 = vector.shape_cast %214 : vector<1x1x64x128xbf16> to vector<64x128xbf16>
    %cst_243 = arith.constant dense<0.000000e+00> : vector<64x128xf32>
    %216 = tpu.matmul %213, %215, %cst_243 {dimension_numbers = #tpu.dot_dimension_numbers<[1], [0], [0], [1], [0, 0, 1, 1], [], []>} : vector<64x64xbf16>, vector<64x128xbf16>, vector<64x128xf32> -> vector<64x128xf32>
    %217 = arith.addf %210, %216 : vector<64x128xf32>
    %c2_244 = arith.constant 2 : index
    %c9_245 = arith.constant 9 : index
    %c0_246 = arith.constant 0 : index
    %218 = vector.load %arg15[%c2_244, %c9_245, %c0_246] : memref<10x24x64xf32, #tpu.memory_space<vmem>>, vector<8x8x64xf32>
    %219 = vector.shape_cast %218 : vector<8x8x64xf32> to vector<64x64xf32>
    %220 = arith.truncf %219 : vector<64x64xf32> to vector<64x64xbf16>
    %c2_247 = arith.constant 2 : index
    %c2_248 = arith.constant 2 : index
    %c0_249 = arith.constant 0 : index
    %c0_250 = arith.constant 0 : index
    %221 = vector.load %arg6[%c2_247, %c2_248, %c0_249, %c0_250] : memref<3x3x64x128xbf16, #tpu.memory_space<vmem>>, vector<1x1x64x128xbf16>
    %222 = vector.shape_cast %221 : vector<1x1x64x128xbf16> to vector<64x128xbf16>
    %cst_251 = arith.constant dense<0.000000e+00> : vector<64x128xf32>
    %223 = tpu.matmul %220, %222, %cst_251 {dimension_numbers = #tpu.dot_dimension_numbers<[1], [0], [0], [1], [0, 0, 1, 1], [], []>} : vector<64x64xbf16>, vector<64x128xbf16>, vector<64x128xf32> -> vector<64x128xf32>
    %224 = arith.addf %217, %223 : vector<64x128xf32>
    %c0_252 = arith.constant 0 : index
    %c0_253 = arith.constant 0 : index
    %225 = vector.load %arg7[%c0_252, %c0_253] : memref<1x128xf32, #tpu.memory_space<vmem>>, vector<1x128xf32>
    %226 = vector.broadcast %225 : vector<1x128xf32> to vector<64x128xf32>
    %227 = arith.addf %224, %226 : vector<64x128xf32>
    %cst_254 = arith.constant 0.000000e+00 : f32
    %228 = vector.broadcast %cst_254 : f32 to vector<64x128xf32>
    %229 = arith.maximumf %227, %228 : vector<64x128xf32>
    %230 = vector.shape_cast %229 : vector<64x128xf32> to vector<8x8x128xf32>
    %231 = vector.shape_cast %230 : vector<8x8x128xf32> to vector<4x2x8x128xf32>
    %232 = vector.extract_strided_slice %231 {offsets = [0, 0, 0, 0], sizes = [4, 1, 8, 128], strides = [1, 1, 1, 1]} : vector<4x2x8x128xf32> to vector<4x1x8x128xf32>
    %233 = vector.shape_cast %232 : vector<4x1x8x128xf32> to vector<4x8x128xf32>
    %234 = vector.extract_strided_slice %231 {offsets = [0, 1, 0, 0], sizes = [4, 1, 8, 128], strides = [1, 1, 1, 1]} : vector<4x2x8x128xf32> to vector<4x1x8x128xf32>
    %235 = vector.shape_cast %234 : vector<4x1x8x128xf32> to vector<4x8x128xf32>
    %236 = arith.maximumf %233, %235 : vector<4x8x128xf32>
    %c0_255 = arith.constant 0 : index
    %c0_256 = arith.constant 0 : index
    %c0_257 = arith.constant 0 : index
    %237 = vector.load %arg18[%c0_255, %c0_256, %c0_257] : memref<4x8x128xf32, #tpu.memory_space<vmem>>, vector<4x8x128xf32>
    tpu.vector_store %arg18[%c0_255, %c0_256, %c0_257], %236 {strides = array<i32>} : memref<4x8x128xf32, #tpu.memory_space<vmem>>, vector<4x8x128xf32>,
    %c0_258 = arith.constant 0 : index
    %c0_259 = arith.constant 0 : index
    %c0_260 = arith.constant 0 : index
    %238 = tpu.strided_load %arg18[%c0_258, %c0_259, %c0_260] {strides = array<i32: 1, 2, 1>} : memref<4x8x128xf32, #tpu.memory_space<vmem>>, vector<4x4x128xf32>
    %c0_261 = arith.constant 0 : index
    %c1_262 = arith.constant 1 : index
    %c0_263 = arith.constant 0 : index
    %239 = tpu.strided_load %arg18[%c0_261, %c1_262, %c0_263] {strides = array<i32: 1, 2, 1>} : memref<4x8x128xf32, #tpu.memory_space<vmem>>, vector<4x4x128xf32>
    %240 = arith.maximumf %238, %239 : vector<4x4x128xf32>
    %cst_264 = arith.constant 0.000000e+00 : f32
    %241 = vector.broadcast %cst_264 : f32 to vector<6x20x128xf32>
    %c0_265 = arith.constant 0 : index
    %c0_266 = arith.constant 0 : index
    %c0_267 = arith.constant 0 : index
    %242 = vector.load %arg16[%c0_265, %c0_266, %c0_267] : memref<6x20x128xf32, #tpu.memory_space<vmem>>, vector<6x20x128xf32>
    tpu.vector_store %arg16[%c0_265, %c0_266, %c0_267], %241 {strides = array<i32>} : memref<6x20x128xf32, #tpu.memory_space<vmem>>, vector<6x20x128xf32>,
    %c1_268 = arith.constant 1 : index
    %c8_269 = arith.constant 8 : index
    %c0_270 = arith.constant 0 : index
    %243 = vector.load %arg16[%c1_268, %c8_269, %c0_270] : memref<6x20x128xf32, #tpu.memory_space<vmem>>, vector<4x4x128xf32>
    tpu.vector_store %arg16[%c1_268, %c8_269, %c0_270], %240 {strides = array<i32>} : memref<6x20x128xf32, #tpu.memory_space<vmem>>, vector<4x4x128xf32>,
    %cst_271 = arith.constant 0.000000e+00 : f32
    %244 = vector.broadcast %cst_271 : f32 to vector<16x128xf32>
    %c0_272 = arith.constant 0 : index
    %c7_273 = arith.constant 7 : index
    %c0_274 = arith.constant 0 : index
    %245 = vector.load %arg16[%c0_272, %c7_273, %c0_274] : memref<6x20x128xf32, #tpu.memory_space<vmem>>, vector<4x4x128xf32>
    %246 = vector.shape_cast %245 : vector<4x4x128xf32> to vector<16x128xf32>
    %247 = arith.truncf %246 : vector<16x128xf32> to vector<16x128xbf16>
    %c0_275 = arith.constant 0 : index
    %c0_276 = arith.constant 0 : index
    %c0_277 = arith.constant 0 : index
    %c0_278 = arith.constant 0 : index
    %248 = vector.load %arg8[%c0_275, %c0_276, %c0_277, %c0_278] : memref<3x3x128x128xbf16, #tpu.memory_space<vmem>>, vector<1x1x128x128xbf16>
    %249 = vector.shape_cast %248 : vector<1x1x128x128xbf16> to vector<128x128xbf16>
    %cst_279 = arith.constant dense<0.000000e+00> : vector<16x128xf32>
    %250 = tpu.matmul %247, %249, %cst_279 {dimension_numbers = #tpu.dot_dimension_numbers<[1], [0], [0], [1], [0, 0, 1, 1], [], []>} : vector<16x128xbf16>, vector<128x128xbf16>, vector<16x128xf32> -> vector<16x128xf32>
    %251 = arith.addf %244, %250 : vector<16x128xf32>
    %c0_280 = arith.constant 0 : index
    %c8_281 = arith.constant 8 : index
    %c0_282 = arith.constant 0 : index
    %252 = vector.load %arg16[%c0_280, %c8_281, %c0_282] : memref<6x20x128xf32, #tpu.memory_space<vmem>>, vector<4x4x128xf32>
    %253 = vector.shape_cast %252 : vector<4x4x128xf32> to vector<16x128xf32>
    %254 = arith.truncf %253 : vector<16x128xf32> to vector<16x128xbf16>
    %c0_283 = arith.constant 0 : index
    %c1_284 = arith.constant 1 : index
    %c0_285 = arith.constant 0 : index
    %c0_286 = arith.constant 0 : index
    %255 = vector.load %arg8[%c0_283, %c1_284, %c0_285, %c0_286] : memref<3x3x128x128xbf16, #tpu.memory_space<vmem>>, vector<1x1x128x128xbf16>
    %256 = vector.shape_cast %255 : vector<1x1x128x128xbf16> to vector<128x128xbf16>
    %cst_287 = arith.constant dense<0.000000e+00> : vector<16x128xf32>
    %257 = tpu.matmul %254, %256, %cst_287 {dimension_numbers = #tpu.dot_dimension_numbers<[1], [0], [0], [1], [0, 0, 1, 1], [], []>} : vector<16x128xbf16>, vector<128x128xbf16>, vector<16x128xf32> -> vector<16x128xf32>
    %258 = arith.addf %251, %257 : vector<16x128xf32>
    %c0_288 = arith.constant 0 : index
    %c9_289 = arith.constant 9 : index
    %c0_290 = arith.constant 0 : index
    %259 = vector.load %arg16[%c0_288, %c9_289, %c0_290] : memref<6x20x128xf32, #tpu.memory_space<vmem>>, vector<4x4x128xf32>
    %260 = vector.shape_cast %259 : vector<4x4x128xf32> to vector<16x128xf32>
    %261 = arith.truncf %260 : vector<16x128xf32> to vector<16x128xbf16>
    %c0_291 = arith.constant 0 : index
    %c2_292 = arith.constant 2 : index
    %c0_293 = arith.constant 0 : index
    %c0_294 = arith.constant 0 : index
    %262 = vector.load %arg8[%c0_291, %c2_292, %c0_293, %c0_294] : memref<3x3x128x128xbf16, #tpu.memory_space<vmem>>, vector<1x1x128x128xbf16>
    %263 = vector.shape_cast %262 : vector<1x1x128x128xbf16> to vector<128x128xbf16>
    %cst_295 = arith.constant dense<0.000000e+00> : vector<16x128xf32>
    %264 = tpu.matmul %261, %263, %cst_295 {dimension_numbers = #tpu.dot_dimension_numbers<[1], [0], [0], [1], [0, 0, 1, 1], [], []>} : vector<16x128xbf16>, vector<128x128xbf16>, vector<16x128xf32> -> vector<16x128xf32>
    %265 = arith.addf %258, %264 : vector<16x128xf32>
    %c1_296 = arith.constant 1 : index
    %c7_297 = arith.constant 7 : index
    %c0_298 = arith.constant 0 : index
    %266 = vector.load %arg16[%c1_296, %c7_297, %c0_298] : memref<6x20x128xf32, #tpu.memory_space<vmem>>, vector<4x4x128xf32>
    %267 = vector.shape_cast %266 : vector<4x4x128xf32> to vector<16x128xf32>
    %268 = arith.truncf %267 : vector<16x128xf32> to vector<16x128xbf16>
    %c1_299 = arith.constant 1 : index
    %c0_300 = arith.constant 0 : index
    %c0_301 = arith.constant 0 : index
    %c0_302 = arith.constant 0 : index
    %269 = vector.load %arg8[%c1_299, %c0_300, %c0_301, %c0_302] : memref<3x3x128x128xbf16, #tpu.memory_space<vmem>>, vector<1x1x128x128xbf16>
    %270 = vector.shape_cast %269 : vector<1x1x128x128xbf16> to vector<128x128xbf16>
    %cst_303 = arith.constant dense<0.000000e+00> : vector<16x128xf32>
    %271 = tpu.matmul %268, %270, %cst_303 {dimension_numbers = #tpu.dot_dimension_numbers<[1], [0], [0], [1], [0, 0, 1, 1], [], []>} : vector<16x128xbf16>, vector<128x128xbf16>, vector<16x128xf32> -> vector<16x128xf32>
    %272 = arith.addf %265, %271 : vector<16x128xf32>
    %c1_304 = arith.constant 1 : index
    %c8_305 = arith.constant 8 : index
    %c0_306 = arith.constant 0 : index
    %273 = vector.load %arg16[%c1_304, %c8_305, %c0_306] : memref<6x20x128xf32, #tpu.memory_space<vmem>>, vector<4x4x128xf32>
    %274 = vector.shape_cast %273 : vector<4x4x128xf32> to vector<16x128xf32>
    %275 = arith.truncf %274 : vector<16x128xf32> to vector<16x128xbf16>
    %c1_307 = arith.constant 1 : index
    %c1_308 = arith.constant 1 : index
    %c0_309 = arith.constant 0 : index
    %c0_310 = arith.constant 0 : index
    %276 = vector.load %arg8[%c1_307, %c1_308, %c0_309, %c0_310] : memref<3x3x128x128xbf16, #tpu.memory_space<vmem>>, vector<1x1x128x128xbf16>
    %277 = vector.shape_cast %276 : vector<1x1x128x128xbf16> to vector<128x128xbf16>
    %cst_311 = arith.constant dense<0.000000e+00> : vector<16x128xf32>
    %278 = tpu.matmul %275, %277, %cst_311 {dimension_numbers = #tpu.dot_dimension_numbers<[1], [0], [0], [1], [0, 0, 1, 1], [], []>} : vector<16x128xbf16>, vector<128x128xbf16>, vector<16x128xf32> -> vector<16x128xf32>
    %279 = arith.addf %272, %278 : vector<16x128xf32>
    %c1_312 = arith.constant 1 : index
    %c9_313 = arith.constant 9 : index
    %c0_314 = arith.constant 0 : index
    %280 = vector.load %arg16[%c1_312, %c9_313, %c0_314] : memref<6x20x128xf32, #tpu.memory_space<vmem>>, vector<4x4x128xf32>
    %281 = vector.shape_cast %280 : vector<4x4x128xf32> to vector<16x128xf32>
    %282 = arith.truncf %281 : vector<16x128xf32> to vector<16x128xbf16>
    %c1_315 = arith.constant 1 : index
    %c2_316 = arith.constant 2 : index
    %c0_317 = arith.constant 0 : index
    %c0_318 = arith.constant 0 : index
    %283 = vector.load %arg8[%c1_315, %c2_316, %c0_317, %c0_318] : memref<3x3x128x128xbf16, #tpu.memory_space<vmem>>, vector<1x1x128x128xbf16>
    %284 = vector.shape_cast %283 : vector<1x1x128x128xbf16> to vector<128x128xbf16>
    %cst_319 = arith.constant dense<0.000000e+00> : vector<16x128xf32>
    %285 = tpu.matmul %282, %284, %cst_319 {dimension_numbers = #tpu.dot_dimension_numbers<[1], [0], [0], [1], [0, 0, 1, 1], [], []>} : vector<16x128xbf16>, vector<128x128xbf16>, vector<16x128xf32> -> vector<16x128xf32>
    %286 = arith.addf %279, %285 : vector<16x128xf32>
    %c2_320 = arith.constant 2 : index
    %c7_321 = arith.constant 7 : index
    %c0_322 = arith.constant 0 : index
    %287 = vector.load %arg16[%c2_320, %c7_321, %c0_322] : memref<6x20x128xf32, #tpu.memory_space<vmem>>, vector<4x4x128xf32>
    %288 = vector.shape_cast %287 : vector<4x4x128xf32> to vector<16x128xf32>
    %289 = arith.truncf %288 : vector<16x128xf32> to vector<16x128xbf16>
    %c2_323 = arith.constant 2 : index
    %c0_324 = arith.constant 0 : index
    %c0_325 = arith.constant 0 : index
    %c0_326 = arith.constant 0 : index
    %290 = vector.load %arg8[%c2_323, %c0_324, %c0_325, %c0_326] : memref<3x3x128x128xbf16, #tpu.memory_space<vmem>>, vector<1x1x128x128xbf16>
    %291 = vector.shape_cast %290 : vector<1x1x128x128xbf16> to vector<128x128xbf16>
    %cst_327 = arith.constant dense<0.000000e+00> : vector<16x128xf32>
    %292 = tpu.matmul %289, %291, %cst_327 {dimension_numbers = #tpu.dot_dimension_numbers<[1], [0], [0], [1], [0, 0, 1, 1], [], []>} : vector<16x128xbf16>, vector<128x128xbf16>, vector<16x128xf32> -> vector<16x128xf32>
    %293 = arith.addf %286, %292 : vector<16x128xf32>
    %c2_328 = arith.constant 2 : index
    %c8_329 = arith.constant 8 : index
    %c0_330 = arith.constant 0 : index
    %294 = vector.load %arg16[%c2_328, %c8_329, %c0_330] : memref<6x20x128xf32, #tpu.memory_space<vmem>>, vector<4x4x128xf32>
    %295 = vector.shape_cast %294 : vector<4x4x128xf32> to vector<16x128xf32>
    %296 = arith.truncf %295 : vector<16x128xf32> to vector<16x128xbf16>
    %c2_331 = arith.constant 2 : index
    %c1_332 = arith.constant 1 : index
    %c0_333 = arith.constant 0 : index
    %c0_334 = arith.constant 0 : index
    %297 = vector.load %arg8[%c2_331, %c1_332, %c0_333, %c0_334] : memref<3x3x128x128xbf16, #tpu.memory_space<vmem>>, vector<1x1x128x128xbf16>
    %298 = vector.shape_cast %297 : vector<1x1x128x128xbf16> to vector<128x128xbf16>
    %cst_335 = arith.constant dense<0.000000e+00> : vector<16x128xf32>
    %299 = tpu.matmul %296, %298, %cst_335 {dimension_numbers = #tpu.dot_dimension_numbers<[1], [0], [0], [1], [0, 0, 1, 1], [], []>} : vector<16x128xbf16>, vector<128x128xbf16>, vector<16x128xf32> -> vector<16x128xf32>
    %300 = arith.addf %293, %299 : vector<16x128xf32>
    %c2_336 = arith.constant 2 : index
    %c9_337 = arith.constant 9 : index
    %c0_338 = arith.constant 0 : index
    %301 = vector.load %arg16[%c2_336, %c9_337, %c0_338] : memref<6x20x128xf32, #tpu.memory_space<vmem>>, vector<4x4x128xf32>
    %302 = vector.shape_cast %301 : vector<4x4x128xf32> to vector<16x128xf32>
    %303 = arith.truncf %302 : vector<16x128xf32> to vector<16x128xbf16>
    %c2_339 = arith.constant 2 : index
    %c2_340 = arith.constant 2 : index
    %c0_341 = arith.constant 0 : index
    %c0_342 = arith.constant 0 : index
    %304 = vector.load %arg8[%c2_339, %c2_340, %c0_341, %c0_342] : memref<3x3x128x128xbf16, #tpu.memory_space<vmem>>, vector<1x1x128x128xbf16>
    %305 = vector.shape_cast %304 : vector<1x1x128x128xbf16> to vector<128x128xbf16>
    %cst_343 = arith.constant dense<0.000000e+00> : vector<16x128xf32>
    %306 = tpu.matmul %303, %305, %cst_343 {dimension_numbers = #tpu.dot_dimension_numbers<[1], [0], [0], [1], [0, 0, 1, 1], [], []>} : vector<16x128xbf16>, vector<128x128xbf16>, vector<16x128xf32> -> vector<16x128xf32>
    %307 = arith.addf %300, %306 : vector<16x128xf32>
    %c0_344 = arith.constant 0 : index
    %c0_345 = arith.constant 0 : index
    %308 = vector.load %arg9[%c0_344, %c0_345] : memref<1x128xf32, #tpu.memory_space<vmem>>, vector<1x128xf32>
    %309 = vector.broadcast %308 : vector<1x128xf32> to vector<16x128xf32>
    %310 = arith.addf %307, %309 : vector<16x128xf32>
    %cst_346 = arith.constant 0.000000e+00 : f32
    %311 = vector.broadcast %cst_346 : f32 to vector<16x128xf32>
    %312 = arith.maximumf %310, %311 : vector<16x128xf32>
    %cst_347 = arith.constant dense<0.000000e+00> : vector<128xf32>
    %313 = vector.multi_reduction <add>, %312, %cst_347 [0] : vector<16x128xf32> to vector<128xf32>
    %314 = vector.shape_cast %313 : vector<128xf32> to vector<1x128xf32>
    %cst_348 = arith.constant 1.600000e+01 : f32
    %315 = vector.broadcast %cst_348 : f32 to vector<1x128xf32>
    %316 = arith.divf %314, %315 : vector<1x128xf32>
    %c0_349 = arith.constant 0 : index
    %c0_350 = arith.constant 0 : index
    %317 = vector.load %arg10[%c0_349, %c0_350] : memref<128x10xf32, #tpu.memory_space<vmem>>, vector<128x10xf32>
    %cst_351 = arith.constant dense<0.000000e+00> : vector<1x10xf32>
    %318 = tpu.matmul %316, %317, %cst_351 {dimension_numbers = #tpu.dot_dimension_numbers<[1], [0], [0], [1], [0, 0, 1, 1], [], []>} : vector<1x128xf32>, vector<128x10xf32>, vector<1x10xf32> -> vector<1x10xf32>
    %c0_352 = arith.constant 0 : index
    %c0_353 = arith.constant 0 : index
    %319 = vector.load %arg11[%c0_352, %c0_353] : memref<1x10xf32, #tpu.memory_space<vmem>>, vector<1x10xf32>
    %320 = arith.addf %318, %319 : vector<1x10xf32>
    %c0_354 = arith.constant 0 : index
    %c0_355 = arith.constant 0 : index
    %c0_356 = arith.constant 0 : index
    %321 = vector.load %arg12[%c0_354, %c0_355, %c0_356] : memref<1x1x10xf32, #tpu.memory_space<vmem>>, vector<1x1x10xf32>
    %322 = vector.shape_cast %321 : vector<1x1x10xf32> to vector<1x10xf32>
    %323 = vector.shape_cast %320 : vector<1x10xf32> to vector<1x1x10xf32>
    tpu.vector_store %arg12[%c0_354, %c0_355, %c0_356], %323 {strides = array<i32>} : memref<1x1x10xf32, #tpu.memory_space<vmem>>, vector<1x1x10xf32>,
    return
  }
  func.func @transform_0(%arg0: i32) -> (i32, i32, i32, i32) {
    %c0_i32 = arith.constant 0 : i32
    %c0_i32_0 = arith.constant 0 : i32
    %c0_i32_1 = arith.constant 0 : i32
    %c0_i32_2 = arith.constant 0 : i32
    return %arg0, %c0_i32, %c0_i32_0, %c0_i32_1 : i32, i32, i32, i32
  }
  func.func @transform_1(%arg0: i32) -> (i32, i32, i32, i32) {
    %c0_i32 = arith.constant 0 : i32
    %c0_i32_0 = arith.constant 0 : i32
    %c0_i32_1 = arith.constant 0 : i32
    %c0_i32_2 = arith.constant 0 : i32
    %c0_i32_3 = arith.constant 0 : i32
    return %c0_i32, %c0_i32_0, %c0_i32_1, %c0_i32_2 : i32, i32, i32, i32
  }
  func.func @transform_2(%arg0: i32) -> (i32, i32) {
    %c0_i32 = arith.constant 0 : i32
    %c0_i32_0 = arith.constant 0 : i32
    %c0_i32_1 = arith.constant 0 : i32
    return %c0_i32, %c0_i32_0 : i32, i32
  }
  func.func @transform_3(%arg0: i32) -> (i32, i32, i32, i32) {
    %c0_i32 = arith.constant 0 : i32
    %c0_i32_0 = arith.constant 0 : i32
    %c0_i32_1 = arith.constant 0 : i32
    %c0_i32_2 = arith.constant 0 : i32
    %c0_i32_3 = arith.constant 0 : i32
    return %c0_i32, %c0_i32_0, %c0_i32_1, %c0_i32_2 : i32, i32, i32, i32
  }
  func.func @transform_4(%arg0: i32) -> (i32, i32) {
    %c0_i32 = arith.constant 0 : i32
    %c0_i32_0 = arith.constant 0 : i32
    %c0_i32_1 = arith.constant 0 : i32
    return %c0_i32, %c0_i32_0 : i32, i32
  }
  func.func @transform_5(%arg0: i32) -> (i32, i32, i32, i32) {
    %c0_i32 = arith.constant 0 : i32
    %c0_i32_0 = arith.constant 0 : i32
    %c0_i32_1 = arith.constant 0 : i32
    %c0_i32_2 = arith.constant 0 : i32
    %c0_i32_3 = arith.constant 0 : i32
    return %c0_i32, %c0_i32_0, %c0_i32_1, %c0_i32_2 : i32, i32, i32, i32
  }
  func.func @transform_6(%arg0: i32) -> (i32, i32) {
    %c0_i32 = arith.constant 0 : i32
    %c0_i32_0 = arith.constant 0 : i32
    %c0_i32_1 = arith.constant 0 : i32
    return %c0_i32, %c0_i32_0 : i32, i32
  }
  func.func @transform_7(%arg0: i32) -> (i32, i32, i32, i32) {
    %c0_i32 = arith.constant 0 : i32
    %c0_i32_0 = arith.constant 0 : i32
    %c0_i32_1 = arith.constant 0 : i32
    %c0_i32_2 = arith.constant 0 : i32
    %c0_i32_3 = arith.constant 0 : i32
    return %c0_i32, %c0_i32_0, %c0_i32_1, %c0_i32_2 : i32, i32, i32, i32
  }
  func.func @transform_8(%arg0: i32) -> (i32, i32) {
    %c0_i32 = arith.constant 0 : i32
    %c0_i32_0 = arith.constant 0 : i32
    %c0_i32_1 = arith.constant 0 : i32
    return %c0_i32, %c0_i32_0 : i32, i32
  }
  func.func @transform_9(%arg0: i32) -> (i32, i32) {
    %c0_i32 = arith.constant 0 : i32
    %c0_i32_0 = arith.constant 0 : i32
    %c0_i32_1 = arith.constant 0 : i32
    return %c0_i32, %c0_i32_0 : i32, i32
  }
  func.func @transform_10(%arg0: i32) -> (i32, i32) {
    %c0_i32 = arith.constant 0 : i32
    %c0_i32_0 = arith.constant 0 : i32
    %c0_i32_1 = arith.constant 0 : i32
    return %c0_i32, %c0_i32_0 : i32, i32
  }
  func.func @transform_11(%arg0: i32) -> (i32, i32, i32) {
    %c0_i32 = arith.constant 0 : i32
    %c0_i32_0 = arith.constant 0 : i32
    %c0_i32_1 = arith.constant 0 : i32
    return %arg0, %c0_i32, %c0_i32_0 : i32, i32, i32
  }
}

</mosaic_0001>

<bundles_post_ra>
// kernel: simple_cnn_forward.1
= control target key start
LH: loop header
LB: loop body
LE: loop exit
PB: predicated region body
PF: predicated region fallthrough
CT: control target
= control target key end

     0   :  { %s14395_s0 = inlined_call_operand.vmem [shape: f32[2,16,16,3], index: 0, kind: input, shape index: {}]   ;;  %s14396_s1 = inlined_call_operand.vmem [shape: bf16[3,3,3,32], index: 1, kind: input, shape index: {}]   ;;  %s14397_s2 = inlined_call_operand.vmem [shape: f32[1,32], index: 2, kind: input, shape index: {}]   ;;  %s14398_s3 = inlined_call_operand.vmem [shape: bf16[3,3,32,64], index: 3, kind: input, shape index: {}]   ;;  %s14399_s4 = inlined_call_operand.vmem [shape: f32[1,64], index: 4, kind: input, shape index: {}]   ;;  %s14400_s5 = inlined_call_operand.vmem [shape: bf16[3,3,64,128], index: 5, kind: input, shape index: {}]   ;;  %s14401_s6 = inlined_call_operand.vmem [shape: f32[1,128], index: 6, kind: input, shape index: {}]   ;;  %s14402_s7 = inlined_call_operand.vmem [shape: bf16[3,3,128,128], index: 7, kind: input, shape index: {}]   ;;  %s14403_s8 = inlined_call_operand.vmem [shape: f32[1,128], index: 8, kind: input, shape index: {}]   ;;  %s14404_s9 = inlined_call_operand.vmem [shape: f32[128,10], index: 9, kind: input, shape index: {}]   ;;  %s14405_s10 = inlined_call_operand.vmem [shape: f32[1,10], index: 10, kind: input, shape index: {}]   ;;  %s14406_s11 = inlined_call_operand.hbm [shape: f32[2,1,10], index: 11, kind: output, shape index: {}]  }
   0x1   :  { %14413 = sst [smem:[#allocation92_spill]] %s14395_s0 }
   0x2   :  { %16 = vsyncpa [#allocation9], 0 }
   0x3   :  { %18 = vsyncpa [#allocation9 + $0x1], 0  ;;  %s11133_s17 = smov 0   ;;  %s11135_s18 = smov 0  }
   0x4   :  { %s11137_s19 = smov 0   ;;  %s11139_s20 = smov 0  }
   0x5 LB: > { %s11154_s21 = sadd.s32 4294967295, %s11067_s20   ;;  %s8647_s22 = sadd.s32 4294967294, %s11067_s20   ;;  %s11067_s20 = sphi %s11139_s20, %s14748_s20   ;;  %s11063_s19 = sphi %s11137_s19, %s14747_s19   ;;  %s11059_s18 = sphi %s11135_s18, %s14746_s18   ;;  %s11055_s17 = sphi %s11133_s17, %s14745_s17  }
   0x6   : > { %s11158_s23 = sadd.s32 1, %s11067_s20   ;;  %s267_s24 = sadd.s32 1, %s11063_s19 }
   0x7   : > { %s264_s25 = ssub.s32 %s11067_s20, %s11158_s23  ;;  %p277_p0 = scmp.ne.s32.totalorder %s11063_s19, %s11059_s18 }
   0x8   : > { %p265_p1 = scmp.eq.s32.totalorder %s264_s25, 0  ;;  %p278_p2 = scmp.eq.s32.totalorder %s11154_s21, 1 }
   0x9   : > { %p283_p3 = scmp.ne.s32.totalorder %s11059_s18, %s11055_s17  ;;  %p284_p4 = scmp.eq.s32.totalorder %s8647_s22, 1 }
   0xa   : > { %s11169_s26 = scalar_select %p265_p1, %s11063_s19, %s267_s24  }
   0xb   : > { %p11171_p5 = por %p278_p2, %p277_p0  ;;  %p11175_p6 = por %p284_p4, %p283_p3 }
   0xc   : > { %p8650_p7 = scmp.ge.s32.totalorder %s11067_s20, 1  ;;  %p340_p8 = scmp.lt.s32.totalorder %s11067_s20, 3 }
   0xe   : > { %p341_p9 = pnand %p8650_p7, %p340_p8 }
  0x10   : > { %344 = sbr.rel (%p341_p9) target bundleno = 1935 (0x78f), region = 64 }
  0x15   : > { %v11184_v0 = vld [vmem:[%s14396_s1 + $0x2] sm:$0x3]  ;;  %vm670_vm0 = vcmask 1040384   ;;  %vm671_vm1 = vcmask 1041408   ;;  %vm417_vm2 = vcmask 23552   ;;  %v11069_v1 = vmov 65535  }
  0x16   : > { %v672_v2 = vsel %vm670_vm0, 4294967295, %v11069_v1  ;;  %v11189_v3 = vld [vmem:[%s14396_s1] sm:$0x3]  ;;  %v11194_v4 = vld [vmem:[%s14396_s1 + $0x4] sm:$0x3]  ;;  %v11070_v6 = vmov 0.0  }
  0x17   : > { %v11196_v5 = vsel %vm671_vm1, %v672_v2, 0  ;;  %419 = vst.msk [vmem:[#allocation2 + $0x8] sm:$0xff] %vm417_vm2, %v11070_v6  ;;  %420 = vst.msk [vmem:[#allocation2 + $0x10] sm:$0xff] %vm417_vm2, %v11070_v6  ;;  %p379_p10 = scmp.lt.s32.totalorder %s11154_s21, 1  ;;  %v8703_v7 = vld [vmem:[%s14396_s1 + $0x6] sm:$0x3] }
  0x18   : > { %418 = vst.msk [vmem:[#allocation2] sm:$0xff] %vm417_vm2, %v11070_v6  ;;  %421 = vst.msk [vmem:[#allocation2 + $0x18] sm:$0xff] %vm417_vm2, %v11070_v6  ;;  %v675_v8 = vand.u32 %v11184_v0, %v11196_v5  ;;  %v887_v9 = vand.u32 %v11196_v5, %v11189_v3  ;;  %v11364_v10 = vand.u32 %v11194_v4, %v11196_v5  ;;  %s14416_s0 = sld [smem:[#allocation92_spill]]  ;;  %v8720_v32 = vld [vmem:[%s14396_s1 + $0x8] sm:$0x3]  ;;  %vm3180_vm3 = vcmask 261120  }
  0x19   : > { %422 = vst.msk [vmem:[#allocation2 + $0x20] sm:$0xff] %vm417_vm2, %v11070_v6  ;;  %423 = vst.msk [vmem:[#allocation2 + $0x28] sm:$0xff] %vm417_vm2, %v11070_v6  ;;  %v11367_v11 = vand.u32 %v8703_v7, %v11196_v5  ;;  %s380_s24 = scalar_select %p379_p10, %s11154_s21, 1  ;;  %v11427_v49 = vand.u32 %v8720_v32, %v11196_v5  ;;  %vm6063_vm4 = vcmask 523264   ;;  %vm11071_vm5 = vmmov 0  }
  0x1a   : > { %424 = vst.msk [vmem:[#allocation2 + $0x30] sm:$0xff] %vm417_vm2, %v11070_v6  ;;  %425 = vst.msk [vmem:[#allocation2 + $0x38] sm:$0xff] %vm417_vm2, %v11070_v6  ;;  %9828 = vmatprep.subr.bf16.mxu0 %v675_v8  ;;  %9862 = vmatprep.subr.bf16.mxu1 %v887_v9  ;;  %s377_s15 = sand.u32 1, %s11059_s18   ;;  %vm8577_vm6 = vcmask 73728  }
  0x1b   : > { %426 = vst.msk [vmem:[#allocation2 + $0x40] sm:$0xff] %vm417_vm2, %v11070_v6  ;;  %427 = vst.msk [vmem:[#allocation2 + $0x48] sm:$0xff] %vm417_vm2, %v11070_v6  ;;  %9829 = vmatpush3.bf16.msra.mxu0 %v675_v8  ;;  %9863 = vmatpush3.bf16.msra.mxu1 %v887_v9  ;;  %s9342_s25 = sshll.u32 %s380_s24, 8  ;;  %s9339_s24 = sshll.u32 %s11154_s21, 4 }
  0x1c   : > { %428 = vst.msk [vmem:[#allocation2 + $0x50] sm:$0xff] %vm417_vm2, %v11070_v6  ;;  %429 = vst.msk [vmem:[#allocation2 + $0x58] sm:$0xff] %vm417_vm2, %v11070_v6  ;;  %9896 = vmatprep.subr.bf16.mxu0 %v11364_v10  ;;  %9930 = vmatprep.subr.bf16.mxu1 %v11367_v11  ;;  %s14360_s13 = scalar_lea.hbm %s14406_s11, %s9339_s24  ;;  %s8580_s14 = scalar_lea.sflag [#allocation9], %s377_s15 }
  0x1d   : > { %430 = vst.msk [vmem:[#allocation2 + $0x60] sm:$0xff] %vm417_vm2, %v11070_v6  ;;  %431 = vst.msk [vmem:[#allocation2 + $0x68] sm:$0xff] %vm417_vm2, %v11070_v6  ;;  %s11072_s21 = smov [#allocation8]  }
  0x1e   : > { %432 = vst.msk [vmem:[#allocation2 + $0x70] sm:$0xff] %vm417_vm2, %v11070_v6  ;;  %433 = vst.msk [vmem:[#allocation2 + $0x78] sm:$0xff] %vm417_vm2, %v11070_v6  ;;  %s11374_s12 = scalar_lea.vmem %s14416_s0, %s9342_s25  ;;  %v572_v15 = vld [vmem:[#allocation2 + $0x8] sm:$0xff]  ;;  %v573_v16 = vld [vmem:[#allocation2 + $0x10] sm:$0xff]  ;;  %s378_s25 = scalar_lea.vmem [#allocation8], %s377_s15 }
  0x1f   : > { %434 = vst.msk [vmem:[#allocation2 + $0x80] sm:$0xff] %vm417_vm2, %v11070_v6  ;;  %435 = vst.msk [vmem:[#allocation2 + $0x88] sm:$0xff] %vm417_vm2, %v11070_v6  ;;  %v385_v12 = vld [vmem:[%s11374_s12] sm:$0xff]  ;;  %v386_v13 = vld [vmem:[%s11374_s12 + $0x8] sm:$0xff]  ;;  %v604_v18 = vpack.c.bf16 %v573_v16, %v572_v15  ;;  %s8592_s29 = sshll.u32 %s378_s25, 4  ;;  %s11011_s16 = sshll.u32 %s11072_s21, 4  ;;  %s8593_s29 = int_to_ptr.vmem [resolvable:$true] %s8592_s29  ;;  %s11012_s16 = int_to_ptr.vmem [resolvable:$false] %s11011_s16 }
  0x20   : > { %436 = vst.msk [vmem:[#allocation2 + $0x90] sm:$0xff] %vm417_vm2, %v11070_v6  ;;  %437 = vst.msk [vmem:[#allocation2 + $0x98] sm:$0xff] %vm417_vm2, %v11070_v6  ;;  %v387_v14 = vld [vmem:[%s11374_s12 + $0x10] sm:$0xff]  ;;  %v523_v17 = vld [vmem:[#allocation2 + $0x7] sm:$0xff]  ;;  %s11007_s0 = scalar_lea.vmem %s8593_s29, 16  ;;  %s11013_s22 = scalar_lea.vmem %s11012_s16, 32 }
  0x21   : > { %438 = vst.msk [vmem:[#allocation2 + $0xa0] sm:$0xff] %vm417_vm2, %v11070_v6  ;;  %439 = vst.msk [vmem:[#allocation2 + $0xa8] sm:$0xff] %vm417_vm2, %v11070_v6  ;;  %v524_v19 = vld [vmem:[#allocation2 + $0xf] sm:$0xff]  ;;  %v388_v20 = vld [vmem:[%s11374_s12 + $0x18] sm:$0xff]  ;;  %9830 = vmatprep.mubr.msk.bf16.mxu0 %vm417_vm2, %v604_v18  ;;  %p11008_p11 = scmp.ne.s32.totalorder %s8593_s29, %s11007_s0  ;;  %p11014_p0 = scmp.lt.s32.totalorder %s8593_s29, %s11012_s16 }
  0x22   : > { %440 = vst.msk [vmem:[#allocation2 + $0xb0] sm:$0xff] %vm417_vm2, %v11070_v6  ;;  %441 = vst.msk [vmem:[#allocation2 + $0xb8] sm:$0xff] %vm417_vm2, %v11070_v6  ;;  %v389_v21 = vld [vmem:[%s11374_s12 + $0x20] sm:$0xff]  ;;  %v555_v22 = vpack.c.bf16 %v524_v19, %v523_v17  ;;  %v390_v23 = vld [vmem:[%s11374_s12 + $0x28] sm:$0xff]  ;;  %p11015_p1 = scmp.lt.s32.totalorder %s11013_s22, %s11007_s0 }
  0x23   : > { %442 = vst.msk [vmem:[#allocation2 + $0xc0] sm:$0xff] %vm417_vm2, %v11070_v6  ;;  %443 = vst.msk [vmem:[#allocation2 + $0xc8] sm:$0xff] %vm417_vm2, %v11070_v6  ;;  %v391_v24 = vld [vmem:[%s11374_s12 + $0x30] sm:$0xff]  ;;  %v392_v25 = vld [vmem:[%s11374_s12 + $0x38] sm:$0xff]  ;;  %p11009_p12 = pnand %p11008_p11, %p11171_p5 }
  0x24   : > { %444 = vst.msk [vmem:[#allocation2 + $0xd0] sm:$0xff] %vm417_vm2, %v11070_v6  ;;  %445 = vst.msk [vmem:[#allocation2 + $0xd8] sm:$0xff] %vm417_vm2, %v11070_v6  ;;  %v393_v26 = vld [vmem:[%s11374_s12 + $0x40] sm:$0xff]  ;;  %v394_v27 = vld [vmem:[%s11374_s12 + $0x48] sm:$0xff]  ;;  %9864 = vmatprep.mubr.msk.bf16.mxu1 %vm417_vm2, %v555_v22  ;;  %p11016_p2 = por %p11015_p1, %p11014_p0 }
  0x25   : > { %446 = vst.msk [vmem:[#allocation2 + $0xe0] sm:$0xff] %vm417_vm2, %v11070_v6  ;;  %447 = vst.msk [vmem:[#allocation2 + $0xe8] sm:$0xff] %vm417_vm2, %v11070_v6  ;;  %v395_v28 = vld [vmem:[%s11374_s12 + $0x50] sm:$0xff]  ;;  %v396_v29 = vld [vmem:[%s11374_s12 + $0x58] sm:$0xff]  ;;  %p11010_p13 = pneg %p11009_p12 }
  0x26   : > { %448 = vst.msk [vmem:[#allocation2 + $0xf0] sm:$0xff] %vm417_vm2, %v11070_v6  ;;  %449 = vst.msk [vmem:[#allocation2 + $0xf8] sm:$0xff] %vm417_vm2, %v11070_v6  ;;  %v397_v30 = vld [vmem:[%s11374_s12 + $0x60] sm:$0xff]  ;;  %v398_v31 = vld [vmem:[%s11374_s12 + $0x68] sm:$0xff] }
  0x27   : > { %450 = vst.msk [vmem:[#allocation2 + $0x100] sm:$0xff] %vm417_vm2, %v11070_v6  ;;  %451 = vst.msk [vmem:[#allocation2 + $0x108] sm:$0xff] %vm417_vm2, %v11070_v6  ;;  %v399_v33 = vld [vmem:[%s11374_s12 + $0x70] sm:$0xff]  ;;  %v400_v34 = vld [vmem:[%s11374_s12 + $0x78] sm:$0xff]  ;;  %p11017_p3 = pnand %p11016_p2, %p11010_p13 }
  0x28   : > { %452 = vst.msk [vmem:[#allocation2 + $0x110] sm:$0xff] %vm417_vm2, %v11070_v6  ;;  %453 = vst.msk [vmem:[#allocation2 + $0x118] sm:$0xff] %vm417_vm2, %v11070_v6  ;;  %v401_v35 = vld [vmem:[%s11374_s12 + $0x80] sm:$0xff]  ;;  %v402_v36 = vld [vmem:[%s11374_s12 + $0x88] sm:$0xff] }
  0x29   : > { %454 = vst.msk [vmem:[#allocation2 + $0x120] sm:$0xff] %vm417_vm2, %v11070_v6  ;;  %455 = vst.msk [vmem:[#allocation2 + $0x128] sm:$0xff] %vm417_vm2, %v11070_v6  ;;  %v403_v37 = vld [vmem:[%s11374_s12 + $0x90] sm:$0xff]  ;;  %v404_v38 = vld [vmem:[%s11374_s12 + $0x98] sm:$0xff] }
  0x2a   : > { %456 = vst.msk [vmem:[#allocation2 + $0x130] sm:$0xff] %vm417_vm2, %v11070_v6  ;;  %457 = vst.msk [vmem:[#allocation2 + $0x138] sm:$0xff] %vm417_vm2, %v11070_v6  ;;  %v405_v9 = vld [vmem:[%s11374_s12 + $0xa0] sm:$0xff]  ;;  %v410_v15 = vld [vmem:[%s11374_s12 + $0xc8] sm:$0xff] }
  0x2b   : > { %458 = vst.msk [vmem:[#allocation2 + $0x140] sm:$0xff] %vm417_vm2, %v11070_v6  ;;  %459 = vst.msk [vmem:[#allocation2 + $0x148] sm:$0xff] %vm417_vm2, %v11070_v6  ;;  %v411_v16 = vld [vmem:[%s11374_s12 + $0xd0] sm:$0xff]  ;;  %v412_v17 = vld [vmem:[%s11374_s12 + $0xd8] sm:$0xff] }
  0x2c   : > { %460 = vst.msk [vmem:[#allocation2 + $0x150] sm:$0xff] %vm417_vm2, %v11070_v6  ;;  %461 = vst.msk [vmem:[#allocation2 + $0x158] sm:$0xff] %vm417_vm2, %v11070_v6 }
  0x2d   : > { %462 = vst.msk [vmem:[#allocation2 + $0x160] sm:$0xff] %vm417_vm2, %v11070_v6  ;;  %463 = vst.msk [vmem:[#allocation2 + $0x168] sm:$0xff] %vm417_vm2, %v11070_v6 }
  0x2e   : > { %464 = vst.msk [vmem:[#allocation2 + $0x170] sm:$0xff] %vm417_vm2, %v11070_v6  ;;  %465 = vst.msk [vmem:[#allocation2 + $0x178] sm:$0xff] %vm417_vm2, %v11070_v6 }
  0x2f   : > { %466 = vst.msk [vmem:[#allocation2 + $0x180] sm:$0xff] %vm417_vm2, %v11070_v6  ;;  %467 = vst.msk [vmem:[#allocation2 + $0x188] sm:$0xff] %vm417_vm2, %v11070_v6 }
  0x30   : > { %468 = vst.msk [vmem:[#allocation2 + $0x190] sm:$0xff] %vm417_vm2, %v11070_v6  ;;  %469 = vst.msk [vmem:[#allocation2 + $0x198] sm:$0xff] %vm417_vm2, %v11070_v6 }
  0x31   : > { %470 = vst.msk [vmem:[#allocation2 + $0x1a0] sm:$0xff] %vm417_vm2, %v11070_v6  ;;  %471 = vst.msk [vmem:[#allocation2 + $0x1a8] sm:$0xff] %vm417_vm2, %v11070_v6 }
  0x32   : > { %472 = vst.msk [vmem:[#allocation2 + $0x1b0] sm:$0xff] %vm417_vm2, %v11070_v6  ;;  %473 = vst.msk [vmem:[#allocation2 + $0x1b8] sm:$0xff] %vm417_vm2, %v11070_v6 }
  0x33   : > { %474 = vst.msk [vmem:[#allocation2 + $0x1c0] sm:$0xff] %vm417_vm2, %v11070_v6  ;;  %475 = vst.msk [vmem:[#allocation2 + $0x1c8] sm:$0xff] %vm417_vm2, %v11070_v6 }
  0x34   : > { %476 = vst.msk [vmem:[#allocation2 + $0x1d0] sm:$0xff] %vm417_vm2, %v11070_v6  ;;  %477 = vst.msk [vmem:[#allocation2 + $0x1d8] sm:$0xff] %vm417_vm2, %v11070_v6 }
  0x35   : > { %478 = vst.msk [vmem:[#allocation2 + $0x1e0] sm:$0xff] %vm417_vm2, %v11070_v6  ;;  %479 = vst.msk [vmem:[#allocation2 + $0x1e8] sm:$0xff] %vm417_vm2, %v11070_v6 }
  0x36   : > { %480 = vst.msk [vmem:[#allocation2 + $0x1f0] sm:$0xff] %vm417_vm2, %v11070_v6  ;;  %481 = vst.msk [vmem:[#allocation2 + $0x1f8] sm:$0xff] %vm417_vm2, %v11070_v6 }
  0x37   : > { %482 = vst.msk [vmem:[#allocation2 + $0x200] sm:$0xff] %vm417_vm2, %v11070_v6  ;;  %483 = vst.msk [vmem:[#allocation2 + $0x208] sm:$0xff] %vm417_vm2, %v11070_v6 }
  0x38   : > { %484 = vst.msk [vmem:[#allocation2 + $0x210] sm:$0xff] %vm417_vm2, %v11070_v6  ;;  %485 = vst.msk [vmem:[#allocation2 + $0x218] sm:$0xff] %vm417_vm2, %v11070_v6 }
  0x39   : > { %486 = vst.msk [vmem:[#allocation2 + $0x220] sm:$0xff] %vm417_vm2, %v11070_v6  ;;  %487 = vst.msk [vmem:[#allocation2 + $0x228] sm:$0xff] %vm417_vm2, %v11070_v6 }
  0x3a   : > { %488 = vst.msk [vmem:[#allocation2 + $0x230] sm:$0xff] %vm417_vm2, %v11070_v6  ;;  %489 = vst.msk [vmem:[#allocation2 + $0x238] sm:$0xff] %vm417_vm2, %v11070_v6 }
  0x3b   : > { %7362 = vst [vmem:[#allocation5] sm:$0xff] %v11070_v6  ;;  %7363 = vst [vmem:[#allocation5 + $0x8] sm:$0xff] %v11070_v6 }
  0x3c   : > { %7365 = vst [vmem:[#allocation5 + $0x18] sm:$0xff] %v11070_v6  ;;  %7366 = vst [vmem:[#allocation5 + $0x20] sm:$0xff] %v11070_v6 }
  0x3d   : > { %7368 = vst [vmem:[#allocation5 + $0x30] sm:$0xff] %v11070_v6  ;;  %7369 = vst [vmem:[#allocation5 + $0x38] sm:$0xff] %v11070_v6 }
  0x3e   : > { %7371 = vst [vmem:[#allocation5 + $0x48] sm:$0xff] %v11070_v6  ;;  %7372 = vst [vmem:[#allocation5 + $0x50] sm:$0xff] %v11070_v6 }
  0x3f   : > { %7374 = vst [vmem:[#allocation5 + $0x60] sm:$0xff] %v11070_v6  ;;  %7375 = vst [vmem:[#allocation5 + $0x68] sm:$0xff] %v11070_v6 }
  0x40   : > { %7377 = vst [vmem:[#allocation5 + $0x78] sm:$0xff] %v11070_v6  ;;  %7378 = vst [vmem:[#allocation5 + $0x80] sm:$0xff] %v11070_v6 }
  0x41   : > { %491 = vst.msk [vmem:[#allocation2 + $0x28] sm:$0xff] %vm417_vm2, %v385_v12  ;;  %492 = vst.msk [vmem:[#allocation2 + $0x30] sm:$0xff] %vm417_vm2, %v386_v13  ;;  %v408_v12 = vld [vmem:[%s11374_s12 + $0xb8] sm:$0xff]  ;;  %v409_v13 = vld [vmem:[%s11374_s12 + $0xc0] sm:$0xff] }
  0x42   : > { %493 = vst.msk [vmem:[#allocation2 + $0x48] sm:$0xff] %vm417_vm2, %v387_v14  ;;  %494 = vst.msk [vmem:[#allocation2 + $0x50] sm:$0xff] %vm417_vm2, %v388_v20  ;;  %v413_v20 = vld [vmem:[%s11374_s12 + $0xe0] sm:$0xff] }
  0x43   : > { %495 = vst.msk [vmem:[#allocation2 + $0x68] sm:$0xff] %vm417_vm2, %v389_v21  ;;  %496 = vst.msk [vmem:[#allocation2 + $0x70] sm:$0xff] %vm417_vm2, %v390_v23  ;;  %v414_v21 = vld [vmem:[%s11374_s12 + $0xe8] sm:$0xff] }
  0x44   : > { %497 = vst.msk [vmem:[#allocation2 + $0x88] sm:$0xff] %vm417_vm2, %v391_v24  ;;  %498 = vst.msk [vmem:[#allocation2 + $0x90] sm:$0xff] %vm417_vm2, %v392_v25 }
  0x45   : > { %499 = vst.msk [vmem:[#allocation2 + $0xa8] sm:$0xff] %vm417_vm2, %v393_v26  ;;  %500 = vst.msk [vmem:[#allocation2 + $0xb0] sm:$0xff] %vm417_vm2, %v394_v27 }
  0x46   : > { %501 = vst.msk [vmem:[#allocation2 + $0xc8] sm:$0xff] %vm417_vm2, %v395_v28  ;;  %502 = vst.msk [vmem:[#allocation2 + $0xd0] sm:$0xff] %vm417_vm2, %v396_v29 }
  0x47   : > { %503 = vst.msk [vmem:[#allocation2 + $0xe8] sm:$0xff] %vm417_vm2, %v397_v30  ;;  %504 = vst.msk [vmem:[#allocation2 + $0xf0] sm:$0xff] %vm417_vm2, %v398_v31 }
  0x48   : > { %505 = vst.msk [vmem:[#allocation2 + $0x108] sm:$0xff] %vm417_vm2, %v399_v33  ;;  %506 = vst.msk [vmem:[#allocation2 + $0x110] sm:$0xff] %vm417_vm2, %v400_v34  ;;  %v574_v39 = vld [vmem:[#allocation2 + $0x28] sm:$0xff]  ;;  %v575_v40 = vld [vmem:[#allocation2 + $0x30] sm:$0xff] }
  0x49   : > { %507 = vst.msk [vmem:[#allocation2 + $0x128] sm:$0xff] %vm417_vm2, %v401_v35  ;;  %v525_v41 = vld [vmem:[#allocation2 + $0x27] sm:$0xff]  ;;  %508 = vst.msk [vmem:[#allocation2 + $0x130] sm:$0xff] %vm417_vm2, %v402_v36  ;;  %v11422_v42 = vpack.c.bf16 %v575_v40, %v574_v39  ;;  %v526_v43 = vld [vmem:[#allocation2 + $0x2f] sm:$0xff] }
  0x4a   : > { %509 = vst.msk [vmem:[#allocation2 + $0x148] sm:$0xff] %vm417_vm2, %v403_v37  ;;  %510 = vst.msk [vmem:[#allocation2 + $0x150] sm:$0xff] %vm417_vm2, %v404_v38  ;;  %v576_v44 = vld [vmem:[#allocation2 + $0x48] sm:$0xff]  ;;  %v11424_v46 = vpack.c.bf16 %v526_v43, %v525_v41  ;;  %v577_v47 = vld [vmem:[#allocation2 + $0x50] sm:$0xff] }
  0x4b   : > { %v527_v45 = vld [vmem:[#allocation2 + $0x47] sm:$0xff]  ;;  %v528_v48 = vld [vmem:[#allocation2 + $0x4f] sm:$0xff]  ;;  %9831 = vmatmul.mubr.msk.bf16.vlgmr.msra.gmra.mxu0 %vm417_vm2, %v11422_v42  ;;  %v11431_v50 = vpack.c.bf16 %v577_v47, %v576_v44  ;;  %511 = vst.msk [vmem:[#allocation2 + $0x168] sm:$0xff] %vm417_vm2, %v405_v9  ;;  %514 = vst.msk [vmem:[#allocation2 + $0x190] sm:$0xff] %vm417_vm2, %v408_v12 }
  0x4c   : > { %v11433_v51 = vpack.c.bf16 %v528_v48, %v527_v45  ;;  %9865 = vmatmul.mubr.msk.bf16.vlgmr.msra.gmra.mxu1 %vm417_vm2, %v11424_v46  ;;  %9897 = vmatpush3.bf16.msra.mxu0 %v11364_v10  ;;  %v578_v52 = vld [vmem:[#allocation2 + $0x68] sm:$0xff]  ;;  %v579_v53 = vld [vmem:[#allocation2 + $0x70] sm:$0xff]  ;;  %515 = vst.msk [vmem:[#allocation2 + $0x1a8] sm:$0xff] %vm417_vm2, %v409_v13  ;;  %516 = vst.msk [vmem:[#allocation2 + $0x1b0] sm:$0xff] %vm417_vm2, %v410_v15 }
  0x4d   : > { %v529_v54 = vld [vmem:[#allocation2 + $0x67] sm:$0xff]  ;;  %9834 = vmatprep.mubr.msk.bf16.mxu0 %vm417_vm2, %v11431_v50  ;;  %v530_v55 = vld [vmem:[#allocation2 + $0x6f] sm:$0xff]  ;;  %9931 = vmatpush3.bf16.msra.mxu1 %v11367_v11  ;;  %v11444_v60 = vpack.c.bf16 %v579_v53, %v578_v52  ;;  %517 = vst.msk [vmem:[#allocation2 + $0x1c8] sm:$0xff] %vm417_vm2, %v411_v16  ;;  %518 = vst.msk [vmem:[#allocation2 + $0x1d0] sm:$0xff] %vm417_vm2, %v412_v17 }
  0x4e   : > { %9868 = vmatprep.mubr.msk.bf16.mxu1 %vm417_vm2, %v11433_v51  ;;  %v580_v56 = vld [vmem:[#allocation2 + $0x88] sm:$0xff]  ;;  %v581_v57 = vld [vmem:[#allocation2 + $0x90] sm:$0xff]  ;;  %9964 = vmatprep.subr.bf16.mxu0 %v11427_v49  ;;  %v11446_v61 = vpack.c.bf16 %v530_v55, %v529_v54  ;;  %519 = vst.msk [vmem:[#allocation2 + $0x1e8] sm:$0xff] %vm417_vm2, %v413_v20  ;;  %520 = vst.msk [vmem:[#allocation2 + $0x1f0] sm:$0xff] %vm417_vm2, %v414_v21 }
  0x4f   : > { %v531_v58 = vld [vmem:[#allocation2 + $0x87] sm:$0xff]  ;;  %v532_v59 = vld [vmem:[#allocation2 + $0x8f] sm:$0xff]  ;;  %v11448_v62 = vpack.c.bf16 %v581_v57, %v580_v56  ;;  %v416_v55 = vld [vmem:[%s11374_s12 + $0xf8] sm:$0xff] }
  0x50   : > { %v11450_v63 = vpack.c.bf16 %v532_v59, %v531_v58  ;;  %v582_v0 = vld [vmem:[#allocation2 + $0xa8] sm:$0xff]  ;;  %v583_v1 = vld [vmem:[#allocation2 + $0xb0] sm:$0xff]  ;;  %522 = vst.msk [vmem:[#allocation2 + $0x210] sm:$0xff] %vm417_vm2, %v416_v55 }
  0x51   : > { %v533_v2 = vld [vmem:[#allocation2 + $0xa7] sm:$0xff]  ;;  %v534_v3 = vld [vmem:[#allocation2 + $0xaf] sm:$0xff]  ;;  %v11467_v14 = vpack.c.bf16 %v583_v1, %v582_v0 }
  0x52   : > { %v584_v4 = vld [vmem:[#allocation2 + $0xc8] sm:$0xff]  ;;  %v585_v6 = vld [vmem:[#allocation2 + $0xd0] sm:$0xff]  ;;  %v11475_v18 = vpack.c.bf16 %v534_v3, %v533_v2 }
  0x53   : > { %9835 = vmatmul.mubr.msk.bf16.gmra.mxu0 %vm417_vm2, %v11444_v60  ;;  %v535_v7 = vld [vmem:[#allocation2 + $0xc7] sm:$0xff]  ;;  %v536_v8 = vld [vmem:[#allocation2 + $0xcf] sm:$0xff]  ;;  %v11477_v19 = vpack.c.bf16 %v585_v6, %v584_v4 }
  0x54   : > { %9869 = vmatmul.mubr.msk.bf16.gmra.mxu1 %vm417_vm2, %v11446_v61  ;;  %9838 = vmatprep.mubr.msk.bf16.mxu0 %vm417_vm2, %v11448_v62  ;;  %v406_v10 = vld [vmem:[%s11374_s12 + $0xa8] sm:$0xff]  ;;  %v407_v11 = vld [vmem:[%s11374_s12 + $0xb0] sm:$0xff]  ;;  %v11484_v22 = vpack.c.bf16 %v536_v8, %v535_v7 }
  0x55   : > { %9872 = vmatprep.mubr.msk.bf16.mxu1 %vm417_vm2, %v11450_v63  ;;  %512 = vst.msk [vmem:[#allocation2 + $0x170] sm:$0xff] %vm417_vm2, %v406_v10  ;;  %513 = vst.msk [vmem:[#allocation2 + $0x188] sm:$0xff] %vm417_vm2, %v407_v11  ;;  %v586_v23 = vld [vmem:[#allocation2 + $0xe8] sm:$0xff]  ;;  %v587_v24 = vld [vmem:[#allocation2 + $0xf0] sm:$0xff] }
  0x56   : > { %v537_v25 = vld [vmem:[#allocation2 + $0xe7] sm:$0xff]  ;;  %v538_v26 = vld [vmem:[#allocation2 + $0xef] sm:$0xff]  ;;  %v11496_v31 = vpack.c.bf16 %v587_v24, %v586_v23 }
  0x57   : > { %v588_v27 = vld [vmem:[#allocation2 + $0x108] sm:$0xff]  ;;  %v589_v28 = vld [vmem:[#allocation2 + $0x110] sm:$0xff]  ;;  %v11498_v32 = vpack.c.bf16 %v538_v26, %v537_v25 }
  0x58   : > { %v539_v29 = vld [vmem:[#allocation2 + $0x107] sm:$0xff]  ;;  %v540_v30 = vld [vmem:[#allocation2 + $0x10f] sm:$0xff]  ;;  %v11500_v33 = vpack.c.bf16 %v589_v28, %v588_v27 }
  0x59   : > { %v11502_v34 = vpack.c.bf16 %v540_v30, %v539_v29  ;;  %v590_v35 = vld [vmem:[#allocation2 + $0x128] sm:$0xff]  ;;  %v591_v36 = vld [vmem:[#allocation2 + $0x130] sm:$0xff] }
  0x5a   : > { %v541_v37 = vld [vmem:[#allocation2 + $0x127] sm:$0xff]  ;;  %v542_v38 = vld [vmem:[#allocation2 + $0x12f] sm:$0xff]  ;;  %v11512_v44 = vpack.c.bf16 %v591_v36, %v590_v35 }
  0x5b   : > { %9839 = vmatmul.mubr.msk.bf16.gmra.mxu0 %vm417_vm2, %v11467_v14  ;;  %v592_v39 = vld [vmem:[#allocation2 + $0x148] sm:$0xff]  ;;  %v593_v40 = vld [vmem:[#allocation2 + $0x150] sm:$0xff]  ;;  %v11514_v45 = vpack.c.bf16 %v542_v38, %v541_v37 }
  0x5c   : > { %9873 = vmatmul.mubr.msk.bf16.gmra.mxu1 %vm417_vm2, %v11475_v18  ;;  %9842 = vmatprep.mubr.msk.bf16.mxu0 %vm417_vm2, %v11477_v19  ;;  %v543_v41 = vld [vmem:[#allocation2 + $0x147] sm:$0xff]  ;;  %v544_v43 = vld [vmem:[#allocation2 + $0x14f] sm:$0xff]  ;;  %v11516_v47 = vpack.c.bf16 %v593_v40, %v592_v39 }
  0x5d   : > { %9876 = vmatprep.mubr.msk.bf16.mxu1 %vm417_vm2, %v11484_v22  ;;  %v11518_v48 = vpack.c.bf16 %v544_v43, %v543_v41  ;;  %v594_v52 = vld [vmem:[#allocation2 + $0x168] sm:$0xff]  ;;  %v595_v53 = vld [vmem:[#allocation2 + $0x170] sm:$0xff] }
  0x5e   : > { %v415_v54 = vld [vmem:[%s11374_s12 + $0xf0] sm:$0xff]  ;;  %v8737_v56 = vld [vmem:[%s14396_s1 + $0xa] sm:$0x3]  ;;  %v11539_v4 = vpack.c.bf16 %v595_v53, %v594_v52  ;;  %v8754_v43 = vld [vmem:[%s14396_s1 + $0xc] sm:$0x3] }
  0x5f   : > { %v545_v57 = vld [vmem:[#allocation2 + $0x167] sm:$0xff]  ;;  %v546_v58 = vld [vmem:[#allocation2 + $0x16f] sm:$0xff]  ;;  %521 = vst.msk [vmem:[#allocation2 + $0x208] sm:$0xff] %vm417_vm2, %v415_v54  ;;  %v11530_v1 = vand.u32 %v8737_v56, %v11196_v5 }
  0x60   : > { %v596_v59 = vld [vmem:[#allocation2 + $0x188] sm:$0xff]  ;;  %v597_v0 = vld [vmem:[#allocation2 + $0x190] sm:$0xff]  ;;  %v11541_v6 = vpack.c.bf16 %v546_v58, %v545_v57  ;;  %v11593_v57 = vand.u32 %v8754_v43, %v11196_v5 }
  0x61   : > { %v547_v2 = vld [vmem:[#allocation2 + $0x187] sm:$0xff]  ;;  %v548_v3 = vld [vmem:[#allocation2 + $0x18f] sm:$0xff]  ;;  %9998 = vmatprep.subr.bf16.mxu1 %v11530_v1  ;;  %v11543_v7 = vpack.c.bf16 %v597_v0, %v596_v59 }
  0x62   : > { %v11545_v8 = vpack.c.bf16 %v548_v3, %v547_v2  ;;  %v598_v9 = vld [vmem:[#allocation2 + $0x1a8] sm:$0xff]  ;;  %v599_v10 = vld [vmem:[#allocation2 + $0x1b0] sm:$0xff] }
  0x63   : > { %9843 = vmatmul.mubr.msk.bf16.gmra.mxu0 %vm417_vm2, %v11496_v31  ;;  %v549_v11 = vld [vmem:[#allocation2 + $0x1a7] sm:$0xff]  ;;  %v550_v12 = vld [vmem:[#allocation2 + $0x1af] sm:$0xff]  ;;  %v11555_v20 = vpack.c.bf16 %v599_v10, %v598_v9 }
  0x64   : > { %9877 = vmatmul.mubr.msk.bf16.gmra.mxu1 %vm417_vm2, %v11498_v32  ;;  %9846 = vmatprep.mubr.msk.bf16.mxu0 %vm417_vm2, %v11500_v33  ;;  %v600_v13 = vld [vmem:[#allocation2 + $0x1c8] sm:$0xff]  ;;  %v601_v15 = vld [vmem:[#allocation2 + $0x1d0] sm:$0xff]  ;;  %v11557_v21 = vpack.c.bf16 %v550_v12, %v549_v11 }
  0x65   : > { %9880 = vmatprep.mubr.msk.bf16.mxu1 %vm417_vm2, %v11502_v34  ;;  %v551_v16 = vld [vmem:[#allocation2 + $0x1c7] sm:$0xff]  ;;  %v552_v17 = vld [vmem:[#allocation2 + $0x1cf] sm:$0xff]  ;;  %v11559_v23 = vpack.c.bf16 %v601_v15, %v600_v13 }
  0x66   : > { %v11561_v24 = vpack.c.bf16 %v552_v17, %v551_v16  ;;  %v602_v25 = vld [vmem:[#allocation2 + $0x1e8] sm:$0xff]  ;;  %v603_v26 = vld [vmem:[#allocation2 + $0x1f0] sm:$0xff] }
  0x67   : > { %v1050_v27 = vld [vmem:[#allocation2 + $0x9] sm:$0xff]  ;;  %v1051_v28 = vld [vmem:[#allocation2 + $0x11] sm:$0xff]  ;;  %v11571_v35 = vpack.c.bf16 %v603_v26, %v602_v25 }
  0x68   : > { %v553_v29 = vld [vmem:[#allocation2 + $0x1e7] sm:$0xff]  ;;  %v554_v30 = vld [vmem:[#allocation2 + $0x1ef] sm:$0xff]  ;;  %v1082_v37 = vpack.c.bf16 %v1051_v28, %v1050_v27 }
  0x69   : > { %v11573_v36 = vpack.c.bf16 %v554_v30, %v553_v29  ;;  %v1052_v38 = vld [vmem:[#allocation2 + $0x29] sm:$0xff]  ;;  %v1053_v39 = vld [vmem:[#allocation2 + $0x31] sm:$0xff] }
  0x6a   : > { %v1054_v40 = vld [vmem:[#allocation2 + $0x49] sm:$0xff]  ;;  %v1055_v41 = vld [vmem:[#allocation2 + $0x51] sm:$0xff]  ;;  %v11588_v53 = vpack.c.bf16 %v1053_v39, %v1052_v38 }
  0x6b   : > { %9847 = vmatmul.mubr.msk.bf16.gmra.mxu0 %vm417_vm2, %v11512_v44  ;;  %v8771_v52 = vld [vmem:[%s14396_s1 + $0xe] sm:$0x3]  ;;  %v11590_v54 = vpack.c.bf16 %v1055_v41, %v1054_v40  ;;  %v1057_v56 = vld [vmem:[#allocation2 + $0x71] sm:$0xff] }
  0x6c   : > { %9881 = vmatmul.mubr.msk.bf16.gmra.mxu1 %vm417_vm2, %v11514_v45  ;;  %9850 = vmatprep.mubr.msk.bf16.mxu0 %vm417_vm2, %v11516_v47  ;;  %v1056_v55 = vld [vmem:[#allocation2 + $0x69] sm:$0xff]  ;;  %v1059_v58 = vld [vmem:[#allocation2 + $0x91] sm:$0xff]  ;;  %v11598_v59 = vand.u32 %v8771_v52, %v11196_v5 }
  0x6d   : > { %9884 = vmatprep.mubr.msk.bf16.mxu1 %vm417_vm2, %v11518_v48  ;;  %v11609_v0 = vpack.c.bf16 %v1057_v56, %v1056_v55  ;;  %v1061_v3 = vld [vmem:[#allocation2 + $0xb1] sm:$0xff]  ;;  %v1062_v9 = vld [vmem:[#allocation2 + $0xc9] sm:$0xff] }
  0x6e   : > { %v1063_v10 = vld [vmem:[#allocation2 + $0xd1] sm:$0xff]  ;;  %v1064_v12 = vld [vmem:[#allocation2 + $0xe9] sm:$0xff] }
  0x6f   : > { %v11624_v11 = vpack.c.bf16 %v1063_v10, %v1062_v9  ;;  %v1065_v13 = vld [vmem:[#allocation2 + $0xf1] sm:$0xff]  ;;  %v1066_v15 = vld [vmem:[#allocation2 + $0x109] sm:$0xff] }
  0x70   : > { %v1067_v16 = vld [vmem:[#allocation2 + $0x111] sm:$0xff]  ;;  %v11634_v17 = vpack.c.bf16 %v1065_v13, %v1064_v12  ;;  %v1068_v26 = vld [vmem:[#allocation2 + $0x129] sm:$0xff] }
  0x71   : > { %v11636_v25 = vpack.c.bf16 %v1067_v16, %v1066_v15  ;;  %v1069_v27 = vld [vmem:[#allocation2 + $0x131] sm:$0xff]  ;;  %v1070_v28 = vld [vmem:[#allocation2 + $0x149] sm:$0xff] }
  0x72   : > { %v1071_v29 = vld [vmem:[#allocation2 + $0x151] sm:$0xff]  ;;  %v11646_v30 = vpack.c.bf16 %v1069_v27, %v1068_v26  ;;  %v1072_v38 = vld [vmem:[#allocation2 + $0x169] sm:$0xff] }
  0x73   : > { %9851 = vmatmul.mubr.msk.bf16.gmra.mxu0 %vm417_vm2, %v11539_v4  ;;  %v1073_v39 = vld [vmem:[#allocation2 + $0x171] sm:$0xff]  ;;  %v1074_v40 = vld [vmem:[#allocation2 + $0x189] sm:$0xff] }
  0x74   : > { %9885 = vmatmul.mubr.msk.bf16.gmra.mxu1 %vm417_vm2, %v11541_v6  ;;  %9854 = vmatprep.mubr.msk.bf16.mxu0 %vm417_vm2, %v11543_v7  ;;  %v1075_v41 = vld [vmem:[#allocation2 + $0x191] sm:$0xff]  ;;  %v1093_v43 = vpack.c.bf16 %v1073_v39, %v1072_v38  ;;  %v1076_v55 = vld [vmem:[#allocation2 + $0x1a9] sm:$0xff] }
  0x75   : > { %9888 = vmatprep.mubr.msk.bf16.mxu1 %vm417_vm2, %v11545_v8  ;;  %v1094_v52 = vpack.c.bf16 %v1075_v41, %v1074_v40  ;;  %v1077_v56 = vld [vmem:[#allocation2 + $0x1b1] sm:$0xff]  ;;  %v1080_v9 = vld [vmem:[#allocation2 + $0x1e9] sm:$0xff] }
  0x76   : > { %v1081_v10 = vld [vmem:[#allocation2 + $0x1f1] sm:$0xff]  ;;  %v1374_v12 = vld [vmem:[#allocation2 + $0x207] sm:$0xff] }
  0x77   : > { %v1375_v13 = vld [vmem:[#allocation2 + $0x20f] sm:$0xff]  ;;  %v1097_v15 = vpack.c.bf16 %v1081_v10, %v1080_v9 }
  0x78   : > { %v11667_v16 = vpack.c.bf16 %v1375_v13, %v1374_v12  ;;  %v8788_v26 = vld [vmem:[%s14396_s1 + $0x10] sm:$0x3] }
  0x79   : > { %v2914_v27 = vand.u32 %v8788_v26, %v11196_v5  ;;  %v1668_v5 = vld [vmem:[#allocation2 + $0x208] sm:$0xff] }
  0x7b   : > { %9855 = vmatmul.mubr.msk.bf16.gmra.mxu0 %vm417_vm2, %v11555_v20 }
  0x7c   : > { %9889 = vmatmul.mubr.msk.bf16.gmra.mxu1 %vm417_vm2, %v11557_v21  ;;  %9858 = vmatprep.mubr.msk.bf16.mxu0 %vm417_vm2, %v11559_v23 }
  0x7d   : > { %9892 = vmatprep.mubr.msk.bf16.mxu1 %vm417_vm2, %v11561_v24 }
  0x83   : > { %9859 = vmatmul.mubr.msk.bf16.gmra.mxu0 %vm417_vm2, %v11571_v35 }
  0x84   : > { %9893 = vmatmul.mubr.msk.bf16.gmra.mxu1 %vm417_vm2, %v11573_v36  ;;  %9898 = vmatprep.mubr.msk.bf16.mxu0 %vm417_vm2, %v1082_v37  ;;  %v1092_v37 = vpack.c.bf16 %v1071_v29, %v1070_v28 }
  0x85   : > { %9932 = vmatprep.mubr.msk.bf16.mxu1 %vm417_vm2, %v11424_v46  ;;  %v1058_v46 = vld [vmem:[#allocation2 + $0x89] sm:$0xff] }
  0x86   : > { %v11612_v2 = vpack.c.bf16 %v1059_v58, %v1058_v46  ;;  %v1078_v46 = vld [vmem:[#allocation2 + $0x1c9] sm:$0xff]  ;;  %v1079_v58 = vld [vmem:[#allocation2 + $0x1d1] sm:$0xff] }
  0x8b   : > { %9899 = vmatmul.mubr.msk.bf16.vlgmr.msra.gmra.mxu0 %vm417_vm2, %v11588_v53 }
  0x8c   : > { %9965 = vmatpush3.bf16.msra.mxu0 %v11427_v49  ;;  %9933 = vmatmul.mubr.msk.bf16.vlgmr.msra.gmra.mxu1 %vm417_vm2, %v11433_v51  ;;  %v1060_v49 = vld [vmem:[#allocation2 + $0xa9] sm:$0xff] }
  0x8d   : > { %9902 = vmatprep.mubr.msk.bf16.mxu0 %vm417_vm2, %v11590_v54  ;;  %9936 = vmatprep.mubr.msk.bf16.mxu1 %vm417_vm2, %v11446_v61 }
  0x8e   : > { %9999 = vmatpush3.bf16.msra.mxu1 %v11530_v1  ;;  %10032 = vmatprep.subr.bf16.mxu0 %v11593_v57  ;;  %v11622_v1 = vpack.c.bf16 %v1061_v3, %v1060_v49  ;;  %v1095_v49 = vpack.c.bf16 %v1077_v56, %v1076_v55  ;;  %v1096_v3 = vpack.c.bf16 %v1079_v58, %v1078_v46 }
  0x8f   : > { %10066 = vmatprep.subr.bf16.mxu1 %v11598_v59 }
  0x93   : > { %9903 = vmatmul.mubr.msk.bf16.gmra.mxu0 %vm417_vm2, %v11609_v0 }
  0x94   : > { %9937 = vmatmul.mubr.msk.bf16.gmra.mxu1 %vm417_vm2, %v11450_v63  ;;  %9906 = vmatprep.mubr.msk.bf16.mxu0 %vm417_vm2, %v11612_v2 }
  0x95   : > { %9940 = vmatprep.mubr.msk.bf16.mxu1 %vm417_vm2, %v11475_v18 }
  0x9b   : > { %9907 = vmatmul.mubr.msk.bf16.gmra.mxu0 %vm417_vm2, %v11622_v1 }
  0x9c   : > { %9941 = vmatmul.mubr.msk.bf16.gmra.mxu1 %vm417_vm2, %v11484_v22  ;;  %9910 = vmatprep.mubr.msk.bf16.mxu0 %vm417_vm2, %v11624_v11 }
  0x9d   : > { %9944 = vmatprep.mubr.msk.bf16.mxu1 %vm417_vm2, %v11498_v32 }
  0xa3   : > { %9911 = vmatmul.mubr.msk.bf16.gmra.mxu0 %vm417_vm2, %v11634_v17 }
  0xa4   : > { %9945 = vmatmul.mubr.msk.bf16.gmra.mxu1 %vm417_vm2, %v11502_v34  ;;  %9914 = vmatprep.mubr.msk.bf16.mxu0 %vm417_vm2, %v11636_v25 }
  0xa5   : > { %9948 = vmatprep.mubr.msk.bf16.mxu1 %vm417_vm2, %v11514_v45 }
  0xab   : > { %9915 = vmatmul.mubr.msk.bf16.gmra.mxu0 %vm417_vm2, %v11646_v30 }
  0xac   : > { %9949 = vmatmul.mubr.msk.bf16.gmra.mxu1 %vm417_vm2, %v11518_v48  ;;  %9918 = vmatprep.mubr.msk.bf16.mxu0 %vm417_vm2, %v1092_v37 }
  0xad   : > { %9952 = vmatprep.mubr.msk.bf16.mxu1 %vm417_vm2, %v11541_v6 }
  0xb3   : > { %9919 = vmatmul.mubr.msk.bf16.gmra.mxu0 %vm417_vm2, %v1093_v43 }
  0xb4   : > { %9953 = vmatmul.mubr.msk.bf16.gmra.mxu1 %vm417_vm2, %v11545_v8  ;;  %9922 = vmatprep.mubr.msk.bf16.mxu0 %vm417_vm2, %v1094_v52 }
  0xb5   : > { %9956 = vmatprep.mubr.msk.bf16.mxu1 %vm417_vm2, %v11557_v21 }
  0xbb   : > { %9923 = vmatmul.mubr.msk.bf16.gmra.mxu0 %vm417_vm2, %v1095_v49 }
  0xbc   : > { %9957 = vmatmul.mubr.msk.bf16.gmra.mxu1 %vm417_vm2, %v11561_v24  ;;  %9926 = vmatprep.mubr.msk.bf16.mxu0 %vm417_vm2, %v1096_v3 }
  0xbd   : > { %9960 = vmatprep.mubr.msk.bf16.mxu1 %vm417_vm2, %v11573_v36 }
  0xc3   : > { %9927 = vmatmul.mubr.msk.bf16.gmra.mxu0 %vm417_vm2, %v1097_v15 }
  0xc4   : > { %9961 = vmatmul.mubr.msk.bf16.gmra.mxu1 %vm417_vm2, %v11667_v16  ;;  %9966 = vmatprep.mubr.msk.bf16.mxu0 %vm417_vm2, %v11422_v42  ;;  %v1669_v42 = vld [vmem:[#allocation2 + $0x210] sm:$0xff] }
  0xc5   : > { %10000 = vmatprep.mubr.msk.bf16.mxu1 %vm417_vm2, %v11588_v53  ;;  %v1962_v53 = vld [vmem:[#allocation2 + $0x209] sm:$0xff] }
  0xcb   : > { %9967 = vmatmul.mubr.msk.bf16.vlgmr.msra.gmra.mxu0 %vm417_vm2, %v11431_v50 }
  0xcc   : > { %10033 = vmatpush3.bf16.msra.mxu0 %v11593_v57  ;;  %10001 = vmatmul.mubr.msk.bf16.vlgmr.msra.gmra.mxu1 %vm417_vm2, %v11590_v54  ;;  %v1963_v57 = vld [vmem:[#allocation2 + $0x211] sm:$0xff] }
  0xcd   : > { %9970 = vmatprep.mubr.msk.bf16.mxu0 %vm417_vm2, %v11444_v60  ;;  %10004 = vmatprep.mubr.msk.bf16.mxu1 %vm417_vm2, %v11609_v0  ;;  %v11734_v28 = vpack.c.bf16 %v1963_v57, %v1962_v53 }
  0xce   : > { %10067 = vmatpush3.bf16.msra.mxu1 %v11598_v59  ;;  %10100 = vmatprep.subr.bf16.mxu0 %v2914_v27  ;;  %v11732_v59 = vpack.c.bf16 %v1669_v42, %v1668_v5 }
  0xd3   : > { %9971 = vmatmul.mubr.msk.bf16.gmra.mxu0 %vm417_vm2, %v11448_v62 }
  0xd4   : > { %10005 = vmatmul.mubr.msk.bf16.gmra.mxu1 %vm417_vm2, %v11612_v2  ;;  %9974 = vmatprep.mubr.msk.bf16.mxu0 %vm417_vm2, %v11467_v14 }
  0xd5   : > { %10008 = vmatprep.mubr.msk.bf16.mxu1 %vm417_vm2, %v11622_v1 }
  0xdb   : > { %9975 = vmatmul.mubr.msk.bf16.gmra.mxu0 %vm417_vm2, %v11477_v19 }
  0xdc   : > { %10009 = vmatmul.mubr.msk.bf16.gmra.mxu1 %vm417_vm2, %v11624_v11  ;;  %9978 = vmatprep.mubr.msk.bf16.mxu0 %vm417_vm2, %v11496_v31 }
  0xdd   : > { %10012 = vmatprep.mubr.msk.bf16.mxu1 %vm417_vm2, %v11634_v17 }
  0xe3   : > { %9979 = vmatmul.mubr.msk.bf16.gmra.mxu0 %vm417_vm2, %v11500_v33 }
  0xe4   : > { %10013 = vmatmul.mubr.msk.bf16.gmra.mxu1 %vm417_vm2, %v11636_v25  ;;  %9982 = vmatprep.mubr.msk.bf16.mxu0 %vm417_vm2, %v11512_v44 }
  0xe5   : > { %10016 = vmatprep.mubr.msk.bf16.mxu1 %vm417_vm2, %v11646_v30 }
  0xeb   : > { %9983 = vmatmul.mubr.msk.bf16.gmra.mxu0 %vm417_vm2, %v11516_v47 }
  0xec   : > { %10017 = vmatmul.mubr.msk.bf16.gmra.mxu1 %vm417_vm2, %v1092_v37  ;;  %9986 = vmatprep.mubr.msk.bf16.mxu0 %vm417_vm2, %v11539_v4 }
  0xed   : > { %10020 = vmatprep.mubr.msk.bf16.mxu1 %vm417_vm2, %v1093_v43 }
  0xf3   : > { %9987 = vmatmul.mubr.msk.bf16.gmra.mxu0 %vm417_vm2, %v11543_v7 }
  0xf4   : > { %10021 = vmatmul.mubr.msk.bf16.gmra.mxu1 %vm417_vm2, %v1094_v52  ;;  %9990 = vmatprep.mubr.msk.bf16.mxu0 %vm417_vm2, %v11555_v20 }
  0xf5   : > { %10024 = vmatprep.mubr.msk.bf16.mxu1 %vm417_vm2, %v1095_v49 }
  0xfb   : > { %9991 = vmatmul.mubr.msk.bf16.gmra.mxu0 %vm417_vm2, %v11559_v23 }
  0xfc   : > { %10025 = vmatmul.mubr.msk.bf16.gmra.mxu1 %vm417_vm2, %v1096_v3  ;;  %9994 = vmatprep.mubr.msk.bf16.mxu0 %vm417_vm2, %v11571_v35 }
  0xfd   : > { %10028 = vmatprep.mubr.msk.bf16.mxu1 %vm417_vm2, %v1097_v15 }
 0x103   : > { %9995 = vmatmul.mubr.msk.bf16.gmra.mxu0 %vm417_vm2, %v11732_v59 }
 0x104   : > { %10029 = vmatmul.mubr.msk.bf16.gmra.mxu1 %vm417_vm2, %v11734_v28  ;;  %10034 = vmatprep.mubr.msk.bf16.mxu0 %vm417_vm2, %v11433_v51 }
 0x105   : > { %10068 = vmatprep.mubr.msk.bf16.mxu1 %vm417_vm2, %v11431_v50 }
 0x10b   : > { %v9832_v29 = vpop.f32.mrf.mxu0  ;;  %10035 = vmatmul.mubr.msk.bf16.vlgmr.msra.gmra.mxu0 %vm417_vm2, %v11446_v61 }
 0x10c   : > { %v9866_v37 = vpop.f32.mrf.mxu1  ;;  %10101 = vmatpush3.bf16.msra.mxu0 %v2914_v27  ;;  %10069 = vmatmul.mubr.msk.bf16.vlgmr.msra.gmra.mxu1 %vm417_vm2, %v11444_v60 }
 0x10d   : > { %v11748_v38 = vadd.f32 %v9866_v37, %v9832_v29  ;;  %v711_v39 = vpop.f32.mrf.mxu0  ;;  %10038 = vmatprep.mubr.msk.bf16.mxu0 %vm417_vm2, %v11450_v63  ;;  %10072 = vmatprep.mubr.msk.bf16.mxu1 %vm417_vm2, %v11448_v62 }
 0x10e   : > { %v923_v51 = vpop.f32.mrf.mxu1 }
 0x10f   : > { %v11754_v50 = vadd.f32 %v923_v51, %v711_v39  ;;  %v9833_v40 = vpop.f32.mrf.mxu0 }
 0x110   : > { %v9867_v41 = vpop.f32.mrf.mxu1 }
 0x111   : > { %v11756_v61 = vadd.f32 %v9867_v41, %v9833_v40  ;;  %v714_v43 = vpop.f32.mrf.mxu0 }
 0x112   : > { %v926_v52 = vpop.f32.mrf.mxu1 }
 0x113   : > { %v11758_v55 = vadd.f32 %v926_v52, %v714_v43  ;;  %v9836_v60 = vpop.f32.mrf.mxu0  ;;  %10039 = vmatmul.mubr.msk.bf16.gmra.mxu0 %vm417_vm2, %v11475_v18 }
 0x114   : > { %v9870_v56 = vpop.f32.mrf.mxu1  ;;  %10073 = vmatmul.mubr.msk.bf16.gmra.mxu1 %vm417_vm2, %v11467_v14  ;;  %10042 = vmatprep.mubr.msk.bf16.mxu0 %vm417_vm2, %v11484_v22 }
 0x115   : > { %v11766_v62 = vadd.f32 %v9870_v56, %v9836_v60  ;;  %v727_v63 = vpop.f32.mrf.mxu0  ;;  %10076 = vmatprep.mubr.msk.bf16.mxu1 %vm417_vm2, %v11477_v19 }
 0x116   : > { %v939_v46 = vpop.f32.mrf.mxu1 }
 0x117   : > { %v11770_v58 = vadd.f32 %v939_v46, %v727_v63  ;;  %v9837_v49 = vpop.f32.mrf.mxu0 }
 0x118   : > { %v9871_v3 = vpop.f32.mrf.mxu1 }
 0x119   : > { %v11772_v9 = vadd.f32 %v9871_v3, %v9837_v49  ;;  %v730_v18 = vpop.f32.mrf.mxu0 }
 0x11a   : > { %v942_v10 = vpop.f32.mrf.mxu1 }
 0x11b   : > { %v11774_v12 = vadd.f32 %v942_v10, %v730_v18  ;;  %v9840_v14 = vpop.f32.mrf.mxu0  ;;  %10043 = vmatmul.mubr.msk.bf16.gmra.mxu0 %vm417_vm2, %v11498_v32 }
 0x11c   : > { %v9874_v22 = vpop.f32.mrf.mxu1  ;;  %10077 = vmatmul.mubr.msk.bf16.gmra.mxu1 %vm417_vm2, %v11496_v31  ;;  %10046 = vmatprep.mubr.msk.bf16.mxu0 %vm417_vm2, %v11502_v34 }
 0x11d   : > { %v11782_v19 = vadd.f32 %v9874_v22, %v9840_v14  ;;  %v743_v13 = vpop.f32.mrf.mxu0  ;;  %10080 = vmatprep.mubr.msk.bf16.mxu1 %vm417_vm2, %v11500_v33 }
 0x11e   : > { %v955_v15 = vpop.f32.mrf.mxu1 }
 0x11f   : > { %v11786_v26 = vadd.f32 %v955_v15, %v743_v13  ;;  %v9841_v27 = vpop.f32.mrf.mxu0 }
 0x120   : > { %v9875_v5 = vpop.f32.mrf.mxu1 }
 0x121   : > { %v11788_v42 = vadd.f32 %v9875_v5, %v9841_v27  ;;  %v746_v32 = vpop.f32.mrf.mxu0 }
 0x122   : > { %v958_v53 = vpop.f32.mrf.mxu1 }
 0x123   : > { %v11790_v57 = vadd.f32 %v958_v53, %v746_v32  ;;  %v9844_v31 = vpop.f32.mrf.mxu0  ;;  %10047 = vmatmul.mubr.msk.bf16.gmra.mxu0 %vm417_vm2, %v11514_v45  ;;  %v2258_v32 = vld [vmem:[#allocation2 + $0x22f] sm:$0xff] }
 0x124   : > { %v9878_v34 = vpop.f32.mrf.mxu1  ;;  %10081 = vmatmul.mubr.msk.bf16.gmra.mxu1 %vm417_vm2, %v11512_v44  ;;  %10050 = vmatprep.mubr.msk.bf16.mxu0 %vm417_vm2, %v11518_v48 }
 0x125   : > { %v11798_v33 = vadd.f32 %v9878_v34, %v9844_v31  ;;  %v759_v29 = vpop.f32.mrf.mxu0  ;;  %10084 = vmatprep.mubr.msk.bf16.mxu1 %vm417_vm2, %v11516_v47  ;;  %v2551_v34 = vld [vmem:[#allocation2 + $0x228] sm:$0xff] }
 0x126   : > { %v971_v37 = vpop.f32.mrf.mxu1 }
 0x127   : > { %v11802_v39 = vadd.f32 %v971_v37, %v759_v29  ;;  %v9845_v51 = vpop.f32.mrf.mxu0  ;;  %v2552_v29 = vld [vmem:[#allocation2 + $0x230] sm:$0xff] }
 0x128   : > { %v9879_v40 = vpop.f32.mrf.mxu1 }
 0x129   : > { %v11804_v41 = vadd.f32 %v9879_v40, %v9845_v51  ;;  %v762_v45 = vpop.f32.mrf.mxu0 }
 0x12a   : > { %v974_v43 = vpop.f32.mrf.mxu1 }
 0x12b   : > { %v11806_v52 = vadd.f32 %v974_v43, %v762_v45  ;;  %v9848_v44 = vpop.f32.mrf.mxu0  ;;  %10051 = vmatmul.mubr.msk.bf16.gmra.mxu0 %vm417_vm2, %v11541_v6 }
 0x12c   : > { %v9882_v48 = vpop.f32.mrf.mxu1  ;;  %10085 = vmatmul.mubr.msk.bf16.gmra.mxu1 %vm417_vm2, %v11539_v4  ;;  %10054 = vmatprep.mubr.msk.bf16.mxu0 %vm417_vm2, %v11545_v8 }
 0x12d   : > { %v11814_v47 = vadd.f32 %v9882_v48, %v9848_v44  ;;  %v775_v60 = vpop.f32.mrf.mxu0  ;;  %10088 = vmatprep.mubr.msk.bf16.mxu1 %vm417_vm2, %v11543_v7 }
 0x12e   : > { %v987_v56 = vpop.f32.mrf.mxu1 }
 0x12f   : > { %v11818_v63 = vadd.f32 %v987_v56, %v775_v60  ;;  %v9849_v46 = vpop.f32.mrf.mxu0 }
 0x130   : > { %v9883_v49 = vpop.f32.mrf.mxu1 }
 0x131   : > { %v11820_v3 = vadd.f32 %v9883_v49, %v9849_v46  ;;  %v11822_v6 = vpop.f32.mrf.mxu0 }
 0x132   : > { %v11824_v18 = vpop.f32.mrf.mxu1 }
 0x133   : > { %v9852_v4 = vpop.f32.mrf.mxu0  ;;  %10055 = vmatmul.mubr.msk.bf16.gmra.mxu0 %vm417_vm2, %v11557_v21 }
 0x134   : > { %v9886_v8 = vpop.f32.mrf.mxu1  ;;  %10089 = vmatmul.mubr.msk.bf16.gmra.mxu1 %vm417_vm2, %v11555_v20  ;;  %10058 = vmatprep.mubr.msk.bf16.mxu0 %vm417_vm2, %v11561_v24 }
 0x135   : > { %v11832_v7 = vadd.f32 %v9886_v8, %v9852_v4  ;;  %v791_v10 = vpop.f32.mrf.mxu0  ;;  %10092 = vmatprep.mubr.msk.bf16.mxu1 %vm417_vm2, %v11559_v23  ;;  %v2257_v23 = vld [vmem:[#allocation2 + $0x227] sm:$0xff] }
 0x136   : > { %v1003_v14 = vpop.f32.mrf.mxu1  ;;  %v2274_v40 = vpack.c.bf16 %v2258_v32, %v2257_v23 }
 0x137   : > { %v11836_v22 = vadd.f32 %v1003_v14, %v791_v10  ;;  %v9853_v13 = vpop.f32.mrf.mxu0 }
 0x138   : > { %v9887_v15 = vpop.f32.mrf.mxu1 }
 0x139   : > { %v11838_v27 = vadd.f32 %v9887_v15, %v9853_v13  ;;  %v11840_v21 = vpop.f32.mrf.mxu0 }
 0x13a   : > { %v11842_v5 = vpop.f32.mrf.mxu1 }
 0x13b   : > { %v9856_v20 = vpop.f32.mrf.mxu0  ;;  %10059 = vmatmul.mubr.msk.bf16.gmra.mxu0 %vm417_vm2, %v11573_v36 }
 0x13c   : > { %v9890_v24 = vpop.f32.mrf.mxu1  ;;  %10093 = vmatmul.mubr.msk.bf16.gmra.mxu1 %vm417_vm2, %v11571_v35  ;;  %10062 = vmatprep.mubr.msk.bf16.mxu0 %vm417_vm2, %v11667_v16  ;;  %v2568_v35 = vpack.c.bf16 %v2552_v29, %v2551_v34 }
 0x13d   : > { %v11850_v53 = vadd.f32 %v9890_v24, %v9856_v20  ;;  %v807_v31 = vpop.f32.mrf.mxu0  ;;  %10096 = vmatprep.mubr.msk.bf16.mxu1 %vm417_vm2, %v11732_v59 }
 0x13e   : > { %v1019_v37 = vpop.f32.mrf.mxu1 }
 0x13f   : > { %v11854_v51 = vadd.f32 %v1019_v37, %v807_v31  ;;  %v9857_v36 = vpop.f32.mrf.mxu0 }
 0x140   : > { %v9891_v45 = vpop.f32.mrf.mxu1 }
 0x141   : > { %v11856_v43 = vadd.f32 %v9891_v45, %v9857_v36  ;;  %v11858_v16 = vpop.f32.mrf.mxu0 }
 0x142   : > { %v11860_v44 = vpop.f32.mrf.mxu1 }
 0x143   : > { %v9860_v48 = vpop.f32.mrf.mxu0  ;;  %10063 = vmatmul.mubr.msk.bf16.gmra.mxu0 %vm417_vm2, %v2274_v40 }
 0x144   : > { %v9894_v60 = vpop.f32.mrf.mxu1  ;;  %10097 = vmatmul.mubr.msk.bf16.gmra.mxu1 %vm417_vm2, %v2568_v35  ;;  %10102 = vmatprep.mubr.msk.bf16.mxu0 %vm417_vm2, %v11590_v54 }
 0x145   : > { %v11866_v59 = vadd.f32 %v9894_v60, %v9860_v48  ;;  %v823_v56 = vpop.f32.mrf.mxu0 }
 0x146   : > { %v1035_v46 = vpop.f32.mrf.mxu1 }
 0x147   : > { %v11868_v49 = vadd.f32 %v1035_v46, %v823_v56  ;;  %v9861_v4 = vpop.f32.mrf.mxu0 }
 0x148   : > { %v9895_v8 = vpop.f32.mrf.mxu1 }
 0x149   : > { %v11870_v10 = vadd.f32 %v9895_v8, %v9861_v4  ;;  %v11872_v14 = vpop.f32.mrf.mxu0 }
 0x14a   : > { %14417 = vst [vmem:[#allocation11_spill] sm:$0xff] %v11872_v14  ;;  %v11874_v13 = vpop.f32.mrf.mxu1 }
 0x14b   : > { %14418 = vst [vmem:[#allocation12_spill] sm:$0xff] %v11874_v13  ;;  %v9900_v15 = vpop.f32.mrf.mxu0  ;;  %10103 = vmatmul.mubr.msk.bf16.vlgmr.msra.gmra.mxu0 %vm417_vm2, %v11609_v0 }
 0x14c   : > { %v1314_v54 = vadd.f32 %v9900_v15, %v11748_v38  ;;  %v9934_v20 = vpop.f32.mrf.mxu1  ;;  %10106 = vmatprep.mubr.msk.bf16.mxu0 %vm417_vm2, %v11612_v2 }
 0x14d   : > { %v1185_v24 = vpop.f32.mrf.mxu0 }
 0x14e   : > { %v1312_v23 = vadd.f32 %v1185_v24, %v11754_v50  ;;  %v11882_v32 = vadd.f32 %v9934_v20, %v1314_v54  ;;  %v1479_v31 = vpop.f32.mrf.mxu1  ;;  %v2831_v24 = vld [vmem:[#allocation2 + $0x149] sm:$0xff] }
 0x14f   : > { %v9901_v34 = vpop.f32.mrf.mxu0 }
 0x150   : > { %v1315_v29 = vadd.f32 %v9901_v34, %v11756_v61  ;;  %v11885_v37 = vadd.f32 %v1479_v31, %v1312_v23  ;;  %v9935_v36 = vpop.f32.mrf.mxu1  ;;  %v2832_v23 = vld [vmem:[#allocation2 + $0x151] sm:$0xff] }
 0x151   : > { %v1188_v40 = vpop.f32.mrf.mxu0 }
 0x152   : > { %v11888_v0 = vadd.f32 %v1188_v40, %v11758_v55  ;;  %v11890_v38 = vadd.f32 %v9935_v36, %v1315_v29  ;;  %v11892_v45 = vpop.f32.mrf.mxu1 }
 0x153   : > { %v9904_v2 = vpop.f32.mrf.mxu0  ;;  %10107 = vmatmul.mubr.msk.bf16.gmra.mxu0 %vm417_vm2, %v11622_v1 }
 0x154   : > { %v1318_v50 = vadd.f32 %v9904_v2, %v11766_v62  ;;  %v9938_v35 = vpop.f32.mrf.mxu1  ;;  %10110 = vmatprep.mubr.msk.bf16.mxu0 %vm417_vm2, %v11624_v11  ;;  %v2855_v2 = vpack.c.bf16 %v2832_v23, %v2831_v24 }
 0x155   : > { %v1201_v61 = vpop.f32.mrf.mxu0 }
 0x156   : > { %v1316_v48 = vadd.f32 %v1201_v61, %v11770_v58  ;;  %v11900_v60 = vadd.f32 %v9938_v35, %v1318_v50  ;;  %v1495_v55 = vpop.f32.mrf.mxu1 }
 0x157   : > { %v9905_v56 = vpop.f32.mrf.mxu0 }
 0x158   : > { %v1319_v46 = vadd.f32 %v9905_v56, %v11772_v9  ;;  %v11903_v4 = vadd.f32 %v1495_v55, %v1316_v48  ;;  %v9939_v8 = vpop.f32.mrf.mxu1  ;;  %v2833_v55 = vld [vmem:[#allocation2 + $0x169] sm:$0xff] }
 0x159   : > { %v1204_v15 = vpop.f32.mrf.mxu0 }
 0x15a   : > { %v11906_v1 = vadd.f32 %v1204_v15, %v11774_v12  ;;  %v11908_v62 = vadd.f32 %v9939_v8, %v1319_v46  ;;  %v11910_v54 = vpop.f32.mrf.mxu1  ;;  %v2835_v46 = vld [vmem:[#allocation2 + $0x189] sm:$0xff]  ;;  %v2836_v8 = vld [vmem:[#allocation2 + $0x191] sm:$0xff] }
 0x15b   : > { %v9908_v11 = vpop.f32.mrf.mxu0  ;;  %10111 = vmatmul.mubr.msk.bf16.gmra.mxu0 %vm417_vm2, %v11634_v17  ;;  %v2857_v23 = vpack.c.bf16 %v2836_v8, %v2835_v46 }
 0x15c   : > { %v1322_v58 = vadd.f32 %v9908_v11, %v11782_v19  ;;  %v9942_v20 = vpop.f32.mrf.mxu1  ;;  %10114 = vmatprep.mubr.msk.bf16.mxu0 %vm417_vm2, %v11636_v25 }
 0x15d   : > { %v1217_v9 = vpop.f32.mrf.mxu0 }
 0x15e   : > { %v1320_v12 = vadd.f32 %v1217_v9, %v11786_v26  ;;  %v11918_v31 = vadd.f32 %v9942_v20, %v1322_v58  ;;  %v1511_v34 = vpop.f32.mrf.mxu1  ;;  %v10859_v26 = vld [vmem:[%s14398_s3 + $0x18] sm:$0xff]  }
 0x15f   : > { %v9909_v29 = vpop.f32.mrf.mxu0  ;;  %10134 = vmatprep.subr.bf16.mxu1 %v10859_v26 }
 0x160   : > { %v1323_v36 = vadd.f32 %v9909_v29, %v11788_v42  ;;  %v11921_v40 = vadd.f32 %v1511_v34, %v1320_v12  ;;  %v9943_v17 = vpop.f32.mrf.mxu1  ;;  %10135 = vmatpush3.bf16.msra.mxu1 %v10859_v26 }
 0x161   : > { %v1220_v19 = vpop.f32.mrf.mxu0 }
 0x162   : > { %v11924_v50 = vadd.f32 %v1220_v19, %v11790_v57  ;;  %v11926_v25 = vadd.f32 %v9943_v17, %v1323_v36  ;;  %v11928_v35 = vpop.f32.mrf.mxu1  ;;  %v2834_v57 = vld [vmem:[#allocation2 + $0x171] sm:$0xff] }
 0x163   : > { %v9912_v61 = vpop.f32.mrf.mxu0  ;;  %10115 = vmatmul.mubr.msk.bf16.gmra.mxu0 %vm417_vm2, %v11646_v30  ;;  %v2856_v9 = vpack.c.bf16 %v2834_v57, %v2833_v55  ;;  %v2838_v19 = vld [vmem:[#allocation2 + $0x1b1] sm:$0xff] }
 0x164   : > { %v1326_v42 = vadd.f32 %v9912_v61, %v11798_v33  ;;  %v9946_v48 = vpop.f32.mrf.mxu1  ;;  %10118 = vmatprep.mubr.msk.bf16.mxu0 %vm417_vm2, %v2855_v2  ;;  %v2839_v61 = vld [vmem:[#allocation2 + $0x1c9] sm:$0xff] }
 0x165   : > { %v1233_v56 = vpop.f32.mrf.mxu0 }
 0x166   : > { %v1324_v15 = vadd.f32 %v1233_v56, %v11802_v39  ;;  %v11938_v11 = vadd.f32 %v9946_v48, %v1326_v42  ;;  %v1527_v58 = vpop.f32.mrf.mxu1  ;;  %v2840_v42 = vld [vmem:[#allocation2 + $0x1d1] sm:$0xff] }
 0x167   : > { %v9913_v20 = vpop.f32.mrf.mxu0 }
 0x168   : > { %v1327_v30 = vadd.f32 %v9913_v20, %v11804_v41  ;;  %v11941_v33 = vadd.f32 %v1527_v58, %v1324_v15  ;;  %v9947_v24 = vpop.f32.mrf.mxu1  ;;  %v2837_v41 = vld [vmem:[#allocation2 + $0x1a9] sm:$0xff]  ;;  %v2859_v15 = vpack.c.bf16 %v2840_v42, %v2839_v61 }
 0x169   : > { %v1236_v12 = vpop.f32.mrf.mxu0  ;;  %v2858_v56 = vpack.c.bf16 %v2838_v19, %v2837_v41 }
 0x16a   : > { %v11944_v34 = vadd.f32 %v1236_v12, %v11806_v52  ;;  %v11946_v29 = vadd.f32 %v9947_v24, %v1327_v30  ;;  %v11948_v36 = vpop.f32.mrf.mxu1 }
 0x16b   : > { %v9916_v39 = vpop.f32.mrf.mxu0  ;;  %10119 = vmatmul.mubr.msk.bf16.gmra.mxu0 %vm417_vm2, %v2856_v9 }
 0x16c   : > { %v1330_v17 = vadd.f32 %v9916_v39, %v11814_v47  ;;  %v9950_v2 = vpop.f32.mrf.mxu1  ;;  %10122 = vmatprep.mubr.msk.bf16.mxu0 %vm417_vm2, %v2857_v23  ;;  %v2841_v23 = vld [vmem:[#allocation2 + $0x1e9] sm:$0xff] }
 0x16d   : > { %v1249_v26 = vpop.f32.mrf.mxu0 }
 0x16e   : > { %v1328_v52 = vadd.f32 %v1249_v26, %v11818_v63  ;;  %v11954_v48 = vadd.f32 %v9950_v2, %v1330_v17  ;;  %v1543_v55 = vpop.f32.mrf.mxu1 }
 0x16f   : > { %v9917_v57 = vpop.f32.mrf.mxu0 }
 0x170   : > { %v1331_v46 = vadd.f32 %v9917_v57, %v11820_v3  ;;  %v11957_v8 = vadd.f32 %v1543_v55, %v1328_v52  ;;  %v9951_v47 = vpop.f32.mrf.mxu1  ;;  %v2842_v3 = vld [vmem:[#allocation2 + $0x1f1] sm:$0xff] }
 0x171   : > { %v11959_v58 = vpop.f32.mrf.mxu0  ;;  %v2860_v19 = vpack.c.bf16 %v2842_v3, %v2841_v23 }
 0x172   : > { %14419 = vst [vmem:[#allocation13_spill] sm:$0xff] %v11959_v58  ;;  %v11961_v20 = vadd.f32 %v9951_v47, %v1331_v46  ;;  %v11963_v9 = vpop.f32.mrf.mxu1  ;;  %v2845_v46 = vld [vmem:[#allocation2 + $0x229] sm:$0xff] }
 0x173   : > { %14420 = vst [vmem:[#allocation14_spill] sm:$0xff] %v11963_v9  ;;  %v9920_v30 = vpop.f32.mrf.mxu0  ;;  %10123 = vmatmul.mubr.msk.bf16.gmra.mxu0 %vm417_vm2, %v2858_v56 }
 0x174   : > { %v1334_v63 = vadd.f32 %v9920_v30, %v11832_v7  ;;  %v9954_v24 = vpop.f32.mrf.mxu1  ;;  %10126 = vmatprep.mubr.msk.bf16.mxu0 %vm417_vm2, %v2859_v15 }
 0x175   : > { %v1265_v12 = vpop.f32.mrf.mxu0 }
 0x176   : > { %v1332_v39 = vadd.f32 %v1265_v12, %v11836_v22  ;;  %v11969_v17 = vadd.f32 %v9954_v24, %v1334_v63  ;;  %v1559_v2 = vpop.f32.mrf.mxu1 }
 0x177   : > { %v9921_v41 = vpop.f32.mrf.mxu0 }
 0x178   : > { %v1335_v26 = vadd.f32 %v9921_v41, %v11838_v27  ;;  %v11972_v61 = vadd.f32 %v1559_v2, %v1332_v39  ;;  %v9955_v42 = vpop.f32.mrf.mxu1  ;;  %v2846_v27 = vld [vmem:[#allocation2 + $0x231] sm:$0xff] }
 0x179   : > { %v11974_v52 = vpop.f32.mrf.mxu0  ;;  %v2862_v23 = vpack.c.bf16 %v2846_v27, %v2845_v46 }
 0x17a   : > { %14421 = vst [vmem:[#allocation15_spill] sm:$0xff] %v11974_v52  ;;  %v11976_v7 = vadd.f32 %v9955_v42, %v1335_v26  ;;  %v11978_v55 = vpop.f32.mrf.mxu1 }
 0x17b   : > { %14422 = vst [vmem:[#allocation16_spill] sm:$0xff] %v11978_v55  ;;  %v9924_v57 = vpop.f32.mrf.mxu0  ;;  %10127 = vmatmul.mubr.msk.bf16.gmra.mxu0 %vm417_vm2, %v2860_v19 }
 0x17c   : > { %v1338_v22 = vadd.f32 %v9924_v57, %v11850_v53  ;;  %v9958_v56 = vpop.f32.mrf.mxu1  ;;  %10130 = vmatprep.mubr.msk.bf16.mxu0 %vm417_vm2, %v11734_v28 }
 0x17d   : > { %v1281_v47 = vpop.f32.mrf.mxu0 }
 0x17e   : > { %v1336_v15 = vadd.f32 %v1281_v47, %v11854_v51  ;;  %v11985_v30 = vadd.f32 %v9958_v56, %v1338_v22  ;;  %v1575_v63 = vpop.f32.mrf.mxu1  ;;  %v10860_v51 = vld [vmem:[%s14398_s3 + $0x10] sm:$0xff]  }
 0x17f   : > { %v9925_v24 = vpop.f32.mrf.mxu0  ;;  %10136 = vmatprep.subr.bf16.mxu1 %v10860_v51 }
 0x180   : > { %v1339_v3 = vadd.f32 %v9925_v24, %v11856_v43  ;;  %v11988_v12 = vadd.f32 %v1575_v63, %v1336_v15  ;;  %v9959_v39 = vpop.f32.mrf.mxu1  ;;  %10137 = vmatpush3.bf16.msra.mxu1 %v10860_v51 }
 0x181   : > { %v11990_v53 = vpop.f32.mrf.mxu0 }
 0x182   : > { %14423 = vst [vmem:[#allocation17_spill] sm:$0xff] %v11990_v53  ;;  %v11992_v2 = vadd.f32 %v9959_v39, %v1339_v3  ;;  %v11994_v28 = vpop.f32.mrf.mxu1 }
 0x183   : > { %14424 = vst [vmem:[#allocation18_spill] sm:$0xff] %v11994_v28  ;;  %v9928_v41 = vpop.f32.mrf.mxu0  ;;  %10131 = vmatmul.mubr.msk.bf16.gmra.mxu0 %vm417_vm2, %v2862_v23 }
 0x184   : > { %v1342_v19 = vadd.f32 %v9928_v41, %v11866_v59  ;;  %v9962_v26 = vpop.f32.mrf.mxu1 }
 0x185   : > { %v1297_v43 = vpop.f32.mrf.mxu0 }
 0x186   : > { %v1340_v42 = vadd.f32 %v1297_v43, %v11868_v49  ;;  %v12002_v57 = vadd.f32 %v9962_v26, %v1342_v19  ;;  %v1591_v22 = vpop.f32.mrf.mxu1  ;;  %v12030_v43 = vld [vmem:[#allocation5] sm:$0xff] }
 0x187   : > { %v9929_v56 = vpop.f32.mrf.mxu0  ;;  %3190 = vst.msk [vmem:[#allocation3 + $0x48] sm:$0xff] %vm3180_vm3, %v12030_v43  ;;  %3181 = vst.msk [vmem:[#allocation3] sm:$0xff] %vm3180_vm3, %v12030_v43 }
 0x188   : > { %v1343_v46 = vadd.f32 %v9929_v56, %v11870_v10  ;;  %v12005_v27 = vadd.f32 %v1591_v22, %v1340_v42  ;;  %v9963_v47 = vpop.f32.mrf.mxu1  ;;  %3182 = vst.msk [vmem:[#allocation3 + $0x8] sm:$0xff] %vm3180_vm3, %v12030_v43  ;;  %3183 = vst.msk [vmem:[#allocation3 + $0x10] sm:$0xff] %vm3180_vm3, %v12030_v43 }
 0x189   : > { %v12007_v15 = vpop.f32.mrf.mxu0  ;;  %3184 = vst.msk [vmem:[#allocation3 + $0x18] sm:$0xff] %vm3180_vm3, %v12030_v43  ;;  %3185 = vst.msk [vmem:[#allocation3 + $0x20] sm:$0xff] %vm3180_vm3, %v12030_v43 }
 0x18a   : > { %14425 = vst [vmem:[#allocation19_spill] sm:$0xff] %v12007_v15  ;;  %v12009_v63 = vadd.f32 %v9963_v47, %v1343_v46  ;;  %v12011_v59 = vpop.f32.mrf.mxu1  ;;  %3186 = vst.msk [vmem:[#allocation3 + $0x28] sm:$0xff] %vm3180_vm3, %v12030_v43 }
 0x18b   : > { %14426 = vst [vmem:[#allocation20_spill] sm:$0xff] %v12011_v59  ;;  %v9968_v24 = vpop.f32.mrf.mxu0  ;;  %3187 = vst.msk [vmem:[#allocation3 + $0x30] sm:$0xff] %vm3180_vm3, %v12030_v43 }
 0x18c   : > { %v12014_v23 = vadd.f32 %v9968_v24, %v11882_v32  ;;  %v12016_v49 = vpop.f32.mrf.mxu1  ;;  %3188 = vst.msk [vmem:[#allocation3 + $0x38] sm:$0xff] %vm3180_vm3, %v12030_v43  ;;  %3189 = vst.msk [vmem:[#allocation3 + $0x40] sm:$0xff] %vm3180_vm3, %v12030_v43 }
 0x18d   : > { %v1773_v3 = vpop.f32.mrf.mxu0  ;;  %3191 = vst.msk [vmem:[#allocation3 + $0x50] sm:$0xff] %vm3180_vm3, %v12030_v43  ;;  %3192 = vst.msk [vmem:[#allocation3 + $0x58] sm:$0xff] %vm3180_vm3, %v12030_v43 }
 0x18e   : > { %v12019_v39 = vadd.f32 %v1773_v3, %v11885_v37  ;;  %v12021_v10 = vpop.f32.mrf.mxu1  ;;  %3193 = vst.msk [vmem:[#allocation3 + $0x60] sm:$0xff] %vm3180_vm3, %v12030_v43  ;;  %3194 = vst.msk [vmem:[#allocation3 + $0x68] sm:$0xff] %vm3180_vm3, %v12030_v43 }
 0x18f   : > { %v9969_v51 = vpop.f32.mrf.mxu0  ;;  %3195 = vst.msk [vmem:[#allocation3 + $0x70] sm:$0xff] %vm3180_vm3, %v12030_v43  ;;  %3196 = vst.msk [vmem:[#allocation3 + $0x78] sm:$0xff] %vm3180_vm3, %v12030_v43  ;;  %v3338_v53 = vld [vmem:[#allocation3 + $0x8] sm:$0xff]  ;;  %v3339_v55 = vld [vmem:[#allocation3 + $0x10] sm:$0xff] }
 0x190   : > { %v12024_v41 = vadd.f32 %v9969_v51, %v11890_v38  ;;  %v12026_v19 = vpop.f32.mrf.mxu1  ;;  %3197 = vst.msk [vmem:[#allocation3 + $0x80] sm:$0xff] %vm3180_vm3, %v12030_v43  ;;  %3198 = vst.msk [vmem:[#allocation3 + $0x88] sm:$0xff] %vm3180_vm3, %v12030_v43  ;;  %v3286_v9 = vld [vmem:[#allocation3 + $0x7] sm:$0xff]  ;;  %v3287_v13 = vld [vmem:[#allocation3 + $0xf] sm:$0xff] }
 0x191   : > { %v12028_v26 = vpop.f32.mrf.mxu0  ;;  %3199 = vst.msk [vmem:[#allocation3 + $0x90] sm:$0xff] %vm3180_vm3, %v12030_v43  ;;  %3200 = vst.msk [vmem:[#allocation3 + $0x98] sm:$0xff] %vm3180_vm3, %v12030_v43  ;;  %v3318_v52 = vpack.c.bf16 %v3287_v13, %v3286_v9 }
 0x192   : > { %3201 = vst.msk [vmem:[#allocation3 + $0xa0] sm:$0xff] %vm3180_vm3, %v12030_v43  ;;  %3202 = vst.msk [vmem:[#allocation3 + $0xa8] sm:$0xff] %vm3180_vm3, %v12030_v43  ;;  %v12176_v32 = vpop.f32.mrf.mxu1 }
 0x193   : > { %3203 = vst.msk [vmem:[#allocation3 + $0xb0] sm:$0xff] %vm3180_vm3, %v12030_v43  ;;  %3204 = vst.msk [vmem:[#allocation3 + $0xb8] sm:$0xff] %vm3180_vm3, %v12030_v43  ;;  %v9972_v37 = vpop.f32.mrf.mxu0  ;;  %10174 = vmatprep.mubr.msk.bf16.mxu0 %vm3180_vm3, %v3318_v52  ;;  %v12242_v52 = vld [vmem:[%s14398_s3 + $0x28] sm:$0xff]  }
 0x194   : > { %3205 = vst.msk [vmem:[#allocation3 + $0xc0] sm:$0xff] %vm3180_vm3, %v12030_v43  ;;  %3206 = vst.msk [vmem:[#allocation3 + $0xc8] sm:$0xff] %vm3180_vm3, %v12030_v43  ;;  %v12179_v38 = vadd.f32 %v9972_v37, %v11900_v60  ;;  %v12181_v42 = vpop.f32.mrf.mxu1  ;;  %v10861_v60 = vld [vmem:[%s14398_s3 + $0x8] sm:$0xff]   ;;  %10206 = vmatprep.subr.bf16.mxu1 %v12242_v52 }
 0x195   : > { %3207 = vst.msk [vmem:[#allocation3 + $0xd0] sm:$0xff] %vm3180_vm3, %v12030_v43  ;;  %3208 = vst.msk [vmem:[#allocation3 + $0xd8] sm:$0xff] %vm3180_vm3, %v12030_v43  ;;  %v1789_v22 = vpop.f32.mrf.mxu0  ;;  %10170 = vmatprep.subr.bf16.mxu0 %v10861_v60 }
 0x196   : > { %3209 = vst.msk [vmem:[#allocation3 + $0xe0] sm:$0xff] %vm3180_vm3, %v12030_v43  ;;  %3210 = vst.msk [vmem:[#allocation3 + $0xe8] sm:$0xff] %vm3180_vm3, %v12030_v43  ;;  %v12184_v56 = vadd.f32 %v1789_v22, %v11903_v4  ;;  %v12186_v46 = vpop.f32.mrf.mxu1  ;;  %10171 = vmatpush3.bf16.msra.mxu0 %v10861_v60  ;;  %v3370_v60 = vpack.c.bf16 %v3339_v55, %v3338_v53 }
 0x197   : > { %3211 = vst.msk [vmem:[#allocation3 + $0xf0] sm:$0xff] %vm3180_vm3, %v12030_v43  ;;  %3212 = vst.msk [vmem:[#allocation3 + $0xf8] sm:$0xff] %vm3180_vm3, %v12030_v43  ;;  %v9973_v47 = vpop.f32.mrf.mxu0 }
 0x198   : > { %3213 = vst.msk [vmem:[#allocation3 + $0x100] sm:$0xff] %vm3180_vm3, %v12030_v43  ;;  %3214 = vst.msk [vmem:[#allocation3 + $0x108] sm:$0xff] %vm3180_vm3, %v12030_v43  ;;  %v12189_v24 = vadd.f32 %v9973_v47, %v11908_v62  ;;  %v12191_v3 = vpop.f32.mrf.mxu1  ;;  %v10862_v47 = vld [vmem:[%s14398_s3] sm:$0xff]   ;;  %10138 = vmatprep.mubr.msk.bf16.mxu1 %vm3180_vm3, %v3370_v60 }
 0x199   : > { %3215 = vst.msk [vmem:[#allocation3 + $0x110] sm:$0xff] %vm3180_vm3, %v12030_v43  ;;  %3216 = vst.msk [vmem:[#allocation3 + $0x118] sm:$0xff] %vm3180_vm3, %v12030_v43  ;;  %v12193_v51 = vpop.f32.mrf.mxu0  ;;  %10172 = vmatprep.subr.bf16.mxu0 %v10862_v47 }
 0x19a   : > { %3217 = vst.msk [vmem:[#allocation3 + $0x120] sm:$0xff] %vm3180_vm3, %v12030_v43  ;;  %3218 = vst.msk [vmem:[#allocation3 + $0x128] sm:$0xff] %vm3180_vm3, %v12030_v43  ;;  %10173 = vmatpush3.bf16.msra.mxu0 %v10862_v47 }
 0x19b   : > { %3219 = vst.msk [vmem:[#allocation3 + $0x130] sm:$0xff] %vm3180_vm3, %v12030_v43  ;;  %3220 = vst.msk [vmem:[#allocation3 + $0x138] sm:$0xff] %vm3180_vm3, %v12030_v43  ;;  %v9976_v37 = vpop.f32.mrf.mxu0 }
 0x19c   : > { %3221 = vst.msk [vmem:[#allocation3 + $0x140] sm:$0xff] %vm3180_vm3, %v12030_v43  ;;  %3222 = vst.msk [vmem:[#allocation3 + $0x148] sm:$0xff] %vm3180_vm3, %v12030_v43  ;;  %v12201_v4 = vadd.f32 %v9976_v37, %v11918_v31 }
 0x19d   : > { %3223 = vst.msk [vmem:[#allocation3 + $0x150] sm:$0xff] %vm3180_vm3, %v12030_v43  ;;  %3224 = vst.msk [vmem:[#allocation3 + $0x158] sm:$0xff] %vm3180_vm3, %v12030_v43  ;;  %v1805_v62 = vpop.f32.mrf.mxu0 }
 0x19e   : > { %3225 = vst.msk [vmem:[#allocation3 + $0x160] sm:$0xff] %vm3180_vm3, %v12030_v43  ;;  %3226 = vst.msk [vmem:[#allocation3 + $0x168] sm:$0xff] %vm3180_vm3, %v12030_v43  ;;  %v12209_v59 = vadd.f32 %v1805_v62, %v11921_v40 }
 0x19f   : > { %3227 = vst.msk [vmem:[#allocation3 + $0x170] sm:$0xff] %vm3180_vm3, %v12030_v43  ;;  %3228 = vst.msk [vmem:[#allocation3 + $0x178] sm:$0xff] %vm3180_vm3, %v12030_v43  ;;  %v9977_v28 = vpop.f32.mrf.mxu0 }
 0x1a0   : > { %3229 = vst.msk [vmem:[#allocation3 + $0x180] sm:$0xff] %vm3180_vm3, %v12030_v43  ;;  %3230 = vst.msk [vmem:[#allocation3 + $0x188] sm:$0xff] %vm3180_vm3, %v12030_v43  ;;  %v12214_v31 = vadd.f32 %v9977_v28, %v11926_v25 }
 0x1a1   : > { %3231 = vst.msk [vmem:[#allocation3 + $0x190] sm:$0xff] %vm3180_vm3, %v12030_v43  ;;  %3232 = vst.msk [vmem:[#allocation3 + $0x198] sm:$0xff] %vm3180_vm3, %v12030_v43  ;;  %v12218_v14 = vpop.f32.mrf.mxu0 }
 0x1a2   : > { %3233 = vst.msk [vmem:[#allocation3 + $0x1a0] sm:$0xff] %vm3180_vm3, %v12030_v43  ;;  %3234 = vst.msk [vmem:[#allocation3 + $0x1a8] sm:$0xff] %vm3180_vm3, %v12030_v43 }
 0x1a3   : > { %3235 = vst.msk [vmem:[#allocation3 + $0x1b0] sm:$0xff] %vm3180_vm3, %v12030_v43  ;;  %3236 = vst.msk [vmem:[#allocation3 + $0x1b8] sm:$0xff] %vm3180_vm3, %v12030_v43  ;;  %v9980_v62 = vpop.f32.mrf.mxu0 }
 0x1a4   : > { %3237 = vst.msk [vmem:[#allocation3 + $0x1c0] sm:$0xff] %vm3180_vm3, %v12030_v43  ;;  %3238 = vst.msk [vmem:[#allocation3 + $0x1c8] sm:$0xff] %vm3180_vm3, %v12030_v43  ;;  %v12225_v58 = vadd.f32 %v9980_v62, %v11938_v11 }
 0x1a5   : > { %3239 = vst.msk [vmem:[#allocation3 + $0x1d0] sm:$0xff] %vm3180_vm3, %v12030_v43  ;;  %3240 = vst.msk [vmem:[#allocation3 + $0x1d8] sm:$0xff] %vm3180_vm3, %v12030_v43  ;;  %v1821_v28 = vpop.f32.mrf.mxu0 }
 0x1a6   : > { %3241 = vst.msk [vmem:[#allocation3 + $0x1e0] sm:$0xff] %vm3180_vm3, %v12030_v43  ;;  %3242 = vst.msk [vmem:[#allocation3 + $0x1e8] sm:$0xff] %vm3180_vm3, %v12030_v43  ;;  %v12230_v47 = vadd.f32 %v1821_v28, %v11941_v33 }
 0x1a7   : > { %3243 = vst.msk [vmem:[#allocation3 + $0x1f0] sm:$0xff] %vm3180_vm3, %v12030_v43  ;;  %3244 = vst.msk [vmem:[#allocation3 + $0x1f8] sm:$0xff] %vm3180_vm3, %v12030_v43  ;;  %v9981_v53 = vpop.f32.mrf.mxu0 }
 0x1a8   : > { %3245 = vst.msk [vmem:[#allocation3 + $0x200] sm:$0xff] %vm3180_vm3, %v12030_v43  ;;  %3246 = vst.msk [vmem:[#allocation3 + $0x208] sm:$0xff] %vm3180_vm3, %v12030_v43  ;;  %v12235_v13 = vadd.f32 %v9981_v53, %v11946_v29 }
 0x1a9   : > { %3247 = vst.msk [vmem:[#allocation3 + $0x210] sm:$0xff] %vm3180_vm3, %v12030_v43  ;;  %3248 = vst.msk [vmem:[#allocation3 + $0x218] sm:$0xff] %vm3180_vm3, %v12030_v43  ;;  %v12244_v11 = vpop.f32.mrf.mxu0 }
 0x1aa   : > { %3249 = vst.msk [vmem:[#allocation3 + $0x220] sm:$0xff] %vm3180_vm3, %v12030_v43  ;;  %3250 = vst.msk [vmem:[#allocation3 + $0x228] sm:$0xff] %vm3180_vm3, %v12030_v43 }
 0x1ab   : > { %3251 = vst.msk [vmem:[#allocation3 + $0x230] sm:$0xff] %vm3180_vm3, %v12030_v43  ;;  %3252 = vst.msk [vmem:[#allocation3 + $0x238] sm:$0xff] %vm3180_vm3, %v12030_v43  ;;  %v12198_v43 = vpop.f32.mrf.mxu1  ;;  %v9984_v33 = vpop.f32.mrf.mxu0 }
 0x1ac   : > { %14428 = vst [vmem:[#allocation22_spill] sm:$0xff] %v12225_v58  ;;  %14430 = vst [vmem:[#allocation24_spill] sm:$0xff] %v12230_v47  ;;  %v12250_v62 = vadd.f32 %v9984_v33, %v11954_v48 }
 0x1ad   : > { %v12203_v22 = vpop.f32.mrf.mxu1  ;;  %14432 = vst [vmem:[#allocation26_spill] sm:$0xff] %v12235_v13  ;;  %14434 = vst [vmem:[#allocation28_spill] sm:$0xff] %v12242_v52  ;;  %v1837_v29 = vpop.f32.mrf.mxu0 }
 0x1ae   : > { %14435 = vst [vmem:[#allocation29_spill] sm:$0xff] %v12244_v11  ;;  %14437 = vst [vmem:[#allocation31_spill] sm:$0xff] %v12250_v62  ;;  %v12255_v53 = vadd.f32 %v1837_v29, %v11957_v8 }
 0x1af   : > { %v12211_v15 = vpop.f32.mrf.mxu1  ;;  %v9985_v13 = vpop.f32.mrf.mxu0 }
 0x1b0   : > { %14439 = vst [vmem:[#allocation33_spill] sm:$0xff] %v12255_v53 }
 0x1b1   : > { %v12216_v37 = vpop.f32.mrf.mxu1 }
 0x1b3   : > { %v12220_v40 = vpop.f32.mrf.mxu1 }
 0x1b4   : > { %14427 = vst [vmem:[#allocation21_spill] sm:$0xff] %v12220_v40 }
 0x1b5   : > { %v12227_v25 = vpop.f32.mrf.mxu1 }
 0x1b6   : > { %14429 = vst [vmem:[#allocation23_spill] sm:$0xff] %v12227_v25 }
 0x1b7   : > { %v12232_v55 = vpop.f32.mrf.mxu1 }
 0x1b8   : > { %14431 = vst [vmem:[#allocation25_spill] sm:$0xff] %v12232_v55  ;;  %v12260_v55 = vadd.f32 %v9985_v13, %v11961_v20 }
 0x1b9   : > { %v12237_v9 = vpop.f32.mrf.mxu1 }
 0x1ba   : > { %14433 = vst [vmem:[#allocation27_spill] sm:$0xff] %v12237_v9  ;;  %14441 = vst [vmem:[#allocation35_spill] sm:$0xff] %v12260_v55 }
 0x1bb   : > { %v12246_v60 = vpop.f32.mrf.mxu1 }
 0x1bc   : > { %14436 = vst [vmem:[#allocation30_spill] sm:$0xff] %v12246_v60  ;;  %v12264_v60 = vpop.f32.mrf.mxu0 }
 0x1bd   : > { %v12252_v28 = vpop.f32.mrf.mxu1  ;;  %14443 = vst [vmem:[#allocation37_spill] sm:$0xff] %v12264_v60 }
 0x1be   : > { %14438 = vst [vmem:[#allocation32_spill] sm:$0xff] %v12252_v28  ;;  %v9988_v48 = vpop.f32.mrf.mxu0 }
 0x1bf   : > { %v12257_v9 = vpop.f32.mrf.mxu1  ;;  %v12269_v33 = vadd.f32 %v9988_v48, %v11969_v17 }
 0x1c0   : > { %14440 = vst [vmem:[#allocation34_spill] sm:$0xff] %v12257_v9  ;;  %v1853_v8 = vpop.f32.mrf.mxu0 }
 0x1c1   : > { %v12262_v47 = vpop.f32.mrf.mxu1  ;;  %14445 = vst [vmem:[#allocation39_spill] sm:$0xff] %v12269_v33  ;;  %v12274_v29 = vadd.f32 %v1853_v8, %v11972_v61 }
 0x1c2   : > { %14442 = vst [vmem:[#allocation36_spill] sm:$0xff] %v12262_v47  ;;  %v9989_v20 = vpop.f32.mrf.mxu0 }
 0x1c3   : > { %v12266_v52 = vpop.f32.mrf.mxu1  ;;  %14447 = vst [vmem:[#allocation41_spill] sm:$0xff] %v12274_v29  ;;  %v12279_v13 = vadd.f32 %v9989_v20, %v11976_v7 }
 0x1c4   : > { %14444 = vst [vmem:[#allocation38_spill] sm:$0xff] %v12266_v52  ;;  %v12283_v55 = vpop.f32.mrf.mxu0 }
 0x1c5   : > { %v12271_v28 = vpop.f32.mrf.mxu1  ;;  %14449 = vst [vmem:[#allocation43_spill] sm:$0xff] %v12279_v13  ;;  %14451 = vst [vmem:[#allocation45_spill] sm:$0xff] %v12283_v55 }
 0x1c6   : > { %14446 = vst [vmem:[#allocation40_spill] sm:$0xff] %v12271_v28  ;;  %v9992_v17 = vpop.f32.mrf.mxu0 }
 0x1c7   : > { %v12276_v9 = vpop.f32.mrf.mxu1  ;;  %v12288_v48 = vadd.f32 %v9992_v17, %v11985_v30 }
 0x1c8   : > { %14448 = vst [vmem:[#allocation42_spill] sm:$0xff] %v12276_v9  ;;  %v1869_v61 = vpop.f32.mrf.mxu0 }
 0x1c9   : > { %v12281_v47 = vpop.f32.mrf.mxu1  ;;  %14453 = vst [vmem:[#allocation47_spill] sm:$0xff] %v12288_v48  ;;  %v12293_v8 = vadd.f32 %v1869_v61, %v11988_v12 }
 0x1ca   : > { %14450 = vst [vmem:[#allocation44_spill] sm:$0xff] %v12281_v47  ;;  %v9993_v7 = vpop.f32.mrf.mxu0 }
 0x1cb   : > { %v12285_v52 = vpop.f32.mrf.mxu1  ;;  %14455 = vst [vmem:[#allocation49_spill] sm:$0xff] %v12293_v8  ;;  %v12298_v20 = vadd.f32 %v9993_v7, %v11992_v2 }
 0x1cc   : > { %14452 = vst [vmem:[#allocation46_spill] sm:$0xff] %v12285_v52  ;;  %v12302_v13 = vpop.f32.mrf.mxu0 }
 0x1cd   : > { %v12290_v28 = vpop.f32.mrf.mxu1  ;;  %14457 = vst [vmem:[#allocation51_spill] sm:$0xff] %v12298_v20  ;;  %14459 = vst [vmem:[#allocation53_spill] sm:$0xff] %v12302_v13 }
 0x1ce   : > { %14454 = vst [vmem:[#allocation48_spill] sm:$0xff] %v12290_v28  ;;  %v9996_v30 = vpop.f32.mrf.mxu0 }
 0x1cf   : > { %v12295_v9 = vpop.f32.mrf.mxu1  ;;  %v12307_v17 = vadd.f32 %v9996_v30, %v12002_v57 }
 0x1d0   : > { %14456 = vst [vmem:[#allocation50_spill] sm:$0xff] %v12295_v9  ;;  %v1885_v12 = vpop.f32.mrf.mxu0 }
 0x1d1   : > { %v12300_v47 = vpop.f32.mrf.mxu1  ;;  %14461 = vst [vmem:[#allocation55_spill] sm:$0xff] %v12307_v17  ;;  %v12312_v61 = vadd.f32 %v1885_v12, %v12005_v27 }
 0x1d2   : > { %14458 = vst [vmem:[#allocation52_spill] sm:$0xff] %v12300_v47  ;;  %v9997_v2 = vpop.f32.mrf.mxu0 }
 0x1d3   : > { %v12304_v52 = vpop.f32.mrf.mxu1  ;;  %14463 = vst [vmem:[#allocation57_spill] sm:$0xff] %v12312_v61  ;;  %v12317_v7 = vadd.f32 %v9997_v2, %v12009_v63 }
 0x1d4   : > { %14460 = vst [vmem:[#allocation54_spill] sm:$0xff] %v12304_v52  ;;  %v12321_v20 = vpop.f32.mrf.mxu0 }
 0x1d5   : > { %v12309_v28 = vpop.f32.mrf.mxu1  ;;  %14465 = vst [vmem:[#allocation59_spill] sm:$0xff] %v12317_v7  ;;  %14467 = vst [vmem:[#allocation61_spill] sm:$0xff] %v12321_v20  ;;  %v12344_v7 = vld [vmem:[%s14398_s3 + $0x38] sm:$0xff]  }
 0x1d6   : > { %14462 = vst [vmem:[#allocation56_spill] sm:$0xff] %v12309_v28  ;;  %v10036_v57 = vpop.f32.mrf.mxu0  ;;  %14469 = vst [vmem:[#allocation63_spill] sm:$0xff] %v12344_v7  ;;  %10242 = vmatprep.subr.bf16.mxu0 %v12344_v7 }
 0x1d7   : > { %v12314_v9 = vpop.f32.mrf.mxu1 }
 0x1d8   : > { %14464 = vst [vmem:[#allocation58_spill] sm:$0xff] %v12314_v9  ;;  %v2362_v17 = vpop.f32.mrf.mxu0 }
 0x1d9   : > { %v12319_v47 = vpop.f32.mrf.mxu1 }
 0x1da   : > { %14466 = vst [vmem:[#allocation60_spill] sm:$0xff] %v12319_v47  ;;  %v10037_v8 = vpop.f32.mrf.mxu0 }
 0x1db   : > { %v12323_v52 = vpop.f32.mrf.mxu1 }
 0x1dc   : > { %14468 = vst [vmem:[#allocation62_spill] sm:$0xff] %v12323_v52  ;;  %v2365_v12 = vpop.f32.mrf.mxu0 }
 0x1dd   : > { %v10070_v30 = vpop.f32.mrf.mxu1 }
 0x1de   : > { %v12329_v9 = vpop.f32.mrf.mxu0 }
 0x1df   : > { %v12325_v28 = vpop.f32.mrf.mxu1 }
 0x1e0   : > { %v12333_v63 = vpop.f32.mrf.mxu0 }
 0x1e1   : > { %v12327_v27 = vpop.f32.mrf.mxu1 }
 0x1e2   : > { %v12335_v2 = vpop.f32.mrf.mxu0 }
 0x1e3   : > { %v12331_v61 = vpop.f32.mrf.mxu1 }
 0x1e4   : > { %v12339_v52 = vpop.f32.mrf.mxu0 }
 0x1e5   : > { %v12337_v47 = vpop.f32.mrf.mxu1 }
 0x1e6   : > { %v12346_v20 = vpop.f32.mrf.mxu0 }
 0x1e7   : > { %v12349_v13 = vpop.f32.mrf.mxu1 }
 0x1e8   : > { %v12351_v48 = vpop.f32.mrf.mxu0 }
 0x1e9   : > { %14470 = vst [vmem:[#allocation64_spill] sm:$0xff] %v12351_v48  ;;  %v12355_v55 = vpop.f32.mrf.mxu1 }
 0x1ea   : > { %v12353_v29 = vpop.f32.mrf.mxu0 }
 0x1eb   : > { %14471 = vst [vmem:[#allocation65_spill] sm:$0xff] %v12353_v29  ;;  %v12361_v60 = vpop.f32.mrf.mxu1 }
 0x1ec   : > { %v12357_v33 = vpop.f32.mrf.mxu0  ;;  %14474 = vst [vmem:[#allocation68_spill] sm:$0xff] %v12361_v60 }
 0x1ed   : > { %14472 = vst [vmem:[#allocation66_spill] sm:$0xff] %v12357_v33  ;;  %v12367_v25 = vpop.f32.mrf.mxu1 }
 0x1ee   : > { %v12359_v53 = vpop.f32.mrf.mxu0  ;;  %14477 = vst [vmem:[#allocation71_spill] sm:$0xff] %v12367_v25 }
 0x1ef   : > { %14473 = vst [vmem:[#allocation67_spill] sm:$0xff] %v12359_v53  ;;  %v12373_v40 = vpop.f32.mrf.mxu1 }
 0x1f0   : > { %v12363_v62 = vpop.f32.mrf.mxu0  ;;  %14480 = vst [vmem:[#allocation74_spill] sm:$0xff] %v12373_v40 }
 0x1f1   : > { %14475 = vst [vmem:[#allocation69_spill] sm:$0xff] %v12363_v62  ;;  %v12379_v33 = vpop.f32.mrf.mxu1 }
 0x1f2   : > { %v12365_v11 = vpop.f32.mrf.mxu0  ;;  %14483 = vst [vmem:[#allocation77_spill] sm:$0xff] %v12379_v33 }
 0x1f3   : > { %14476 = vst [vmem:[#allocation70_spill] sm:$0xff] %v12365_v11  ;;  %v12385_v62 = vpop.f32.mrf.mxu1 }
 0x1f4   : > { %v12369_v7 = vpop.f32.mrf.mxu0 }
 0x1f5   : > { %14478 = vst [vmem:[#allocation72_spill] sm:$0xff] %v12369_v7  ;;  %v12391_v7 = vpop.f32.mrf.mxu1 }
 0x1f6   : > { %v12371_v58 = vpop.f32.mrf.mxu0  ;;  %14488 = vst [vmem:[#allocation82_spill] sm:$0xff] %v12391_v7 }
 0x1f7   : > { %14479 = vst [vmem:[#allocation73_spill] sm:$0xff] %v12371_v58 }
 0x1f8   : > { %v12375_v29 = vpop.f32.mrf.mxu0 }
 0x1f9   : > { %14481 = vst [vmem:[#allocation75_spill] sm:$0xff] %v12375_v29  ;;  %v12397_v29 = vpop.f32.mrf.mxu1 }
 0x1fa   : > { %v12377_v48 = vpop.f32.mrf.mxu0  ;;  %14491 = vst [vmem:[#allocation85_spill] sm:$0xff] %v12397_v29 }
 0x1fb   : > { %14482 = vst [vmem:[#allocation76_spill] sm:$0xff] %v12377_v48 }
 0x1fc   : > { %v12381_v53 = vpop.f32.mrf.mxu0 }
 0x1fd   : > { %14484 = vst [vmem:[#allocation78_spill] sm:$0xff] %v12381_v53  ;;  %v12403_v53 = vpop.f32.mrf.mxu1 }
 0x1fe   : > { %v12383_v60 = vpop.f32.mrf.mxu0  ;;  %14494 = vst [vmem:[#allocation88_spill] sm:$0xff] %v12403_v53 }
 0x1ff   : > { %14485 = vst [vmem:[#allocation79_spill] sm:$0xff] %v12383_v60  ;;  %v12413_v7 = vpop.f32.mrf.mxu1 }
 0x200   : > { %v12387_v11 = vpop.f32.mrf.mxu0 }
 0x201   : > { %14486 = vst [vmem:[#allocation80_spill] sm:$0xff] %v12387_v11  ;;  %v1607_v11 = vadd.f32 %v11892_v45, %v11888_v0  ;;  %v2197_v0 = vadd.f32 %v12026_v19, %v12024_v41  ;;  %v12436_v41 = vld [vmem:[%s14397_s2] ss:$0 sm:$0xff] }
 0x202   : > { %v12389_v25 = vpop.f32.mrf.mxu0 }
 0x203   : > { %14487 = vst [vmem:[#allocation81_spill] sm:$0xff] %v12389_v25 }
 0x204   : > { %v12393_v58 = vpop.f32.mrf.mxu0 }
 0x205   : > { %14489 = vst [vmem:[#allocation83_spill] sm:$0xff] %v12393_v58  ;;  %v2196_v58 = vadd.f32 %v12016_v49, %v12014_v23 }
 0x206   : > { %v12395_v40 = vpop.f32.mrf.mxu0 }
 0x207   : > { %14490 = vst [vmem:[#allocation84_spill] sm:$0xff] %v12395_v40  ;;  %v1901_v40 = vadd.f32 %v12028_v26, %v1607_v11  ;;  %v2492_v26 = vadd.f32 %v10037_v8, %v2197_v0  ;;  %v1611_v11 = vadd.f32 %v11910_v54, %v11906_v1  ;;  %v2198_v54 = vadd.f32 %v12186_v46, %v12184_v56 }
 0x208   : > { %v12399_v48 = vpop.f32.mrf.mxu0 }
 0x209   : > { %14492 = vst [vmem:[#allocation86_spill] sm:$0xff] %v12399_v48  ;;  %v2491_v48 = vadd.f32 %v10036_v57, %v2196_v58  ;;  %v2195_v23 = vadd.f32 %v12176_v32, %v1901_v40  ;;  %v2200_v58 = vadd.f32 %v12181_v42, %v12179_v38  ;;  %v2786_v38 = vadd.f32 %v12327_v27, %v2492_v26 }
 0x20a   : > { %v12401_v33 = vpop.f32.mrf.mxu0 }
 0x20b   : > { %14493 = vst [vmem:[#allocation87_spill] sm:$0xff] %v12401_v33  ;;  %v2194_v33 = vadd.f32 %v12021_v10, %v12019_v39  ;;  %v2490_v39 = vadd.f32 %v2365_v12, %v2195_v23 }
 0x20c   : > { %v12405_v60 = vpop.f32.mrf.mxu0 }
 0x20d   : > { %14495 = vst [vmem:[#allocation89_spill] sm:$0xff] %v12405_v60  ;;  %v2489_v45 = vadd.f32 %v2362_v17, %v2194_v33  ;;  %v2785_v60 = vadd.f32 %v10070_v30, %v2491_v48  ;;  %v1905_v33 = vadd.f32 %v12193_v51, %v1611_v11  ;;  %v2495_v48 = vadd.f32 %v12329_v9, %v2200_v58 }
 0x20e   : > { %v12409_v25 = vpop.f32.mrf.mxu0  ;;  %v2201_v17 = vadd.f32 %v12191_v3, %v12189_v24 }
 0x20f   : > { %14496 = vst [vmem:[#allocation90_spill] sm:$0xff] %v12409_v25  ;;  %v12424_v25 = vpop.f32.mrf.mxu1  ;;  %v2783_v19 = vadd.f32 %v12325_v28, %v2489_v45  ;;  %v2784_v28 = vadd.f32 %v12331_v61, %v2490_v39  ;;  %v2199_v56 = vadd.f32 %v12198_v43, %v1905_v33  ;;  %v2789_v46 = vadd.f32 %v12337_v47, %v2495_v48 }
 0x210   : > { %v12416_v29 = vpop.f32.mrf.mxu0  ;;  %v2496_v0 = vadd.f32 %v12335_v2, %v2201_v17  ;;  %v1615_v45 = vadd.f32 %v11928_v35, %v11924_v50  ;;  %v2204_v43 = vadd.f32 %v12203_v22, %v12201_v4 }
 0x211   : > { %v12439_v32 = vpop.f32.mrf.mxu1  ;;  %v2494_v47 = vadd.f32 %v12339_v52, %v2199_v56  ;;  %v14506_v56 = vld [vmem:[#allocation22_spill] sm:$0xff] }
 0x212   : > { %v12420_v53 = vpop.f32.mrf.mxu0  ;;  %v1909_v50 = vadd.f32 %v12218_v14, %v1615_v45  ;;  %v2499_v35 = vadd.f32 %v12346_v20, %v2204_v43  ;;  %v2790_v22 = vadd.f32 %v12355_v55, %v2496_v0  ;;  %v14497_v14 = vld [vmem:[#allocation68_spill] sm:$0xff]  ;;  %v14508_v0 = vld [vmem:[#allocation29_spill] sm:$0xff]  ;;  %v14510_v45 = vld [vmem:[#allocation74_spill] sm:$0xff] }
 0x213   : > { %v12451_v51 = vpop.f32.mrf.mxu1  ;;  %v14498_v55 = vld [vmem:[#allocation64_spill] sm:$0xff] }
 0x214   : > { %v12427_v49 = vpop.f32.mrf.mxu0 }
 0x215   : > { %v12467_v26 = vpop.f32.mrf.mxu1 }
 0x216   : > { %v10104_v10 = vpop.f32.mrf.mxu0 }
 0x217   : > { %v3079_v40 = vadd.f32 %v10104_v10, %v2785_v60  ;;  %v2493_v60 = vadd.f32 %v12333_v63, %v2198_v54  ;;  %v991_v63 = vadd.f32 %v11824_v18, %v11822_v6  ;;  %v1007_v6 = vadd.f32 %v11842_v5, %v11840_v21  ;;  %v14500_v54 = vld [vmem:[#allocation15_spill] sm:$0xff] }
 0x218   : > { %v2950_v1 = vpop.f32.mrf.mxu0  ;;  %v2202_v18 = vadd.f32 %v12211_v15, %v12209_v59  ;;  %v1619_v21 = vadd.f32 %v11948_v36, %v11944_v34  ;;  %v2205_v5 = vadd.f32 %v12216_v37, %v12214_v31  ;;  %v2788_v15 = vadd.f32 %v14497_v14, %v2494_v47  ;;  %v14501_v36 = vld [vmem:[#allocation21_spill] sm:$0xff]  ;;  %v14502_v31 = vld [vmem:[#allocation71_spill] sm:$0xff] }
 0x219   : > { %v3118_v42 = vadd.f32 %v12436_v41, %v3079_v40  ;;  %v3077_v8 = vadd.f32 %v2950_v1, %v2783_v19  ;;  %v2787_v2 = vadd.f32 %v12349_v13, %v2493_v60  ;;  %v12482_v19 = vadd.f32 %v11860_v44, %v11858_v16  ;;  %v12490_v40 = vpop.f32.mrf.mxu1  ;;  %v14499_v44 = vld [vmem:[#allocation13_spill] sm:$0xff] }
 0x21a   : > { %v10105_v57 = vpop.f32.mrf.mxu0  ;;  %v2497_v20 = vadd.f32 %v14498_v55, %v2202_v18  ;;  %v1329_v1 = vadd.f32 %v14499_v44, %v991_v63  ;;  %v1333_v34 = vadd.f32 %v14500_v54, %v1007_v6  ;;  %v2793_v37 = vadd.f32 %v14502_v31, %v2499_v35  ;;  %v14512_v6 = vld [vmem:[#allocation16_spill] sm:$0xff]  ;;  %v14514_v35 = vld [vmem:[#allocation25_spill] sm:$0xff] }
 0x21b   : > { %v3150_v9 = vmax.f32 %v3118_v42, 0.0  ;;  %v3116_v30 = vadd.f32 %v12436_v41, %v3077_v8  ;;  %v3080_v12 = vadd.f32 %v10105_v57, %v2786_v38  ;;  %v2203_v38 = vadd.f32 %v14501_v36, %v1909_v50  ;;  %v14503_v8 = vld [vmem:[#allocation65_spill] sm:$0xff]  ;;  %v12510_v47 = vpop.f32.mrf.mxu1  ;;  %v14513_v50 = vld [vmem:[#allocation24_spill] sm:$0xff] }
 0x21c   : > { %v2953_v27 = vpop.f32.mrf.mxu0  ;;  %v2500_v17 = vadd.f32 %v14503_v8, %v2205_v5  ;;  %v2791_v43 = vadd.f32 %v14510_v45, %v2497_v20  ;;  %v12516_v18 = vadd.f32 %v14512_v6, %v1333_v34  ;;  %v14517_v20 = vld [vmem:[#allocation26_spill] sm:$0xff]  ;;  %v14520_v54 = vld [vmem:[#allocation69_spill] sm:$0xff] }
 0x21d   : > { %3256 = vst.msk [vmem:[#allocation3 + $0x48] sm:$0xff] %vm3180_vm3, %v3150_v9  ;;  %v3148_v24 = vmax.f32 %v3116_v30, 0.0  ;;  %v3119_v3 = vadd.f32 %v12436_v41, %v3080_v12  ;;  %v3078_v61 = vadd.f32 %v2953_v27, %v2784_v28  ;;  %v14504_v9 = vld [vmem:[#allocation11_spill] sm:$0xff]  ;;  %v14505_v30 = vld [vmem:[#allocation12_spill] sm:$0xff] }
 0x21e   : > { %v10108_v23 = vpop.f32.mrf.mxu0  ;;  %v12503_v12 = vadd.f32 %v14505_v30, %v14504_v9  ;;  %v14521_v30 = vld [vmem:[#allocation82_spill] sm:$0xff] }
 0x21f   : > { %3254 = vst.msk [vmem:[#allocation3 + $0x28] sm:$0xff] %vm3180_vm3, %v3148_v24  ;;  %v3151_v11 = vmax.f32 %v3119_v3, 0.0  ;;  %v3117_v58 = vadd.f32 %v12436_v41, %v3078_v61  ;;  %v3083_v39 = vadd.f32 %v10108_v23, %v2789_v46  ;;  %v14507_v46 = vld [vmem:[#allocation23_spill] sm:$0xff]  ;;  %v1913_v24 = vadd.f32 %v14508_v0, %v1619_v21  ;;  %v14509_v3 = vld [vmem:[#allocation66_spill] sm:$0xff] }
 0x220   : > { %v2966_v4 = vpop.f32.mrf.mxu0  ;;  %v2208_v27 = vadd.f32 %v14507_v46, %v14506_v56  ;;  %v2498_v61 = vadd.f32 %v14509_v3, %v2203_v38  ;;  %v14522_v56 = vld [vmem:[#allocation70_spill] sm:$0xff] }
 0x221   : > { %3257 = vst.msk [vmem:[#allocation3 + $0x50] sm:$0xff] %vm3180_vm3, %v3151_v11  ;;  %v3149_v52 = vmax.f32 %v3117_v58, 0.0  ;;  %v3122_v13 = vadd.f32 %v12436_v41, %v3083_v39  ;;  %v3081_v10 = vadd.f32 %v2966_v4, %v2787_v2  ;;  %v14511_v58 = vld [vmem:[#allocation14_spill] sm:$0xff]  ;;  %v2206_v4 = vadd.f32 %v14514_v35, %v14513_v50  ;;  %v14525_v50 = vld [vmem:[#allocation37_spill] sm:$0xff] }
 0x222   : > { %v10109_v59 = vpop.f32.mrf.mxu0  ;;  %v1623_v39 = vadd.f32 %v14511_v58, %v1329_v1  ;;  %v2792_v1 = vadd.f32 %v12385_v62, %v2498_v61  ;;  %v10864_v61 = vld [vmem:[%s14398_s3 + $0x20] sm:$0xff]   ;;  %v14524_v58 = vld [vmem:[#allocation32_spill] sm:$0xff] }
 0x223   : > { %3255 = vst.msk [vmem:[#allocation3 + $0x30] sm:$0xff] %vm3180_vm3, %v3149_v52  ;;  %v3154_v33 = vmax.f32 %v3122_v13, 0.0  ;;  %v3120_v48 = vadd.f32 %v12436_v41, %v3081_v10  ;;  %v3084_v16 = vadd.f32 %v10109_v59, %v2790_v22  ;;  %v14515_v22 = vld [vmem:[#allocation67_spill] sm:$0xff]  ;;  %v14516_v10 = vld [vmem:[#allocation77_spill] sm:$0xff]  ;;  %v2501_v34 = vadd.f32 %v14520_v54, %v2206_v4  ;;  %v14526_v4 = vld [vmem:[#allocation72_spill] sm:$0xff] }
 0x224   : > { %v2969_v42 = vpop.f32.mrf.mxu0  ;;  %v2503_v52 = vadd.f32 %v14515_v22, %v2208_v27  ;;  %v2794_v21 = vadd.f32 %v14516_v10, %v2500_v17  ;;  %v3342_v9 = vld [vmem:[#allocation3 + $0x48] sm:$0xff]  ;;  %v1917_v35 = vadd.f32 %v14525_v50, %v1623_v39  ;;  %v14528_v10 = vld [vmem:[#allocation85_spill] sm:$0xff] }
 0x225   : > { %3260 = vst.msk [vmem:[#allocation3 + $0x88] sm:$0xff] %vm3180_vm3, %v3154_v33  ;;  %v3152_v28 = vmax.f32 %v3120_v48, 0.0  ;;  %v3123_v57 = vadd.f32 %v12436_v41, %v3084_v16  ;;  %v3082_v60 = vadd.f32 %v2969_v42, %v2788_v15  ;;  %v14518_v33 = vld [vmem:[#allocation27_spill] sm:$0xff]  ;;  %v14519_v16 = vld [vmem:[#allocation30_spill] sm:$0xff]  ;;  %v12529_v42 = vpop.f32.mrf.mxu1 }
 0x226   : > { %v10112_v63 = vpop.f32.mrf.mxu0  ;;  %v3340_v59 = vld [vmem:[#allocation3 + $0x28] sm:$0xff]  ;;  %v2209_v48 = vadd.f32 %v14518_v33, %v14517_v20  ;;  %v2207_v44 = vadd.f32 %v14519_v16, %v1913_v24  ;;  %v2797_v62 = vadd.f32 %v14521_v30, %v2503_v52  ;;  %v14530_v33 = vld [vmem:[#allocation33_spill] sm:$0xff] }
 0x227   : > { %3258 = vst.msk [vmem:[#allocation3 + $0x68] sm:$0xff] %vm3180_vm3, %v3152_v28  ;;  %v3155_v23 = vmax.f32 %v3123_v57, 0.0  ;;  %v3121_v2 = vadd.f32 %v12436_v41, %v3082_v60  ;;  %v3087_v11 = vadd.f32 %v10112_v63, %v2793_v37  ;;  %v3288_v60 = vld [vmem:[#allocation3 + $0x27] sm:$0xff] }
 0x228   : > { %v2982_v13 = vpop.f32.mrf.mxu0  ;;  %v3343_v55 = vld [vmem:[#allocation3 + $0x50] sm:$0xff]  ;;  %v2504_v46 = vadd.f32 %v14522_v56, %v2209_v48  ;;  %v3290_v3 = vld [vmem:[#allocation3 + $0x47] sm:$0xff]  ;;  %v2502_v22 = vadd.f32 %v14526_v4, %v2207_v44  ;;  %v14531_v48 = vld [vmem:[#allocation34_spill] sm:$0xff] }
 0x229   : > { %3261 = vst.msk [vmem:[#allocation3 + $0x90] sm:$0xff] %vm3180_vm3, %v3155_v23  ;;  %v3153_v5 = vmax.f32 %v3121_v2, 0.0  ;;  %v3126_v14 = vadd.f32 %v12436_v41, %v3087_v11  ;;  %v3085_v15 = vadd.f32 %v2982_v13, %v2791_v43  ;;  %v3291_v37 = vld [vmem:[#allocation3 + $0x4f] sm:$0xff]  ;;  %v12539_v24 = vpack.c.bf16 %v3343_v55, %v3342_v9  ;;  %v14523_v11 = vld [vmem:[#allocation31_spill] sm:$0xff] }
 0x22a   : > { %v10113_v36 = vpop.f32.mrf.mxu0  ;;  %v3341_v38 = vld [vmem:[#allocation3 + $0x30] sm:$0xff]  ;;  %v12548_v23 = vpack.c.bf16 %v3291_v37, %v3290_v3  ;;  %v2212_v6 = vadd.f32 %v14524_v58, %v14523_v11  ;;  %v12572_v39 = vld [vmem:[%s14398_s3 + $0x48] sm:$0xff]   ;;  %v2210_v16 = vadd.f32 %v14531_v48, %v14530_v33 }
 0x22b   : > { %v3289_v31 = vld [vmem:[#allocation3 + $0x2f] sm:$0xff]  ;;  %3259 = vst.msk [vmem:[#allocation3 + $0x70] sm:$0xff] %vm3180_vm3, %v3153_v5  ;;  %v3158_v8 = vmax.f32 %v3126_v14, 0.0  ;;  %v3124_v17 = vadd.f32 %v12436_v41, %v3085_v15  ;;  %v3088_v28 = vadd.f32 %v10113_v36, %v2794_v21  ;;  %v12533_v57 = vpack.c.bf16 %v3341_v38, %v3340_v59  ;;  %v12561_v5 = vpop.f32.mrf.mxu1 }
 0x22c   : > { %v2985_v27 = vpop.f32.mrf.mxu0  ;;  %v12537_v0 = vpack.c.bf16 %v3289_v31, %v3288_v60  ;;  %v10866_v2 = vld [vmem:[%s14398_s3 + $0x30] sm:$0xff]   ;;  %v2795_v21 = vadd.f32 %v14528_v10, %v2501_v34  ;;  %v14533_v34 = vld [vmem:[#allocation63_spill] sm:$0xff] }
 0x22d   : > { %3264 = vst.msk [vmem:[#allocation3 + $0xc8] sm:$0xff] %vm3180_vm3, %v3158_v8  ;;  %v3156_v63 = vmax.f32 %v3124_v17, 0.0  ;;  %v3127_v45 = vadd.f32 %v12436_v41, %v3088_v28  ;;  %v3086_v43 = vadd.f32 %v2985_v27, %v2792_v1  ;;  %10139 = vmatmul.mubr.msk.bf16.vlgmr.msra.gmra.mxu1 %vm3180_vm3, %v12533_v57  ;;  %v14527_v52 = vld [vmem:[#allocation28_spill] sm:$0xff]  ;;  %v14529_v55 = vld [vmem:[#allocation17_spill] sm:$0xff]  ;;  %v14535_v60 = vld [vmem:[#allocation35_spill] sm:$0xff]  ;;  %v12593_v58 = vpop.f32.mrf.mxu1 }
 0x22e   : > { %10175 = vmatmul.mubr.msk.bf16.vlgmr.msra.gmra.mxu0 %vm3180_vm3, %v12537_v0  ;;  %10207 = vmatpush3.bf16.msra.mxu1 %v14527_v52  ;;  %v10116_v13 = vpop.f32.mrf.mxu0  ;;  %v1337_v20 = vadd.f32 %v14529_v55, %v12482_v19  ;;  %v14532_v44 = vld [vmem:[#allocation73_spill] sm:$0xff]  ;;  %v14534_v36 = vld [vmem:[#allocation88_spill] sm:$0xff]  ;;  %v14538_v27 = vld [vmem:[#allocation75_spill] sm:$0xff] }
 0x22f   : > { %3262 = vst.msk [vmem:[#allocation3 + $0xa8] sm:$0xff] %vm3180_vm3, %v3156_v63  ;;  %v3159_v14 = vmax.f32 %v3127_v45, 0.0  ;;  %v3125_v15 = vadd.f32 %v12436_v41, %v3086_v43  ;;  %v3091_v59 = vadd.f32 %v10116_v13, %v2797_v62  ;;  %10142 = vmatprep.mubr.msk.bf16.mxu1 %vm3180_vm3, %v12539_v24  ;;  %10178 = vmatprep.mubr.msk.bf16.mxu0 %vm3180_vm3, %v12548_v23  ;;  %v3344_v17 = vld [vmem:[#allocation3 + $0x68] sm:$0xff]  ;;  %v12586_v19 = vld [vmem:[%s14398_s3 + $0x58] sm:$0xff]  }
 0x230   : > { %v2507_v1 = vadd.f32 %v14532_v44, %v2212_v6  ;;  %v2998_v54 = vpop.f32.mrf.mxu0  ;;  %10208 = vmatprep.subr.bf16.mxu1 %v10864_v61  ;;  %10243 = vmatpush3.bf16.msra.mxu0 %v14533_v34  ;;  %v2798_v38 = vadd.f32 %v14534_v36, %v2504_v46  ;;  %v3347_v28 = vld [vmem:[#allocation3 + $0x90] sm:$0xff]  ;;  %v14537_v62 = vld [vmem:[#allocation38_spill] sm:$0xff]  ;;  %v2796_v46 = vadd.f32 %v12413_v7, %v2502_v22  ;;  %v3346_v13 = vld [vmem:[#allocation3 + $0x88] sm:$0xff] }
 0x231   : > { %3265 = vst.msk [vmem:[#allocation3 + $0xd0] sm:$0xff] %vm3180_vm3, %v3159_v14  ;;  %v3157_v31 = vmax.f32 %v3125_v15, 0.0  ;;  %v3130_v37 = vadd.f32 %v12436_v41, %v3091_v59  ;;  %v3089_v8 = vadd.f32 %v2998_v54, %v2795_v21  ;;  %10244 = vmatprep.subr.bf16.mxu0 %v10866_v2  ;;  %v14536_v9 = vld [vmem:[#allocation36_spill] sm:$0xff]  ;;  %v2211_v56 = vadd.f32 %v14537_v62, %v1917_v35  ;;  %v14547_v62 = vld [vmem:[#allocation42_spill] sm:$0xff] }
 0x232   : > { %v2213_v30 = vadd.f32 %v14536_v9, %v14535_v60  ;;  %v2505_v3 = vadd.f32 %v14538_v27, %v2210_v16  ;;  %v10117_v63 = vpop.f32.mrf.mxu0  ;;  %v3345_v45 = vld [vmem:[#allocation3 + $0x70] sm:$0xff]  ;;  %10209 = vmatpush3.bf16.msra.mxu1 %v10864_v61  ;;  %v3292_v35 = vld [vmem:[#allocation3 + $0x67] sm:$0xff]  ;;  %v2801_v7 = vadd.f32 %v12424_v25, %v2507_v1  ;;  %v12604_v14 = vpack.c.bf16 %v3347_v28, %v3346_v13 }
 0x233   : > { %v3293_v43 = vld [vmem:[#allocation3 + $0x6f] sm:$0xff]  ;;  %3263 = vst.msk [vmem:[#allocation3 + $0xb0] sm:$0xff] %vm3180_vm3, %v3157_v31  ;;  %v3162_v6 = vmax.f32 %v3130_v37, 0.0  ;;  %v3128_v50 = vadd.f32 %v12436_v41, %v3089_v8  ;;  %v3092_v4 = vadd.f32 %v10117_v63, %v2798_v38  ;;  %v12597_v52 = vpack.c.bf16 %v3345_v45, %v3344_v17  ;;  %10278 = vmatprep.subr.bf16.mxu1 %v12572_v39  ;;  %v3294_v15 = vld [vmem:[#allocation3 + $0x87] sm:$0xff]  ;;  %v12623_v31 = vpop.f32.mrf.mxu1 }
 0x234   : > { %v3295_v11 = vld [vmem:[#allocation3 + $0x8f] sm:$0xff]  ;;  %v3001_v21 = vpop.f32.mrf.mxu0  ;;  %v12602_v61 = vpack.c.bf16 %v3293_v43, %v3292_v35  ;;  %10245 = vmatpush3.bf16.msra.mxu0 %v10866_v2  ;;  %v14540_v25 = vld [vmem:[#allocation39_spill] sm:$0xff]  ;;  %v14543_v2 = vld [vmem:[#allocation78_spill] sm:$0xff]  ;;  %v2799_v38 = vadd.f32 %v12439_v32, %v2505_v3 }
 0x235   : > { %v14539_v22 = vld [vmem:[#allocation76_spill] sm:$0xff]  ;;  %3268 = vst.msk [vmem:[#allocation3 + $0x108] sm:$0xff] %vm3180_vm3, %v3162_v6  ;;  %v3160_v59 = vmax.f32 %v3128_v50, 0.0  ;;  %v3131_v55 = vadd.f32 %v12436_v41, %v3092_v4  ;;  %v3090_v33 = vadd.f32 %v3001_v21, %v2796_v46  ;;  %10143 = vmatmul.mubr.msk.bf16.gmra.mxu1 %vm3180_vm3, %v12597_v52  ;;  %v12610_v48 = vpack.c.bf16 %v3295_v11, %v3294_v15  ;;  %v14542_v1 = vld [vmem:[#allocation45_spill] sm:$0xff]  ;;  %v14545_v60 = vld [vmem:[#allocation19_spill] sm:$0xff] }
 0x236   : > { %v2508_v10 = vadd.f32 %v14539_v22, %v2213_v30  ;;  %10314 = vmatprep.subr.bf16.mxu0 %v12586_v19  ;;  %v14541_v16 = vld [vmem:[#allocation40_spill] sm:$0xff]  ;;  %v1921_v54 = vadd.f32 %v14542_v1, %v12516_v18  ;;  %v2506_v34 = vadd.f32 %v14543_v2, %v2211_v56  ;;  %10179 = vmatmul.mubr.msk.bf16.gmra.mxu0 %vm3180_vm3, %v12602_v61  ;;  %v10120_v36 = vpop.f32.mrf.mxu0  ;;  %v14544_v18 = vld [vmem:[#allocation18_spill] sm:$0xff]  ;;  %v14546_v30 = vld [vmem:[#allocation41_spill] sm:$0xff] }
 0x237   : > { %v2216_v44 = vadd.f32 %v14541_v16, %v14540_v25  ;;  %10146 = vmatprep.mubr.msk.bf16.mxu1 %vm3180_vm3, %v12604_v14  ;;  %3266 = vst.msk [vmem:[#allocation3 + $0xe8] sm:$0xff] %vm3180_vm3, %v3160_v59  ;;  %v3163_v37 = vmax.f32 %v3131_v55, 0.0  ;;  %v3129_v8 = vadd.f32 %v12436_v41, %v3090_v33  ;;  %v3095_v17 = vadd.f32 %v10120_v36, %v2801_v7  ;;  %v14548_v32 = vld [vmem:[#allocation79_spill] sm:$0xff]  ;;  %v14550_v50 = vld [vmem:[#allocation44_spill] sm:$0xff]  ;;  %v12643_v59 = vpop.f32.mrf.mxu1 }
 0x238   : > { %10182 = vmatprep.mubr.msk.bf16.mxu0 %vm3180_vm3, %v12610_v48  ;;  %v1631_v28 = vadd.f32 %v14544_v18, %v1337_v20  ;;  %v1341_v9 = vadd.f32 %v14545_v60, %v12503_v12  ;;  %v2214_v56 = vadd.f32 %v14547_v62, %v14546_v30  ;;  %v3014_v27 = vpop.f32.mrf.mxu0  ;;  %v2802_v3 = vadd.f32 %v12451_v51, %v2508_v10  ;;  %v3348_v11 = vld [vmem:[#allocation3 + $0xa8] sm:$0xff]  ;;  %v3351_v6 = vld [vmem:[#allocation3 + $0xd0] sm:$0xff]  ;;  %v14551_v12 = vld [vmem:[#allocation46_spill] sm:$0xff] }
 0x239   : > { %v2511_v46 = vadd.f32 %v14548_v32, %v2216_v44  ;;  %3269 = vst.msk [vmem:[#allocation3 + $0x110] sm:$0xff] %vm3180_vm3, %v3163_v37  ;;  %v3161_v63 = vmax.f32 %v3129_v8, 0.0  ;;  %v3134_v45 = vadd.f32 %v12436_v41, %v3095_v17  ;;  %v3093_v43 = vadd.f32 %v3014_v27, %v2799_v38  ;;  %v14549_v20 = vld [vmem:[#allocation43_spill] sm:$0xff]  ;;  %v14552_v7 = vld [vmem:[#allocation80_spill] sm:$0xff] }
 0x23a   : > { %v2217_v4 = vadd.f32 %v14550_v50, %v14549_v20  ;;  %v2215_v35 = vadd.f32 %v14551_v12, %v1921_v54  ;;  %v2800_v13 = vadd.f32 %v12467_v26, %v2506_v34  ;;  %v2509_v22 = vadd.f32 %v14552_v7, %v2214_v56  ;;  %v10121_v21 = vpop.f32.mrf.mxu0  ;;  %v3349_v15 = vld [vmem:[#allocation3 + $0xb0] sm:$0xff]  ;;  %v3296_v44 = vld [vmem:[#allocation3 + $0xa7] sm:$0xff] }
 0x23b   : > { %v3297_v51 = vld [vmem:[#allocation3 + $0xaf] sm:$0xff]  ;;  %3267 = vst.msk [vmem:[#allocation3 + $0xf0] sm:$0xff] %vm3180_vm3, %v3161_v63  ;;  %v3166_v55 = vmax.f32 %v3134_v45, 0.0  ;;  %v3132_v33 = vadd.f32 %v12436_v41, %v3093_v43  ;;  %v3096_v25 = vadd.f32 %v10121_v21, %v2802_v3  ;;  %v12647_v16 = vpack.c.bf16 %v3349_v15, %v3348_v11  ;;  %v3298_v37 = vld [vmem:[#allocation3 + $0xc7] sm:$0xff]  ;;  %v12670_v45 = vpop.f32.mrf.mxu1 }
 0x23c   : > { %v3299_v10 = vld [vmem:[#allocation3 + $0xcf] sm:$0xff]  ;;  %v2805_v26 = vadd.f32 %v12490_v40, %v2511_v46  ;;  %v3017_v34 = vpop.f32.mrf.mxu0  ;;  %v12651_v36 = vpack.c.bf16 %v3297_v51, %v3296_v44  ;;  %v14554_v40 = vld [vmem:[#allocation47_spill] sm:$0xff]  ;;  %v2803_v63 = vadd.f32 %v12510_v47, %v2509_v22 }
 0x23d   : > { %v3350_v1 = vld [vmem:[#allocation3 + $0xc8] sm:$0xff]  ;;  %v14553_v54 = vld [vmem:[#allocation81_spill] sm:$0xff]  ;;  %3272 = vst.msk [vmem:[#allocation3 + $0x148] sm:$0xff] %vm3180_vm3, %v3166_v55  ;;  %v3164_v8 = vmax.f32 %v3132_v33, 0.0  ;;  %v3135_v17 = vadd.f32 %v12436_v41, %v3096_v25  ;;  %v3094_v18 = vadd.f32 %v3017_v34, %v2800_v13  ;;  %10147 = vmatmul.mubr.msk.bf16.gmra.mxu1 %vm3180_vm3, %v12647_v16  ;;  %v12659_v60 = vpack.c.bf16 %v3299_v10, %v3298_v37 }
 0x23e   : > { %v2512_v2 = vadd.f32 %v14553_v54, %v2217_v4  ;;  %v12653_v38 = vpack.c.bf16 %v3351_v6, %v3350_v1  ;;  %v14555_v30 = vld [vmem:[#allocation48_spill] sm:$0xff]  ;;  %v14556_v56 = vld [vmem:[#allocation53_spill] sm:$0xff]  ;;  %v14557_v46 = vld [vmem:[#allocation83_spill] sm:$0xff]  ;;  %10183 = vmatmul.mubr.msk.bf16.gmra.mxu0 %vm3180_vm3, %v12651_v36  ;;  %v10124_v3 = vpop.f32.mrf.mxu0 }
 0x23f   : > { %v2220_v62 = vadd.f32 %v14555_v30, %v14554_v40  ;;  %v1925_v32 = vadd.f32 %v14556_v56, %v1631_v28  ;;  %v2510_v27 = vadd.f32 %v14557_v46, %v2215_v35  ;;  %3270 = vst.msk [vmem:[#allocation3 + $0x128] sm:$0xff] %vm3180_vm3, %v3164_v8  ;;  %v3167_v43 = vmax.f32 %v3135_v17, 0.0  ;;  %10186 = vmatprep.mubr.msk.bf16.mxu0 %vm3180_vm3, %v12659_v60  ;;  %v14558_v28 = vld [vmem:[#allocation20_spill] sm:$0xff]  ;;  %v14559_v50 = vld [vmem:[#allocation49_spill] sm:$0xff]  ;;  %v14560_v4 = vld [vmem:[#allocation50_spill] sm:$0xff]  ;;  %v10098_v8 = vpop.f32.mrf.mxu1 }
 0x240   : > { %10150 = vmatprep.mubr.msk.bf16.mxu1 %vm3180_vm3, %v12653_v38  ;;  %v3133_v11 = vadd.f32 %v12436_v41, %v3094_v18  ;;  %v3099_v6 = vadd.f32 %v10124_v3, %v2805_v26  ;;  %v1635_v20 = vadd.f32 %v14558_v28, %v1341_v9  ;;  %v2218_v12 = vadd.f32 %v14560_v4, %v14559_v50  ;;  %v14561_v35 = vld [vmem:[#allocation84_spill] sm:$0xff]  ;;  %v3030_v7 = vpop.f32.mrf.mxu0  ;;  %v14562_v55 = vld [vmem:[#allocation51_spill] sm:$0xff]  ;;  %v14564_v9 = vld [vmem:[#allocation54_spill] sm:$0xff] }
 0x241   : > { %v2515_v13 = vadd.f32 %v14561_v35, %v2220_v62  ;;  %v2806_v47 = vadd.f32 %v12529_v42, %v2512_v2  ;;  %3273 = vst.msk [vmem:[#allocation3 + $0x150] sm:$0xff] %vm3180_vm3, %v3167_v43  ;;  %v3097_v15 = vadd.f32 %v3030_v7, %v2803_v63  ;;  %v3352_v51 = vld [vmem:[#allocation3 + $0xe8] sm:$0xff]  ;;  %v3355_v10 = vld [vmem:[#allocation3 + $0x110] sm:$0xff]  ;;  %v2219_v44 = vadd.f32 %v14564_v9, %v1925_v32  ;;  %v14565_v26 = vld [vmem:[#allocation86_spill] sm:$0xff] }
 0x242   : > { %v3165_v22 = vmax.f32 %v3133_v11, 0.0  ;;  %v3138_v21 = vadd.f32 %v12436_v41, %v3099_v6  ;;  %v14563_v33 = vld [vmem:[#allocation52_spill] sm:$0xff]  ;;  %v2804_v1 = vadd.f32 %v12561_v5, %v2510_v27  ;;  %v2513_v54 = vadd.f32 %v14565_v26, %v2218_v12  ;;  %v10125_v34 = vpop.f32.mrf.mxu0  ;;  %v14566_v5 = vld [vmem:[#allocation87_spill] sm:$0xff]  ;;  %v14569_v35 = vld [vmem:[#allocation61_spill] sm:$0xff] }
 0x243   : > { %v2221_v25 = vadd.f32 %v14563_v33, %v14562_v55  ;;  %v3353_v37 = vld [vmem:[#allocation3 + $0xf0] sm:$0xff]  ;;  %v3136_v18 = vadd.f32 %v12436_v41, %v3097_v15  ;;  %v3100_v40 = vadd.f32 %v10125_v34, %v2806_v47  ;;  %v3300_v62 = vld [vmem:[#allocation3 + $0xe7] sm:$0xff]  ;;  %v2809_v32 = vadd.f32 %v12593_v58, %v2515_v13  ;;  %v2768_v15 = vpop.f32.mrf.mxu1  ;;  %v14572_v33 = vld [vmem:[#allocation58_spill] sm:$0xff] }
 0x244   : > { %v3301_v42 = vld [vmem:[#allocation3 + $0xef] sm:$0xff]  ;;  %3271 = vst.msk [vmem:[#allocation3 + $0x130] sm:$0xff] %vm3180_vm3, %v3165_v22  ;;  %v3170_v17 = vmax.f32 %v3138_v21, 0.0  ;;  %v12690_v30 = vpack.c.bf16 %v3353_v37, %v3352_v51  ;;  %v3033_v27 = vpop.f32.mrf.mxu0  ;;  %v3302_v43 = vld [vmem:[#allocation3 + $0x107] sm:$0xff]  ;;  %v1929_v13 = vadd.f32 %v14569_v35, %v1635_v20  ;;  %v2807_v21 = vadd.f32 %v12623_v31, %v2513_v54  ;;  %v14573_v9 = vld [vmem:[#allocation90_spill] sm:$0xff] }
 0x245   : > { %v3303_v2 = vld [vmem:[#allocation3 + $0x10f] sm:$0xff]  ;;  %v2516_v46 = vadd.f32 %v14566_v5, %v2221_v25  ;;  %v12694_v3 = vpack.c.bf16 %v3301_v42, %v3300_v62  ;;  %v3168_v11 = vmax.f32 %v3136_v18, 0.0  ;;  %v3139_v6 = vadd.f32 %v12436_v41, %v3100_v40  ;;  %v14567_v58 = vld [vmem:[#allocation55_spill] sm:$0xff]  ;;  %v14576_v40 = vld [vmem:[#allocation62_spill] sm:$0xff] }
 0x246   : > { %v3354_v56 = vld [vmem:[#allocation3 + $0x108] sm:$0xff]  ;;  %3276 = vst.msk [vmem:[#allocation3 + $0x188] sm:$0xff] %vm3180_vm3, %v3170_v17  ;;  %v3098_v28 = vadd.f32 %v3033_v27, %v2804_v1  ;;  %10151 = vmatmul.mubr.msk.bf16.gmra.mxu1 %vm3180_vm3, %v12690_v30  ;;  %v12702_v50 = vpack.c.bf16 %v3303_v2, %v3302_v43  ;;  %v14570_v7 = vld [vmem:[#allocation89_spill] sm:$0xff]  ;;  %v10128_v22 = vpop.f32.mrf.mxu0  ;;  %v2223_v62 = vadd.f32 %v14576_v40, %v1929_v13  ;;  %v10099_v43 = vpop.f32.mrf.mxu1 }
 0x247   : > { %v12696_v63 = vpack.c.bf16 %v3355_v10, %v3354_v56  ;;  %v14568_v4 = vld [vmem:[#allocation56_spill] sm:$0xff]  ;;  %v2514_v47 = vadd.f32 %v14570_v7, %v2219_v44  ;;  %10187 = vmatmul.mubr.msk.bf16.gmra.mxu0 %vm3180_vm3, %v12694_v3  ;;  %3274 = vst.msk [vmem:[#allocation3 + $0x168] sm:$0xff] %vm3180_vm3, %v3168_v11  ;;  %v3171_v51 = vmax.f32 %v3139_v6, 0.0  ;;  %v3103_v55 = vadd.f32 %v10128_v22, %v2809_v32  ;;  %v14571_v20 = vld [vmem:[#allocation57_spill] sm:$0xff]  ;;  %v14574_v2 = vld [vmem:[#allocation59_spill] sm:$0xff] }
 0x248   : > { %v2224_v12 = vadd.f32 %v14568_v4, %v14567_v58  ;;  %v3137_v10 = vadd.f32 %v12436_v41, %v3098_v28  ;;  %10190 = vmatprep.mubr.msk.bf16.mxu0 %vm3180_vm3, %v12702_v50  ;;  %v2222_v25 = vadd.f32 %v14572_v33, %v14571_v20  ;;  %v3046_v1 = vpop.f32.mrf.mxu0  ;;  %v2810_v26 = vadd.f32 %v12643_v59, %v2516_v46  ;;  %v3356_v37 = vld [vmem:[#allocation3 + $0x128] sm:$0xff]  ;;  %v3359_v42 = vld [vmem:[#allocation3 + $0x150] sm:$0xff]  ;;  %v2771_v20 = vpop.f32.mrf.mxu1 }
 0x249   : > { %10154 = vmatprep.mubr.msk.bf16.mxu1 %vm3180_vm3, %v12696_v63  ;;  %3277 = vst.msk [vmem:[#allocation3 + $0x190] sm:$0xff] %vm3180_vm3, %v3171_v51  ;;  %v3142_v54 = vadd.f32 %v12436_v41, %v3103_v55  ;;  %v3101_v34 = vadd.f32 %v3046_v1, %v2807_v21  ;;  %v14575_v17 = vld [vmem:[#allocation60_spill] sm:$0xff]  ;;  %v2808_v56 = vadd.f32 %v12670_v45, %v2514_v47 }
 0x24a   : > { %v2519_v44 = vadd.f32 %v14573_v9, %v2224_v12  ;;  %v3169_v31 = vmax.f32 %v3137_v10, 0.0  ;;  %v2225_v18 = vadd.f32 %v14575_v17, %v14574_v2  ;;  %v2517_v32 = vadd.f32 %v12416_v29, %v2222_v25  ;;  %v10129_v5 = vpop.f32.mrf.mxu0  ;;  %v3307_v46 = vld [vmem:[#allocation3 + $0x14f] sm:$0xff]  ;;  %v3304_v4 = vld [vmem:[#allocation3 + $0x127] sm:$0xff] }
 0x24b   : > { %v3357_v27 = vld [vmem:[#allocation3 + $0x130] sm:$0xff]  ;;  %v3174_v11 = vmax.f32 %v3142_v54, 0.0  ;;  %v3140_v6 = vadd.f32 %v12436_v41, %v3101_v34  ;;  %v3104_v28 = vadd.f32 %v10129_v5, %v2810_v26  ;;  %v3358_v12 = vld [vmem:[#allocation3 + $0x148] sm:$0xff] }
 0x24c   : > { %v3305_v59 = vld [vmem:[#allocation3 + $0x12f] sm:$0xff]  ;;  %3275 = vst.msk [vmem:[#allocation3 + $0x170] sm:$0xff] %vm3180_vm3, %v3169_v31  ;;  %v12730_v58 = vpack.c.bf16 %v3357_v27, %v3356_v37  ;;  %v2813_v35 = vadd.f32 %v10098_v8, %v2519_v44  ;;  %v2520_v45 = vadd.f32 %v12420_v53, %v2225_v18  ;;  %v3049_v13 = vpop.f32.mrf.mxu0  ;;  %v12735_v7 = vpack.c.bf16 %v3359_v42, %v3358_v12  ;;  %v3306_v47 = vld [vmem:[#allocation3 + $0x147] sm:$0xff] }
 0x24d   : > { %v12733_v29 = vpack.c.bf16 %v3305_v59, %v3304_v4  ;;  %3280 = vst.msk [vmem:[#allocation3 + $0x1c8] sm:$0xff] %vm3180_vm3, %v3174_v11  ;;  %v3172_v22 = vmax.f32 %v3140_v6, 0.0  ;;  %v3143_v21 = vadd.f32 %v12436_v41, %v3104_v28  ;;  %v3102_v51 = vadd.f32 %v3049_v13, %v2808_v56  ;;  %v3362_v5 = vld [vmem:[#allocation3 + $0x188] sm:$0xff] }
 0x24e   : > { %10155 = vmatmul.mubr.msk.bf16.gmra.mxu1 %vm3180_vm3, %v12730_v58  ;;  %v12741_v10 = vpack.c.bf16 %v3307_v46, %v3306_v47  ;;  %v2518_v8 = vadd.f32 %v12427_v49, %v2223_v62  ;;  %v10132_v53 = vpop.f32.mrf.mxu0  ;;  %v2811_v55 = vadd.f32 %v2768_v15, %v2517_v32  ;;  %v2814_v49 = vadd.f32 %v10099_v43, %v2520_v45  ;;  %v3360_v54 = vld [vmem:[#allocation3 + $0x168] sm:$0xff] }
 0x24f   : > { %10191 = vmatmul.mubr.msk.bf16.gmra.mxu0 %vm3180_vm3, %v12733_v29  ;;  %10158 = vmatprep.mubr.msk.bf16.mxu1 %vm3180_vm3, %v12735_v7  ;;  %3278 = vst.msk [vmem:[#allocation3 + $0x1a8] sm:$0xff] %vm3180_vm3, %v3172_v22  ;;  %v3175_v33 = vmax.f32 %v3143_v21, 0.0  ;;  %v3141_v25 = vadd.f32 %v12436_v41, %v3102_v51  ;;  %v3107_v9 = vadd.f32 %v10132_v53, %v2813_v35  ;;  %v3308_v32 = vld [vmem:[#allocation3 + $0x167] sm:$0xff] }
 0x250   : > { %10194 = vmatprep.mubr.msk.bf16.mxu0 %vm3180_vm3, %v12741_v10  ;;  %v3062_v44 = vpop.f32.mrf.mxu0  ;;  %v3363_v15 = vld [vmem:[#allocation3 + $0x190] sm:$0xff]  ;;  %v2812_v34 = vadd.f32 %v2771_v20, %v2518_v8  ;;  %v3310_v43 = vld [vmem:[#allocation3 + $0x187] sm:$0xff] }
 0x251   : > { %3281 = vst.msk [vmem:[#allocation3 + $0x1d0] sm:$0xff] %vm3180_vm3, %v3175_v33  ;;  %v3173_v1 = vmax.f32 %v3141_v25, 0.0  ;;  %v3146_v26 = vadd.f32 %v12436_v41, %v3107_v9  ;;  %v3105_v31 = vadd.f32 %v3062_v44, %v2811_v55  ;;  %v3311_v17 = vld [vmem:[#allocation3 + $0x18f] sm:$0xff]  ;;  %v12760_v46 = vpack.c.bf16 %v3363_v15, %v3362_v5 }
 0x252   : > { %v10133_v37 = vpop.f32.mrf.mxu0  ;;  %v12766_v4 = vpack.c.bf16 %v3311_v17, %v3310_v43  ;;  %v3833_v9 = vld [vmem:[#allocation3 + $0x9] sm:$0xff]  ;;  %v3834_v44 = vld [vmem:[#allocation3 + $0x11] sm:$0xff] }
 0x253   : > { %v3361_v42 = vld [vmem:[#allocation3 + $0x170] sm:$0xff]  ;;  %3279 = vst.msk [vmem:[#allocation3 + $0x1b0] sm:$0xff] %vm3180_vm3, %v3173_v1  ;;  %v3178_v18 = vmax.f32 %v3146_v26, 0.0  ;;  %v3144_v40 = vadd.f32 %v12436_v41, %v3105_v31  ;;  %v3108_v62 = vadd.f32 %v10133_v37, %v2814_v49 }
 0x254   : > { %v3309_v2 = vld [vmem:[#allocation3 + $0x16f] sm:$0xff]  ;;  %v12756_v56 = vpack.c.bf16 %v3361_v42, %v3360_v54  ;;  %v3065_v27 = vpop.f32.mrf.mxu0  ;;  %v3314_v33 = vld [vmem:[#allocation3 + $0x1c7] sm:$0xff]  ;;  %v3865_v54 = vpack.c.bf16 %v3834_v44, %v3833_v9 }
 0x255   : > { %v12758_v59 = vpack.c.bf16 %v3309_v2, %v3308_v32  ;;  %3284 = vst.msk [vmem:[#allocation3 + $0x208] sm:$0xff] %vm3180_vm3, %v3178_v18  ;;  %v3176_v11 = vmax.f32 %v3144_v40, 0.0  ;;  %v3147_v6 = vadd.f32 %v12436_v41, %v3108_v62  ;;  %v3106_v28 = vadd.f32 %v3065_v27, %v2812_v34  ;;  %v3366_v20 = vld [vmem:[#allocation3 + $0x1c8] sm:$0xff]  ;;  %v3836_v42 = vld [vmem:[#allocation3 + $0x31] sm:$0xff]  ;;  %v10868_v40 = vld [vmem:[%s14398_s3 + $0x40] sm:$0xff]  }
 0x256   : > { %10159 = vmatmul.mubr.msk.bf16.gmra.mxu1 %vm3180_vm3, %v12756_v56  ;;  %v3364_v13 = vld [vmem:[#allocation3 + $0x1a8] sm:$0xff]  ;;  %v3838_v17 = vld [vmem:[#allocation3 + $0x51] sm:$0xff] }
 0x257   : > { %10195 = vmatmul.mubr.msk.bf16.gmra.mxu0 %vm3180_vm3, %v12758_v59  ;;  %10162 = vmatprep.mubr.msk.bf16.mxu1 %vm3180_vm3, %v12760_v46  ;;  %3282 = vst.msk [vmem:[#allocation3 + $0x1e8] sm:$0xff] %vm3180_vm3, %v3176_v11  ;;  %v3179_v12 = vmax.f32 %v3147_v6, 0.0  ;;  %v3145_v35 = vadd.f32 %v12436_v41, %v3106_v28  ;;  %v3312_v47 = vld [vmem:[#allocation3 + $0x1a7] sm:$0xff]  ;;  %v10870_v32 = vld [vmem:[%s14398_s3 + $0x50] sm:$0xff]  }
 0x258   : > { %10198 = vmatprep.mubr.msk.bf16.mxu0 %vm3180_vm3, %v12766_v4  ;;  %v3367_v22 = vld [vmem:[#allocation3 + $0x1d0] sm:$0xff] }
 0x259   : > { %3285 = vst.msk [vmem:[#allocation3 + $0x210] sm:$0xff] %vm3180_vm3, %v3179_v12  ;;  %v3177_v45 = vmax.f32 %v3145_v35, 0.0  ;;  %v3315_v8 = vld [vmem:[#allocation3 + $0x1cf] sm:$0xff]  ;;  %v12782_v41 = vpack.c.bf16 %v3367_v22, %v3366_v20 }
 0x25a   : > { %v3365_v21 = vld [vmem:[#allocation3 + $0x1b0] sm:$0xff]  ;;  %v12786_v25 = vpack.c.bf16 %v3315_v8, %v3314_v33 }
 0x25b   : > { %v3313_v51 = vld [vmem:[#allocation3 + $0x1af] sm:$0xff]  ;;  %3283 = vst.msk [vmem:[#allocation3 + $0x1f0] sm:$0xff] %vm3180_vm3, %v3177_v45  ;;  %v12778_v53 = vpack.c.bf16 %v3365_v21, %v3364_v13 }
 0x25c   : > { %v12780_v55 = vpack.c.bf16 %v3313_v51, %v3312_v47  ;;  %v3835_v37 = vld [vmem:[#allocation3 + $0x29] sm:$0xff]  ;;  %v3840_v27 = vld [vmem:[#allocation3 + $0x71] sm:$0xff] }
 0x25d   : > { %v3837_v2 = vld [vmem:[#allocation3 + $0x49] sm:$0xff]  ;;  %v12805_v18 = vpack.c.bf16 %v3836_v42, %v3835_v37  ;;  %v3842_v11 = vld [vmem:[#allocation3 + $0x91] sm:$0xff] }
 0x25e   : > { %10163 = vmatmul.mubr.msk.bf16.gmra.mxu1 %vm3180_vm3, %v12778_v53  ;;  %v3368_v49 = vld [vmem:[#allocation3 + $0x1e8] sm:$0xff]  ;;  %v12812_v62 = vpack.c.bf16 %v3838_v17, %v3837_v2  ;;  %v3844_v12 = vld [vmem:[#allocation3 + $0xb1] sm:$0xff] }
 0x25f   : > { %10199 = vmatmul.mubr.msk.bf16.gmra.mxu0 %vm3180_vm3, %v12780_v55  ;;  %10166 = vmatprep.mubr.msk.bf16.mxu1 %vm3180_vm3, %v12782_v41  ;;  %v3316_v26 = vld [vmem:[#allocation3 + $0x1e7] sm:$0xff]  ;;  %v3846_v45 = vld [vmem:[#allocation3 + $0xd1] sm:$0xff] }
 0x260   : > { %10202 = vmatprep.mubr.msk.bf16.mxu0 %vm3180_vm3, %v12786_v25  ;;  %v3839_v5 = vld [vmem:[#allocation3 + $0x69] sm:$0xff]  ;;  %v3848_v21 = vld [vmem:[#allocation3 + $0xf1] sm:$0xff] }
 0x261   : > { %v3841_v43 = vld [vmem:[#allocation3 + $0x89] sm:$0xff]  ;;  %v12835_v6 = vpack.c.bf16 %v3840_v27, %v3839_v5  ;;  %v3850_v8 = vld [vmem:[#allocation3 + $0x111] sm:$0xff] }
 0x262   : > { %v3369_v1 = vld [vmem:[#allocation3 + $0x1f0] sm:$0xff]  ;;  %v12838_v28 = vpack.c.bf16 %v3842_v11, %v3841_v43 }
 0x263   : > { %v3317_v31 = vld [vmem:[#allocation3 + $0x1ef] sm:$0xff]  ;;  %v12794_v15 = vpack.c.bf16 %v3369_v1, %v3368_v49 }
 0x264   : > { %v12796_v34 = vpack.c.bf16 %v3317_v31, %v3316_v26  ;;  %v3845_v35 = vld [vmem:[#allocation3 + $0xc9] sm:$0xff]  ;;  %v3852_v44 = vld [vmem:[#allocation3 + $0x131] sm:$0xff] }
 0x265   : > { %v12851_v47 = vpack.c.bf16 %v3846_v45, %v3845_v35  ;;  %v3847_v22 = vld [vmem:[#allocation3 + $0xe9] sm:$0xff]  ;;  %v3854_v1 = vld [vmem:[#allocation3 + $0x151] sm:$0xff] }
 0x266   : > { %10167 = vmatmul.mubr.msk.bf16.gmra.mxu1 %vm3180_vm3, %v12794_v15  ;;  %v3849_v51 = vld [vmem:[#allocation3 + $0x109] sm:$0xff]  ;;  %v12861_v20 = vpack.c.bf16 %v3848_v21, %v3847_v22  ;;  %v3856_v37 = vld [vmem:[#allocation3 + $0x171] sm:$0xff] }
 0x267   : > { %10203 = vmatmul.mubr.msk.bf16.gmra.mxu0 %vm3180_vm3, %v12796_v34  ;;  %10210 = vmatprep.mubr.msk.bf16.mxu1 %vm3180_vm3, %v3865_v54  ;;  %v12863_v33 = vpack.c.bf16 %v3850_v8, %v3849_v51  ;;  %v3851_v9 = vld [vmem:[#allocation3 + $0x129] sm:$0xff]  ;;  %v3858_v2 = vld [vmem:[#allocation3 + $0x191] sm:$0xff]  ;;  %v10872_v8 = vld [vmem:[%s14398_s3 + $0x60] sm:$0xff]  }
 0x268   : > { %10246 = vmatprep.mubr.msk.bf16.mxu0 %vm3180_vm3, %v12537_v0  ;;  %v12827_v0 = vld [vmem:[%s14398_s3 + $0x68] sm:$0xff]   ;;  %v3874_v26 = vpack.c.bf16 %v3852_v44, %v3851_v9  ;;  %v3860_v5 = vld [vmem:[#allocation3 + $0x1b1] sm:$0xff] }
 0x269   : > { %v3853_v49 = vld [vmem:[#allocation3 + $0x149] sm:$0xff]  ;;  %v3862_v43 = vld [vmem:[#allocation3 + $0x1d1] sm:$0xff] }
 0x26a   : > { %v3875_v31 = vpack.c.bf16 %v3854_v1, %v3853_v49  ;;  %v3855_v54 = vld [vmem:[#allocation3 + $0x169] sm:$0xff]  ;;  %v3864_v35 = vld [vmem:[#allocation3 + $0x1f1] sm:$0xff] }
 0x26b   : > { %v3857_v42 = vld [vmem:[#allocation3 + $0x189] sm:$0xff]  ;;  %v3876_v17 = vpack.c.bf16 %v3856_v37, %v3855_v54 }
 0x26c   : > { %v3861_v27 = vld [vmem:[#allocation3 + $0x1c9] sm:$0xff] }
 0x26d   : > { %v4170_v45 = vld [vmem:[#allocation3 + $0x20f] sm:$0xff]  ;;  %v4169_v21 = vld [vmem:[#allocation3 + $0x207] sm:$0xff] }
 0x26e   : > { %10211 = vmatmul.mubr.msk.bf16.vlgmr.msra.gmra.mxu1 %vm3180_vm3, %v12805_v18  ;;  %v12891_v51 = vpack.c.bf16 %v4170_v45, %v4169_v21  ;;  %v10874_v9 = vld [vmem:[%s14398_s3 + $0x70] sm:$0xff]   ;;  %v5366_v49 = vld [vmem:[#allocation3 + $0x68] sm:$0xff] }
 0x26f   : > { %10247 = vmatmul.mubr.msk.bf16.vlgmr.msra.gmra.mxu0 %vm3180_vm3, %v12548_v23  ;;  %10279 = vmatpush3.bf16.msra.mxu1 %v12572_v39  ;;  %v12833_v39 = vld [vmem:[%s14398_s3 + $0x78] sm:$0xff]   ;;  %v5367_v44 = vld [vmem:[#allocation3 + $0x70] sm:$0xff] }
 0x270   : > { %10214 = vmatprep.mubr.msk.bf16.mxu1 %vm3180_vm3, %v12812_v62  ;;  %10250 = vmatprep.mubr.msk.bf16.mxu0 %vm3180_vm3, %v12602_v61  ;;  %v5397_v1 = vpack.c.bf16 %v5367_v44, %v5366_v49 }
 0x271   : > { %10280 = vmatprep.subr.bf16.mxu1 %v10868_v40  ;;  %10315 = vmatpush3.bf16.msra.mxu0 %v12586_v19  ;;  %v3843_v19 = vld [vmem:[#allocation3 + $0xa9] sm:$0xff] }
 0x272   : > { %10316 = vmatprep.subr.bf16.mxu0 %v10870_v32  ;;  %v12849_v13 = vpack.c.bf16 %v3844_v12, %v3843_v19  ;;  %v3879_v19 = vpack.c.bf16 %v3862_v43, %v3861_v27  ;;  %v3863_v12 = vld [vmem:[#allocation3 + $0x1e9] sm:$0xff] }
 0x273   : > { %10281 = vmatpush3.bf16.msra.mxu1 %v10868_v40  ;;  %v3877_v40 = vpack.c.bf16 %v3858_v2, %v3857_v42  ;;  %v3880_v22 = vpack.c.bf16 %v3864_v35, %v3863_v12 }
 0x274   : > { %10350 = vmatprep.subr.bf16.mxu1 %v12827_v0 }
 0x275   : > { %10317 = vmatpush3.bf16.msra.mxu0 %v10870_v32  ;;  %v3859_v32 = vld [vmem:[#allocation3 + $0x1a9] sm:$0xff] }
 0x276   : > { %10215 = vmatmul.mubr.msk.bf16.gmra.mxu1 %vm3180_vm3, %v12835_v6  ;;  %10386 = vmatprep.subr.bf16.mxu0 %v12833_v39  ;;  %v3878_v11 = vpack.c.bf16 %v3860_v5, %v3859_v32 }
 0x277   : > { %10251 = vmatmul.mubr.msk.bf16.gmra.mxu0 %vm3180_vm3, %v12610_v48  ;;  %10218 = vmatprep.mubr.msk.bf16.mxu1 %vm3180_vm3, %v12838_v28 }
 0x278   : > { %10254 = vmatprep.mubr.msk.bf16.mxu0 %vm3180_vm3, %v12651_v36 }
 0x27e   : > { %10219 = vmatmul.mubr.msk.bf16.gmra.mxu1 %vm3180_vm3, %v12849_v13 }
 0x27f   : > { %10255 = vmatmul.mubr.msk.bf16.gmra.mxu0 %vm3180_vm3, %v12659_v60  ;;  %10222 = vmatprep.mubr.msk.bf16.mxu1 %vm3180_vm3, %v12851_v47 }
 0x280   : > { %10258 = vmatprep.mubr.msk.bf16.mxu0 %vm3180_vm3, %v12694_v3 }
 0x286   : > { %10223 = vmatmul.mubr.msk.bf16.gmra.mxu1 %vm3180_vm3, %v12861_v20 }
 0x287   : > { %10259 = vmatmul.mubr.msk.bf16.gmra.mxu0 %vm3180_vm3, %v12702_v50  ;;  %10226 = vmatprep.mubr.msk.bf16.mxu1 %vm3180_vm3, %v12863_v33 }
 0x288   : > { %10262 = vmatprep.mubr.msk.bf16.mxu0 %vm3180_vm3, %v12733_v29 }
 0x28e   : > { %10227 = vmatmul.mubr.msk.bf16.gmra.mxu1 %vm3180_vm3, %v3874_v26 }
 0x28f   : > { %10263 = vmatmul.mubr.msk.bf16.gmra.mxu0 %vm3180_vm3, %v12741_v10  ;;  %10230 = vmatprep.mubr.msk.bf16.mxu1 %vm3180_vm3, %v3875_v31 }
 0x290   : > { %10266 = vmatprep.mubr.msk.bf16.mxu0 %vm3180_vm3, %v12758_v59 }
 0x296   : > { %10231 = vmatmul.mubr.msk.bf16.gmra.mxu1 %vm3180_vm3, %v3876_v17 }
 0x297   : > { %10267 = vmatmul.mubr.msk.bf16.gmra.mxu0 %vm3180_vm3, %v12766_v4  ;;  %10234 = vmatprep.mubr.msk.bf16.mxu1 %vm3180_vm3, %v3877_v40 }
 0x298   : > { %10270 = vmatprep.mubr.msk.bf16.mxu0 %vm3180_vm3, %v12780_v55 }
 0x29e   : > { %10235 = vmatmul.mubr.msk.bf16.gmra.mxu1 %vm3180_vm3, %v3878_v11 }
 0x29f   : > { %10271 = vmatmul.mubr.msk.bf16.gmra.mxu0 %vm3180_vm3, %v12786_v25  ;;  %10238 = vmatprep.mubr.msk.bf16.mxu1 %vm3180_vm3, %v3879_v19 }
 0x2a0   : > { %10274 = vmatprep.mubr.msk.bf16.mxu0 %vm3180_vm3, %v12796_v34 }
 0x2a6   : > { %10239 = vmatmul.mubr.msk.bf16.gmra.mxu1 %vm3180_vm3, %v3880_v22 }
 0x2a7   : > { %10275 = vmatmul.mubr.msk.bf16.gmra.mxu0 %vm3180_vm3, %v12891_v51  ;;  %10282 = vmatprep.mubr.msk.bf16.mxu1 %vm3180_vm3, %v12533_v57  ;;  %v10875_v57 = vld [vmem:[%s14398_s3 + $0x88] sm:$0xff]  }
 0x2a8   : > { %10318 = vmatprep.mubr.msk.bf16.mxu0 %vm3180_vm3, %v12805_v18  ;;  %v4782_v18 = vld [vmem:[#allocation3 + $0x211] sm:$0xff] }
 0x2ae   : > { %10283 = vmatmul.mubr.msk.bf16.vlgmr.msra.gmra.mxu1 %vm3180_vm3, %v12539_v24  ;;  %v4476_v24 = vld [vmem:[#allocation3 + $0x210] sm:$0xff] }
 0x2af   : > { %10319 = vmatmul.mubr.msk.bf16.vlgmr.msra.gmra.mxu0 %vm3180_vm3, %v12812_v62  ;;  %10351 = vmatpush3.bf16.msra.mxu1 %v12827_v0  ;;  %v4475_v0 = vld [vmem:[#allocation3 + $0x208] sm:$0xff] }
 0x2b0   : > { %10286 = vmatprep.mubr.msk.bf16.mxu1 %vm3180_vm3, %v12597_v52  ;;  %10322 = vmatprep.mubr.msk.bf16.mxu0 %vm3180_vm3, %v12835_v6  ;;  %v4781_v52 = vld [vmem:[#allocation3 + $0x209] sm:$0xff] }
 0x2b1   : > { %10352 = vmatprep.subr.bf16.mxu1 %v10872_v8  ;;  %10387 = vmatpush3.bf16.msra.mxu0 %v12833_v39  ;;  %v5365_v39 = vld [vmem:[#allocation3 + $0x50] sm:$0xff] }
 0x2b2   : > { %10388 = vmatprep.subr.bf16.mxu0 %v10874_v9 }
 0x2b3   : > { %10353 = vmatpush3.bf16.msra.mxu1 %v10872_v8 }
 0x2b4   : > { %10422 = vmatprep.subr.bf16.mxu1 %v10875_v57 }
 0x2b5   : > { %10389 = vmatpush3.bf16.msra.mxu0 %v10874_v9 }
 0x2b6   : > { %10287 = vmatmul.mubr.msk.bf16.gmra.mxu1 %vm3180_vm3, %v12604_v14 }
 0x2b7   : > { %10323 = vmatmul.mubr.msk.bf16.gmra.mxu0 %vm3180_vm3, %v12838_v28  ;;  %10290 = vmatprep.mubr.msk.bf16.mxu1 %vm3180_vm3, %v12647_v16 }
 0x2b8   : > { %10326 = vmatprep.mubr.msk.bf16.mxu0 %vm3180_vm3, %v12849_v13  ;;  %v12960_v13 = vpack.c.bf16 %v4476_v24, %v4475_v0 }
 0x2be   : > { %10291 = vmatmul.mubr.msk.bf16.gmra.mxu1 %vm3180_vm3, %v12653_v38 }
 0x2bf   : > { %10327 = vmatmul.mubr.msk.bf16.gmra.mxu0 %vm3180_vm3, %v12851_v47  ;;  %10294 = vmatprep.mubr.msk.bf16.mxu1 %vm3180_vm3, %v12690_v30  ;;  %v12962_v47 = vpack.c.bf16 %v4782_v18, %v4781_v52 }
 0x2c0   : > { %10330 = vmatprep.mubr.msk.bf16.mxu0 %vm3180_vm3, %v12861_v20  ;;  %v5364_v20 = vld [vmem:[#allocation3 + $0x48] sm:$0xff] }
 0x2c6   : > { %10295 = vmatmul.mubr.msk.bf16.gmra.mxu1 %vm3180_vm3, %v12696_v63 }
 0x2c7   : > { %10331 = vmatmul.mubr.msk.bf16.gmra.mxu0 %vm3180_vm3, %v12863_v33  ;;  %10298 = vmatprep.mubr.msk.bf16.mxu1 %vm3180_vm3, %v12730_v58  ;;  %v5396_v33 = vpack.c.bf16 %v5365_v39, %v5364_v20 }
 0x2c8   : > { %10334 = vmatprep.mubr.msk.bf16.mxu0 %vm3180_vm3, %v3874_v26  ;;  %v10876_v26 = vld [vmem:[%s14398_s3 + $0x80] sm:$0xff]  }
 0x2ce   : > { %10299 = vmatmul.mubr.msk.bf16.gmra.mxu1 %vm3180_vm3, %v12735_v7 }
 0x2cf   : > { %10335 = vmatmul.mubr.msk.bf16.gmra.mxu0 %vm3180_vm3, %v3875_v31  ;;  %10302 = vmatprep.mubr.msk.bf16.mxu1 %vm3180_vm3, %v12756_v56 }
 0x2d0   : > { %10338 = vmatprep.mubr.msk.bf16.mxu0 %vm3180_vm3, %v3876_v17 }
 0x2d6   : > { %10303 = vmatmul.mubr.msk.bf16.gmra.mxu1 %vm3180_vm3, %v12760_v46 }
 0x2d7   : > { %10339 = vmatmul.mubr.msk.bf16.gmra.mxu0 %vm3180_vm3, %v3877_v40  ;;  %10306 = vmatprep.mubr.msk.bf16.mxu1 %vm3180_vm3, %v12778_v53 }
 0x2d8   : > { %10342 = vmatprep.mubr.msk.bf16.mxu0 %vm3180_vm3, %v3878_v11 }
 0x2de   : > { %10307 = vmatmul.mubr.msk.bf16.gmra.mxu1 %vm3180_vm3, %v12782_v41 }
 0x2df   : > { %10343 = vmatmul.mubr.msk.bf16.gmra.mxu0 %vm3180_vm3, %v3879_v19  ;;  %10310 = vmatprep.mubr.msk.bf16.mxu1 %vm3180_vm3, %v12794_v15 }
 0x2e0   : > { %10346 = vmatprep.mubr.msk.bf16.mxu0 %vm3180_vm3, %v3880_v22 }
 0x2e6   : > { %10311 = vmatmul.mubr.msk.bf16.gmra.mxu1 %vm3180_vm3, %v12960_v13 }
 0x2e7   : > { %10347 = vmatmul.mubr.msk.bf16.gmra.mxu0 %vm3180_vm3, %v12962_v47  ;;  %10354 = vmatprep.mubr.msk.bf16.mxu1 %vm3180_vm3, %v12548_v23 }
 0x2e8   : > { %10390 = vmatprep.mubr.msk.bf16.mxu0 %vm3180_vm3, %v5396_v33 }
 0x2ed   : > { %v10140_v31 = vpop.f32.mrf.mxu1 }
 0x2ee   : > { %10355 = vmatmul.mubr.msk.bf16.vlgmr.msra.gmra.mxu1 %vm3180_vm3, %v12602_v61  ;;  %v10176_v54 = vpop.f32.mrf.mxu0 }
 0x2ef   : > { %10391 = vmatmul.mubr.msk.bf16.vlgmr.msra.gmra.mxu0 %vm3180_vm3, %v5397_v1  ;;  %10423 = vmatpush3.bf16.msra.mxu1 %v10875_v57  ;;  %v12977_v37 = vadd.f32 %v10176_v54, %v10140_v31  ;;  %v3485_v23 = vpop.f32.mrf.mxu1 }
 0x2f0   : > { %10358 = vmatprep.mubr.msk.bf16.mxu1 %vm3180_vm3, %v12610_v48  ;;  %10394 = vmatprep.mubr.msk.bf16.mxu0 %vm3180_vm3, %v12604_v14  ;;  %v3706_v42 = vpop.f32.mrf.mxu0 }
 0x2f1   : > { %10424 = vmatprep.subr.bf16.mxu1 %v10876_v26  ;;  %v12983_v2 = vadd.f32 %v3706_v42, %v3485_v23  ;;  %v10141_v17 = vpop.f32.mrf.mxu1 }
 0x2f2   : > { %v10177_v40 = vpop.f32.mrf.mxu0 }
 0x2f3   : > { %10425 = vmatpush3.bf16.msra.mxu1 %v10876_v26  ;;  %v12985_v61 = vadd.f32 %v10177_v40, %v10141_v17  ;;  %v3488_v32 = vpop.f32.mrf.mxu1 }
 0x2f4   : > { %v3709_v5 = vpop.f32.mrf.mxu0 }
 0x2f5   : > { %v12987_v27 = vadd.f32 %v3709_v5, %v3488_v32  ;;  %v10144_v43 = vpop.f32.mrf.mxu1 }
 0x2f6   : > { %10359 = vmatmul.mubr.msk.bf16.gmra.mxu1 %vm3180_vm3, %v12651_v36  ;;  %v10180_v48 = vpop.f32.mrf.mxu0 }
 0x2f7   : > { %10395 = vmatmul.mubr.msk.bf16.gmra.mxu0 %vm3180_vm3, %v12647_v16  ;;  %10362 = vmatprep.mubr.msk.bf16.mxu1 %vm3180_vm3, %v12659_v60  ;;  %v12995_v14 = vadd.f32 %v10180_v48, %v10144_v43  ;;  %v3501_v11 = vpop.f32.mrf.mxu1 }
 0x2f8   : > { %10398 = vmatprep.mubr.msk.bf16.mxu0 %vm3180_vm3, %v12653_v38  ;;  %v3722_v19 = vpop.f32.mrf.mxu0 }
 0x2f9   : > { %v12999_v12 = vadd.f32 %v3722_v19, %v3501_v11  ;;  %v10145_v35 = vpop.f32.mrf.mxu1 }
 0x2fa   : > { %v10181_v45 = vpop.f32.mrf.mxu0 }
 0x2fb   : > { %v13001_v22 = vadd.f32 %v10181_v45, %v10145_v35  ;;  %v3504_v36 = vpop.f32.mrf.mxu1 }
 0x2fc   : > { %v3725_v21 = vpop.f32.mrf.mxu0 }
 0x2fd   : > { %v13003_v8 = vadd.f32 %v3725_v21, %v3504_v36  ;;  %v10148_v16 = vpop.f32.mrf.mxu1 }
 0x2fe   : > { %10363 = vmatmul.mubr.msk.bf16.gmra.mxu1 %vm3180_vm3, %v12694_v3  ;;  %v10184_v60 = vpop.f32.mrf.mxu0 }
 0x2ff   : > { %10399 = vmatmul.mubr.msk.bf16.gmra.mxu0 %vm3180_vm3, %v12690_v30  ;;  %10366 = vmatprep.mubr.msk.bf16.mxu1 %vm3180_vm3, %v12702_v50  ;;  %v13011_v38 = vadd.f32 %v10184_v60, %v10148_v16  ;;  %v3517_v9 = vpop.f32.mrf.mxu1  ;;  %v5089_v60 = vld [vmem:[#allocation3 + $0x22f] sm:$0xff] }
 0x300   : > { %10402 = vmatprep.mubr.msk.bf16.mxu0 %vm3180_vm3, %v12696_v63  ;;  %v3738_v57 = vpop.f32.mrf.mxu0 }
 0x301   : > { %v13015_v24 = vadd.f32 %v3738_v57, %v3517_v9  ;;  %v10149_v52 = vpop.f32.mrf.mxu1 }
 0x302   : > { %v10185_v18 = vpop.f32.mrf.mxu0 }
 0x303   : > { %v13017_v0 = vadd.f32 %v10185_v18, %v10149_v52  ;;  %v3520_v3 = vpop.f32.mrf.mxu1  ;;  %v5394_v52 = vld [vmem:[#allocation3 + $0x228] sm:$0xff]  ;;  %v5395_v18 = vld [vmem:[#allocation3 + $0x230] sm:$0xff] }
 0x304   : > { %v3741_v39 = vpop.f32.mrf.mxu0 }
 0x305   : > { %v13019_v20 = vadd.f32 %v3741_v39, %v3520_v3 }
 0x306   : > { %v10152_v30 = vpop.f32.mrf.mxu1  ;;  %10367 = vmatmul.mubr.msk.bf16.gmra.mxu1 %vm3180_vm3, %v12733_v29 }
 0x307   : > { %v10188_v50 = vpop.f32.mrf.mxu0  ;;  %10403 = vmatmul.mubr.msk.bf16.gmra.mxu0 %vm3180_vm3, %v12730_v58  ;;  %10370 = vmatprep.mubr.msk.bf16.mxu1 %vm3180_vm3, %v12741_v10 }
 0x308   : > { %v13027_v63 = vadd.f32 %v10188_v50, %v10152_v30  ;;  %10406 = vmatprep.mubr.msk.bf16.mxu0 %vm3180_vm3, %v12735_v7  ;;  %v3533_v33 = vpop.f32.mrf.mxu1 }
 0x309   : > { %v3754_v44 = vpop.f32.mrf.mxu0 }
 0x30a   : > { %v13031_v49 = vadd.f32 %v3754_v44, %v3533_v33  ;;  %v10153_v1 = vpop.f32.mrf.mxu1 }
 0x30b   : > { %v10189_v26 = vpop.f32.mrf.mxu0 }
 0x30c   : > { %v13033_v31 = vadd.f32 %v10189_v26, %v10153_v1  ;;  %v3536_v29 = vpop.f32.mrf.mxu1 }
 0x30d   : > { %v3757_v54 = vpop.f32.mrf.mxu0 }
 0x30e   : > { %v13035_v23 = vadd.f32 %v3757_v54, %v3536_v29  ;;  %v10156_v58 = vpop.f32.mrf.mxu1  ;;  %10371 = vmatmul.mubr.msk.bf16.gmra.mxu1 %vm3180_vm3, %v12758_v59 }
 0x30f   : > { %v10192_v10 = vpop.f32.mrf.mxu0  ;;  %10407 = vmatmul.mubr.msk.bf16.gmra.mxu0 %vm3180_vm3, %v12756_v56  ;;  %10374 = vmatprep.mubr.msk.bf16.mxu1 %vm3180_vm3, %v12766_v4 }
 0x310   : > { %v13043_v7 = vadd.f32 %v10192_v10, %v10156_v58  ;;  %10410 = vmatprep.mubr.msk.bf16.mxu0 %vm3180_vm3, %v12760_v46  ;;  %v3549_v42 = vpop.f32.mrf.mxu1 }
 0x311   : > { %v3770_v17 = vpop.f32.mrf.mxu0 }
 0x312   : > { %v13047_v40 = vadd.f32 %v3770_v17, %v3549_v42  ;;  %v10157_v32 = vpop.f32.mrf.mxu1 }
 0x313   : > { %v10193_v5 = vpop.f32.mrf.mxu0 }
 0x314   : > { %v13049_v43 = vadd.f32 %v10193_v5, %v10157_v32  ;;  %v13051_v59 = vpop.f32.mrf.mxu1 }
 0x315   : > { %v13053_v48 = vpop.f32.mrf.mxu0 }
 0x316   : > { %v10160_v56 = vpop.f32.mrf.mxu1  ;;  %10375 = vmatmul.mubr.msk.bf16.gmra.mxu1 %vm3180_vm3, %v12780_v55 }
 0x317   : > { %v10196_v4 = vpop.f32.mrf.mxu0  ;;  %10411 = vmatmul.mubr.msk.bf16.gmra.mxu0 %vm3180_vm3, %v12778_v53  ;;  %10378 = vmatprep.mubr.msk.bf16.mxu1 %vm3180_vm3, %v12786_v25 }
 0x318   : > { %v13061_v46 = vadd.f32 %v10196_v4, %v10160_v56  ;;  %10414 = vmatprep.mubr.msk.bf16.mxu0 %vm3180_vm3, %v12782_v41  ;;  %v3565_v11 = vpop.f32.mrf.mxu1  ;;  %v5088_v41 = vld [vmem:[#allocation3 + $0x227] sm:$0xff] }
 0x319   : > { %v3786_v19 = vpop.f32.mrf.mxu0  ;;  %v5105_v30 = vpack.c.bf16 %v5089_v60, %v5088_v41  ;;  %v5678_v60 = vld [vmem:[#allocation3 + $0xc9] sm:$0xff] }
 0x31a   : > { %v13065_v35 = vadd.f32 %v3786_v19, %v3565_v11  ;;  %v10161_v45 = vpop.f32.mrf.mxu1 }
 0x31b   : > { %v10197_v36 = vpop.f32.mrf.mxu0 }
 0x31c   : > { %v13067_v21 = vadd.f32 %v10197_v36, %v10161_v45  ;;  %v13069_v55 = vpop.f32.mrf.mxu1 }
 0x31d   : > { %v13071_v16 = vpop.f32.mrf.mxu0 }
 0x31e   : > { %14577 = vst [vmem:[#allocation68_spill] sm:$0xff] %v13071_v16  ;;  %v10164_v53 = vpop.f32.mrf.mxu1  ;;  %10379 = vmatmul.mubr.msk.bf16.gmra.mxu1 %vm3180_vm3, %v12796_v34 }
 0x31f   : > { %v10200_v25 = vpop.f32.mrf.mxu0  ;;  %10415 = vmatmul.mubr.msk.bf16.gmra.mxu0 %vm3180_vm3, %v12794_v15  ;;  %10382 = vmatprep.mubr.msk.bf16.mxu1 %vm3180_vm3, %v12891_v51  ;;  %v5411_v15 = vpack.c.bf16 %v5395_v18, %v5394_v52 }
 0x320   : > { %v13079_v9 = vadd.f32 %v10200_v25, %v10164_v53  ;;  %10418 = vmatprep.mubr.msk.bf16.mxu0 %vm3180_vm3, %v12960_v13  ;;  %v3581_v57 = vpop.f32.mrf.mxu1  ;;  %v5676_v53 = vld [vmem:[#allocation3 + $0xa9] sm:$0xff]  ;;  %v5677_v25 = vld [vmem:[#allocation3 + $0xb1] sm:$0xff] }
 0x321   : > { %v3802_v3 = vpop.f32.mrf.mxu0 }
 0x322   : > { %v13083_v39 = vadd.f32 %v3802_v3, %v3581_v57  ;;  %v10165_v34 = vpop.f32.mrf.mxu1  ;;  %v5679_v57 = vld [vmem:[#allocation3 + $0xd1] sm:$0xff]  ;;  %v5705_v3 = vpack.c.bf16 %v5677_v25, %v5676_v53 }
 0x323   : > { %v10201_v50 = vpop.f32.mrf.mxu0 }
 0x324   : > { %v13085_v33 = vadd.f32 %v10201_v50, %v10165_v34  ;;  %v13087_v51 = vpop.f32.mrf.mxu1 }
 0x325   : > { %14578 = vst [vmem:[#allocation64_spill] sm:$0xff] %v13087_v51  ;;  %v13089_v44 = vpop.f32.mrf.mxu0 }
 0x326   : > { %14579 = vst [vmem:[#allocation13_spill] sm:$0xff] %v13089_v44  ;;  %v10168_v1 = vpop.f32.mrf.mxu1  ;;  %10383 = vmatmul.mubr.msk.bf16.gmra.mxu1 %vm3180_vm3, %v5105_v30 }
 0x327   : > { %v10204_v13 = vpop.f32.mrf.mxu0  ;;  %10426 = vmatprep.mubr.msk.bf16.mxu1 %vm3180_vm3, %v12812_v62  ;;  %10419 = vmatmul.mubr.msk.bf16.gmra.mxu0 %vm3180_vm3, %v5411_v15 }
 0x328   : > { %v13095_v26 = vadd.f32 %v10204_v13, %v10168_v1  ;;  %v3597_v29 = vpop.f32.mrf.mxu1 }
 0x329   : > { %v3818_v54 = vpop.f32.mrf.mxu0 }
 0x32a   : > { %v13097_v58 = vadd.f32 %v3818_v54, %v3597_v29  ;;  %v10169_v10 = vpop.f32.mrf.mxu1 }
 0x32b   : > { %v10205_v42 = vpop.f32.mrf.mxu0 }
 0x32c   : > { %v13099_v17 = vadd.f32 %v10205_v42, %v10169_v10  ;;  %v13101_v32 = vpop.f32.mrf.mxu1  ;;  %v5680_v10 = vld [vmem:[#allocation3 + $0xe9] sm:$0xff] }
 0x32d   : > { %14580 = vst [vmem:[#allocation15_spill] sm:$0xff] %v13101_v32  ;;  %v13103_v5 = vpop.f32.mrf.mxu0 }
 0x32e   : > { %14581 = vst [vmem:[#allocation21_spill] sm:$0xff] %v13103_v5  ;;  %v10212_v56 = vpop.f32.mrf.mxu1  ;;  %10427 = vmatmul.mubr.msk.bf16.vlgmr.msra.gmra.mxu1 %vm3180_vm3, %v12835_v6 }
 0x32f   : > { %v4109_v62 = vadd.f32 %v10212_v56, %v12977_v37  ;;  %v10248_v4 = vpop.f32.mrf.mxu0  ;;  %10430 = vmatprep.mubr.msk.bf16.mxu1 %vm3180_vm3, %v12838_v28  ;;  %v5682_v56 = vld [vmem:[#allocation3 + $0x109] sm:$0xff] }
 0x330   : > { %v3980_v11 = vpop.f32.mrf.mxu1 }
 0x331   : > { %v13110_v19 = vadd.f32 %v10248_v4, %v4109_v62  ;;  %v4107_v45 = vadd.f32 %v3980_v11, %v12983_v2  ;;  %v4286_v36 = vpop.f32.mrf.mxu0  ;;  %v5706_v2 = vpack.c.bf16 %v5679_v57, %v5678_v60  ;;  %v5683_v62 = vld [vmem:[#allocation3 + $0x111] sm:$0xff] }
 0x332   : > { %v10213_v41 = vpop.f32.mrf.mxu1 }
 0x333   : > { %v13113_v52 = vadd.f32 %v4286_v36, %v4107_v45  ;;  %v4110_v6 = vadd.f32 %v10213_v41, %v12985_v61  ;;  %v10249_v37 = vpop.f32.mrf.mxu0 }
 0x334   : > { %v3983_v18 = vpop.f32.mrf.mxu1 }
 0x335   : > { %v13116_v34 = vadd.f32 %v10249_v37, %v4110_v6  ;;  %v13119_v28 = vadd.f32 %v3983_v18, %v12987_v27  ;;  %v13121_v30 = vpop.f32.mrf.mxu0  ;;  %v5681_v27 = vld [vmem:[#allocation3 + $0xf1] sm:$0xff] }
 0x336   : > { %v10216_v50 = vpop.f32.mrf.mxu1  ;;  %10431 = vmatmul.mubr.msk.bf16.gmra.mxu1 %vm3180_vm3, %v5705_v3  ;;  %v5707_v36 = vpack.c.bf16 %v5681_v27, %v5680_v10 }
 0x337   : > { %v4113_v15 = vadd.f32 %v10216_v50, %v12995_v14  ;;  %v10252_v1 = vpop.f32.mrf.mxu0  ;;  %10434 = vmatprep.mubr.msk.bf16.mxu1 %vm3180_vm3, %v5706_v2  ;;  %v5684_v2 = vld [vmem:[#allocation3 + $0x129] sm:$0xff] }
 0x338   : > { %v3996_v61 = vpop.f32.mrf.mxu1 }
 0x339   : > { %v13126_v13 = vadd.f32 %v10252_v1, %v4113_v15  ;;  %v4111_v29 = vadd.f32 %v3996_v61, %v12999_v12  ;;  %v4302_v54 = vpop.f32.mrf.mxu0  ;;  %v5708_v12 = vpack.c.bf16 %v5683_v62, %v5682_v56  ;;  %v5686_v15 = vld [vmem:[#allocation3 + $0x149] sm:$0xff]  ;;  %v5687_v1 = vld [vmem:[#allocation3 + $0x151] sm:$0xff] }
 0x33a   : > { %v10217_v42 = vpop.f32.mrf.mxu1 }
 0x33b   : > { %v13129_v4 = vadd.f32 %v4302_v54, %v4111_v29  ;;  %v4114_v11 = vadd.f32 %v10217_v42, %v13001_v22  ;;  %v10253_v45 = vpop.f32.mrf.mxu0 }
 0x33c   : > { %v3999_v14 = vpop.f32.mrf.mxu1 }
 0x33d   : > { %v13132_v53 = vadd.f32 %v10253_v45, %v4114_v11  ;;  %v13135_v25 = vadd.f32 %v3999_v14, %v13003_v8  ;;  %v13137_v41 = vpop.f32.mrf.mxu0  ;;  %v5685_v8 = vld [vmem:[#allocation3 + $0x131] sm:$0xff] }
 0x33e   : > { %v10220_v60 = vpop.f32.mrf.mxu1  ;;  %10435 = vmatmul.mubr.msk.bf16.gmra.mxu1 %vm3180_vm3, %v5707_v36  ;;  %v5709_v10 = vpack.c.bf16 %v5685_v8, %v5684_v2 }
 0x33f   : > { %v4117_v57 = vadd.f32 %v10220_v60, %v13011_v38  ;;  %v10256_v6 = vpop.f32.mrf.mxu0  ;;  %10438 = vmatprep.mubr.msk.bf16.mxu1 %vm3180_vm3, %v5708_v12  ;;  %v5688_v60 = vld [vmem:[#allocation3 + $0x169] sm:$0xff] }
 0x340   : > { %v4012_v22 = vpop.f32.mrf.mxu1 }
 0x341   : > { %v13142_v37 = vadd.f32 %v10256_v6, %v4117_v57  ;;  %v4115_v18 = vadd.f32 %v4012_v22, %v13015_v24  ;;  %v4318_v3 = vpop.f32.mrf.mxu0  ;;  %v5710_v24 = vpack.c.bf16 %v5687_v1, %v5686_v15  ;;  %v5690_v6 = vld [vmem:[#allocation3 + $0x189] sm:$0xff]  ;;  %v5691_v22 = vld [vmem:[#allocation3 + $0x191] sm:$0xff] }
 0x342   : > { %v10221_v50 = vpop.f32.mrf.mxu1 }
 0x343   : > { %v13145_v61 = vadd.f32 %v4318_v3, %v4115_v18  ;;  %v4118_v29 = vadd.f32 %v10221_v50, %v13017_v0  ;;  %v10257_v54 = vpop.f32.mrf.mxu0 }
 0x344   : > { %v4015_v38 = vpop.f32.mrf.mxu1 }
 0x345   : > { %v13148_v27 = vadd.f32 %v10257_v54, %v4118_v29  ;;  %v13151_v42 = vadd.f32 %v4015_v38, %v13019_v20  ;;  %v13153_v56 = vpop.f32.mrf.mxu0  ;;  %v5689_v20 = vld [vmem:[#allocation3 + $0x171] sm:$0xff] }
 0x346   : > { %v10224_v62 = vpop.f32.mrf.mxu1  ;;  %10439 = vmatmul.mubr.msk.bf16.gmra.mxu1 %vm3180_vm3, %v5709_v10  ;;  %v5711_v8 = vpack.c.bf16 %v5689_v20, %v5688_v60 }
 0x347   : > { %v4121_v11 = vadd.f32 %v10224_v62, %v13027_v63  ;;  %v10260_v45 = vpop.f32.mrf.mxu0  ;;  %10442 = vmatprep.mubr.msk.bf16.mxu1 %vm3180_vm3, %v5710_v24 }
 0x348   : > { %v4028_v0 = vpop.f32.mrf.mxu1 }
 0x349   : > { %v13158_v14 = vadd.f32 %v10260_v45, %v4121_v11  ;;  %v4119_v36 = vadd.f32 %v4028_v0, %v13031_v49  ;;  %v4334_v12 = vpop.f32.mrf.mxu0  ;;  %v5712_v49 = vpack.c.bf16 %v5691_v22, %v5690_v6  ;;  %v5692_v11 = vld [vmem:[#allocation3 + $0x1a9] sm:$0xff] }
 0x34a   : > { %v10225_v57 = vpop.f32.mrf.mxu1  ;;  %v5694_v0 = vld [vmem:[#allocation3 + $0x1c9] sm:$0xff] }
 0x34b   : > { %v13161_v18 = vadd.f32 %v4334_v12, %v4119_v36  ;;  %v4122_v3 = vadd.f32 %v10225_v57, %v13033_v31  ;;  %v10261_v2 = vpop.f32.mrf.mxu0  ;;  %v5695_v36 = vld [vmem:[#allocation3 + $0x1d1] sm:$0xff] }
 0x34c   : > { %v4031_v63 = vpop.f32.mrf.mxu1 }
 0x34d   : > { %v13164_v50 = vadd.f32 %v10261_v2, %v4122_v3  ;;  %v13167_v15 = vadd.f32 %v4031_v63, %v13035_v23  ;;  %v13169_v1 = vpop.f32.mrf.mxu0  ;;  %v5693_v23 = vld [vmem:[#allocation3 + $0x1b1] sm:$0xff]  ;;  %v5714_v3 = vpack.c.bf16 %v5695_v36, %v5694_v0 }
 0x34e   : > { %14583 = vst [vmem:[#allocation65_spill] sm:$0xff] %v13169_v1  ;;  %v10228_v29 = vpop.f32.mrf.mxu1  ;;  %10443 = vmatmul.mubr.msk.bf16.gmra.mxu1 %vm3180_vm3, %v5711_v8  ;;  %v5713_v57 = vpack.c.bf16 %v5693_v23, %v5692_v11 }
 0x34f   : > { %14582 = vst [vmem:[#allocation71_spill] sm:$0xff] %v13167_v15  ;;  %v4125_v54 = vadd.f32 %v10228_v29, %v13043_v7  ;;  %v10264_v38 = vpop.f32.mrf.mxu0  ;;  %10446 = vmatprep.mubr.msk.bf16.mxu1 %vm3180_vm3, %v5712_v49 }
 0x350   : > { %v4044_v31 = vpop.f32.mrf.mxu1 }
 0x351   : > { %v13174_v10 = vadd.f32 %v10264_v38, %v4125_v54  ;;  %v4123_v24 = vadd.f32 %v4044_v31, %v13047_v40  ;;  %v4350_v62 = vpop.f32.mrf.mxu0  ;;  %v5696_v54 = vld [vmem:[#allocation3 + $0x1e9] sm:$0xff]  ;;  %v5697_v38 = vld [vmem:[#allocation3 + $0x1f1] sm:$0xff] }
 0x352   : > { %v10229_v45 = vpop.f32.mrf.mxu1 }
 0x353   : > { %v13177_v12 = vadd.f32 %v4350_v62, %v4123_v24  ;;  %v4126_v60 = vadd.f32 %v10229_v45, %v13049_v43  ;;  %v10265_v20 = vpop.f32.mrf.mxu0 }
 0x354   : > { %v13180_v7 = vpop.f32.mrf.mxu1 }
 0x355   : > { %14584 = vst [vmem:[#allocation11_spill] sm:$0xff] %v13180_v7  ;;  %v13182_v6 = vadd.f32 %v10265_v20, %v4126_v60  ;;  %v13184_v22 = vpop.f32.mrf.mxu0  ;;  %v5700_v20 = vld [vmem:[#allocation3 + $0x229] sm:$0xff] }
 0x356   : > { %14585 = vst [vmem:[#allocation12_spill] sm:$0xff] %v13184_v22  ;;  %v10232_v40 = vpop.f32.mrf.mxu1  ;;  %10447 = vmatmul.mubr.msk.bf16.gmra.mxu1 %vm3180_vm3, %v5713_v57  ;;  %v5701_v57 = vld [vmem:[#allocation3 + $0x231] sm:$0xff] }
 0x357   : > { %v4129_v2 = vadd.f32 %v10232_v40, %v13061_v46  ;;  %v10268_v63 = vpop.f32.mrf.mxu0  ;;  %10450 = vmatprep.mubr.msk.bf16.mxu1 %vm3180_vm3, %v5714_v3  ;;  %v5715_v46 = vpack.c.bf16 %v5697_v38, %v5696_v54 }
 0x358   : > { %v4060_v8 = vpop.f32.mrf.mxu1 }
 0x359   : > { %v13189_v49 = vadd.f32 %v10268_v63, %v4129_v2  ;;  %v4127_v43 = vadd.f32 %v4060_v8, %v13065_v35  ;;  %v4366_v29 = vpop.f32.mrf.mxu0  ;;  %v5717_v8 = vpack.c.bf16 %v5701_v57, %v5700_v20 }
 0x35a   : > { %v10233_v31 = vpop.f32.mrf.mxu1 }
 0x35b   : > { %v13192_v24 = vadd.f32 %v4366_v29, %v4127_v43  ;;  %v4130_v62 = vadd.f32 %v10233_v31, %v13067_v21  ;;  %v10269_v11 = vpop.f32.mrf.mxu0 }
 0x35c   : > { %v13195_v23 = vpop.f32.mrf.mxu1 }
 0x35d   : > { %14586 = vst [vmem:[#allocation22_spill] sm:$0xff] %v13195_v23  ;;  %v13197_v45 = vadd.f32 %v10269_v11, %v4130_v62  ;;  %v13199_v0 = vpop.f32.mrf.mxu0 }
 0x35e   : > { %14587 = vst [vmem:[#allocation23_spill] sm:$0xff] %v13199_v0  ;;  %v10236_v36 = vpop.f32.mrf.mxu1  ;;  %10451 = vmatmul.mubr.msk.bf16.gmra.mxu1 %vm3180_vm3, %v5715_v46 }
 0x35f   : > { %v4133_v35 = vadd.f32 %v10236_v36, %v13079_v9  ;;  %v10272_v60 = vpop.f32.mrf.mxu0  ;;  %10454 = vmatprep.mubr.msk.bf16.mxu1 %vm3180_vm3, %v12962_v47 }
 0x360   : > { %v4076_v21 = vpop.f32.mrf.mxu1 }
 0x361   : > { %v13205_v3 = vadd.f32 %v10272_v60, %v4133_v35  ;;  %v4131_v40 = vadd.f32 %v4076_v21, %v13083_v39  ;;  %v4382_v2 = vpop.f32.mrf.mxu0 }
 0x362   : > { %v10237_v63 = vpop.f32.mrf.mxu1 }
 0x363   : > { %v13208_v43 = vadd.f32 %v4382_v2, %v4131_v40  ;;  %v4134_v29 = vadd.f32 %v10237_v63, %v13085_v33  ;;  %v10273_v54 = vpop.f32.mrf.mxu0 }
 0x364   : > { %v13211_v9 = vpop.f32.mrf.mxu1 }
 0x365   : > { %14588 = vst [vmem:[#allocation29_spill] sm:$0xff] %v13211_v9  ;;  %v13213_v38 = vadd.f32 %v10273_v54, %v4134_v29  ;;  %v13215_v47 = vpop.f32.mrf.mxu0 }
 0x366   : > { %14589 = vst [vmem:[#allocation66_spill] sm:$0xff] %v13215_v47  ;;  %v10240_v31 = vpop.f32.mrf.mxu1  ;;  %10455 = vmatmul.mubr.msk.bf16.gmra.mxu1 %vm3180_vm3, %v5717_v8 }
 0x367   : > { %v4137_v62 = vadd.f32 %v10240_v31, %v13095_v26  ;;  %v10276_v39 = vpop.f32.mrf.mxu0 }
 0x368   : > { %v4092_v11 = vpop.f32.mrf.mxu1 }
 0x369   : > { %v13219_v46 = vadd.f32 %v10276_v39, %v4137_v62  ;;  %v4135_v36 = vadd.f32 %v4092_v11, %v13097_v58  ;;  %v4398_v35 = vpop.f32.mrf.mxu0 }
 0x36a   : > { %v10241_v33 = vpop.f32.mrf.mxu1 }
 0x36b   : > { %v13222_v60 = vadd.f32 %v4398_v35, %v4135_v36  ;;  %v4138_v20 = vadd.f32 %v10241_v33, %v13099_v17  ;;  %v10277_v57 = vpop.f32.mrf.mxu0  ;;  %v11004_v33 = vld [vmem:[#allocation5] sm:$0xff] }
 0x36c   : > { %v13225_v21 = vpop.f32.mrf.mxu1  ;;  %6119 = vst.msk [vmem:[#allocation4] sm:$0xff] %vm6063_vm4, %v11004_v33  ;;  %6120 = vst.msk [vmem:[#allocation4 + $0x8] sm:$0xff] %vm6063_vm4, %v11004_v33 }
 0x36d   : > { %14590 = vst [vmem:[#allocation74_spill] sm:$0xff] %v13225_v21  ;;  %v13227_v40 = vadd.f32 %v10277_v57, %v4138_v20  ;;  %v13229_v2 = vpop.f32.mrf.mxu0  ;;  %6121 = vst.msk [vmem:[#allocation4 + $0x10] sm:$0xff] %vm6063_vm4, %v11004_v33 }
 0x36e   : > { %14591 = vst [vmem:[#allocation14_spill] sm:$0xff] %v13229_v2  ;;  %v10284_v26 = vpop.f32.mrf.mxu1  ;;  %6122 = vst.msk [vmem:[#allocation4 + $0x18] sm:$0xff] %vm6063_vm4, %v11004_v33 }
 0x36f   : > { %v13232_v63 = vadd.f32 %v10284_v26, %v13110_v19  ;;  %v13234_v8 = vpop.f32.mrf.mxu0  ;;  %6123 = vst.msk [vmem:[#allocation4 + $0x20] sm:$0xff] %vm6063_vm4, %v11004_v33  ;;  %6124 = vst.msk [vmem:[#allocation4 + $0x28] sm:$0xff] %vm6063_vm4, %v11004_v33 }
 0x370   : > { %v4592_v58 = vpop.f32.mrf.mxu1  ;;  %6125 = vst.msk [vmem:[#allocation4 + $0x30] sm:$0xff] %vm6063_vm4, %v11004_v33  ;;  %6126 = vst.msk [vmem:[#allocation4 + $0x38] sm:$0xff] %vm6063_vm4, %v11004_v33 }
 0x371   : > { %v13237_v29 = vadd.f32 %v4592_v58, %v13113_v52  ;;  %v13239_v54 = vpop.f32.mrf.mxu0  ;;  %6127 = vst.msk [vmem:[#allocation4 + $0x40] sm:$0xff] %vm6063_vm4, %v11004_v33  ;;  %6128 = vst.msk [vmem:[#allocation4 + $0x48] sm:$0xff] %vm6063_vm4, %v11004_v33 }
 0x372   : > { %v10285_v17 = vpop.f32.mrf.mxu1  ;;  %6129 = vst.msk [vmem:[#allocation4 + $0x50] sm:$0xff] %vm6063_vm4, %v11004_v33  ;;  %6130 = vst.msk [vmem:[#allocation4 + $0x58] sm:$0xff] %vm6063_vm4, %v11004_v33 }
 0x373   : > { %v13242_v31 = vadd.f32 %v10285_v17, %v13116_v34  ;;  %v13244_v62 = vpop.f32.mrf.mxu0  ;;  %6131 = vst.msk [vmem:[#allocation4 + $0x60] sm:$0xff] %vm6063_vm4, %v11004_v33  ;;  %6132 = vst.msk [vmem:[#allocation4 + $0x68] sm:$0xff] %vm6063_vm4, %v11004_v33 }
 0x374   : > { %v13246_v39 = vpop.f32.mrf.mxu1  ;;  %6133 = vst.msk [vmem:[#allocation4 + $0x70] sm:$0xff] %vm6063_vm4, %v11004_v33  ;;  %6134 = vst.msk [vmem:[#allocation4 + $0x78] sm:$0xff] %vm6063_vm4, %v11004_v33 }
 0x375   : > { %v13248_v11 = vpop.f32.mrf.mxu0  ;;  %6135 = vst.msk [vmem:[#allocation4 + $0x80] sm:$0xff] %vm6063_vm4, %v11004_v33  ;;  %6136 = vst.msk [vmem:[#allocation4 + $0x88] sm:$0xff] %vm6063_vm4, %v11004_v33 }
 0x376   : > { %v10288_v19 = vpop.f32.mrf.mxu1  ;;  %6137 = vst.msk [vmem:[#allocation4 + $0x90] sm:$0xff] %vm6063_vm4, %v11004_v33  ;;  %6138 = vst.msk [vmem:[#allocation4 + $0x98] sm:$0xff] %vm6063_vm4, %v11004_v33 }
 0x377   : > { %v13251_v36 = vadd.f32 %v10288_v19, %v13126_v13  ;;  %v13253_v35 = vpop.f32.mrf.mxu0  ;;  %6139 = vst.msk [vmem:[#allocation4 + $0xa0] sm:$0xff] %vm6063_vm4, %v11004_v33  ;;  %6140 = vst.msk [vmem:[#allocation4 + $0xa8] sm:$0xff] %vm6063_vm4, %v11004_v33 }
 0x378   : > { %v4608_v52 = vpop.f32.mrf.mxu1  ;;  %6141 = vst.msk [vmem:[#allocation4 + $0xb0] sm:$0xff] %vm6063_vm4, %v11004_v33  ;;  %6142 = vst.msk [vmem:[#allocation4 + $0xb8] sm:$0xff] %vm6063_vm4, %v11004_v33 }
 0x379   : > { %6143 = vst.msk [vmem:[#allocation4 + $0xc0] sm:$0xff] %vm6063_vm4, %v11004_v33  ;;  %6144 = vst.msk [vmem:[#allocation4 + $0xc8] sm:$0xff] %vm6063_vm4, %v11004_v33  ;;  %v13286_v34 = vadd.f32 %v4608_v52, %v13129_v4  ;;  %v13288_v13 = vpop.f32.mrf.mxu0 }
 0x37a   : > { %6145 = vst.msk [vmem:[#allocation4 + $0xd0] sm:$0xff] %vm6063_vm4, %v11004_v33  ;;  %6146 = vst.msk [vmem:[#allocation4 + $0xd8] sm:$0xff] %vm6063_vm4, %v11004_v33  ;;  %v10289_v20 = vpop.f32.mrf.mxu1 }
 0x37b   : > { %6147 = vst.msk [vmem:[#allocation4 + $0xe0] sm:$0xff] %vm6063_vm4, %v11004_v33  ;;  %6148 = vst.msk [vmem:[#allocation4 + $0xe8] sm:$0xff] %vm6063_vm4, %v11004_v33  ;;  %v13291_v57 = vadd.f32 %v10289_v20, %v13132_v53  ;;  %v13293_v26 = vpop.f32.mrf.mxu0 }
 0x37c   : > { %v13295_v58 = vpop.f32.mrf.mxu1 }
 0x37d   : > { %v13297_v17 = vpop.f32.mrf.mxu0 }
 0x37e   : > { %v10292_v19 = vpop.f32.mrf.mxu1 }
 0x37f   : > { %v13300_v2 = vadd.f32 %v10292_v19, %v13142_v37  ;;  %v13302_v33 = vpop.f32.mrf.mxu0 }
 0x380   : > { %v4624_v4 = vpop.f32.mrf.mxu1 }
 0x381   : > { %v13305_v52 = vadd.f32 %v4624_v4, %v13145_v61  ;;  %v13307_v21 = vpop.f32.mrf.mxu0  ;;  %v10877_v61 = vld [vmem:[%s14400_s5 + $0x38] sm:$0xff]  }
 0x382   : > { %v10293_v53 = vpop.f32.mrf.mxu1  ;;  %10458 = vmatprep.subr.bf16.mxu0 %v10877_v61 }
 0x383   : > { %v13310_v20 = vadd.f32 %v10293_v53, %v13148_v27  ;;  %v13312_v47 = vpop.f32.mrf.mxu0  ;;  %10459 = vmatpush3.bf16.msra.mxu0 %v10877_v61  ;;  %v10878_v61 = vld [vmem:[%s14400_s5 + $0x18] sm:$0xff]  }
 0x384   : > { %v13314_v9 = vpop.f32.mrf.mxu1  ;;  %10474 = vmatprep.subr.bf16.mxu1 %v10878_v61 }
 0x385   : > { %v13316_v0 = vpop.f32.mrf.mxu0  ;;  %10475 = vmatpush3.bf16.msra.mxu1 %v10878_v61 }
 0x386   : > { %v10296_v37 = vpop.f32.mrf.mxu1 }
 0x387   : > { %v13319_v19 = vadd.f32 %v10296_v37, %v13158_v14  ;;  %v13321_v5 = vpop.f32.mrf.mxu0 }
 0x388   : > { %14593 = vst [vmem:[#allocation24_spill] sm:$0xff] %v13321_v5  ;;  %v4640_v4 = vpop.f32.mrf.mxu1 }
 0x389   : > { %14592 = vst [vmem:[#allocation16_spill] sm:$0xff] %v13319_v19  ;;  %v13327_v27 = vadd.f32 %v4640_v4, %v13161_v18  ;;  %v13329_v53 = vpop.f32.mrf.mxu0 }
 0x38a   : > { %14595 = vst [vmem:[#allocation67_spill] sm:$0xff] %v13329_v53  ;;  %v10297_v32 = vpop.f32.mrf.mxu1 }
 0x38b   : > { %14594 = vst [vmem:[#allocation25_spill] sm:$0xff] %v13327_v27  ;;  %v13332_v23 = vadd.f32 %v10297_v32, %v13164_v50  ;;  %v13334_v14 = vpop.f32.mrf.mxu0 }
 0x38c   : > { %14597 = vst [vmem:[#allocation26_spill] sm:$0xff] %v13334_v14  ;;  %v13336_v37 = vpop.f32.mrf.mxu1 }
 0x38d   : > { %14596 = vst [vmem:[#allocation77_spill] sm:$0xff] %v13332_v23  ;;  %14598 = vst [vmem:[#allocation27_spill] sm:$0xff] %v13336_v37  ;;  %v13338_v22 = vpop.f32.mrf.mxu0 }
 0x38e   : > { %14599 = vst [vmem:[#allocation30_spill] sm:$0xff] %v13338_v22  ;;  %v10300_v7 = vpop.f32.mrf.mxu1 }
 0x38f   : > { %v13341_v44 = vadd.f32 %v10300_v7, %v13174_v10  ;;  %v13343_v18 = vpop.f32.mrf.mxu0  ;;  %v10879_v7 = vld [vmem:[%s14400_s5 + $0x30] sm:$0xff]  }
 0x390   : > { %14601 = vst [vmem:[#allocation82_spill] sm:$0xff] %v13343_v18  ;;  %v4656_v4 = vpop.f32.mrf.mxu1  ;;  %10460 = vmatprep.subr.bf16.mxu0 %v10879_v7 }
 0x391   : > { %14600 = vst [vmem:[#allocation69_spill] sm:$0xff] %v13341_v44  ;;  %v13349_v32 = vadd.f32 %v4656_v4, %v13177_v12  ;;  %v13351_v50 = vpop.f32.mrf.mxu0  ;;  %v10880_v12 = vld [vmem:[%s14400_s5 + $0x10] sm:$0xff]   ;;  %10461 = vmatpush3.bf16.msra.mxu0 %v10879_v7 }
 0x392   : > { %14603 = vst [vmem:[#allocation31_spill] sm:$0xff] %v13351_v50  ;;  %v10301_v14 = vpop.f32.mrf.mxu1  ;;  %10476 = vmatprep.subr.bf16.mxu1 %v10880_v12 }
 0x393   : > { %14602 = vst [vmem:[#allocation70_spill] sm:$0xff] %v13349_v32  ;;  %v13354_v22 = vadd.f32 %v10301_v14, %v13182_v6  ;;  %v13356_v23 = vpop.f32.mrf.mxu0  ;;  %10477 = vmatpush3.bf16.msra.mxu1 %v10880_v12 }
 0x394   : > { %14605 = vst [vmem:[#allocation37_spill] sm:$0xff] %v13356_v23  ;;  %v13358_v10 = vpop.f32.mrf.mxu1  ;;  %v10881_v23 = vld [vmem:[%s14400_s5 + $0x28] sm:$0xff]  }
 0x395   : > { %14604 = vst [vmem:[#allocation32_spill] sm:$0xff] %v13354_v22  ;;  %14606 = vst [vmem:[#allocation72_spill] sm:$0xff] %v13358_v10  ;;  %v13366_v4 = vpop.f32.mrf.mxu0  ;;  %v10882_v22 = vld [vmem:[%s14400_s5 + $0x8] sm:$0xff]   ;;  %10462 = vmatprep.subr.bf16.mxu0 %v10881_v23 }
 0x396   : > { %14607 = vst [vmem:[#allocation28_spill] sm:$0xff] %v13366_v4  ;;  %v10304_v50 = vpop.f32.mrf.mxu1  ;;  %10478 = vmatprep.subr.bf16.mxu1 %v10882_v22  ;;  %10463 = vmatpush3.bf16.msra.mxu0 %v10881_v23 }
 0x397   : > { %v13369_v6 = vadd.f32 %v10304_v50, %v13189_v49  ;;  %v13371_v14 = vpop.f32.mrf.mxu0  ;;  %10479 = vmatpush3.bf16.msra.mxu1 %v10882_v22 }
 0x398   : > { %14609 = vst [vmem:[#allocation17_spill] sm:$0xff] %v13371_v14  ;;  %v4672_v61 = vpop.f32.mrf.mxu1  ;;  %v10883_v14 = vld [vmem:[%s14400_s5 + $0x20] sm:$0xff]  }
 0x399   : > { %14608 = vst [vmem:[#allocation85_spill] sm:$0xff] %v13369_v6  ;;  %v13380_v4 = vadd.f32 %v4672_v61, %v13192_v24  ;;  %v13382_v10 = vpop.f32.mrf.mxu0  ;;  %v10884_v24 = vld [vmem:[%s14400_s5] sm:$0xff]   ;;  %10464 = vmatprep.subr.bf16.mxu0 %v10883_v14 }
 0x39a   : > { %14611 = vst [vmem:[#allocation34_spill] sm:$0xff] %v13382_v10  ;;  %v10305_v49 = vpop.f32.mrf.mxu1  ;;  %10480 = vmatprep.subr.bf16.mxu1 %v10884_v24  ;;  %10465 = vmatpush3.bf16.msra.mxu0 %v10883_v14 }
 0x39b   : > { %14610 = vst [vmem:[#allocation33_spill] sm:$0xff] %v13380_v4  ;;  %v13385_v50 = vadd.f32 %v10305_v49, %v13197_v45  ;;  %v13387_v7 = vpop.f32.mrf.mxu0  ;;  %10481 = vmatpush3.bf16.msra.mxu1 %v10884_v24 }
 0x39c   : > { %14613 = vst [vmem:[#allocation63_spill] sm:$0xff] %v13387_v7  ;;  %v13389_v12 = vpop.f32.mrf.mxu1 }
 0x39d   : > { %14612 = vst [vmem:[#allocation73_spill] sm:$0xff] %v13385_v50  ;;  %14614 = vst [vmem:[#allocation88_spill] sm:$0xff] %v13389_v12  ;;  %v13397_v61 = vpop.f32.mrf.mxu0 }
 0x39e   : > { %14615 = vst [vmem:[#allocation35_spill] sm:$0xff] %v13397_v61  ;;  %v10308_v10 = vpop.f32.mrf.mxu1 }
 0x39f   : > { %v13400_v45 = vadd.f32 %v10308_v10, %v13205_v3  ;;  %v13402_v23 = vpop.f32.mrf.mxu0 }
 0x3a0   : > { %14617 = vst [vmem:[#allocation38_spill] sm:$0xff] %v13402_v23  ;;  %v4688_v22 = vpop.f32.mrf.mxu1 }
 0x3a1   : > { %14616 = vst [vmem:[#allocation36_spill] sm:$0xff] %v13400_v45  ;;  %v13405_v49 = vadd.f32 %v4688_v22, %v13208_v43  ;;  %v13407_v7 = vpop.f32.mrf.mxu0 }
 0x3a2   : > { %14619 = vst [vmem:[#allocation76_spill] sm:$0xff] %v13407_v7  ;;  %v10309_v50 = vpop.f32.mrf.mxu1 }
 0x3a3   : > { %14618 = vst [vmem:[#allocation75_spill] sm:$0xff] %v13405_v49  ;;  %v13410_v12 = vadd.f32 %v10309_v50, %v13213_v38  ;;  %v13412_v61 = vpop.f32.mrf.mxu0 }
 0x3a4   : > { %14621 = vst [vmem:[#allocation40_spill] sm:$0xff] %v13412_v61  ;;  %v13414_v4 = vpop.f32.mrf.mxu1 }
 0x3a5   : > { %14620 = vst [vmem:[#allocation39_spill] sm:$0xff] %v13410_v12  ;;  %14622 = vst [vmem:[#allocation45_spill] sm:$0xff] %v13414_v4  ;;  %v13416_v3 = vpop.f32.mrf.mxu0 }
 0x3a6   : > { %14623 = vst [vmem:[#allocation78_spill] sm:$0xff] %v13416_v3  ;;  %v10312_v10 = vpop.f32.mrf.mxu1 }
 0x3a7   : > { %v13419_v14 = vadd.f32 %v10312_v10, %v13219_v46  ;;  %v13421_v24 = vpop.f32.mrf.mxu0 }
 0x3a8   : > { %14625 = vst [vmem:[#allocation19_spill] sm:$0xff] %v13421_v24  ;;  %v4704_v43 = vpop.f32.mrf.mxu1 }
 0x3a9   : > { %14624 = vst [vmem:[#allocation18_spill] sm:$0xff] %v13419_v14  ;;  %v13424_v22 = vadd.f32 %v4704_v43, %v13222_v60  ;;  %v13426_v7 = vpop.f32.mrf.mxu0 }
 0x3aa   : > { %14627 = vst [vmem:[#allocation42_spill] sm:$0xff] %v13426_v7  ;;  %v10313_v38 = vpop.f32.mrf.mxu1 }
 0x3ab   : > { %14626 = vst [vmem:[#allocation41_spill] sm:$0xff] %v13424_v22  ;;  %v13429_v50 = vadd.f32 %v10313_v38, %v13227_v40  ;;  %v13431_v61 = vpop.f32.mrf.mxu0  ;;  %v13450_v38 = vld [vmem:[%s14400_s5 + $0x58] sm:$0xff]  }
 0x3ac   : > { %14629 = vst [vmem:[#allocation43_spill] sm:$0xff] %v13431_v61  ;;  %v13433_v12 = vpop.f32.mrf.mxu1  ;;  %14632 = vst [vmem:[#allocation80_spill] sm:$0xff] %v13450_v38  ;;  %10490 = vmatprep.subr.bf16.mxu0 %v13450_v38 }
 0x3ad   : > { %14628 = vst [vmem:[#allocation79_spill] sm:$0xff] %v13429_v50  ;;  %14630 = vst [vmem:[#allocation44_spill] sm:$0xff] %v13433_v12  ;;  %v13435_v3 = vpop.f32.mrf.mxu0 }
 0x3ae   : > { %14631 = vst [vmem:[#allocation46_spill] sm:$0xff] %v13435_v3  ;;  %v10356_v46 = vpop.f32.mrf.mxu1  ;;  %v13455_v3 = vld [vmem:[%s14400_s5 + $0x78] sm:$0xff]  }
 0x3af   : > { %v10392_v10 = vpop.f32.mrf.mxu0  ;;  %14633 = vst [vmem:[#allocation81_spill] sm:$0xff] %v13455_v3  ;;  %10506 = vmatprep.subr.bf16.mxu1 %v13455_v3 }
 0x3b0   : > { %v5205_v14 = vpop.f32.mrf.mxu1 }
 0x3b1   : > { %v13437_v24 = vpop.f32.mrf.mxu0 }
 0x3b2   : > { %v10357_v4 = vpop.f32.mrf.mxu1 }
 0x3b3   : > { %v13441_v43 = vpop.f32.mrf.mxu0 }
 0x3b4   : > { %v13439_v60 = vpop.f32.mrf.mxu1 }
 0x3b5   : > { %v13457_v61 = vpop.f32.mrf.mxu0 }
 0x3b6   : > { %v13443_v7 = vpop.f32.mrf.mxu1 }
 0x3b7   : > { %v13465_v22 = vpop.f32.mrf.mxu0 }
 0x3b8   : > { %v13445_v40 = vpop.f32.mrf.mxu1 }
 0x3b9   : > { %v13471_v45 = vpop.f32.mrf.mxu0 }
 0x3ba   : > { %v13459_v50 = vpop.f32.mrf.mxu1 }
 0x3bb   : > { %v13477_v18 = vpop.f32.mrf.mxu0 }
 0x3bc   : > { %v13463_v12 = vpop.f32.mrf.mxu1 }
 0x3bd   : > { %v13483_v3 = vpop.f32.mrf.mxu0 }
 0x3be   : > { %v13467_v49 = vpop.f32.mrf.mxu1 }
 0x3bf   : > { %v13489_v53 = vpop.f32.mrf.mxu0 }
 0x3c0   : > { %v13469_v23 = vpop.f32.mrf.mxu1 }
 0x3c1   : > { %v13495_v19 = vpop.f32.mrf.mxu0 }
 0x3c2   : > { %v13473_v6 = vpop.f32.mrf.mxu1  ;;  %14641 = vst [vmem:[#allocation84_spill] sm:$0xff] %v13495_v19 }
 0x3c4   : > { %v13475_v32 = vpop.f32.mrf.mxu1 }
 0x3c5   : > { %14634 = vst [vmem:[#allocation47_spill] sm:$0xff] %v13475_v32 }
 0x3c6   : > { %v13479_v44 = vpop.f32.mrf.mxu1 }
 0x3c7   : > { %14635 = vst [vmem:[#allocation48_spill] sm:$0xff] %v13479_v44  ;;  %v13501_v44 = vpop.f32.mrf.mxu0 }
 0x3c8   : > { %v13481_v38 = vpop.f32.mrf.mxu1  ;;  %14644 = vst [vmem:[#allocation54_spill] sm:$0xff] %v13501_v44 }
 0x3c9   : > { %14636 = vst [vmem:[#allocation53_spill] sm:$0xff] %v13481_v38 }
 0x3ca   : > { %v13485_v51 = vpop.f32.mrf.mxu1 }
 0x3cb   : > { %14637 = vst [vmem:[#allocation83_spill] sm:$0xff] %v13485_v51  ;;  %v13507_v51 = vpop.f32.mrf.mxu0 }
 0x3cc   : > { %v13487_v37 = vpop.f32.mrf.mxu1 }
 0x3cd   : > { %14638 = vst [vmem:[#allocation20_spill] sm:$0xff] %v13487_v37 }
 0x3ce   : > { %v13491_v27 = vpop.f32.mrf.mxu1 }
 0x3cf   : > { %14639 = vst [vmem:[#allocation49_spill] sm:$0xff] %v13491_v27  ;;  %v13513_v27 = vpop.f32.mrf.mxu0 }
 0x3d0   : > { %v13493_v5 = vpop.f32.mrf.mxu1  ;;  %14649 = vst [vmem:[#allocation61_spill] sm:$0xff] %v13513_v27 }
 0x3d1   : > { %14640 = vst [vmem:[#allocation50_spill] sm:$0xff] %v13493_v5 }
 0x3d2   : > { %v13497_v32 = vpop.f32.mrf.mxu1 }
 0x3d3   : > { %14642 = vst [vmem:[#allocation51_spill] sm:$0xff] %v13497_v32  ;;  %v13519_v32 = vpop.f32.mrf.mxu0 }
 0x3d4   : > { %v13499_v1 = vpop.f32.mrf.mxu1  ;;  %14652 = vst [vmem:[#allocation58_spill] sm:$0xff] %v13519_v32 }
 0x3d5   : > { %14643 = vst [vmem:[#allocation52_spill] sm:$0xff] %v13499_v1 }
 0x3d6   : > { %v13503_v38 = vpop.f32.mrf.mxu1 }
 0x3d7   : > { %14645 = vst [vmem:[#allocation86_spill] sm:$0xff] %v13503_v38  ;;  %v13525_v38 = vpop.f32.mrf.mxu0 }
 0x3d8   : > { %v13505_v15 = vpop.f32.mrf.mxu1  ;;  %14655 = vst [vmem:[#allocation60_spill] sm:$0xff] %v13525_v38 }
 0x3d9   : > { %14646 = vst [vmem:[#allocation87_spill] sm:$0xff] %v13505_v15  ;;  %v13538_v32 = vpop.f32.mrf.mxu0 }
 0x3da   : > { %v13509_v37 = vpop.f32.mrf.mxu1 }
 0x3db   : > { %14647 = vst [vmem:[#allocation55_spill] sm:$0xff] %v13509_v37  ;;  %v4414_v37 = vadd.f32 %v13121_v30, %v13119_v28 }
 0x3dc   : > { %v13511_v16 = vpop.f32.mrf.mxu1 }
 0x3dd   : > { %14648 = vst [vmem:[#allocation56_spill] sm:$0xff] %v13511_v16  ;;  %v5027_v16 = vadd.f32 %v13234_v8, %v13232_v63 }
 0x3de   : > { %v13515_v5 = vpop.f32.mrf.mxu1 }
 0x3df   : > { %14650 = vst [vmem:[#allocation89_spill] sm:$0xff] %v13515_v5  ;;  %v4720_v5 = vadd.f32 %v13246_v39, %v4414_v37  ;;  %v5032_v37 = vadd.f32 %v13293_v26, %v13291_v57 }
 0x3e0   : > { %v13517_v19 = vpop.f32.mrf.mxu1 }
 0x3e1   : > { %14651 = vst [vmem:[#allocation57_spill] sm:$0xff] %v13517_v19  ;;  %v5025_v19 = vadd.f32 %v13239_v54, %v13237_v29  ;;  %v5026_v30 = vadd.f32 %v13248_v11, %v4720_v5  ;;  %v4418_v29 = vadd.f32 %v13137_v41, %v13135_v25  ;;  %v5029_v25 = vadd.f32 %v13288_v13, %v13286_v34 }
 0x3e2   : > { %v13521_v1 = vpop.f32.mrf.mxu1 }
 0x3e3   : > { %14653 = vst [vmem:[#allocation90_spill] sm:$0xff] %v13521_v1  ;;  %v5334_v1 = vadd.f32 %v10356_v46, %v5027_v16  ;;  %v5332_v38 = vadd.f32 %v5205_v14, %v5025_v19  ;;  %v5031_v16 = vadd.f32 %v13253_v35, %v13251_v36  ;;  %v5333_v5 = vadd.f32 %v13439_v60, %v5026_v30 }
 0x3e4   : > { %v13523_v44 = vpop.f32.mrf.mxu1  ;;  %v5339_v46 = vadd.f32 %v13459_v50, %v5032_v37 }
 0x3e5   : > { %14654 = vst [vmem:[#allocation59_spill] sm:$0xff] %v13523_v44  ;;  %v5640_v63 = vadd.f32 %v10392_v10, %v5334_v1  ;;  %v5338_v39 = vadd.f32 %v13443_v7, %v5031_v16  ;;  %v5639_v14 = vadd.f32 %v13457_v61, %v5333_v5  ;;  %v4422_v61 = vadd.f32 %v13153_v56, %v13151_v42 }
 0x3e6   : > { %v13527_v15 = vpop.f32.mrf.mxu1  ;;  %v5036_v5 = vadd.f32 %v13312_v47, %v13310_v20 }
 0x3e7   : > { %14656 = vst [vmem:[#allocation62_spill] sm:$0xff] %v13527_v15  ;;  %v5028_v15 = vadd.f32 %v13244_v62, %v13242_v31  ;;  %v13556_v31 = vld [vmem:[%s14399_s4] ss:$0 sm:$0xff]  ;;  %v5638_v62 = vadd.f32 %v13437_v24, %v5332_v38  ;;  %v5644_v13 = vadd.f32 %v13465_v22, %v5338_v39  ;;  %v4728_v16 = vadd.f32 %v13314_v9, %v4422_v61 }
 0x3e8   : > { %v13533_v27 = vpop.f32.mrf.mxu1  ;;  %v14668_v61 = vld [vmem:[#allocation54_spill] sm:$0xff] }
 0x3e9   : > { %14657 = vst [vmem:[#allocation91_spill] sm:$0xff] %v13533_v27  ;;  %v5335_v8 = vadd.f32 %v10357_v4, %v5028_v15  ;;  %v13547_v27 = vpop.f32.mrf.mxu0  ;;  %v4724_v15 = vadd.f32 %v13295_v58, %v4418_v29  ;;  %v5336_v58 = vadd.f32 %v13445_v40, %v5029_v25  ;;  %v5035_v40 = vadd.f32 %v13302_v33, %v13300_v2 }
 0x3ea   : > { %v13540_v44 = vpop.f32.mrf.mxu1  ;;  %v5033_v29 = vadd.f32 %v13307_v21, %v13305_v52  ;;  %v5034_v39 = vadd.f32 %v13316_v0, %v4728_v16  ;;  %v5343_v25 = vadd.f32 %v13473_v6, %v5036_v5  ;;  %v14663_v6 = vld [vmem:[#allocation47_spill] sm:$0xff] }
 0x3eb   : > { %v5641_v41 = vadd.f32 %v13441_v43, %v5335_v8  ;;  %v13565_v36 = vpop.f32.mrf.mxu0  ;;  %v5030_v34 = vadd.f32 %v13297_v17, %v4724_v15  ;;  %v5642_v22 = vadd.f32 %v13471_v45, %v5336_v58  ;;  %v5342_v42 = vadd.f32 %v13467_v49, %v5035_v40 }
 0x3ec   : > { %v13544_v28 = vpop.f32.mrf.mxu1  ;;  %v5340_v52 = vadd.f32 %v13469_v23, %v5033_v29  ;;  %v3774_v15 = vadd.f32 %v13053_v48, %v13051_v59  ;;  %v14659_v59 = vld [vmem:[#allocation71_spill] sm:$0xff]  ;;  %v14660_v48 = vld [vmem:[#allocation65_spill] sm:$0xff]  ;;  %v5341_v58 = vadd.f32 %v14663_v6, %v5034_v39  ;;  %v5649_v40 = vadd.f32 %v14668_v61, %v5343_v25 }
 0x3ed   : > { %v13576_v60 = vpop.f32.mrf.mxu0  ;;  %v5337_v17 = vadd.f32 %v13463_v12, %v5030_v34  ;;  %v4426_v0 = vadd.f32 %v14660_v48, %v14659_v59 }
 0x3ee   : > { %v10428_v54 = vpop.f32.mrf.mxu1 }
 0x3ef   : > { %v5946_v1 = vadd.f32 %v10428_v54, %v5640_v63  ;;  %v5645_v54 = vadd.f32 %v13477_v18, %v5339_v46  ;;  %v13591_v2 = vpop.f32.mrf.mxu0  ;;  %v5643_v21 = vadd.f32 %v13483_v3, %v5337_v17  ;;  %v14669_v17 = vld [vmem:[#allocation48_spill] sm:$0xff] }
 0x3f0   : > { %v5817_v11 = vpop.f32.mrf.mxu1 }
 0x3f1   : > { %v5985_v35 = vadd.f32 %v13556_v31, %v5946_v1  ;;  %v5944_v19 = vadd.f32 %v5817_v11, %v5638_v62  ;;  %v5648_v11 = vadd.f32 %v13489_v53, %v5342_v42  ;;  %v13605_v47 = vpop.f32.mrf.mxu0  ;;  %v14662_v53 = vld [vmem:[#allocation24_spill] sm:$0xff]  ;;  %v14671_v42 = vld [vmem:[#allocation13_spill] sm:$0xff] }
 0x3f2   : > { %v10429_v4 = vpop.f32.mrf.mxu1 }
 0x3f3   : > { %v5983_v7 = vadd.f32 %v13556_v31, %v5944_v19  ;;  %v5947_v24 = vadd.f32 %v10429_v4, %v5641_v41  ;;  %v6017_v43 = vmax.f32 %v5985_v35, 0.0  ;;  %v14658_v19 = vld [vmem:[#allocation68_spill] sm:$0xff] }
 0x3f4   : > { %v5820_v10 = vpop.f32.mrf.mxu1  ;;  %v3790_v37 = vadd.f32 %v14658_v19, %v13069_v55  ;;  %v14661_v4 = vld [vmem:[#allocation16_spill] sm:$0xff] }
 0x3f5   : > { %v6015_v38 = vmax.f32 %v5983_v7, 0.0  ;;  %v5986_v57 = vadd.f32 %v13556_v31, %v5947_v24  ;;  %v5945_v26 = vadd.f32 %v5820_v10, %v5639_v14  ;;  %v5039_v14 = vadd.f32 %v14662_v53, %v14661_v4  ;;  %v14664_v24 = vld [vmem:[#allocation84_spill] sm:$0xff] }
 0x3f6   : > { %v10432_v30 = vpop.f32.mrf.mxu1  ;;  %v5646_v34 = vadd.f32 %v14664_v24, %v5340_v52  ;;  %v14675_v52 = vld [vmem:[#allocation53_spill] sm:$0xff] }
 0x3f7   : > { %v6047_v50 = vmax.f32 %v6015_v38, %v6017_v43  ;;  %v5984_v63 = vadd.f32 %v13556_v31, %v5945_v26  ;;  %v5950_v8 = vadd.f32 %v10432_v30, %v5644_v13  ;;  %v6018_v33 = vmax.f32 %v5986_v57, 0.0  ;;  %v14665_v43 = vld [vmem:[#allocation25_spill] sm:$0xff]  ;;  %v14666_v38 = vld [vmem:[#allocation67_spill] sm:$0xff] }
 0x3f8   : > { %v5833_v56 = vpop.f32.mrf.mxu1  ;;  %v5037_v57 = vadd.f32 %v14666_v38, %v14665_v43  ;;  %v14667_v26 = vld [vmem:[#allocation27_spill] sm:$0xff]  ;;  %v5346_v30 = vadd.f32 %v14669_v17, %v5039_v14  ;;  %v14679_v14 = vld [vmem:[#allocation12_spill] sm:$0xff]  ;;  %v14681_v24 = vld [vmem:[#allocation69_spill] sm:$0xff] }
 0x3f9   : > { %6064 = vst.msk [vmem:[#allocation6] sm:$0xff] %vm6063_vm4, %v6047_v50  ;;  %v6016_v12 = vmax.f32 %v5984_v63, 0.0  ;;  %v5989_v45 = vadd.f32 %v13556_v31, %v5950_v8  ;;  %v5948_v62 = vadd.f32 %v5833_v56, %v5642_v22  ;;  %v4732_v55 = vadd.f32 %v14667_v26, %v4426_v0  ;;  %v13623_v50 = vpop.f32.mrf.mxu0  ;;  %v14684_v38 = vld [vmem:[#allocation58_spill] sm:$0xff]  ;;  %v14686_v17 = vld [vmem:[#allocation31_spill] sm:$0xff] }
 0x3fa   : > { %v10433_v9 = vpop.f32.mrf.mxu1 }
 0x3fb   : > { %v6048_v18 = vmax.f32 %v6016_v12, %v6018_v33  ;;  %v5987_v49 = vadd.f32 %v13556_v31, %v5948_v62  ;;  %v5951_v1 = vadd.f32 %v10433_v9, %v5645_v54  ;;  %v6021_v20 = vmax.f32 %v5989_v45, 0.0  ;;  %v14670_v54 = vld [vmem:[#allocation64_spill] sm:$0xff]  ;;  %v14672_v33 = vld [vmem:[#allocation11_spill] sm:$0xff]  ;;  %v14673_v45 = vld [vmem:[#allocation77_spill] sm:$0xff]  ;;  %v13640_v48 = vpop.f32.mrf.mxu0 }
 0x3fc   : > { %v5836_v41 = vpop.f32.mrf.mxu1  ;;  %v13629_v56 = vadd.f32 %v14671_v42, %v14670_v54  ;;  %v4124_v12 = vadd.f32 %v14672_v33, %v3774_v15  ;;  %v14674_v62 = vld [vmem:[#allocation26_spill] sm:$0xff] }
 0x3fd   : > { %6065 = vst.msk [vmem:[#allocation6 + $0x8] sm:$0xff] %vm6063_vm4, %v6048_v18  ;;  %v6019_v23 = vmax.f32 %v5987_v49, 0.0  ;;  %v5990_v3 = vadd.f32 %v13556_v31, %v5951_v1  ;;  %v5949_v35 = vadd.f32 %v5836_v41, %v5643_v21  ;;  %v5040_v5 = vadd.f32 %v14674_v62, %v14673_v45  ;;  %v14677_v41 = vld [vmem:[#allocation61_spill] sm:$0xff]  ;;  %v13657_v42 = vpop.f32.mrf.mxu0 }
 0x3fe   : > { %v10436_v7 = vpop.f32.mrf.mxu1  ;;  %v5647_v21 = vadd.f32 %v13507_v51, %v5341_v58  ;;  %v5344_v18 = vadd.f32 %v14675_v52, %v5037_v57  ;;  %v4430_v6 = vadd.f32 %v14679_v14, %v4124_v12  ;;  %v14680_v58 = vld [vmem:[#allocation22_spill] sm:$0xff]  ;;  %v14692_v52 = vld [vmem:[#allocation23_spill] sm:$0xff] }
 0x3ff   : > { %v6049_v13 = vmax.f32 %v6019_v23, %v6021_v20  ;;  %v5988_v46 = vadd.f32 %v13556_v31, %v5949_v35  ;;  %v5954_v10 = vadd.f32 %v10436_v7, %v5648_v11  ;;  %v6022_v63 = vmax.f32 %v5990_v3, 0.0  ;;  %v14676_v11 = vld [vmem:[#allocation30_spill] sm:$0xff]  ;;  %v14678_v23 = vld [vmem:[#allocation83_spill] sm:$0xff] }
 0x400   : > { %v5849_v22 = vpop.f32.mrf.mxu1  ;;  %v5038_v25 = vadd.f32 %v14676_v11, %v4732_v55  ;;  %v5652_v20 = vadd.f32 %v14677_v41, %v5346_v30  ;;  %v5347_v3 = vadd.f32 %v14678_v23, %v5040_v5  ;;  %v4128_v7 = vadd.f32 %v14680_v58, %v3790_v37  ;;  %v14688_v37 = vld [vmem:[#allocation60_spill] sm:$0xff]  ;;  %v14690_v5 = vld [vmem:[#allocation15_spill] sm:$0xff]  ;;  %v14695_v41 = vld [vmem:[#allocation50_spill] sm:$0xff]  ;;  %v13674_v58 = vpop.f32.mrf.mxu0 }
 0x401   : > { %6066 = vst.msk [vmem:[#allocation6 + $0x10] sm:$0xff] %vm6063_vm4, %v6049_v13  ;;  %v6020_v8 = vmax.f32 %v5988_v46, 0.0  ;;  %v5993_v29 = vadd.f32 %v13556_v31, %v5954_v10  ;;  %v5952_v16 = vadd.f32 %v5849_v22, %v5646_v34  ;;  %v14682_v34 = vld [vmem:[#allocation82_spill] sm:$0xff]  ;;  %v14683_v46 = vld [vmem:[#allocation20_spill] sm:$0xff]  ;;  %v5650_v57 = vadd.f32 %v14684_v38, %v5344_v18  ;;  %v14700_v38 = vld [vmem:[#allocation33_spill] sm:$0xff] }
 0x402   : > { %v10437_v9 = vpop.f32.mrf.mxu1  ;;  %v5043_v13 = vadd.f32 %v14682_v34, %v14681_v24  ;;  %v5345_v10 = vadd.f32 %v14683_v46, %v5038_v25  ;;  %v14687_v22 = vld [vmem:[#allocation72_spill] sm:$0xff]  ;;  %v4434_v18 = vadd.f32 %v14692_v52, %v4128_v7 }
 0x403   : > { %v6050_v49 = vmax.f32 %v6020_v8, %v6022_v63  ;;  %v5991_v1 = vadd.f32 %v13556_v31, %v5952_v16  ;;  %v5955_v39 = vadd.f32 %v10437_v9, %v5649_v40  ;;  %v6025_v19 = vmax.f32 %v5993_v29, 0.0  ;;  %v14685_v40 = vld [vmem:[#allocation70_spill] sm:$0xff]  ;;  %v14689_v29 = vld [vmem:[#allocation49_spill] sm:$0xff]  ;;  %v6158_v46 = vld [vmem:[#allocation4 + $0x7] sm:$0xff] }
 0x404   : > { %v6080_v35 = vld [vmem:[#allocation6] ss:$2 sm:$0xff]  ;;  %v6096_v15 = vld [vmem:[#allocation6 + $0x1] ss:$2 sm:$0xff]  ;;  %v5852_v59 = vpop.f32.mrf.mxu1  ;;  %v5041_v30 = vadd.f32 %v14686_v17, %v14685_v40  ;;  %v4736_v63 = vadd.f32 %v14687_v22, %v4430_v6  ;;  %v5653_v8 = vadd.f32 %v14688_v37, %v5347_v3  ;;  %v5350_v16 = vadd.f32 %v14689_v29, %v5043_v13 }
 0x405   : > { %v6111_v51 = vmax.f32 %v6080_v35, %v6096_v15  ;;  %6067 = vst.msk [vmem:[#allocation6 + $0x18] sm:$0xff] %vm6063_vm4, %v6050_v49  ;;  %v6023_v0 = vmax.f32 %v5991_v1, 0.0  ;;  %v5994_v4 = vadd.f32 %v13556_v31, %v5955_v39  ;;  %v5953_v53 = vadd.f32 %v5852_v59, %v5647_v21  ;;  %v14691_v21 = vld [vmem:[#allocation21_spill] sm:$0xff]  ;;  %v14693_v49 = vld [vmem:[#allocation32_spill] sm:$0xff] }
 0x406   : > { %v10440_v43 = vpop.f32.mrf.mxu1  ;;  %v13663_v9 = vadd.f32 %v14691_v21, %v14690_v5  ;;  %v14694_v1 = vld [vmem:[#allocation37_spill] sm:$0xff]  ;;  %v5651_v11 = vadd.f32 %v13538_v32, %v5345_v10  ;;  %v14696_v15 = vld [vmem:[#allocation28_spill] sm:$0xff]  ;;  %v5656_v59 = vadd.f32 %v13547_v27, %v5350_v16  ;;  %v13695_v21 = vpop.f32.mrf.mxu0 }
 0x407   : > { %6150 = vst.msk [vmem:[#allocation4 + $0x20] sm:$0xff] %vm6063_vm4, %v6111_v51  ;;  %v6051_v26 = vmax.f32 %v6023_v0, %v6025_v19  ;;  %v5992_v55 = vadd.f32 %v13556_v31, %v5953_v53  ;;  %v5958_v61 = vadd.f32 %v10440_v43, %v5652_v20  ;;  %v6026_v33 = vmax.f32 %v5994_v4, 0.0  ;;  %v14697_v51 = vld [vmem:[#allocation51_spill] sm:$0xff]  ;;  %v14698_v10 = vld [vmem:[#allocation85_spill] sm:$0xff]  ;;  %v14703_v40 = vld [vmem:[#allocation52_spill] sm:$0xff] }
 0x408   : > { %v5865_v54 = vpop.f32.mrf.mxu1  ;;  %v5044_v39 = vadd.f32 %v14694_v1, %v14693_v49  ;;  %v5348_v20 = vadd.f32 %v14695_v41, %v5041_v30  ;;  %v5042_v19 = vadd.f32 %v14696_v15, %v4736_v63  ;;  %v6178_v13 = vld [vmem:[#allocation4 + $0x8] sm:$0xff]  ;;  %v14699_v43 = vld [vmem:[#allocation17_spill] sm:$0xff] }
 0x409   : > { %6068 = vst.msk [vmem:[#allocation6 + $0x20] sm:$0xff] %vm6063_vm4, %v6051_v26  ;;  %v6024_v12 = vmax.f32 %v5992_v55, 0.0  ;;  %v5997_v45 = vadd.f32 %v13556_v31, %v5958_v61  ;;  %v5956_v62 = vadd.f32 %v5865_v54, %v5650_v57  ;;  %v5047_v27 = vadd.f32 %v14699_v43, %v14698_v10  ;;  %v14701_v57 = vld [vmem:[#allocation34_spill] sm:$0xff]  ;;  %v14702_v55 = vld [vmem:[#allocation88_spill] sm:$0xff]  ;;  %v14705_v1 = vld [vmem:[#allocation29_spill] sm:$0xff] }
 0x40a   : > { %v10441_v25 = vpop.f32.mrf.mxu1  ;;  %v5351_v0 = vadd.f32 %v14697_v51, %v5044_v39  ;;  %v5045_v26 = vadd.f32 %v14701_v57, %v14700_v38  ;;  %v4740_v61 = vadd.f32 %v14702_v55, %v4434_v18  ;;  %v5349_v17 = vadd.f32 %v14703_v40, %v5042_v19  ;;  %v14712_v43 = vld [vmem:[#allocation74_spill] sm:$0xff] }
 0x40b   : > { %v6052_v23 = vmax.f32 %v6024_v12, %v6026_v33  ;;  %v5995_v3 = vadd.f32 %v13556_v31, %v5956_v62  ;;  %v5959_v35 = vadd.f32 %v10441_v25, %v5653_v8  ;;  %v6029_v14 = vmax.f32 %v5997_v45, 0.0  ;;  %v14704_v33 = vld [vmem:[#allocation86_spill] sm:$0xff] }
 0x40c   : > { %v6082_v4 = vld [vmem:[#allocation6 + $0x10] ss:$2 sm:$0xff]  ;;  %v6098_v53 = vld [vmem:[#allocation6 + $0x11] ss:$2 sm:$0xff]  ;;  %v5868_v6 = vpop.f32.mrf.mxu1  ;;  %v5654_v37 = vadd.f32 %v13565_v36, %v5348_v20  ;;  %v5657_v54 = vadd.f32 %v13576_v60, %v5351_v0  ;;  %v5354_v12 = vadd.f32 %v14704_v33, %v5047_v27  ;;  %v4132_v39 = vadd.f32 %v14705_v1, %v13629_v56  ;;  %v14710_v0 = vld [vmem:[#allocation55_spill] sm:$0xff] }
 0x40d   : > { %v6112_v32 = vmax.f32 %v6082_v4, %v6098_v53  ;;  %6069 = vst.msk [vmem:[#allocation6 + $0x28] sm:$0xff] %vm6063_vm4, %v6052_v23  ;;  %v6027_v7 = vmax.f32 %v5995_v3, 0.0  ;;  %v5998_v24 = vadd.f32 %v13556_v31, %v5959_v35  ;;  %v5957_v34 = vadd.f32 %v5868_v6, %v5651_v11  ;;  %v14706_v60 = vld [vmem:[#allocation73_spill] sm:$0xff]  ;;  %v14707_v11 = vld [vmem:[#allocation63_spill] sm:$0xff]  ;;  %v14713_v27 = vld [vmem:[#allocation36_spill] sm:$0xff] }
 0x40e   : > { %v10444_v30 = vpop.f32.mrf.mxu1  ;;  %v13684_v22 = vld [vmem:[#allocation4 + $0x20] sm:$0xff]  ;;  %v5048_v25 = vadd.f32 %v14707_v11, %v14706_v60  ;;  %v5655_v41 = vadd.f32 %v13591_v2, %v5349_v17  ;;  %v5660_v56 = vadd.f32 %v13605_v47, %v5354_v12  ;;  %v4136_v47 = vadd.f32 %v14712_v43, %v13663_v9  ;;  %v14719_v12 = vld [vmem:[#allocation89_spill] sm:$0xff]  ;;  %v14722_v60 = vld [vmem:[#allocation40_spill] sm:$0xff] }
 0x40f   : > { %v13686_v63 = vld [vmem:[#allocation4 + $0x1f] sm:$0xff]  ;;  %6151 = vst.msk [vmem:[#allocation4 + $0x38] sm:$0xff] %vm6063_vm4, %v6112_v32  ;;  %v6053_v8 = vmax.f32 %v6027_v7, %v6029_v14  ;;  %v5996_v29 = vadd.f32 %v13556_v31, %v5957_v34  ;;  %v5962_v16 = vadd.f32 %v10444_v30, %v5656_v59  ;;  %v6186_v62 = vpack.c.bf16 %v13684_v22, %v6178_v13  ;;  %v13711_v32 = vpop.f32.mrf.mxu0 }
 0x410   : > { %v5881_v45 = vpop.f32.mrf.mxu1  ;;  %v6166_v5 = vpack.c.bf16 %v13686_v63, %v6158_v46  ;;  %v6030_v36 = vmax.f32 %v5998_v24, 0.0  ;;  %v14708_v23 = vld [vmem:[#allocation87_spill] sm:$0xff]  ;;  %v5355_v4 = vadd.f32 %v14710_v0, %v5048_v25  ;;  %v14711_v46 = vld [vmem:[#allocation66_spill] sm:$0xff] }
 0x411   : > { %6070 = vst.msk [vmem:[#allocation6 + $0x30] sm:$0xff] %vm6063_vm4, %v6053_v8  ;;  %v6028_v52 = vmax.f32 %v5996_v29, 0.0  ;;  %v6001_v18 = vadd.f32 %v13556_v31, %v5962_v16  ;;  %v5960_v49 = vadd.f32 %v5881_v45, %v5654_v37  ;;  %10466 = vmatprep.mubr.msk.bf16.mxu0 %vm6063_vm4, %v6186_v62  ;;  %v5352_v3 = vadd.f32 %v14708_v23, %v5045_v26  ;;  %v14709_v59 = vld [vmem:[#allocation35_spill] sm:$0xff]  ;;  %v14714_v38 = vld [vmem:[#allocation38_spill] sm:$0xff]  ;;  %v14715_v26 = vld [vmem:[#allocation56_spill] sm:$0xff] }
 0x412   : > { %10482 = vmatprep.mubr.msk.bf16.mxu1 %vm6063_vm4, %v6166_v5  ;;  %v10445_v20 = vpop.f32.mrf.mxu1  ;;  %v5046_v51 = vadd.f32 %v14709_v59, %v4740_v61  ;;  %v4438_v10 = vadd.f32 %v14711_v46, %v4132_v39  ;;  %v5051_v57 = vadd.f32 %v14714_v38, %v14713_v27  ;;  %v14716_v8 = vld [vmem:[#allocation75_spill] sm:$0xff]  ;;  %v14717_v29 = vld [vmem:[#allocation76_spill] sm:$0xff]  ;;  %v5661_v9 = vadd.f32 %v13640_v48, %v5355_v4  ;;  %v5610_v5 = vpop.f32.mrf.mxu0  ;;  %v14723_v48 = vld [vmem:[#allocation57_spill] sm:$0xff] }
 0x413   : > { %v6054_v35 = vmax.f32 %v6028_v52, %v6030_v36  ;;  %v5999_v15 = vadd.f32 %v13556_v31, %v5960_v49  ;;  %v5963_v19 = vadd.f32 %v10445_v20, %v5657_v54  ;;  %v6033_v2 = vmax.f32 %v6001_v18, 0.0  ;;  %v14718_v54 = vld [vmem:[#allocation45_spill] sm:$0xff]  ;;  %v14720_v49 = vld [vmem:[#allocation14_spill] sm:$0xff]  ;;  %v14721_v39 = vld [vmem:[#allocation39_spill] sm:$0xff] }
 0x414   : > { %v6084_v53 = vld [vmem:[#allocation6 + $0x20] ss:$2 sm:$0xff]  ;;  %v6100_v14 = vld [vmem:[#allocation6 + $0x21] ss:$2 sm:$0xff]  ;;  %v5884_v6 = vpop.f32.mrf.mxu1  ;;  %v5353_v55 = vadd.f32 %v14715_v26, %v5046_v51  ;;  %v5658_v40 = vadd.f32 %v13623_v50, %v5352_v3  ;;  %v5049_v16 = vadd.f32 %v14717_v29, %v14716_v8  ;;  %v4744_v33 = vadd.f32 %v14718_v54, %v4438_v10  ;;  %v10420_v23 = vpop.f32.mrf.mxu0  ;;  %v14728_v10 = vld [vmem:[#allocation41_spill] sm:$0xff] }
 0x415   : > { %v6113_v7 = vmax.f32 %v6084_v53, %v6100_v14  ;;  %6071 = vst.msk [vmem:[#allocation6 + $0x38] sm:$0xff] %vm6063_vm4, %v6054_v35  ;;  %v6031_v24 = vmax.f32 %v5999_v15, 0.0  ;;  %v6002_v34 = vadd.f32 %v13556_v31, %v5963_v19  ;;  %v5961_v13 = vadd.f32 %v5884_v6, %v5655_v41  ;;  %v14724_v19 = vld [vmem:[#allocation78_spill] sm:$0xff]  ;;  %v14731_v38 = vld [vmem:[#allocation59_spill] sm:$0xff] }
 0x416   : > { %v10448_v61 = vpop.f32.mrf.mxu1  ;;  %v5358_v45 = vadd.f32 %v14719_v12, %v5051_v57  ;;  %v4442_v1 = vadd.f32 %v14720_v49, %v4136_v47  ;;  %v5052_v11 = vadd.f32 %v14722_v60, %v14721_v39  ;;  %v5659_v25 = vadd.f32 %v13657_v42, %v5353_v55  ;;  %v14729_v43 = vld [vmem:[#allocation42_spill] sm:$0xff]  ;;  %v14733_v49 = vld [vmem:[#allocation79_spill] sm:$0xff] }
 0x417   : > { %6152 = vst.msk [vmem:[#allocation4 + $0x50] sm:$0xff] %vm6063_vm4, %v6113_v7  ;;  %v6055_v17 = vmax.f32 %v6031_v24, %v6033_v2  ;;  %v6000_v30 = vadd.f32 %v13556_v31, %v5961_v13  ;;  %v5966_v37 = vadd.f32 %v10448_v61, %v5660_v56  ;;  %v6034_v50 = vmax.f32 %v6002_v34, 0.0  ;;  %v14725_v56 = vld [vmem:[#allocation90_spill] sm:$0xff]  ;;  %v14727_v13 = vld [vmem:[#allocation19_spill] sm:$0xff] }
 0x418   : > { %v5897_v62 = vpop.f32.mrf.mxu1  ;;  %v5356_v20 = vadd.f32 %v14723_v48, %v5049_v16  ;;  %v5050_v59 = vadd.f32 %v14724_v19, %v4744_v33  ;;  %v5664_v51 = vadd.f32 %v13674_v58, %v5358_v45  ;;  %v5359_v0 = vadd.f32 %v14725_v56, %v5052_v11  ;;  %v14726_v34 = vld [vmem:[#allocation18_spill] sm:$0xff]  ;;  %v14730_v58 = vld [vmem:[#allocation44_spill] sm:$0xff]  ;;  %v14735_v11 = vld [vmem:[#allocation91_spill] sm:$0xff] }
 0x419   : > { %6072 = vst.msk [vmem:[#allocation6 + $0x40] sm:$0xff] %vm6063_vm4, %v6055_v17  ;;  %v6032_v36 = vmax.f32 %v6000_v30, 0.0  ;;  %v6005_v52 = vadd.f32 %v13556_v31, %v5966_v37  ;;  %v5964_v18 = vadd.f32 %v5897_v62, %v5658_v40  ;;  %v5055_v46 = vadd.f32 %v14727_v13, %v14726_v34  ;;  %v5623_v17 = vpop.f32.mrf.mxu0  ;;  %v13755_v29 = vld [vmem:[#allocation4 + $0x38] sm:$0xff]  ;;  %v10887_v62 = vld [vmem:[%s14400_s5 + $0x50] sm:$0xff]  }
 0x41a   : > { %v10449_v41 = vpop.f32.mrf.mxu1  ;;  %v5053_v47 = vadd.f32 %v14729_v43, %v14728_v10  ;;  %v4748_v27 = vadd.f32 %v14730_v58, %v4442_v1  ;;  %v5357_v57 = vadd.f32 %v14731_v38, %v5050_v59  ;;  %v5662_v40 = vadd.f32 %v13695_v21, %v5356_v20  ;;  %v13757_v16 = vld [vmem:[#allocation4 + $0x37] sm:$0xff]  ;;  %v14734_v1 = vld [vmem:[#allocation43_spill] sm:$0xff] }
 0x41b   : > { %v6056_v3 = vmax.f32 %v6032_v36, %v6034_v50  ;;  %v6003_v35 = vadd.f32 %v13556_v31, %v5964_v18  ;;  %v5967_v15 = vadd.f32 %v10449_v41, %v5661_v9  ;;  %v6037_v14 = vmax.f32 %v6005_v52, 0.0  ;;  %v14732_v33 = vld [vmem:[#allocation62_spill] sm:$0xff]  ;;  %v10888_v50 = vld [vmem:[%s14400_s5 + $0x70] sm:$0xff]   ;;  %v10421_v48 = vpop.f32.mrf.mxu0 }
 0x41c   : > { %v6086_v4 = vld [vmem:[#allocation6 + $0x30] ss:$2 sm:$0xff]  ;;  %v6102_v53 = vld [vmem:[#allocation6 + $0x31] ss:$2 sm:$0xff]  ;;  %v5900_v2 = vpop.f32.mrf.mxu1  ;;  %v5665_v54 = vadd.f32 %v13711_v32, %v5359_v0  ;;  %v5362_v9 = vadd.f32 %v14732_v33, %v5055_v46  ;;  %v5056_v39 = vadd.f32 %v14734_v1, %v14733_v49  ;;  %v5663_v60 = vadd.f32 %v5610_v5, %v5357_v57  ;;  %v10889_v5 = vld [vmem:[%s14400_s5 + $0x48] sm:$0xff]  }
 0x41d   : > { %v6114_v6 = vmax.f32 %v6086_v4, %v6102_v53  ;;  %6073 = vst.msk [vmem:[#allocation6 + $0x48] sm:$0xff] %vm6063_vm4, %v6056_v3  ;;  %v6035_v42 = vmax.f32 %v6003_v35, 0.0  ;;  %v6006_v7 = vadd.f32 %v13556_v31, %v5967_v15  ;;  %v5965_v24 = vadd.f32 %v5900_v2, %v5659_v25  ;;  %v14736_v15 = vld [vmem:[#allocation80_spill] sm:$0xff]  ;;  %v14737_v19 = vld [vmem:[#allocation81_spill] sm:$0xff]  ;;  %v14738_v59 = vld [vmem:[#allocation46_spill] sm:$0xff]  ;;  %v5626_v46 = vpop.f32.mrf.mxu0 }
 0x41e   : > { %v10452_v26 = vpop.f32.mrf.mxu1  ;;  %v13748_v55 = vld [vmem:[#allocation4 + $0x50] sm:$0xff]  ;;  %v5360_v25 = vadd.f32 %v14735_v11, %v5053_v47  ;;  %v5668_v56 = vadd.f32 %v10420_v23, %v5362_v9  ;;  %v5363_v0 = vadd.f32 %v13540_v44, %v5056_v39  ;;  %v10891_v38 = vld [vmem:[%s14400_s5 + $0x40] sm:$0xff]   ;;  %v13812_v9 = vld [vmem:[%s14400_s5 + $0x98] sm:$0xff]  }
 0x41f   : > { %v13750_v61 = vld [vmem:[#allocation4 + $0x4f] sm:$0xff]  ;;  %6153 = vst.msk [vmem:[#allocation4 + $0x68] sm:$0xff] %vm6063_vm4, %v6114_v6  ;;  %v6057_v30 = vmax.f32 %v6035_v42, %v6037_v14  ;;  %v6004_v37 = vadd.f32 %v13556_v31, %v5965_v24  ;;  %v5970_v8 = vadd.f32 %v10452_v26, %v5664_v51  ;;  %v13763_v45 = vpack.c.bf16 %v13748_v55, %v13755_v29 }
 0x420   : > { %v5913_v12 = vpop.f32.mrf.mxu1  ;;  %v13767_v21 = vpack.c.bf16 %v13750_v61, %v13757_v16  ;;  %v6038_v32 = vmax.f32 %v6006_v7, 0.0  ;;  %v5054_v51 = vadd.f32 %v14738_v59, %v4748_v27  ;;  %v10890_v6 = vld [vmem:[%s14400_s5 + $0x68] sm:$0xff]   ;;  %v5666_v23 = vadd.f32 %v5623_v17, %v5360_v25 }
 0x421   : > { %6074 = vst.msk [vmem:[#allocation6 + $0x50] sm:$0xff] %vm6063_vm4, %v6057_v30  ;;  %v6036_v36 = vmax.f32 %v6004_v37, 0.0  ;;  %v6009_v52 = vadd.f32 %v13556_v31, %v5970_v8  ;;  %v5968_v18 = vadd.f32 %v5913_v12, %v5662_v40  ;;  %10467 = vmatmul.mubr.msk.bf16.vlgmr.msra.gmra.mxu0 %vm6063_vm4, %v13763_v45  ;;  %v5669_v58 = vadd.f32 %v10421_v48, %v5363_v0 }
 0x422   : > { %10483 = vmatmul.mubr.msk.bf16.vlgmr.msra.gmra.mxu1 %vm6063_vm4, %v13767_v21  ;;  %v10453_v41 = vpop.f32.mrf.mxu1  ;;  %10491 = vmatpush3.bf16.msra.mxu0 %v14736_v15  ;;  %v5361_v44 = vadd.f32 %v13544_v28, %v5054_v51  ;;  %v10892_v28 = vld [vmem:[%s14400_s5 + $0x60] sm:$0xff]  }
 0x423   : > { %v6058_v20 = vmax.f32 %v6036_v36, %v6038_v32  ;;  %v6007_v3 = vadd.f32 %v13556_v31, %v5968_v18  ;;  %v5971_v35 = vadd.f32 %v10453_v41, %v5665_v54  ;;  %10507 = vmatpush3.bf16.msra.mxu1 %v14737_v19  ;;  %v6041_v14 = vmax.f32 %v6009_v52, 0.0  ;;  %10492 = vmatprep.subr.bf16.mxu0 %v10887_v62  ;;  %v13817_v36 = vld [vmem:[%s14400_s5 + $0xb8] sm:$0xff]  }
 0x424   : > { %v6088_v4 = vld [vmem:[#allocation6 + $0x40] ss:$2 sm:$0xff]  ;;  %v6104_v53 = vld [vmem:[#allocation6 + $0x41] ss:$2 sm:$0xff]  ;;  %v5916_v2 = vpop.f32.mrf.mxu1  ;;  %10508 = vmatprep.subr.bf16.mxu1 %v10888_v50  ;;  %v5667_v30 = vadd.f32 %v5626_v46, %v5361_v44  ;;  %v6404_v44 = vld [vmem:[#allocation4 + $0x51] sm:$0xff] }
 0x425   : > { %v6115_v42 = vmax.f32 %v6088_v4, %v6104_v53  ;;  %6075 = vst.msk [vmem:[#allocation6 + $0x58] sm:$0xff] %vm6063_vm4, %v6058_v20  ;;  %v6039_v7 = vmax.f32 %v6007_v3, 0.0  ;;  %v6010_v24 = vadd.f32 %v13556_v31, %v5971_v35  ;;  %v5969_v34 = vadd.f32 %v5916_v2, %v5663_v60  ;;  %v6401_v53 = vld [vmem:[#allocation4 + $0x9] sm:$0xff]  ;;  %v6403_v46 = vld [vmem:[#allocation4 + $0x39] sm:$0xff] }
 0x426   : > { %v10456_v13 = vpop.f32.mrf.mxu1  ;;  %10493 = vmatpush3.bf16.msra.mxu0 %v10887_v62  ;;  %v13821_v39 = vld [vmem:[#allocation4 + $0x68] sm:$0xff] }
 0x427   : > { %6154 = vst.msk [vmem:[#allocation4 + $0x80] sm:$0xff] %vm6063_vm4, %v6115_v42  ;;  %v6059_v10 = vmax.f32 %v6039_v7, %v6041_v14  ;;  %v6008_v43 = vadd.f32 %v13556_v31, %v5969_v34  ;;  %v5974_v47 = vadd.f32 %v10456_v13, %v5668_v56  ;;  %10509 = vmatpush3.bf16.msra.mxu1 %v10888_v50  ;;  %v6042_v57 = vmax.f32 %v6010_v24, 0.0  ;;  %v6162_v20 = vld [vmem:[#allocation4 + $0x67] sm:$0xff] }
 0x428   : > { %v5929_v27 = vpop.f32.mrf.mxu1  ;;  %10494 = vmatprep.subr.bf16.mxu0 %v10889_v5  ;;  %10510 = vmatprep.subr.bf16.mxu1 %v10890_v6  ;;  %v6402_v14 = vld [vmem:[#allocation4 + $0x21] sm:$0xff] }
 0x429   : > { %6076 = vst.msk [vmem:[#allocation6 + $0x60] sm:$0xff] %vm6063_vm4, %v6059_v10  ;;  %v6040_v26 = vmax.f32 %v6008_v43, 0.0  ;;  %v6013_v40 = vadd.f32 %v13556_v31, %v5974_v47  ;;  %v5972_v17 = vadd.f32 %v5929_v27, %v5666_v23  ;;  %v6409_v34 = vpack.c.bf16 %v6402_v14, %v6401_v53  ;;  %v6405_v47 = vld [vmem:[#allocation4 + $0x69] sm:$0xff]  ;;  %v10920_v53 = vld [vmem:[%s14402_s7 + $0x20] sm:$0xff]  }
 0x42a   : > { %v10457_v37 = vpop.f32.mrf.mxu1  ;;  %10495 = vmatpush3.bf16.msra.mxu0 %v10889_v5  ;;  %v6539_v23 = vpack.c.bf16 %v13757_v16, %v13686_v63  ;;  %v13861_v10 = vpack.c.bf16 %v6404_v44, %v6403_v46  ;;  %v6540_v43 = vpack.c.bf16 %v6162_v20, %v13750_v61  ;;  %v10895_v63 = vld [vmem:[%s14400_s5 + $0x90] sm:$0xff]   ;;  %v10897_v61 = vld [vmem:[%s14400_s5 + $0x88] sm:$0xff]  }
 0x42b   : > { %v6060_v8 = vmax.f32 %v6040_v26, %v6042_v57  ;;  %v6011_v54 = vadd.f32 %v13556_v31, %v5972_v17  ;;  %v5975_v33 = vadd.f32 %v10457_v37, %v5669_v58  ;;  %10511 = vmatpush3.bf16.msra.mxu1 %v10890_v6  ;;  %v6045_v50 = vmax.f32 %v6013_v40, 0.0  ;;  %10496 = vmatprep.subr.bf16.mxu0 %v10891_v38  ;;  %v10896_v16 = vld [vmem:[%s14400_s5 + $0xb0] sm:$0xff]   ;;  %v10898_v57 = vld [vmem:[%s14400_s5 + $0xa8] sm:$0xff]   ;;  %v10899_v37 = vld [vmem:[%s14400_s5 + $0x80] sm:$0xff]  }
 0x42c   : > { %v6090_v12 = vld [vmem:[#allocation6 + $0x50] ss:$2 sm:$0xff]  ;;  %v6106_v62 = vld [vmem:[#allocation6 + $0x51] ss:$2 sm:$0xff]  ;;  %v5932_v32 = vpop.f32.mrf.mxu1  ;;  %10512 = vmatprep.subr.bf16.mxu1 %v10892_v28 }
 0x42d   : > { %v6116_v52 = vmax.f32 %v6090_v12, %v6106_v62  ;;  %6077 = vst.msk [vmem:[#allocation6 + $0x68] sm:$0xff] %vm6063_vm4, %v6060_v8  ;;  %v6043_v18 = vmax.f32 %v6011_v54, 0.0  ;;  %v6014_v49 = vadd.f32 %v13556_v31, %v5975_v33  ;;  %v5973_v1 = vadd.f32 %v5932_v32, %v5667_v30  ;;  %v10900_v8 = vld [vmem:[%s14400_s5 + $0xa0] sm:$0xff]   ;;  %v10903_v12 = vld [vmem:[%s14400_s5 + $0xd0] sm:$0xff]  }
 0x42e   : > { %v13823_v60 = vld [vmem:[#allocation4 + $0x80] sm:$0xff]  ;;  %10497 = vmatpush3.bf16.msra.mxu0 %v10891_v38  ;;  %v6669_v30 = vpack.c.bf16 %v13755_v29, %v13684_v22  ;;  %v6799_v54 = vpack.c.bf16 %v6403_v46, %v6402_v14  ;;  %v10901_v22 = vld [vmem:[%s14400_s5 + $0xd8] sm:$0xff]   ;;  %v6670_v33 = vpack.c.bf16 %v13821_v39, %v13748_v55  ;;  %v10904_v32 = vld [vmem:[%s14400_s5 + $0xf0] sm:$0xff]  }
 0x42f   : > { %v6163_v11 = vld [vmem:[#allocation4 + $0x7f] sm:$0xff]  ;;  %6155 = vst.msk [vmem:[#allocation4 + $0x98] sm:$0xff] %vm6063_vm4, %v6116_v52  ;;  %v6061_v25 = vmax.f32 %v6043_v18, %v6045_v50  ;;  %v6012_v41 = vadd.f32 %v13556_v31, %v5973_v1  ;;  %v13829_v48 = vpack.c.bf16 %v13823_v60, %v13821_v39  ;;  %10513 = vmatpush3.bf16.msra.mxu1 %v10892_v28  ;;  %v6046_v35 = vmax.f32 %v6014_v49, 0.0  ;;  %v10905_v55 = vld [vmem:[%s14400_s5 + $0xc8] sm:$0xff]  }
 0x430   : > { %v13831_v3 = vpack.c.bf16 %v6163_v11, %v6162_v20  ;;  %10522 = vmatprep.subr.bf16.mxu0 %v13812_v9  ;;  %10538 = vmatprep.subr.bf16.mxu1 %v13817_v36  ;;  %v6406_v13 = vld [vmem:[#allocation4 + $0x81] sm:$0xff]  ;;  %v10902_v29 = vld [vmem:[%s14400_s5 + $0xf8] sm:$0xff]  }
 0x431   : > { %6078 = vst.msk [vmem:[#allocation6 + $0x70] sm:$0xff] %vm6063_vm4, %v6061_v25  ;;  %v6044_v15 = vmax.f32 %v6012_v41, 0.0  ;;  %10470 = vmatprep.mubr.msk.bf16.mxu0 %vm6063_vm4, %v13829_v48  ;;  %v13864_v58 = vpack.c.bf16 %v6406_v13, %v6405_v47  ;;  %v10906_v18 = vld [vmem:[%s14400_s5 + $0xe8] sm:$0xff]   ;;  %v10907_v39 = vld [vmem:[%s14400_s5 + $0xc0] sm:$0xff]   ;;  %v10910_v25 = vld [vmem:[%s14400_s5 + $0x110] sm:$0xff]  }
 0x432   : > { %10486 = vmatprep.mubr.msk.bf16.mxu1 %vm6063_vm4, %v13831_v3  ;;  %v6929_v41 = vld [vmem:[#allocation4 + $0xdf] sm:$0xff] }
 0x433   : > { %v6062_v31 = vmax.f32 %v6044_v15, %v6046_v35  ;;  %v7059_v20 = vld [vmem:[#allocation4 + $0xe0] sm:$0xff]  ;;  %v10921_v14 = vld [vmem:[%s14402_s7 + $0x58] sm:$0xff]  }
 0x434   : > { %v6092_v19 = vld [vmem:[#allocation6 + $0x60] ss:$2 sm:$0xff]  ;;  %v6108_v5 = vld [vmem:[#allocation6 + $0x61] ss:$2 sm:$0xff] }
 0x435   : > { %v6117_v59 = vmax.f32 %v6092_v19, %v6108_v5  ;;  %6079 = vst.msk [vmem:[#allocation6 + $0x78] sm:$0xff] %vm6063_vm4, %v6062_v31  ;;  %v10912_v35 = vld [vmem:[%s14400_s5 + $0x100] sm:$0xff]   ;;  %v10913_v19 = vld [vmem:[%s14402_s7 + $0x78] sm:$0xff]  }
 0x436   : > { %v13842_v4 = vld [vmem:[#allocation4 + $0x98] sm:$0xff]  ;;  %v7189_v15 = vld [vmem:[#allocation4 + $0xe1] sm:$0xff] }
 0x437   : > { %6156 = vst.msk [vmem:[#allocation4 + $0xb0] sm:$0xff] %vm6063_vm4, %v6117_v59  ;;  %v6164_v6 = vld [vmem:[#allocation4 + $0x97] sm:$0xff]  ;;  %v6671_v62 = vpack.c.bf16 %v13842_v4, %v13823_v60  ;;  %v10908_v60 = vld [vmem:[%s14400_s5 + $0xe0] sm:$0xff]  }
 0x438   : > { %v6541_v27 = vpack.c.bf16 %v6164_v6, %v6163_v11  ;;  %v6407_v26 = vld [vmem:[#allocation4 + $0x99] sm:$0xff]  ;;  %v10915_v59 = vld [vmem:[%s14402_s7 + $0x70] sm:$0xff]  }
 0x439   : > { %v6801_v50 = vpack.c.bf16 %v6407_v26, %v6406_v13  ;;  %v10909_v11 = vld [vmem:[%s14400_s5 + $0x118] sm:$0xff]  }
 0x43a   : > { %v10914_v5 = vld [vmem:[%s14402_s7 + $0x38] sm:$0xff]  }
 0x43c   : > { %v6094_v51 = vld [vmem:[#allocation6 + $0x70] ss:$2 sm:$0xff]  ;;  %v6110_v56 = vld [vmem:[#allocation6 + $0x71] ss:$2 sm:$0xff] }
 0x43d   : > { %v6118_v0 = vmax.f32 %v6094_v51, %v6110_v56  ;;  %v10916_v51 = vld [vmem:[%s14402_s7 + $0x30] sm:$0xff]   ;;  %v10917_v56 = vld [vmem:[%s14402_s7 + $0x68] sm:$0xff]  }
 0x43e   : > { %v13844_v2 = vld [vmem:[#allocation4 + $0xb0] sm:$0xff] }
 0x43f   : > { %v6165_v42 = vld [vmem:[#allocation4 + $0xaf] sm:$0xff]  ;;  %6157 = vst.msk [vmem:[#allocation4 + $0xc8] sm:$0xff] %vm6063_vm4, %v6118_v0  ;;  %v13849_v7 = vpack.c.bf16 %v13844_v2, %v13842_v4  ;;  %v10919_v4 = vld [vmem:[%s14402_s7 + $0x60] sm:$0xff]  }
 0x440   : > { %v13851_v24 = vpack.c.bf16 %v6165_v42, %v6164_v6  ;;  %v6408_v38 = vld [vmem:[#allocation4 + $0xb1] sm:$0xff]  ;;  %v10918_v0 = vld [vmem:[%s14402_s7 + $0x28] sm:$0xff]  }
 0x441   : > { %10471 = vmatmul.mubr.msk.bf16.gmra.mxu0 %vm6063_vm4, %v13849_v7  ;;  %v13888_v40 = vpack.c.bf16 %v6408_v38, %v6407_v26  ;;  %v10923_v6 = vld [vmem:[%s14402_s7 + $0x50] sm:$0xff]  }
 0x442   : > { %10487 = vmatmul.mubr.msk.bf16.gmra.mxu1 %vm6063_vm4, %v13851_v24  ;;  %10498 = vmatprep.mubr.msk.bf16.mxu0 %vm6063_vm4, %v6409_v34  ;;  %v10927_v34 = vld [vmem:[%s14402_s7 + $0x40] sm:$0xff]  }
 0x443   : > { %10514 = vmatprep.mubr.msk.bf16.mxu1 %vm6063_vm4, %v6539_v23  ;;  %v10928_v23 = vld [vmem:[%s14402_s7] sm:$0xff]  }
 0x446   : > { %v13883_v28 = vld [vmem:[#allocation4 + $0xc7] sm:$0xff] }
 0x447   : > { %v6542_v17 = vpack.c.bf16 %v13883_v28, %v6165_v42  ;;  %v6798_v52 = vld [vmem:[#allocation4 + $0xc9] sm:$0xff] }
 0x448   : > { %v6802_v1 = vpack.c.bf16 %v6798_v52, %v6408_v38  ;;  %v7193_v31 = vpack.c.bf16 %v7189_v15, %v6798_v52  ;;  %v10924_v42 = vld [vmem:[%s14402_s7 + $0x10] sm:$0xff]  }
 0x449   : > { %10499 = vmatmul.mubr.msk.bf16.vlgmr.msra.gmra.mxu0 %vm6063_vm4, %v13861_v10 }
 0x44a   : > { %10515 = vmatmul.mubr.msk.bf16.vlgmr.msra.gmra.mxu1 %vm6063_vm4, %v6540_v43  ;;  %10523 = vmatpush3.bf16.msra.mxu0 %v13812_v9  ;;  %v6800_v9 = vpack.c.bf16 %v6405_v47, %v6404_v44 }
 0x44b   : > { %10502 = vmatprep.mubr.msk.bf16.mxu0 %vm6063_vm4, %v13864_v58  ;;  %10518 = vmatprep.mubr.msk.bf16.mxu1 %vm6063_vm4, %v6541_v27 }
 0x44c   : > { %10539 = vmatpush3.bf16.msra.mxu1 %v13817_v36  ;;  %10524 = vmatprep.subr.bf16.mxu0 %v10895_v63  ;;  %v6668_v36 = vld [vmem:[#allocation4 + $0xc8] sm:$0xff] }
 0x44d   : > { %10540 = vmatprep.subr.bf16.mxu1 %v10896_v16  ;;  %v6672_v49 = vpack.c.bf16 %v6668_v36, %v13844_v2  ;;  %v10922_v2 = vld [vmem:[%s14402_s7 + $0x18] sm:$0xff]  }
 0x44e   : > { %10525 = vmatpush3.bf16.msra.mxu0 %v10895_v63 }
 0x44f   : > { %10526 = vmatprep.subr.bf16.mxu0 %v10897_v61 }
 0x450   : > { %10541 = vmatpush3.bf16.msra.mxu1 %v10896_v16 }
 0x451   : > { %10542 = vmatprep.subr.bf16.mxu1 %v10898_v57  ;;  %10503 = vmatmul.mubr.msk.bf16.gmra.mxu0 %vm6063_vm4, %v13888_v40 }
 0x452   : > { %10519 = vmatmul.mubr.msk.bf16.gmra.mxu1 %vm6063_vm4, %v6542_v17  ;;  %10527 = vmatpush3.bf16.msra.mxu0 %v10897_v61 }
 0x453   : > { %10530 = vmatprep.mubr.msk.bf16.mxu0 %vm6063_vm4, %v6669_v30  ;;  %10546 = vmatprep.mubr.msk.bf16.mxu1 %vm6063_vm4, %v6799_v54 }
 0x454   : > { %10543 = vmatpush3.bf16.msra.mxu1 %v10898_v57  ;;  %10528 = vmatprep.subr.bf16.mxu0 %v10899_v37 }
 0x455   : > { %10544 = vmatprep.subr.bf16.mxu1 %v10900_v8 }
 0x456   : > { %10529 = vmatpush3.bf16.msra.mxu0 %v10899_v37 }
 0x457   : > { %10554 = vmatprep.subr.bf16.mxu0 %v10901_v22 }
 0x458   : > { %10545 = vmatpush3.bf16.msra.mxu1 %v10900_v8 }
 0x459   : > { %10570 = vmatprep.subr.bf16.mxu1 %v10902_v29  ;;  %10531 = vmatmul.mubr.msk.bf16.vlgmr.msra.gmra.mxu0 %vm6063_vm4, %v6670_v33 }
 0x45a   : > { %10555 = vmatpush3.bf16.msra.mxu0 %v10901_v22  ;;  %10534 = vmatprep.mubr.msk.bf16.mxu0 %vm6063_vm4, %v6671_v62 }
 0x45b   : > { %10547 = vmatmul.mubr.msk.bf16.vlgmr.msra.gmra.mxu1 %vm6063_vm4, %v6800_v9  ;;  %10556 = vmatprep.subr.bf16.mxu0 %v10903_v12 }
 0x45c   : > { %10550 = vmatprep.mubr.msk.bf16.mxu1 %vm6063_vm4, %v6801_v50  ;;  %10571 = vmatpush3.bf16.msra.mxu1 %v10902_v29 }
 0x45d   : > { %10572 = vmatprep.subr.bf16.mxu1 %v10904_v32 }
 0x45e   : > { %10557 = vmatpush3.bf16.msra.mxu0 %v10903_v12 }
 0x45f   : > { %10558 = vmatprep.subr.bf16.mxu0 %v10905_v55 }
 0x460   : > { %10573 = vmatpush3.bf16.msra.mxu1 %v10904_v32 }
 0x461   : > { %10535 = vmatmul.mubr.msk.bf16.gmra.mxu0 %vm6063_vm4, %v6672_v49  ;;  %10574 = vmatprep.subr.bf16.mxu1 %v10906_v18 }
 0x462   : > { %10559 = vmatpush3.bf16.msra.mxu0 %v10905_v55  ;;  %10562 = vmatprep.mubr.msk.bf16.mxu0 %vm6063_vm4, %v13767_v21  ;;  %v13951_v21 = vld [vmem:[#allocation5] sm:$0xff] }
 0x463   : > { %10551 = vmatmul.mubr.msk.bf16.gmra.mxu1 %vm6063_vm4, %v6802_v1  ;;  %10560 = vmatprep.subr.bf16.mxu0 %v10907_v39  ;;  %14739 = vst [vmem:[#allocation68_spill] sm:$0xff] %v13951_v21 }
 0x464   : > { %10578 = vmatprep.mubr.msk.bf16.mxu1 %vm6063_vm4, %v13763_v45  ;;  %10575 = vmatpush3.bf16.msra.mxu1 %v10906_v18  ;;  %v10911_v45 = vld [vmem:[%s14400_s5 + $0x108] sm:$0xff]  }
 0x465   : > { %10576 = vmatprep.subr.bf16.mxu1 %v10908_v60 }
 0x466   : > { %10561 = vmatpush3.bf16.msra.mxu0 %v10907_v39 }
 0x467   : > { %10586 = vmatprep.subr.bf16.mxu0 %v10909_v11 }
 0x468   : > { %10577 = vmatpush3.bf16.msra.mxu1 %v10908_v60 }
 0x469   : > { %10563 = vmatmul.mubr.msk.bf16.vlgmr.msra.gmra.mxu0 %vm6063_vm4, %v13831_v3  ;;  %10602 = vmatprep.subr.bf16.mxu1 %v13951_v21  ;;  %v6933_v3 = vpack.c.bf16 %v6929_v41, %v13883_v28 }
 0x46a   : > { %10587 = vmatpush3.bf16.msra.mxu0 %v10909_v11  ;;  %10566 = vmatprep.mubr.msk.bf16.mxu0 %vm6063_vm4, %v13851_v24  ;;  %v10926_v24 = vld [vmem:[%s14402_s7 + $0x8] sm:$0xff]  }
 0x46b   : > { %10579 = vmatmul.mubr.msk.bf16.vlgmr.msra.gmra.mxu1 %vm6063_vm4, %v13829_v48  ;;  %10588 = vmatprep.subr.bf16.mxu0 %v10910_v25  ;;  %v7063_v48 = vpack.c.bf16 %v7059_v20, %v6668_v36 }
 0x46c   : > { %10582 = vmatprep.mubr.msk.bf16.mxu1 %vm6063_vm4, %v13849_v7  ;;  %10603 = vmatpush3.bf16.msra.mxu1 %v10913_v19  ;;  %v10925_v7 = vld [vmem:[%s14402_s7 + $0x48] sm:$0xff]  }
 0x46d   : > { %10604 = vmatprep.subr.bf16.mxu1 %v13951_v21 }
 0x46e   : > { %10589 = vmatpush3.bf16.msra.mxu0 %v10910_v25 }
 0x46f   : > { %10590 = vmatprep.subr.bf16.mxu0 %v10911_v45 }
 0x470   : > { %10605 = vmatpush3.bf16.msra.mxu1 %v10915_v59 }
 0x471   : > { %10567 = vmatmul.mubr.msk.bf16.gmra.mxu0 %vm6063_vm4, %v6933_v3  ;;  %10606 = vmatprep.subr.bf16.mxu1 %v13951_v21 }
 0x472   : > { %10591 = vmatpush3.bf16.msra.mxu0 %v10911_v45  ;;  %10594 = vmatprep.mubr.msk.bf16.mxu0 %vm6063_vm4, %v13861_v10 }
 0x473   : > { %10583 = vmatmul.mubr.msk.bf16.gmra.mxu1 %vm6063_vm4, %v7063_v48  ;;  %10592 = vmatprep.subr.bf16.mxu0 %v10912_v35 }
 0x474   : > { %10607 = vmatpush3.bf16.msra.mxu1 %v10917_v56  ;;  %10618 = vmatprep.mubr.msk.bf16.mxu1 %vm11071_vm5, %v13951_v21 }
 0x475   : > { %10608 = vmatprep.subr.bf16.mxu1 %v13951_v21 }
 0x476   : > { %10593 = vmatpush3.bf16.msra.mxu0 %v10912_v35 }
 0x477   : > { %10622 = vmatprep.subr.bf16.mxu0 %v13951_v21 }
 0x478   : > { %10609 = vmatpush3.bf16.msra.mxu1 %v10919_v4 }
 0x479   : > { %10595 = vmatmul.mubr.msk.bf16.vlgmr.msra.gmra.mxu0 %vm6063_vm4, %v13864_v58  ;;  %10610 = vmatprep.subr.bf16.mxu1 %v13951_v21 }
 0x47a   : > { %10598 = vmatprep.mubr.msk.bf16.mxu0 %vm6063_vm4, %v13888_v40  ;;  %10623 = vmatpush3.bf16.msra.mxu0 %v10914_v5 }
 0x47b   : > { %10624 = vmatprep.subr.bf16.mxu0 %v13951_v21 }
 0x47c   : > { %10611 = vmatpush3.bf16.msra.mxu1 %v10921_v14 }
 0x47d   : > { %10612 = vmatprep.subr.bf16.mxu1 %v13951_v21 }
 0x47e   : > { %10625 = vmatpush3.bf16.msra.mxu0 %v10916_v51 }
 0x47f   : > { %10626 = vmatprep.subr.bf16.mxu0 %v13951_v21 }
 0x480   : > { %10613 = vmatpush3.bf16.msra.mxu1 %v10923_v6 }
 0x481   : > { %10599 = vmatmul.mubr.msk.bf16.gmra.mxu0 %vm6063_vm4, %v7193_v31  ;;  %10614 = vmatprep.subr.bf16.mxu1 %v13951_v21 }
 0x482   : > { %10627 = vmatpush3.bf16.msra.mxu0 %v10918_v0  ;;  %10638 = vmatprep.mubr.msk.bf16.mxu0 %vm11071_vm5, %v13951_v21 }
 0x483   : > { %10628 = vmatprep.subr.bf16.mxu0 %v13951_v21 }
 0x484   : > { %10615 = vmatpush3.bf16.msra.mxu1 %v10925_v7 }
 0x485   : > { %10616 = vmatprep.subr.bf16.mxu1 %v13951_v21 }
 0x486   : > { %10629 = vmatpush3.bf16.msra.mxu0 %v10920_v53 }
 0x487   : > { %10630 = vmatprep.subr.bf16.mxu0 %v13951_v21 }
 0x488   : > { %10617 = vmatpush3.bf16.msra.mxu1 %v10927_v34 }
 0x489   : > { %10642 = vmatprep.subr.bf16.mxu1 %v13951_v21 }
 0x48a   : > { %10631 = vmatpush3.bf16.msra.mxu0 %v10922_v2 }
 0x48b   : > { %10632 = vmatprep.subr.bf16.mxu0 %v13951_v21 }
 0x48e   : > { %10633 = vmatpush3.bf16.msra.mxu0 %v10924_v42 }
 0x48f   : > { %10634 = vmatprep.subr.bf16.mxu0 %v13951_v21 }
 0x492   : > { %10635 = vmatpush3.bf16.msra.mxu0 %v10926_v24 }
 0x493   : > { %10636 = vmatprep.subr.bf16.mxu0 %v13951_v21 }
 0x496   : > { %10637 = vmatpush3.bf16.msra.mxu0 %v10928_v23 }
 0x497   : > { %10662 = vmatprep.subr.bf16.mxu0 %v13951_v21 }
 0x4e1   : > { %v10468_v44 = vpop.f32.mrf.mxu0 }
 0x4e2   : > { %v10484_v13 = vpop.f32.mrf.mxu1 }
 0x4e3   : > { %v6269_v46 = vpop.f32.mrf.mxu0  ;;  %v6379_v15 = vadd.f32 %v10484_v13, %v10468_v44 }
 0x4e4   : > { %v6370_v10 = vpop.f32.mrf.mxu1 }
 0x4e5   : > { %v10469_v43 = vpop.f32.mrf.mxu0  ;;  %v6371_v5 = vadd.f32 %v6370_v10, %v6269_v46 }
 0x4e6   : > { %v10485_v47 = vpop.f32.mrf.mxu1 }
 0x4e7   : > { %v6272_v58 = vpop.f32.mrf.mxu0  ;;  %v6382_v0 = vadd.f32 %v10485_v47, %v10469_v43 }
 0x4e8   : > { %v6373_v63 = vpop.f32.mrf.mxu1 }
 0x4e9   : > { %v6374_v2 = vadd.f32 %v6373_v63, %v6272_v58 }
 0x501   : > { %v10472_v16 = vpop.f32.mrf.mxu0 }
 0x502   : > { %v10488_v27 = vpop.f32.mrf.mxu1 }
 0x503   : > { %v6285_v61 = vpop.f32.mrf.mxu0  ;;  %v6395_v34 = vadd.f32 %v10488_v27, %v10472_v16 }
 0x504   : > { %v6386_v38 = vpop.f32.mrf.mxu1 }
 0x505   : > { %v10473_v28 = vpop.f32.mrf.mxu0  ;;  %v6387_v21 = vadd.f32 %v6386_v38, %v6285_v61 }
 0x506   : > { %v10489_v57 = vpop.f32.mrf.mxu1 }
 0x507   : > { %v14045_v26 = vpop.f32.mrf.mxu0 }
 0x508   : > { %v6389_v40 = vpop.f32.mrf.mxu1 }
 0x509   : > { %v10500_v17 = vpop.f32.mrf.mxu0  ;;  %v6390_v63 = vadd.f32 %v6389_v40, %v14045_v26 }
 0x50a   : > { %v10516_v30 = vpop.f32.mrf.mxu1  ;;  %v6525_v59 = vadd.f32 %v10500_v17, %v6379_v15  ;;  %v6398_v15 = vadd.f32 %v10489_v57, %v10473_v28 }
 0x50b   : > { %v6492_v37 = vpop.f32.mrf.mxu0 }
 0x50c   : > { %v6622_v8 = vpop.f32.mrf.mxu1  ;;  %v6523_v4 = vadd.f32 %v6492_v37, %v6371_v5  ;;  %v6655_v6 = vadd.f32 %v10516_v30, %v6525_v59 }
 0x50d   : > { %v10501_v54 = vpop.f32.mrf.mxu0 }
 0x50e   : > { %v10517_v22 = vpop.f32.mrf.mxu1  ;;  %v6526_v42 = vadd.f32 %v10501_v54, %v6382_v0  ;;  %v6653_v23 = vadd.f32 %v6622_v8, %v6523_v4 }
 0x50f   : > { %v6495_v29 = vpop.f32.mrf.mxu0 }
 0x510   : > { %v6625_v33 = vpop.f32.mrf.mxu1  ;;  %v6524_v44 = vadd.f32 %v6495_v29, %v6374_v2  ;;  %v6656_v46 = vadd.f32 %v10517_v22, %v6526_v42 }
 0x511   : > { %v10504_v9 = vpop.f32.mrf.mxu0 }
 0x512   : > { %v10520_v12 = vpop.f32.mrf.mxu1  ;;  %v6529_v10 = vadd.f32 %v10504_v9, %v6395_v34  ;;  %v6654_v37 = vadd.f32 %v6625_v33, %v6524_v44 }
 0x513   : > { %v6508_v62 = vpop.f32.mrf.mxu0 }
 0x514   : > { %v6638_v50 = vpop.f32.mrf.mxu1  ;;  %v6659_v16 = vadd.f32 %v10520_v12, %v6529_v10 }
 0x515   : > { %v10505_v32 = vpop.f32.mrf.mxu0 }
 0x516   : > { %v10521_v55 = vpop.f32.mrf.mxu1  ;;  %v6530_v30 = vadd.f32 %v10505_v32, %v6398_v15 }
 0x517   : > { %v6511_v36 = vpop.f32.mrf.mxu0 }
 0x518   : > { %v14047_v52 = vpop.f32.mrf.mxu1  ;;  %v6528_v38 = vadd.f32 %v6511_v36, %v6390_v63  ;;  %v6660_v57 = vadd.f32 %v10521_v55, %v6530_v30  ;;  %v9137_v55 = vld [vmem:[%s14401_s6] ss:$0 sm:$0xff] }
 0x519   : > { %v10532_v18 = vpop.f32.mrf.mxu0 }
 0x51a   : > { %v6785_v13 = vadd.f32 %v10532_v18, %v6655_v6  ;;  %v6658_v26 = vadd.f32 %v14047_v52, %v6528_v38 }
 0x51b   : > { %v10548_v49 = vpop.f32.mrf.mxu1  ;;  %v6752_v1 = vpop.f32.mrf.mxu0 }
 0x51c   : > { %v6783_v17 = vadd.f32 %v6752_v1, %v6653_v23  ;;  %v6915_v5 = vadd.f32 %v10548_v49, %v6785_v13 }
 0x51d   : > { %v6882_v39 = vpop.f32.mrf.mxu1  ;;  %v10533_v60 = vpop.f32.mrf.mxu0 }
 0x51e   : > { %v6786_v58 = vadd.f32 %v10533_v60, %v6656_v46  ;;  %v6913_v27 = vadd.f32 %v6882_v39, %v6783_v17 }
 0x51f   : > { %v10549_v11 = vpop.f32.mrf.mxu1  ;;  %v6755_v25 = vpop.f32.mrf.mxu0 }
 0x520   : > { %v6784_v8 = vadd.f32 %v6755_v25, %v6654_v37  ;;  %v6916_v18 = vadd.f32 %v10549_v11, %v6786_v58 }
 0x521   : > { %v6885_v45 = vpop.f32.mrf.mxu1  ;;  %v10536_v41 = vpop.f32.mrf.mxu0 }
 0x522   : > { %v6789_v28 = vadd.f32 %v10536_v41, %v6659_v16  ;;  %v6914_v49 = vadd.f32 %v6885_v45, %v6784_v8 }
 0x523   : > { %v10552_v20 = vpop.f32.mrf.mxu1  ;;  %v6768_v3 = vpop.f32.mrf.mxu0 }
 0x524   : > { %v6919_v39 = vadd.f32 %v10552_v20, %v6789_v28 }
 0x525   : > { %v6898_v35 = vpop.f32.mrf.mxu1  ;;  %v10537_v48 = vpop.f32.mrf.mxu0 }
 0x526   : > { %v6790_v40 = vadd.f32 %v10537_v48, %v6660_v57 }
 0x527   : > { %v14049_v31 = vpop.f32.mrf.mxu1  ;;  %v6771_v19 = vpop.f32.mrf.mxu0 }
 0x528   : > { %14740 = vst [vmem:[#allocation71_spill] sm:$0xff] %v14049_v31 }
 0x529   : > { %v14051_v51 = vpop.f32.mrf.mxu1  ;;  %v10564_v56 = vpop.f32.mrf.mxu0 }
 0x52a   : > { %14741 = vst [vmem:[#allocation65_spill] sm:$0xff] %v14051_v51  ;;  %v6527_v51 = vadd.f32 %v6508_v62, %v6387_v21  ;;  %v7046_v29 = vadd.f32 %v10564_v56, %v6915_v5 }
 0x52b   : > { %v10580_v53 = vpop.f32.mrf.mxu1  ;;  %v7013_v14 = vpop.f32.mrf.mxu0 }
 0x52c   : > { %v6657_v61 = vadd.f32 %v6638_v50, %v6527_v51  ;;  %v7044_v21 = vadd.f32 %v7013_v14, %v6913_v27  ;;  %v7176_v1 = vadd.f32 %v10580_v53, %v7046_v29  ;;  %v6788_v51 = vadd.f32 %v6771_v19, %v6658_v26 }
 0x52d   : > { %v7143_v7 = vpop.f32.mrf.mxu1  ;;  %v10565_v24 = vpop.f32.mrf.mxu0 }
 0x52e   : > { %v6787_v62 = vadd.f32 %v6768_v3, %v6657_v61  ;;  %v7047_v60 = vadd.f32 %v10565_v24, %v6916_v18  ;;  %v7174_v25 = vadd.f32 %v7143_v7, %v7044_v21 }
 0x52f   : > { %v7016_v31 = vpop.f32.mrf.mxu0  ;;  %v10581_v43 = vpop.f32.mrf.mxu1  ;;  %v14742_v56 = vld [vmem:[#allocation71_spill] sm:$0xff] }
 0x530   : > { %v7045_v50 = vadd.f32 %v7016_v31, %v6914_v49  ;;  %v6917_v59 = vadd.f32 %v6898_v35, %v6787_v62  ;;  %v7177_v41 = vadd.f32 %v10581_v43, %v7047_v60  ;;  %v6920_v0 = vadd.f32 %v14742_v56, %v6790_v40 }
 0x531   : > { %v10568_v47 = vpop.f32.mrf.mxu0  ;;  %v7146_v22 = vpop.f32.mrf.mxu1  ;;  %v14743_v31 = vld [vmem:[#allocation65_spill] sm:$0xff] }
 0x532   : > { %v7050_v45 = vadd.f32 %v10568_v47, %v6919_v39  ;;  %v7175_v53 = vadd.f32 %v7146_v22, %v7045_v50  ;;  %v6918_v2 = vadd.f32 %v14743_v31, %v6788_v51  ;;  %v10939_v31 = vld [vmem:[%s14402_s7 + $0xa0] sm:$0xff]  }
 0x533   : > { %v7029_v54 = vpop.f32.mrf.mxu0  ;;  %v10584_v12 = vpop.f32.mrf.mxu1 }
 0x534   : > { %v7048_v52 = vadd.f32 %v7029_v54, %v6917_v59  ;;  %v7180_v6 = vadd.f32 %v10584_v12, %v7050_v45 }
 0x535   : > { %v10569_v9 = vpop.f32.mrf.mxu0  ;;  %v7159_v48 = vpop.f32.mrf.mxu1 }
 0x536   : > { %v7051_v35 = vadd.f32 %v10569_v9, %v6920_v0  ;;  %v7178_v34 = vadd.f32 %v7159_v48, %v7048_v52  ;;  %v10934_v0 = vld [vmem:[%s14402_s7 + $0xf8] sm:$0xff]   ;;  %v10935_v48 = vld [vmem:[%s14402_s7 + $0xb0] sm:$0xff]  }
 0x537   : > { %v7032_v33 = vpop.f32.mrf.mxu0  ;;  %v10585_v23 = vpop.f32.mrf.mxu1 }
 0x538   : > { %v7049_v44 = vadd.f32 %v7032_v33, %v6918_v2  ;;  %v7181_v43 = vadd.f32 %v10585_v23, %v7051_v35  ;;  %v10940_v2 = vld [vmem:[%s14402_s7 + $0xe0] sm:$0xff]   ;;  %v10941_v35 = vld [vmem:[%s14402_s7 + $0x98] sm:$0xff]  }
 0x539   : > { %v10596_v32 = vpop.f32.mrf.mxu0  ;;  %v7162_v30 = vpop.f32.mrf.mxu1  ;;  %v10948_v23 = vld [vmem:[%s14402_s7 + $0xc0] sm:$0xff]  }
 0x53a   : > { %v7306_v36 = vadd.f32 %v10596_v32, %v7176_v1  ;;  %v7179_v16 = vadd.f32 %v7162_v30, %v7049_v44  ;;  %v10959_v30 = vld [vmem:[%s14402_s7 + $0x120] sm:$0xff]  }
 0x53b   : > { %v7273_v11 = vpop.f32.mrf.mxu0 }
 0x53c   : > { %v7304_v3 = vadd.f32 %v7273_v11, %v7174_v25  ;;  %v7321_v20 = vadd.f32 %v9137_v55, %v7306_v36  ;;  %v10933_v11 = vld [vmem:[%s14402_s7 + $0xb8] sm:$0xff]  }
 0x53d   : > { %v10597_v4 = vpop.f32.mrf.mxu0 }
 0x53e   : > { %v7307_v14 = vadd.f32 %v10597_v4, %v7177_v41  ;;  %v7319_v42 = vadd.f32 %v9137_v55, %v7304_v3  ;;  %v7329_v46 = vmax.f32 %v7321_v20, 0.0  ;;  %v14744_v4 = vld [vmem:[#allocation68_spill] sm:$0xff] }
 0x53f   : > { %v7276_v19 = vpop.f32.mrf.mxu0  ;;  %v10937_v20 = vld [vmem:[%s14402_s7 + $0xa8] sm:$0xff]  }
 0x540   : > { %v7322_v7 = vadd.f32 %v9137_v55, %v7307_v14  ;;  %v7305_v24 = vadd.f32 %v7276_v19, %v7175_v53  ;;  %v7327_v37 = vmax.f32 %v7319_v42, 0.0  ;;  %v10936_v53 = vld [vmem:[%s14402_s7 + $0xf0] sm:$0xff]   ;;  %v10938_v14 = vld [vmem:[%s14402_s7 + $0xe8] sm:$0xff]   ;;  %v10942_v19 = vld [vmem:[%s14402_s7 + $0xd8] sm:$0xff]  }
 0x541   : > { %v10600_v13 = vpop.f32.mrf.mxu0  ;;  %v10944_v42 = vld [vmem:[%s14402_s7 + $0xd0] sm:$0xff]  }
 0x542   : > { %v7330_v10 = vmax.f32 %v7322_v7, 0.0  ;;  %v7320_v17 = vadd.f32 %v9137_v55, %v7305_v24  ;;  %v7310_v15 = vadd.f32 %v10600_v13, %v7180_v6  ;;  %v10943_v6 = vld [vmem:[%s14402_s7 + $0x90] sm:$0xff]   ;;  %v10945_v7 = vld [vmem:[%s14402_s7 + $0x88] sm:$0xff]  }
 0x543   : > { %v7289_v47 = vpop.f32.mrf.mxu0  ;;  %v10946_v24 = vld [vmem:[%s14402_s7 + $0xc8] sm:$0xff]  }
 0x544   : > { %v7336_v5 = vmax.f32 %v7329_v46, %v7330_v10  ;;  %v7328_v58 = vmax.f32 %v7320_v17, 0.0  ;;  %v7308_v63 = vadd.f32 %v7289_v47, %v7178_v34  ;;  %v7325_v8 = vadd.f32 %v9137_v55, %v7310_v15  ;;  %v10947_v34 = vld [vmem:[%s14402_s7 + $0x80] sm:$0xff]   ;;  %v10953_v17 = vld [vmem:[%s14402_s7 + $0x138] sm:$0xff]  }
 0x545   : > { %v10601_v54 = vpop.f32.mrf.mxu0 }
 0x546   : > { %7340 = vst [vmem:[#allocation7 + $0x8] sm:$0xff] %v7336_v5  ;;  %v7335_v27 = vmax.f32 %v7327_v37, %v7328_v58  ;;  %v7311_v29 = vadd.f32 %v10601_v54, %v7181_v43  ;;  %v7323_v38 = vadd.f32 %v9137_v55, %v7308_v63  ;;  %v7333_v18 = vmax.f32 %v7325_v8, 0.0  ;;  %v10954_v43 = vld [vmem:[%s14402_s7 + $0x178] sm:$0xff]   ;;  %v10955_v37 = vld [vmem:[%s14402_s7 + $0x130] sm:$0xff]   ;;  %v10957_v58 = vld [vmem:[%s14402_s7 + $0x128] sm:$0xff]  }
 0x547   : > { %v7292_v61 = vpop.f32.mrf.mxu0  ;;  %v10956_v5 = vld [vmem:[%s14402_s7 + $0x170] sm:$0xff]   ;;  %v10958_v63 = vld [vmem:[%s14402_s7 + $0x168] sm:$0xff]   ;;  %v10960_v54 = vld [vmem:[%s14402_s7 + $0x160] sm:$0xff]  }
 0x548   : > { %7339 = vst [vmem:[#allocation7] sm:$0xff] %v7335_v27  ;;  %v7326_v22 = vadd.f32 %v9137_v55, %v7311_v29  ;;  %v7309_v9 = vadd.f32 %v7292_v61, %v7179_v16  ;;  %v7331_v57 = vmax.f32 %v7323_v38, 0.0  ;;  %v10961_v16 = vld [vmem:[%s14402_s7 + $0x118] sm:$0xff]   ;;  %v10963_v8 = vld [vmem:[%s14402_s7 + $0x110] sm:$0xff]   ;;  %v10965_v61 = vld [vmem:[%s14402_s7 + $0x108] sm:$0xff]  }
 0x549   : > { %v10962_v27 = vld [vmem:[%s14402_s7 + $0x158] sm:$0xff]   ;;  %v10964_v29 = vld [vmem:[%s14402_s7 + $0x150] sm:$0xff]   ;;  %v10966_v38 = vld [vmem:[%s14402_s7 + $0x148] sm:$0xff]  }
 0x54a   : > { %v7334_v28 = vmax.f32 %v7326_v22, 0.0  ;;  %v7324_v21 = vadd.f32 %v9137_v55, %v7309_v9  ;;  %v10967_v22 = vld [vmem:[%s14402_s7 + $0x100] sm:$0xff]  }
 0x54b   : > { %v10968_v9 = vld [vmem:[%s14402_s7 + $0x140] sm:$0xff]  }
 0x54c   : > { %v7338_v62 = vmax.f32 %v7333_v18, %v7334_v28  ;;  %v7332_v33 = vmax.f32 %v7324_v21, 0.0 }
 0x54d   : > { %v7345_v49 = vld [vmem:[#allocation7 + $0x8] ss:$2 sm:$0xf]  ;;  %v7353_v1 = vld [vmem:[#allocation7 + $0x9] ss:$2 sm:$0xf] }
 0x54e   : > { %v7359_v60 = vmax.f32 %v7345_v49, %v7353_v1  ;;  %7342 = vst [vmem:[#allocation7 + $0x18] sm:$0xff] %v7338_v62  ;;  %v7337_v26 = vmax.f32 %v7331_v57, %v7332_v33  ;;  %v10973_v62 = vld [vmem:[%s14402_s7 + $0x1b8] sm:$0xff]  }
 0x54f   : > { %v7343_v40 = vld [vmem:[#allocation7] ss:$2 sm:$0xf]  ;;  %v7351_v12 = vld [vmem:[#allocation7 + $0x1] ss:$2 sm:$0xf] }
 0x550   : > { %7382 = vst [vmem:[#allocation5 + $0x38] sm:$0xf] %v7359_v60  ;;  %v7358_v32 = vmax.f32 %v7343_v40, %v7351_v12  ;;  %7341 = vst [vmem:[#allocation7 + $0x10] sm:$0xff] %v7337_v26  ;;  %v10974_v49 = vld [vmem:[%s14402_s7 + $0x1f8] sm:$0xff]   ;;  %v10975_v60 = vld [vmem:[%s14402_s7 + $0x1b0] sm:$0xff]  }
 0x551   : > { %v10976_v26 = vld [vmem:[%s14402_s7 + $0x1f0] sm:$0xff]   ;;  %v10977_v40 = vld [vmem:[%s14402_s7 + $0x1a8] sm:$0xff]  }
 0x552   : > { %7381 = vst [vmem:[#allocation5 + $0x20] sm:$0xf] %v7358_v32  ;;  %v10978_v12 = vld [vmem:[%s14402_s7 + $0x1e8] sm:$0xff]   ;;  %v10979_v32 = vld [vmem:[%s14402_s7 + $0x1a0] sm:$0xff]  }
 0x555   : > { %v7349_v39 = vld [vmem:[#allocation7 + $0x18] ss:$2 sm:$0xf]  ;;  %v7357_v25 = vld [vmem:[#allocation7 + $0x19] ss:$2 sm:$0xf] }
 0x556   : > { %v7361_v50 = vmax.f32 %v7349_v39, %v7357_v25  ;;  %v10980_v39 = vld [vmem:[%s14402_s7 + $0x1e0] sm:$0xff]   ;;  %v10981_v25 = vld [vmem:[%s14402_s7 + $0x198] sm:$0xff]  }
 0x557   : > { %v7347_v36 = vld [vmem:[#allocation7 + $0x10] ss:$2 sm:$0xf]  ;;  %v7355_v59 = vld [vmem:[#allocation7 + $0x11] ss:$2 sm:$0xf] }
 0x558   : > { %7384 = vst [vmem:[#allocation5 + $0x68] sm:$0xf] %v7361_v50  ;;  %v7360_v51 = vmax.f32 %v7347_v36, %v7355_v59  ;;  %v10982_v50 = vld [vmem:[%s14402_s7 + $0x1d8] sm:$0xff]   ;;  %v10983_v36 = vld [vmem:[%s14402_s7 + $0x190] sm:$0xff]  }
 0x559   : > { %v10929_v55 = vld [vmem:[#allocation5 + $0x8] ss:$24 sps:$4 sm:$0xff]  }
 0x55a   : > { %7383 = vst [vmem:[#allocation5 + $0x50] sm:$0xf] %v7360_v51  ;;  %v10931_v45 = vld [vmem:[#allocation5 + $0x7] ss:$24 sps:$4 sm:$0xff]  }
 0x55b   : > { %v10949_v46 = vld [vmem:[#allocation5 + $0x9] ss:$24 sps:$4 sm:$0xff]   ;;  %v10985_v51 = vld [vmem:[%s14402_s7 + $0x188] sm:$0xff]  }
 0x55c   : > { %v10951_v10 = vld [vmem:[#allocation5 + $0x1f] ss:$24 sps:$4 sm:$0xff]  }
 0x55d   : > { %v10969_v21 = vld [vmem:[#allocation5 + $0x20] ss:$24 sps:$4 sm:$0xff]  }
 0x55e   : > { %v10971_v57 = vld [vmem:[#allocation5 + $0x21] ss:$24 sps:$4 sm:$0xff]  }
 0x55f   : > { %v10984_v59 = vld [vmem:[%s14402_s7 + $0x1d0] sm:$0xff]  }
 0x561   : > { %v10930_v41 = vld [vmem:[#allocation5 + $0x38] ss:$24 sps:$4 sm:$0xff]  }
 0x562   : > { %v10932_v3 = vld [vmem:[#allocation5 + $0x37] ss:$24 sps:$4 sm:$0xff]   ;;  %v7426_v56 = vpack.c.bf16 %v10930_v41, %v10929_v55 }
 0x563   : > { %v7397_v52 = vpack.c.bf16 %v10932_v3, %v10931_v45  ;;  %v10950_v44 = vld [vmem:[#allocation5 + $0x39] ss:$24 sps:$4 sm:$0xff]  }
 0x564   : > { %10619 = vmatmul.mubr.bf16.vlgmr.msra.gmra.mxu1 %v7426_v56  ;;  %v10952_v13 = vld [vmem:[#allocation5 + $0x4f] ss:$24 sps:$4 sm:$0xff]   ;;  %v7634_v15 = vpack.c.bf16 %v10950_v44, %v10949_v46  ;;  %v10986_v55 = vld [vmem:[%s14402_s7 + $0x1c8] sm:$0xff]  }
 0x565   : > { %10639 = vmatmul.mubr.bf16.vlgmr.msra.gmra.mxu0 %v7397_v52  ;;  %10643 = vmatpush3.bf16.msra.mxu1 %v10933_v11  ;;  %v7755_v47 = vpack.c.bf16 %v10952_v13, %v10951_v10  ;;  %v10970_v18 = vld [vmem:[#allocation5 + $0x50] ss:$24 sps:$4 sm:$0xff]  }
 0x566   : > { %10663 = vmatpush3.bf16.msra.mxu0 %v10934_v0  ;;  %10644 = vmatprep.subr.bf16.mxu1 %v14744_v4  ;;  %v10972_v28 = vld [vmem:[#allocation5 + $0x51] ss:$24 sps:$4 sm:$0xff]   ;;  %v7876_v33 = vpack.c.bf16 %v10970_v18, %v10969_v21 }
 0x567   : > { %10664 = vmatprep.subr.bf16.mxu0 %v14744_v4  ;;  %10658 = vmatprep.mubr.msk.bf16.mxu1 %vm11071_vm5, %v14744_v4  ;;  %v7997_v1 = vpack.c.bf16 %v10972_v28, %v10971_v57  ;;  %v10987_v11 = vld [vmem:[%s14402_s7 + $0x180] sm:$0xff]   ;;  %v10990_v56 = vld [vmem:[#allocation5 + $0x67] ss:$24 sps:$4 sm:$0xff]  }
 0x568   : > { %10678 = vmatprep.mubr.msk.bf16.mxu0 %vm11071_vm5, %v14744_v4  ;;  %v10988_v41 = vld [vmem:[%s14402_s7 + $0x1c0] sm:$0xff]   ;;  %v10992_v0 = vld [vmem:[#allocation5 + $0x68] ss:$24 sps:$4 sm:$0xff]  }
 0x569   : > { %10645 = vmatpush3.bf16.msra.mxu1 %v10935_v48  ;;  %v10989_v45 = vld [vmem:[#allocation5 + $0x37] ss:$24 sps:$4 sm:$0xff]   ;;  %v8492_v57 = vld [vmem:[%s14404_s9 + $0x10] sm:$0xff] }
 0x56a   : > { %10665 = vmatpush3.bf16.msra.mxu0 %v10936_v53  ;;  %10646 = vmatprep.subr.bf16.mxu1 %v14744_v4  ;;  %v10991_v3 = vld [vmem:[#allocation5 + $0x38] ss:$24 sps:$4 sm:$0xff]   ;;  %v10993_v52 = vld [vmem:[%s14402_s7 + $0x238] sm:$0xff]   ;;  %v8119_v48 = vpack.c.bf16 %v10990_v56, %v10989_v45 }
 0x56b   : > { %10666 = vmatprep.subr.bf16.mxu0 %v14744_v4  ;;  %v8240_v53 = vpack.c.bf16 %v10992_v0, %v10991_v3 }
 0x56d   : > { %10647 = vmatpush3.bf16.msra.mxu1 %v10937_v20  ;;  %v10994_v20 = vld [vmem:[%s14402_s7 + $0x230] sm:$0xff]  }
 0x56e   : > { %10667 = vmatpush3.bf16.msra.mxu0 %v10938_v14  ;;  %10648 = vmatprep.subr.bf16.mxu1 %v14744_v4  ;;  %v10995_v14 = vld [vmem:[%s14402_s7 + $0x228] sm:$0xff]  }
 0x56f   : > { %10668 = vmatprep.subr.bf16.mxu0 %v14744_v4 }
 0x571   : > { %10649 = vmatpush3.bf16.msra.mxu1 %v10939_v31  ;;  %v10996_v31 = vld [vmem:[%s14402_s7 + $0x220] sm:$0xff]  }
 0x572   : > { %10669 = vmatpush3.bf16.msra.mxu0 %v10940_v2  ;;  %10650 = vmatprep.subr.bf16.mxu1 %v14744_v4  ;;  %v10997_v2 = vld [vmem:[%s14402_s7 + $0x218] sm:$0xff]  }
 0x573   : > { %10670 = vmatprep.subr.bf16.mxu0 %v14744_v4 }
 0x575   : > { %10651 = vmatpush3.bf16.msra.mxu1 %v10941_v35  ;;  %v10998_v35 = vld [vmem:[%s14402_s7 + $0x210] sm:$0xff]  }
 0x576   : > { %10671 = vmatpush3.bf16.msra.mxu0 %v10942_v19  ;;  %10652 = vmatprep.subr.bf16.mxu1 %v14744_v4  ;;  %v10999_v19 = vld [vmem:[%s14402_s7 + $0x208] sm:$0xff]  }
 0x577   : > { %10672 = vmatprep.subr.bf16.mxu0 %v14744_v4 }
 0x579   : > { %10653 = vmatpush3.bf16.msra.mxu1 %v10943_v6  ;;  %v11000_v6 = vld [vmem:[%s14402_s7 + $0x200] sm:$0xff]  }
 0x57a   : > { %10673 = vmatpush3.bf16.msra.mxu0 %v10944_v42  ;;  %10654 = vmatprep.subr.bf16.mxu1 %v14744_v4  ;;  %v11001_v42 = vld [vmem:[#allocation5 + $0x39] ss:$24 sps:$4 sm:$0xff]  }
 0x57b   : > { %10674 = vmatprep.subr.bf16.mxu0 %v14744_v4 }
 0x57d   : > { %10655 = vmatpush3.bf16.msra.mxu1 %v10945_v7  ;;  %v11002_v7 = vld [vmem:[#allocation5 + $0x69] ss:$24 sps:$4 sm:$0xff]  }
 0x57e   : > { %10675 = vmatpush3.bf16.msra.mxu0 %v10946_v24  ;;  %10656 = vmatprep.subr.bf16.mxu1 %v14744_v4  ;;  %v8361_v24 = vpack.c.bf16 %v11002_v7, %v11001_v42 }
 0x57f   : > { %10676 = vmatprep.subr.bf16.mxu0 %v14744_v4 }
 0x581   : > { %10657 = vmatpush3.bf16.msra.mxu1 %v10947_v34  ;;  %v8505_v34 = vld [vmem:[%s14404_s9 + $0x78] sm:$0xff] }
 0x582   : > { %10677 = vmatpush3.bf16.msra.mxu0 %v10948_v23  ;;  %10682 = vmatprep.subr.bf16.mxu1 %v14744_v4  ;;  %v8504_v23 = vld [vmem:[%s14404_s9 + $0x70] sm:$0xff] }
 0x583   : > { %10702 = vmatprep.subr.bf16.mxu0 %v14744_v4 }
 0x584   : > { %10659 = vmatmul.mubr.bf16.vlgmr.msra.gmra.mxu1 %v7634_v15 }
 0x585   : > { %10679 = vmatmul.mubr.bf16.vlgmr.msra.gmra.mxu0 %v7755_v47  ;;  %10683 = vmatpush3.bf16.msra.mxu1 %v10953_v17  ;;  %v8503_v47 = vld [vmem:[%s14404_s9 + $0x68] sm:$0xff] }
 0x586   : > { %10703 = vmatpush3.bf16.msra.mxu0 %v10954_v43  ;;  %10684 = vmatprep.subr.bf16.mxu1 %v14744_v4 }
 0x587   : > { %10704 = vmatprep.subr.bf16.mxu0 %v14744_v4  ;;  %10698 = vmatprep.mubr.msk.bf16.mxu1 %vm11071_vm5, %v14744_v4 }
 0x588   : > { %10718 = vmatprep.mubr.msk.bf16.mxu0 %vm11071_vm5, %v14744_v4 }
 0x589   : > { %10685 = vmatpush3.bf16.msra.mxu1 %v10955_v37  ;;  %v8502_v37 = vld [vmem:[%s14404_s9 + $0x60] sm:$0xff] }
 0x58a   : > { %10705 = vmatpush3.bf16.msra.mxu0 %v10956_v5  ;;  %10686 = vmatprep.subr.bf16.mxu1 %v14744_v4 }
 0x58b   : > { %10706 = vmatprep.subr.bf16.mxu0 %v14744_v4 }
 0x58d   : > { %10687 = vmatpush3.bf16.msra.mxu1 %v10957_v58 }
 0x58e   : > { %10707 = vmatpush3.bf16.msra.mxu0 %v10958_v63  ;;  %10688 = vmatprep.subr.bf16.mxu1 %v14744_v4 }
 0x58f   : > { %10708 = vmatprep.subr.bf16.mxu0 %v14744_v4 }
 0x591   : > { %10689 = vmatpush3.bf16.msra.mxu1 %v10959_v30  ;;  %v8501_v30 = vld [vmem:[%s14404_s9 + $0x58] sm:$0xff] }
 0x592   : > { %10709 = vmatpush3.bf16.msra.mxu0 %v10960_v54  ;;  %10690 = vmatprep.subr.bf16.mxu1 %v14744_v4  ;;  %v8500_v54 = vld [vmem:[%s14404_s9 + $0x50] sm:$0xff] }
 0x593   : > { %10710 = vmatprep.subr.bf16.mxu0 %v14744_v4 }
 0x595   : > { %10691 = vmatpush3.bf16.msra.mxu1 %v10961_v16  ;;  %v8499_v16 = vld [vmem:[%s14404_s9 + $0x48] sm:$0xff] }
 0x596   : > { %10711 = vmatpush3.bf16.msra.mxu0 %v10962_v27  ;;  %10692 = vmatprep.subr.bf16.mxu1 %v14744_v4  ;;  %v8498_v27 = vld [vmem:[%s14404_s9 + $0x40] sm:$0xff] }
 0x597   : > { %10712 = vmatprep.subr.bf16.mxu0 %v14744_v4 }
 0x599   : > { %10693 = vmatpush3.bf16.msra.mxu1 %v10963_v8  ;;  %v8497_v8 = vld [vmem:[%s14404_s9 + $0x38] sm:$0xff] }
 0x59a   : > { %10713 = vmatpush3.bf16.msra.mxu0 %v10964_v29  ;;  %10694 = vmatprep.subr.bf16.mxu1 %v14744_v4  ;;  %v8496_v29 = vld [vmem:[%s14404_s9 + $0x30] sm:$0xff] }
 0x59b   : > { %10714 = vmatprep.subr.bf16.mxu0 %v14744_v4 }
 0x59d   : > { %10695 = vmatpush3.bf16.msra.mxu1 %v10965_v61  ;;  %v8495_v61 = vld [vmem:[%s14404_s9 + $0x28] sm:$0xff] }
 0x59e   : > { %10715 = vmatpush3.bf16.msra.mxu0 %v10966_v38  ;;  %10696 = vmatprep.subr.bf16.mxu1 %v14744_v4  ;;  %v8494_v38 = vld [vmem:[%s14404_s9 + $0x20] sm:$0xff] }
 0x59f   : > { %10716 = vmatprep.subr.bf16.mxu0 %v14744_v4 }
 0x5a1   : > { %10697 = vmatpush3.bf16.msra.mxu1 %v10967_v22 }
 0x5a2   : > { %10717 = vmatpush3.bf16.msra.mxu0 %v10968_v9  ;;  %10722 = vmatprep.subr.bf16.mxu1 %v14744_v4  ;;  %v8493_v9 = vld [vmem:[%s14404_s9 + $0x18] sm:$0xff] }
 0x5a3   : > { %10742 = vmatprep.subr.bf16.mxu0 %v14744_v4 }
 0x5a4   : > { %10699 = vmatmul.mubr.bf16.vlgmr.msra.gmra.mxu1 %v7876_v33 }
 0x5a5   : > { %10719 = vmatmul.mubr.bf16.vlgmr.msra.gmra.mxu0 %v7997_v1  ;;  %10723 = vmatpush3.bf16.msra.mxu1 %v10973_v62  ;;  %v8491_v1 = vld [vmem:[%s14404_s9 + $0x8] sm:$0xff] }
 0x5a6   : > { %10743 = vmatpush3.bf16.msra.mxu0 %v10974_v49  ;;  %10724 = vmatprep.subr.bf16.mxu1 %v14744_v4 }
 0x5a7   : > { %10744 = vmatprep.subr.bf16.mxu0 %v14744_v4  ;;  %10738 = vmatprep.mubr.msk.bf16.mxu1 %vm11071_vm5, %v14744_v4 }
 0x5a8   : > { %10758 = vmatprep.mubr.msk.bf16.mxu0 %vm11071_vm5, %v14744_v4 }
 0x5a9   : > { %10725 = vmatpush3.bf16.msra.mxu1 %v10975_v60 }
 0x5aa   : > { %10745 = vmatpush3.bf16.msra.mxu0 %v10976_v26  ;;  %10726 = vmatprep.subr.bf16.mxu1 %v14744_v4 }
 0x5ab   : > { %10746 = vmatprep.subr.bf16.mxu0 %v14744_v4 }
 0x5ad   : > { %10727 = vmatpush3.bf16.msra.mxu1 %v10977_v40 }
 0x5ae   : > { %10747 = vmatpush3.bf16.msra.mxu0 %v10978_v12  ;;  %10728 = vmatprep.subr.bf16.mxu1 %v14744_v4  ;;  %v8490_v12 = vld [vmem:[%s14404_s9] sm:$0xff] }
 0x5af   : > { %10748 = vmatprep.subr.bf16.mxu0 %v14744_v4 }
 0x5b1   : > { %10729 = vmatpush3.bf16.msra.mxu1 %v10979_v32 }
 0x5b2   : > { %10749 = vmatpush3.bf16.msra.mxu0 %v10980_v39  ;;  %10730 = vmatprep.subr.bf16.mxu1 %v14744_v4 }
 0x5b3   : > { %10750 = vmatprep.subr.bf16.mxu0 %v14744_v4 }
 0x5b5   : > { %10731 = vmatpush3.bf16.msra.mxu1 %v10981_v25 }
 0x5b6   : > { %10751 = vmatpush3.bf16.msra.mxu0 %v10982_v50  ;;  %10732 = vmatprep.subr.bf16.mxu1 %v14744_v4 }
 0x5b7   : > { %10752 = vmatprep.subr.bf16.mxu0 %v14744_v4 }
 0x5b9   : > { %10733 = vmatpush3.bf16.msra.mxu1 %v10983_v36 }
 0x5ba   : > { %10753 = vmatpush3.bf16.msra.mxu0 %v10984_v59  ;;  %10734 = vmatprep.subr.bf16.mxu1 %v14744_v4 }
 0x5bb   : > { %10754 = vmatprep.subr.bf16.mxu0 %v14744_v4 }
 0x5bd   : > { %10735 = vmatpush3.bf16.msra.mxu1 %v10985_v51 }
 0x5be   : > { %10755 = vmatpush3.bf16.msra.mxu0 %v10986_v55  ;;  %10736 = vmatprep.subr.bf16.mxu1 %v14744_v4 }
 0x5bf   : > { %10756 = vmatprep.subr.bf16.mxu0 %v14744_v4 }
 0x5c1   : > { %10737 = vmatpush3.bf16.msra.mxu1 %v10987_v11 }
 0x5c2   : > { %10757 = vmatpush3.bf16.msra.mxu0 %v10988_v41  ;;  %10762 = vmatprep.subr.bf16.mxu1 %v14744_v4 }
 0x5c3   : > { %10782 = vmatprep.subr.mxu0 %v14744_v4 }
 0x5c4   : > { %10739 = vmatmul.mubr.bf16.vlgmr.msra.gmra.mxu1 %v8119_v48 }
 0x5c5   : > { %10759 = vmatmul.mubr.bf16.vlgmr.msra.gmra.mxu0 %v8240_v53  ;;  %10763 = vmatpush3.bf16.msra.mxu1 %v10993_v52 }
 0x5c6   : > { %10764 = vmatprep.subr.bf16.mxu1 %v14744_v4  ;;  %10778 = vmatprep.mubr.msk.bf16.mxu1 %vm11071_vm5, %v14744_v4 }
 0x5c7   : > { %10814 = vmatprep.mubr.msk.f32.mxu0 %vm11071_vm5, %v14744_v4  ;;  %10783 = vmatpush3.msra.mxu0 %v8505_v34  ;;  %v9338_v34 = vld [vmem:[%s14403_s8] ss:$0 sm:$0xff] }
 0x5c8   : > { %10784 = vmatprep.subr.mxu0 %v14744_v4 }
 0x5c9   : > { %10765 = vmatpush3.bf16.msra.mxu1 %v10994_v20  ;;  %10785 = vmatpush3.msra.mxu0 %v8504_v23 }
 0x5ca   : > { %10766 = vmatprep.subr.bf16.mxu1 %v14744_v4  ;;  %10786 = vmatprep.subr.mxu0 %v14744_v4 }
 0x5cb   : > { %10787 = vmatpush3.msra.mxu0 %v8503_v47 }
 0x5cd   : > { %10767 = vmatpush3.bf16.msra.mxu1 %v10995_v14 }
 0x5ce   : > { %10768 = vmatprep.subr.bf16.mxu1 %v14744_v4 }
 0x5d1   : > { %10769 = vmatpush3.bf16.msra.mxu1 %v10996_v31 }
 0x5d2   : > { %10770 = vmatprep.subr.bf16.mxu1 %v14744_v4 }
 0x5d5   : > { %10771 = vmatpush3.bf16.msra.mxu1 %v10997_v2 }
 0x5d6   : > { %10772 = vmatprep.subr.bf16.mxu1 %v14744_v4 }
 0x5d9   : > { %10773 = vmatpush3.bf16.msra.mxu1 %v10998_v35 }
 0x5da   : > { %10774 = vmatprep.subr.bf16.mxu1 %v14744_v4 }
 0x5dd   : > { %10775 = vmatpush3.bf16.msra.mxu1 %v10999_v19 }
 0x5de   : > { %10776 = vmatprep.subr.bf16.mxu1 %v14744_v4  ;;  %v11006_v4 = vld [vmem:[#allocation5] sm:$0xff] }
 0x5df   : > { %10788 = vmatprep.subr.mxu0 %v11006_v4 }
 0x5e0   : > { %10789 = vmatpush3.msra.mxu0 %v8502_v37 }
 0x5e1   : > { %10777 = vmatpush3.bf16.msra.mxu1 %v11000_v6  ;;  %10790 = vmatprep.subr.mxu0 %v11006_v4 }
 0x5e2   : > { %10791 = vmatpush3.msra.mxu0 %v8501_v30 }
 0x5e3   : > { %10792 = vmatprep.subr.mxu0 %v11006_v4 }
 0x5e4   : > { %10779 = vmatmul.mubr.bf16.vlgmr.msra.gmra.mxu1 %v8361_v24  ;;  %10793 = vmatpush3.msra.mxu0 %v8500_v54 }
 0x5e5   : > { %10794 = vmatprep.subr.mxu0 %v11006_v4 }
 0x5e6   : > { %10795 = vmatpush3.msra.mxu0 %v8499_v16 }
 0x5e7   : > { %10796 = vmatprep.subr.mxu0 %v11006_v4 }
 0x5e8   : > { %10797 = vmatpush3.msra.mxu0 %v8498_v27  ;;  %v8506_v27 = vld [vmem:[%s14405_s10] sm:$0x1] }
 0x5e9   : > { %10798 = vmatprep.subr.mxu0 %v11006_v4 }
 0x5ea   : > { %10799 = vmatpush3.msra.mxu0 %v8497_v8 }
 0x5eb   : > { %10800 = vmatprep.subr.mxu0 %v11006_v4 }
 0x5ec   : > { %10801 = vmatpush3.msra.mxu0 %v8496_v29 }
 0x5ed   : > { %10802 = vmatprep.subr.mxu0 %v11006_v4 }
 0x5ee   : > { %10803 = vmatpush3.msra.mxu0 %v8495_v61 }
 0x5ef   : > { %10804 = vmatprep.subr.mxu0 %v11006_v4 }
 0x5f0   : > { %10805 = vmatpush3.msra.mxu0 %v8494_v38 }
 0x5f1   : > { %10806 = vmatprep.subr.mxu0 %v11006_v4 }
 0x5f2   : > { %10807 = vmatpush3.msra.mxu0 %v8493_v9 }
 0x5f3   : > { %10808 = vmatprep.subr.mxu0 %v11006_v4 }
 0x5f4   : > { %10809 = vmatpush3.msra.mxu0 %v8492_v57 }
 0x5f5   : > { %10810 = vmatprep.subr.mxu0 %v11006_v4 }
 0x5f6   : > { %10811 = vmatpush3.msra.mxu0 %v8491_v1 }
 0x5f7   : > { %10812 = vmatprep.subr.mxu0 %v11006_v4 }
 0x5f8   : > { %10813 = vmatpush3.msra.mxu0 %v8490_v12 }
 0x624   : > { %v7526_v44 = vpop.f32.mrf.mxu1 }
 0x625   : > { %v7615_v13 = vpop.f32.mrf.mxu0 }
 0x626   : > { %v7616_v46 = vadd.f32 %v7615_v13, %v7526_v44  ;;  %v10620_v10 = vpop.f32.mrf.mxu1 }
 0x627   : > { %v10640_v17 = vpop.f32.mrf.mxu0 }
 0x628   : > { %v7529_v15 = vpop.f32.mrf.mxu1 }
 0x629   : > { %v7618_v43 = vpop.f32.mrf.mxu0 }
 0x62a   : > { %v7619_v5 = vadd.f32 %v7618_v43, %v7529_v15  ;;  %v10621_v58 = vpop.f32.mrf.mxu1 }
 0x62b   : > { %v10641_v63 = vpop.f32.mrf.mxu0 }
 0x644   : > { %v7734_v22 = vpop.f32.mrf.mxu1 }
 0x645   : > { %v7741_v18 = vadd.f32 %v7734_v22, %v7616_v46  ;;  %v7855_v28 = vpop.f32.mrf.mxu0 }
 0x646   : > { %v10660_v21 = vpop.f32.mrf.mxu1 }
 0x647   : > { %v7862_v62 = vadd.f32 %v7855_v28, %v7741_v18  ;;  %v10680_v33 = vpop.f32.mrf.mxu0 }
 0x648   : > { %v7737_v49 = vpop.f32.mrf.mxu1 }
 0x649   : > { %v7742_v60 = vadd.f32 %v7737_v49, %v7619_v5  ;;  %v7858_v26 = vpop.f32.mrf.mxu0 }
 0x64a   : > { %v10661_v40 = vpop.f32.mrf.mxu1 }
 0x64b   : > { %v7863_v32 = vadd.f32 %v7858_v26, %v7742_v60  ;;  %v10681_v39 = vpop.f32.mrf.mxu0 }
 0x664   : > { %v7976_v25 = vpop.f32.mrf.mxu1 }
 0x665   : > { %v8097_v50 = vpop.f32.mrf.mxu0  ;;  %v7983_v14 = vadd.f32 %v7976_v25, %v7862_v62 }
 0x666   : > { %v10700_v36 = vpop.f32.mrf.mxu1 }
 0x667   : > { %v10720_v59 = vpop.f32.mrf.mxu0  ;;  %v8104_v31 = vadd.f32 %v8097_v50, %v7983_v14 }
 0x668   : > { %v7979_v51 = vpop.f32.mrf.mxu1 }
 0x669   : > { %v8100_v55 = vpop.f32.mrf.mxu0  ;;  %v7984_v2 = vadd.f32 %v7979_v51, %v7863_v32 }
 0x66a   : > { %v10701_v11 = vpop.f32.mrf.mxu1 }
 0x66b   : > { %v10721_v41 = vpop.f32.mrf.mxu0  ;;  %v8105_v19 = vadd.f32 %v8100_v55, %v7984_v2 }
 0x684   : > { %v8219_v45 = vpop.f32.mrf.mxu1 }
 0x685   : > { %v8340_v3 = vpop.f32.mrf.mxu0  ;;  %v8226_v35 = vadd.f32 %v8219_v45, %v8104_v31 }
 0x686   : > { %v10740_v56 = vpop.f32.mrf.mxu1 }
 0x687   : > { %v10760_v0 = vpop.f32.mrf.mxu0  ;;  %v8347_v6 = vadd.f32 %v8340_v3, %v8226_v35 }
 0x688   : > { %v8222_v52 = vpop.f32.mrf.mxu1 }
 0x689   : > { %v8343_v48 = vpop.f32.mrf.mxu0  ;;  %v8227_v42 = vadd.f32 %v8222_v52, %v8105_v19 }
 0x68a   : > { %v10741_v53 = vpop.f32.mrf.mxu1 }
 0x68b   : > { %v10761_v20 = vpop.f32.mrf.mxu0  ;;  %v8348_v44 = vadd.f32 %v8343_v48, %v8227_v42 }
 0x6a4   : > { %v8461_v7 = vpop.f32.mrf.mxu1 }
 0x6a5   : > { %v8468_v24 = vadd.f32 %v8461_v7, %v8347_v6 }
 0x6a6   : > { %v10780_v23 = vpop.f32.mrf.mxu1 }
 0x6a7   : > { %v8477_v46 = vadd.f32 %v9338_v34, %v8468_v24 }
 0x6a8   : > { %v8464_v13 = vpop.f32.mrf.mxu1 }
 0x6a9   : > { %v8469_v10 = vadd.f32 %v8464_v13, %v8348_v44  ;;  %v8479_v43 = vmax.f32 %v8477_v46, 0.0 }
 0x6aa   : > { %v10781_v17 = vpop.f32.mrf.mxu1 }
 0x6ab   : > { %v8478_v15 = vadd.f32 %v9338_v34, %v8469_v10 }
 0x6ad   : > { %v8480_v47 = vmax.f32 %v8478_v15, 0.0 }
 0x6af   : > { %v8481_v37 = vadd.f32 %v8480_v47, %v8479_v43 }
 0x6b1   : > { %v8482_v5 = vrot.slane %v8481_v37, 4 }
 0x6b3   : > { %v8483_v58 = vadd.f32 %v8482_v5, %v8481_v37 }
 0x6b5   : > { %v8484_v63 = vrot.slane %v8483_v58, 2 }
 0x6b7   : > { %v8485_v4 = vadd.f32 %v8484_v63, %v8483_v58 }
 0x6b9   : > { %v8486_v30 = vrot.slane %v8485_v4, 1 }
 0x6bb   : > { %v8487_v54 = vadd.f32 %v8486_v30, %v8485_v4 }
 0x6bd   : > { %v8489_v16 = vmul.f32 0.0625, %v8487_v54 }
 0x6bf   : > { %10815 = vmatmul.mubr.f32.vlgmr.msra.gmra.mxu0 %v8489_v16 }
 0x77f   : > { %v8573_v8 = vpop.f32.mrf.mxu0 }
 0x780   : > { %v8574_v29 = vadd.f32 %v8573_v8, %v8506_v27 }
 0x781   : > { %v10816_v61 = vpop.f32.mrf.mxu0 }
 0x782   : > { %8578 = vst.msk [vmem:[%s378_s25] sm:$0x1] %vm8577_vm6, %v8574_v29 }
 0x783   : > { %11020 = shalt.err (!%p11017_p3)
}
 0x784   : > { %s11021_s24 = scalar_lea.hbm %s14360_s13, 16  ;;  %s11025_s30 = scalar_lea.hbm %s14406_s11, 32 }
 0x785   : > { %p11022_p4 = scmp.ne.s32.totalorder %s14360_s13, %s11021_s24  ;;  %p11026_p9 = scmp.lt.s32.totalorder %s14360_s13, %s14406_s11 }
 0x786   : > { %p11027_p10 = scmp.lt.s32.totalorder %s11025_s30, %s11021_s24 }
 0x787   : > { %p11023_p7 = pnand %p11022_p4, %p11171_p5 }
 0x788   : > { %p11028_p11 = por %p11027_p10, %p11026_p9 }
 0x789   : > { %p11024_p8 = pneg %p11023_p7 }
 0x78b   : > { %p11029_p12 = pnand %p11028_p11, %p11024_p8 }
 0x78d   : > { %11032 = shalt.err (!%p11029_p12)
}
 0x78e   : > { %10817 = dma.vmem_to_hbm [thread:$0]  (%p11171_p5), %s8593_s29, 16, %s14360_s13, %s8580_s14  }
 0x78f PF: > { %p10823_p13 = scmp.ge.s32.totalorder %s11067_s20, 2  ;;  %s8604_s0 = sand.u32 1, %s11055_s17  }
 0x790   : > { %s8605_s16 = scalar_lea.sflag [#allocation9], %s8604_s0 }
 0x791   : > { %p10820_p0 = pnand %p10823_p13, %p11175_p6 }
 0x793   : > { %p10821_p1 = pneg %p10820_p0 }
 0x795   : > { %11050 = dma.done.wait (%p10821_p1), %s8605_s16, 16  }
 0x796   : > { %11052 = vsyncadd (%p10821_p1), %s8605_s16, 4294967280  ;;  %p21_p2 = scmp.ge.s32.totalorder %s11158_s23, 4   ;;  %s14745_s17 = smov %s11059_s18 }
 0x797   : > { %s14746_s18 = smov %s11063_s19  ;;  %s14747_s19 = smov %s11169_s26 }
 0x798   : > { %s14748_s20 = smov %s11158_s23  ;;  %23 = sbr.rel (!%p21_p2) target bundleno = 5 (0x5), region = 161 }
 0x79d   :  { %8609 = vsyncpa [#allocation9], 1 }
 0x79e   :  { %8611 = vsyncpa [#allocation9 + $0x1], 1 }

</bundles_post_ra>
